<compile_context>
chip_gen: v7x
topology: tpu7x:2x2x1
jax: 0.10.0
libtpu: 0.0.40
codegen_flags: <defaults>
</compile_context>

<pallas_src>
import functools

import jax
import jax.numpy as jnp
import numpy as np
from jax import lax
from jax.experimental import pallas as pl
from jax.experimental.pallas import tpu as pltpu

EPS = 1e-5  # PyTorch GroupNorm default eps
BF16 = jnp.bfloat16


# ------------------------------- shared math --------------------------------
def _dot(a, b):
    return jnp.dot(a, b, preferred_element_type=jnp.float32)


def _dot_nt(a, b):
    # a @ b.T (contract last dims of both) without materialising an explicit transpose.
    return lax.dot_general(a, b, (((1,), (1,)), ((), ())),
                           preferred_element_type=jnp.float32)


def _cell_math(patches, c, m,
               wc, gn_pack, wqkv, wkv2, wz_h, wz_m, wm_z, wm_h, bias_pack,
               *, hid):
    """Single batch element.

    patches: (N, Kp) bf16 im2col of cat[x, h];  c, m: (N, hid) f32.
    wc: (Kp, 4*hid) bf16; gn_pack: (3, 4*hid) = [bc; gamma; beta] f32.
    wqkv: (hid, 3*hid) = [wq|wk|wv] bf16; wkv2: (hid, 2*hid) = [wk2|wv2] bf16.
    wz_h/wz_m: (hid, 2*hid) bf16 (row split of wz).
    wm_z: (2*hid, 3*hid), wm_h: (hid, 3*hid)  -- columns permuted to [mo | mi | mg].
    bias_pack: (4, 3*hid) f32 = [bq|bk|bv ; bk2|bv2|0 ; bz|0 ; bm(permuted)].
    """
    N = patches.shape[0]
    bc, gamma, beta = gn_pack[0:1, :], gn_pack[1:2, :], gn_pack[2:3, :]
    bqkv = bias_pack[0:1, :]
    bkv2 = bias_pack[1:2, :2 * hid]
    bz = bias_pack[2:3, :2 * hid]
    bm_perm = bias_pack[3:4, :]

    # ---- Conv2d (im2col matmul, bf16 MXU / f32 acc) + GroupNorm ----
    # num_groups == num_channels in the original module -> per-channel stats over space.
    conv = _dot(patches, wc) + bc                               # (N, 4*hid) f32
    mean = jnp.mean(conv, axis=0, keepdims=True)
    cen = conv - mean
    var = jnp.mean(cen * cen, axis=0, keepdims=True)            # centered (stable) variance
    convn = cen * lax.rsqrt(var + EPS) * gamma + beta

    # ---- ConvLSTM gates: one 3*hid-wide sigmoid pass + one hid-wide tanh ----
    sig = jax.nn.sigmoid(convn[:, :3 * hid])
    i = sig[:, 0 * hid:1 * hid]
    f = sig[:, 1 * hid:2 * hid]
    o = sig[:, 2 * hid:3 * hid]
    g = jnp.tanh(convn[:, 3 * hid:4 * hid])

    c_next = f * c + i * g
    h1 = o * jnp.tanh(c_next)                                   # (N, hid) f32
    h1b = h1.astype(BF16)
    mb = m.astype(BF16)

    # ---- self-attention memory module ----
    # fused q/k/v and k2/v2 projections
    qkv = _dot(h1b, wqkv) + bqkv                                # (N, 3*hid) f32
    kv_m = _dot(mb, wkv2) + bkv2                                # (N, 2*hid) f32
    q_h = qkv[:, 0 * hid:1 * hid].astype(BF16)
    k_h = qkv[:, 1 * hid:2 * hid]
    v_h = qkv[:, 2 * hid:3 * hid].astype(BF16)
    k_m = kv_m[:, 0 * hid:1 * hid]
    v_m = kv_m[:, 1 * hid:2 * hid].astype(BF16)

    # One (N, 2N) score matmul instead of two (N, N) ones.
    k_all = jnp.concatenate([k_h, k_m], axis=0).astype(BF16)    # (2N, hid)
    scores = _dot_nt(q_h, k_all)                                # (N, 2N) f32

    # Per-half softmax (identical to the two original softmaxes): f32 max/sum,
    # bf16 exp / probs (the probs feed a bf16 matmul anyway).
    s_h = scores[:, :N]
    s_m = scores[:, N:]
    p_h = jnp.exp((s_h - jnp.max(s_h, axis=-1, keepdims=True)).astype(BF16))
    p_m = jnp.exp((s_m - jnp.max(s_m, axis=-1, keepdims=True)).astype(BF16))
    r_h = pl.reciprocal(jnp.sum(p_h.astype(jnp.float32), axis=-1, keepdims=True), approx=True)
    r_m = pl.reciprocal(jnp.sum(p_m.astype(jnp.float32), axis=-1, keepdims=True), approx=True)
    probs = jnp.concatenate([p_h * r_h.astype(BF16),
                             p_m * r_m.astype(BF16)], axis=-1)  # (N, 2N) bf16

    # Pre-project values through the row-halves of wz, stack along sublanes,
    # then ONE deep K=2N contraction produces z directly.
    # TODO(synk): for large H*W switch to key-blocked (flash-style) online softmax so
    # the (N, 2N) score slab never materialises (mandatory on v7x's 64 MiB VMEM).
    vproj = jnp.concatenate([_dot(v_h, wz_h), _dot(v_m, wz_m)], axis=0)   # (2N, 2*hid) f32
    z = _dot(probs, vproj.astype(BF16)) + bz                              # (N, 2*hid) f32

    # split-weight matmuls instead of lane-axis concatenation; columns are [mo | mi | mg]
    comb = _dot(z.astype(BF16), wm_z) + _dot(h1b, wm_h) + bm_perm         # (N, 3*hid)
    sg = jax.nn.sigmoid(comb[:, :2 * hid])
    mo = sg[:, 0 * hid:1 * hid]
    mi = sg[:, 1 * hid:2 * hid]
    mg = jnp.tanh(comb[:, 2 * hid:3 * hid])

    new_m = (1.0 - mi) * m + mi * mg
    new_h = mo * new_m
    return new_h, c_next, new_m


# ------------------------------- Pallas kernel -------------------------------
def _sa_convlstm_kernel(patches_ref, c_ref, m_ref,
                        wc_ref, gn_ref, wqkv_ref, wkv2_ref,
                        wz_h_ref, wz_m_ref, wm_z_ref, wm_h_ref, bias_ref,
                        out_ref, *, hid, out_width):
    new_h, c_next, new_m = _cell_math(
        patches_ref[0], c_ref[0], m_ref[0],
        wc_ref[...], gn_ref[...], wqkv_ref[...], wkv2_ref[...],
        wz_h_ref[...], wz_m_ref[...], wm_z_ref[...], wm_h_ref[...],
        bias_ref[...], hid=hid)
    # single lane-dense packed output slab [h | c | m | pad], width = multiple of 128
    parts = [new_h, c_next, new_m]
    pad = out_width - 3 * hid
    if pad:
        parts.append(jnp.zeros((new_h.shape[0], pad), jnp.float32))
    out_ref[0] = jnp.concatenate(parts, axis=-1)


# --------------------------------- glue --------------------------------------
def _im2col(a, kernel_size):
    """a: (B, H, W, C) -> (B, H*W, kh*kw*C) 'same'-padded patches."""
    # TODO(synk): for large H*W, replace host-side im2col with in-kernel shifted-matmul
    # conv to avoid the ~k*k x HBM traffic inflation (v5e/v6e critical at large N).
    B, H, W, C = a.shape
    kh, kw = kernel_size
    ph, pw = kh // 2, kw // 2
    pad = jnp.pad(a, ((0, 0), (ph, ph), (pw, pw), (0, 0)))
    cols = [pad[:, dh:dh + H, dw:dw + W, :] for dh in range(kh) for dw in range(kw)]
    return jnp.concatenate(cols, axis=-1).reshape(B, H * W, kh * kw * C)


def _prepare(x, h, c, m, params, kernel_size):
    """Build kernel-ready (padded / fused / bf16-cast) operands."""
    B, H, W, _ = x.shape
    hid = h.shape[-1]
    N = H * W

    patches = _im2col(jnp.concatenate([x, h], axis=-1), kernel_size)    # (B, N, P)
    P = patches.shape[-1]
    Pp = ((P + 127) // 128) * 128                                       # pad K to x128
    if Pp != P:
        patches = jnp.pad(patches, ((0, 0), (0, 0), (0, Pp - P)))
    patches = patches.astype(BF16)

    c_flat = c.reshape(B, N, hid).astype(jnp.float32)
    m_flat = m.reshape(B, N, hid).astype(jnp.float32)

    wc = params["wc"]
    if Pp != P:
        wc = jnp.pad(wc, ((0, Pp - P), (0, 0)))
    wc = wc.astype(BF16)

    gn_pack = jnp.concatenate(
        [params["bc"], params["gamma"], params["beta"]], axis=0).astype(jnp.float32)

    wqkv = jnp.concatenate([params["wq"], params["wk"], params["wv"]], axis=1).astype(BF16)
    wkv2 = jnp.concatenate([params["wk2"], params["wv2"]], axis=1).astype(BF16)
    wz_h = params["wz"][:hid, :].astype(BF16)
    wz_m = params["wz"][hid:, :].astype(BF16)

    # Permute wm/bm output columns from [mo | mg | mi] to [mo | mi | mg] so the kernel
    # runs one contiguous 2*hid sigmoid + one hid tanh.
    perm = jnp.concatenate([jnp.arange(0, hid),
                            jnp.arange(2 * hid, 3 * hid),
                            jnp.arange(hid, 2 * hid)])
    wm_p = params["wm"][:, perm]
    bm_p = params["bm"][:, perm]
    wm_z = wm_p[:2 * hid, :].astype(BF16)
    wm_h = wm_p[2 * hid:, :].astype(BF16)

    zpad = jnp.zeros((1, hid), jnp.float32)
    bias_pack = jnp.concatenate([
        jnp.concatenate([params["bq"], params["bk"], params["bv"]], axis=1),
        jnp.concatenate([params["bk2"], params["bv2"], zpad], axis=1),
        jnp.concatenate([params["bz"], zpad], axis=1),
        bm_p,
    ], axis=0).astype(jnp.float32)                                      # (4, 3*hid)

    weights = [wc, gn_pack, wqkv, wkv2, wz_h, wz_m, wm_z, wm_h, bias_pack]
    return patches, c_flat, m_flat, weights, hid, N, Pp


def sa_convlstm_cell(x, h, c, m, params, *, kernel_size=(3, 3)):
    """x: (B, H, W, Cin); h, c, m: (B, H, W, hid).  Returns (h_next, c_next, m_next)."""
    B, H, W, _ = x.shape
    patches, c_flat, m_flat, weights, hid, N, Pp = _prepare(x, h, c, m, params, kernel_size)
    out_width = ((3 * hid + 127) // 128) * 128                          # lane-dense output

    def batched_spec(nc):
        return pl.BlockSpec((1, N, nc), lambda b: (b, 0, 0))

    def weight_spec(w):
        nd = w.ndim
        return pl.BlockSpec(w.shape, lambda b: (0,) * nd)

    in_specs = ([batched_spec(Pp), batched_spec(hid), batched_spec(hid)]
                + [weight_spec(w) for w in weights])
    out_specs = batched_spec(out_width)
    out_shape = jax.ShapeDtypeStruct((B, N, out_width), jnp.float32)

    packed = pl.pallas_call(
        functools.partial(_sa_convlstm_kernel, hid=hid, out_width=out_width),
        out_shape=out_shape,
        grid=(B,),
        in_specs=in_specs,
        out_specs=out_specs,
        compiler_params=pltpu.CompilerParams(
            dimension_semantics=("parallel",),          # B=2 -> one batch per v7x core
            vmem_limit_bytes=32 * 1024 * 1024,          # working set is a few MiB
        ),
    )(patches, c_flat, m_flat, *weights)

    h_next = packed[:, :, 0 * hid:1 * hid].reshape(B, H, W, hid)
    c_next = packed[:, :, 1 * hid:2 * hid].reshape(B, H, W, hid)
    m_next = packed[:, :, 2 * hid:3 * hid].reshape(B, H, W, hid)
    return h_next, c_next, m_next


# ------------------------------ plain-JAX reference --------------------------
def sa_convlstm_reference(x, h, c, m, params, *, kernel_size=(3, 3)):
    """Straight transcription of the PyTorch forward (unfused matmuls, exact softmax);
    matmul operands cast to bf16 (f32 accumulation) to match the kernel's precision."""
    B, H, W, _ = x.shape
    hid = h.shape[-1]
    N = H * W
    patches = _im2col(jnp.concatenate([x, h], axis=-1), kernel_size).astype(BF16)
    wc = params["wc"].astype(BF16)

    def lin(a, wname, bname):
        return _dot(a.astype(BF16), params[wname].astype(BF16)) + params[bname]

    def one(p_, c_, m_):
        conv = _dot(p_, wc) + params["bc"]
        mean = jnp.mean(conv, axis=0, keepdims=True)
        var = jnp.mean((conv - mean) ** 2, axis=0, keepdims=True)
        convn = (conv - mean) * lax.rsqrt(var + EPS) * params["gamma"] + params["beta"]
        i = jax.nn.sigmoid(convn[:, 0 * hid:1 * hid])
        f = jax.nn.sigmoid(convn[:, 1 * hid:2 * hid])
        o = jax.nn.sigmoid(convn[:, 2 * hid:3 * hid])
        g = jnp.tanh(convn[:, 3 * hid:4 * hid])
        c_next = f * c_ + i * g
        h1 = o * jnp.tanh(c_next)

        q = lin(h1, "wq", "bq")
        k = lin(h1, "wk", "bk")
        v = lin(h1, "wv", "bv")
        k2 = lin(m_, "wk2", "bk2")
        v2 = lin(m_, "wv2", "bv2")
        a_h = jax.nn.softmax(_dot_nt(q.astype(BF16), k.astype(BF16)), axis=-1)
        z_h = _dot(a_h.astype(BF16), v.astype(BF16))
        a_m = jax.nn.softmax(_dot_nt(q.astype(BF16), k2.astype(BF16)), axis=-1)
        z_m = _dot(a_m.astype(BF16), v2.astype(BF16))
        z = lin(jnp.concatenate([z_h, z_m], axis=-1), "wz", "bz")
        comb = lin(jnp.concatenate([z, h1], axis=-1), "wm", "bm")
        mo = comb[:, 0 * hid:1 * hid]
        mg = comb[:, 1 * hid:2 * hid]
        mi = jax.nn.sigmoid(comb[:, 2 * hid:3 * hid])
        new_m = (1.0 - mi) * m_ + mi * jnp.tanh(mg)
        new_h = jax.nn.sigmoid(mo) * new_m
        return new_h, c_next, new_m

    c_flat = c.reshape(B, N, hid).astype(jnp.float32)
    m_flat = m.reshape(B, N, hid).astype(jnp.float32)
    nh, cn, nm = jax.vmap(one)(patches, c_flat, m_flat)
    return (nh.reshape(B, H, W, hid),
            cn.reshape(B, H, W, hid),
            nm.reshape(B, H, W, hid))


def init_params(key, in_channel, hid, kernel_size):
    kh, kw = kernel_size
    P = kh * kw * (in_channel + hid)
    keys = jax.random.split(key, 18)
    ki = iter(keys)

    def rnd(shape, scale):
        return (scale * jax.random.normal(next(ki), shape)).astype(jnp.float32)

    return {
        "wc": rnd((P, 4 * hid), 0.05),
        "bc": rnd((1, 4 * hid), 0.1),
        "gamma": 1.0 + rnd((1, 4 * hid), 0.1),
        "beta": rnd((1, 4 * hid), 0.1),
        "wq": rnd((hid, hid), 0.05), "bq": rnd((1, hid), 0.1),
        "wk": rnd((hid, hid), 0.05), "bk": rnd((1, hid), 0.1),
        "wk2": rnd((hid, hid), 0.05), "bk2": rnd((1, hid), 0.1),
        "wv": rnd((hid, hid), 0.05), "bv": rnd((1, hid), 0.1),
        "wv2": rnd((hid, hid), 0.05), "bv2": rnd((1, hid), 0.1),
        "wz": rnd((2 * hid, 2 * hid), 0.05), "bz": rnd((1, 2 * hid), 0.1),
        "wm": rnd((3 * hid, 3 * hid), 0.05), "bm": rnd((1, 3 * hid), 0.1),
    }


if __name__ == "__main__":
    B, Cin, hid, H, W = 2, 4, 32, 16, 16
    ksize = (3, 3)

    key = jax.random.PRNGKey(0)
    kx, kh_, kc, km, kp = jax.random.split(key, 5)
    # (PyTorch NCHW x would be (B, Cin, H, W); we keep NHWC per the layout note.)
    x = jax.random.normal(kx, (B, H, W, Cin), jnp.float32)
    h = jax.random.normal(kh_, (B, H, W, hid), jnp.float32)
    c = jax.random.normal(kc, (B, H, W, hid), jnp.float32)
    m = jax.random.normal(km, (B, H, W, hid), jnp.float32)
    params = init_params(kp, Cin, hid, ksize)

    h_next, c_next, m_next = sa_convlstm_cell(x, h, c, m, params, kernel_size=ksize)
    jax.block_until_ready((h_next, c_next, m_next))

    hr, cr, mr = sa_convlstm_reference(x, h, c, m, params, kernel_size=ksize)
    jax.block_until_ready((hr, cr, mr))

    for got, want in ((h_next, hr), (c_next, cr), (m_next, mr)):
        np.testing.assert_allclose(np.asarray(got), np.asarray(want), rtol=2e-2, atol=2e-2)

    print("KERNEL_OK")
</pallas_src>

<mosaic_0001>
module attributes {stable_mosaic.version = 11 : i64} {
  func.func @_sa_convlstm_kernel(%arg0: i32, %arg1: memref<1x256x384xbf16, #tpu.memory_space<vmem>>, %arg2: memref<1x256x32xf32, #tpu.memory_space<vmem>>, %arg3: memref<1x256x32xf32, #tpu.memory_space<vmem>>, %arg4: memref<384x128xbf16, #tpu.memory_space<vmem>>, %arg5: memref<3x128xf32, #tpu.memory_space<vmem>>, %arg6: memref<32x96xbf16, #tpu.memory_space<vmem>>, %arg7: memref<32x64xbf16, #tpu.memory_space<vmem>>, %arg8: memref<32x64xbf16, #tpu.memory_space<vmem>>, %arg9: memref<32x64xbf16, #tpu.memory_space<vmem>>, %arg10: memref<64x96xbf16, #tpu.memory_space<vmem>>, %arg11: memref<32x96xbf16, #tpu.memory_space<vmem>>, %arg12: memref<4x96xf32, #tpu.memory_space<vmem>>, %arg13: memref<1x256x128xf32, #tpu.memory_space<vmem>>) attributes {dimension_semantics = [#tpu.dimension_semantics<parallel>], iteration_bounds = array<i64: 2>, scalar_prefetch = 0 : i64, scratch_operands = 0 : i64, tpu.core_type = #tpu.core_type<tc>, window_params = [{transform_indices = @transform_0, window_bounds = array<i64: 1, 256, 384>}, {transform_indices = @transform_1, window_bounds = array<i64: 1, 256, 32>}, {transform_indices = @transform_2, window_bounds = array<i64: 1, 256, 32>}, {pipeline_mode = #tpu.pipeline_mode<synchronous>, transform_indices = @transform_3, window_bounds = array<i64: 384, 128>}, {pipeline_mode = #tpu.pipeline_mode<synchronous>, transform_indices = @transform_4, window_bounds = array<i64: 3, 128>}, {pipeline_mode = #tpu.pipeline_mode<synchronous>, transform_indices = @transform_5, window_bounds = array<i64: 32, 96>}, {pipeline_mode = #tpu.pipeline_mode<synchronous>, transform_indices = @transform_6, window_bounds = array<i64: 32, 64>}, {pipeline_mode = #tpu.pipeline_mode<synchronous>, transform_indices = @transform_7, window_bounds = array<i64: 32, 64>}, {pipeline_mode = #tpu.pipeline_mode<synchronous>, transform_indices = @transform_8, window_bounds = array<i64: 32, 64>}, {pipeline_mode = #tpu.pipeline_mode<synchronous>, transform_indices = @transform_9, window_bounds = array<i64: 64, 96>}, {pipeline_mode = #tpu.pipeline_mode<synchronous>, transform_indices = @transform_10, window_bounds = array<i64: 32, 96>}, {pipeline_mode = #tpu.pipeline_mode<synchronous>, transform_indices = @transform_11, window_bounds = array<i64: 4, 96>}, {transform_indices = @transform_12, window_bounds = array<i64: 1, 256, 128>}]} {
    %c0 = arith.constant 0 : index
    %c0_0 = arith.constant 0 : index
    %c0_1 = arith.constant 0 : index
    %0 = vector.load %arg1[%c0, %c0_0, %c0_1] : memref<1x256x384xbf16, #tpu.memory_space<vmem>>, vector<1x256x384xbf16>
    %1 = vector.shape_cast %0 : vector<1x256x384xbf16> to vector<256x384xbf16>
    %c0_2 = arith.constant 0 : index
    %c0_3 = arith.constant 0 : index
    %c0_4 = arith.constant 0 : index
    %2 = vector.load %arg2[%c0_2, %c0_3, %c0_4] : memref<1x256x32xf32, #tpu.memory_space<vmem>>, vector<1x256x32xf32>
    %3 = vector.shape_cast %2 : vector<1x256x32xf32> to vector<256x32xf32>
    %c0_5 = arith.constant 0 : index
    %c0_6 = arith.constant 0 : index
    %c0_7 = arith.constant 0 : index
    %4 = vector.load %arg3[%c0_5, %c0_6, %c0_7] : memref<1x256x32xf32, #tpu.memory_space<vmem>>, vector<1x256x32xf32>
    %5 = vector.shape_cast %4 : vector<1x256x32xf32> to vector<256x32xf32>
    %c0_8 = arith.constant 0 : index
    %c0_9 = arith.constant 0 : index
    %6 = vector.load %arg4[%c0_8, %c0_9] : memref<384x128xbf16, #tpu.memory_space<vmem>>, vector<384x128xbf16>
    %c0_10 = arith.constant 0 : index
    %c0_11 = arith.constant 0 : index
    %7 = vector.load %arg5[%c0_10, %c0_11] : memref<3x128xf32, #tpu.memory_space<vmem>>, vector<3x128xf32>
    %c0_12 = arith.constant 0 : index
    %c0_13 = arith.constant 0 : index
    %8 = vector.load %arg6[%c0_12, %c0_13] : memref<32x96xbf16, #tpu.memory_space<vmem>>, vector<32x96xbf16>
    %c0_14 = arith.constant 0 : index
    %c0_15 = arith.constant 0 : index
    %9 = vector.load %arg7[%c0_14, %c0_15] : memref<32x64xbf16, #tpu.memory_space<vmem>>, vector<32x64xbf16>
    %c0_16 = arith.constant 0 : index
    %c0_17 = arith.constant 0 : index
    %10 = vector.load %arg8[%c0_16, %c0_17] : memref<32x64xbf16, #tpu.memory_space<vmem>>, vector<32x64xbf16>
    %c0_18 = arith.constant 0 : index
    %c0_19 = arith.constant 0 : index
    %11 = vector.load %arg9[%c0_18, %c0_19] : memref<32x64xbf16, #tpu.memory_space<vmem>>, vector<32x64xbf16>
    %c0_20 = arith.constant 0 : index
    %c0_21 = arith.constant 0 : index
    %12 = vector.load %arg10[%c0_20, %c0_21] : memref<64x96xbf16, #tpu.memory_space<vmem>>, vector<64x96xbf16>
    %c0_22 = arith.constant 0 : index
    %c0_23 = arith.constant 0 : index
    %13 = vector.load %arg11[%c0_22, %c0_23] : memref<32x96xbf16, #tpu.memory_space<vmem>>, vector<32x96xbf16>
    %c0_24 = arith.constant 0 : index
    %c0_25 = arith.constant 0 : index
    %14 = vector.load %arg12[%c0_24, %c0_25] : memref<4x96xf32, #tpu.memory_space<vmem>>, vector<4x96xf32>
    %15 = vector.extract_strided_slice %7 {offsets = [0, 0], sizes = [1, 128], strides = [1, 1]} : vector<3x128xf32> to vector<1x128xf32>
    %16 = vector.extract_strided_slice %7 {offsets = [1, 0], sizes = [1, 128], strides = [1, 1]} : vector<3x128xf32> to vector<1x128xf32>
    %17 = vector.extract_strided_slice %7 {offsets = [2, 0], sizes = [1, 128], strides = [1, 1]} : vector<3x128xf32> to vector<1x128xf32>
    %18 = vector.extract_strided_slice %14 {offsets = [0, 0], sizes = [1, 96], strides = [1, 1]} : vector<4x96xf32> to vector<1x96xf32>
    %19 = vector.extract_strided_slice %14 {offsets = [1, 0], sizes = [1, 64], strides = [1, 1]} : vector<4x96xf32> to vector<1x64xf32>
    %20 = vector.extract_strided_slice %14 {offsets = [2, 0], sizes = [1, 64], strides = [1, 1]} : vector<4x96xf32> to vector<1x64xf32>
    %21 = vector.extract_strided_slice %14 {offsets = [3, 0], sizes = [1, 96], strides = [1, 1]} : vector<4x96xf32> to vector<1x96xf32>
    %cst = arith.constant dense<0.000000e+00> : vector<256x128xf32>
    %22 = tpu.matmul %1, %6, %cst {dimension_numbers = #tpu.dot_dimension_numbers<[1], [0], [0], [1], [0, 0, 1, 1], [], []>} : vector<256x384xbf16>, vector<384x128xbf16>, vector<256x128xf32> -> vector<256x128xf32>
    %23 = vector.broadcast %15 : vector<1x128xf32> to vector<256x128xf32>
    %24 = arith.addf %22, %23 : vector<256x128xf32>
    %cst_26 = arith.constant dense<0.000000e+00> : vector<128xf32>
    %25 = vector.multi_reduction <add>, %24, %cst_26 [0] : vector<256x128xf32> to vector<128xf32>
    %26 = vector.shape_cast %25 : vector<128xf32> to vector<1x128xf32>
    %cst_27 = arith.constant 2.560000e+02 : f32
    %27 = vector.broadcast %cst_27 : f32 to vector<1x128xf32>
    %28 = arith.divf %26, %27 : vector<1x128xf32>
    %29 = vector.broadcast %28 : vector<1x128xf32> to vector<256x128xf32>
    %30 = arith.subf %24, %29 : vector<256x128xf32>
    %31 = arith.mulf %30, %30 : vector<256x128xf32>
    %cst_28 = arith.constant dense<0.000000e+00> : vector<128xf32>
    %32 = vector.multi_reduction <add>, %31, %cst_28 [0] : vector<256x128xf32> to vector<128xf32>
    %33 = vector.shape_cast %32 : vector<128xf32> to vector<1x128xf32>
    %cst_29 = arith.constant 2.560000e+02 : f32
    %34 = vector.broadcast %cst_29 : f32 to vector<1x128xf32>
    %35 = arith.divf %33, %34 : vector<1x128xf32>
    %cst_30 = arith.constant 9.99999974E-6 : f32
    %36 = vector.broadcast %cst_30 : f32 to vector<1x128xf32>
    %37 = arith.addf %35, %36 : vector<1x128xf32>
    %38 = math.rsqrt %37 : vector<1x128xf32>
    %39 = vector.broadcast %38 : vector<1x128xf32> to vector<256x128xf32>
    %40 = arith.mulf %30, %39 : vector<256x128xf32>
    %41 = vector.broadcast %16 : vector<1x128xf32> to vector<256x128xf32>
    %42 = arith.mulf %40, %41 : vector<256x128xf32>
    %43 = vector.broadcast %17 : vector<1x128xf32> to vector<256x128xf32>
    %44 = arith.addf %42, %43 : vector<256x128xf32>
    %45 = vector.extract_strided_slice %44 {offsets = [0, 0], sizes = [256, 96], strides = [1, 1]} : vector<256x128xf32> to vector<256x96xf32>
    %46 = arith.negf %45 : vector<256x96xf32>
    %47 = math.exp %46 : vector<256x96xf32>
    %cst_31 = arith.constant 1.000000e+00 : f32
    %48 = vector.broadcast %cst_31 : f32 to vector<256x96xf32>
    %49 = arith.addf %48, %47 : vector<256x96xf32>
    %50 = arith.divf %48, %49 : vector<256x96xf32>
    %51 = vector.extract_strided_slice %50 {offsets = [0, 0], sizes = [256, 32], strides = [1, 1]} : vector<256x96xf32> to vector<256x32xf32>
    %52 = vector.extract_strided_slice %50 {offsets = [0, 32], sizes = [256, 32], strides = [1, 1]} : vector<256x96xf32> to vector<256x32xf32>
    %53 = vector.extract_strided_slice %50 {offsets = [0, 64], sizes = [256, 32], strides = [1, 1]} : vector<256x96xf32> to vector<256x32xf32>
    %54 = vector.extract_strided_slice %44 {offsets = [0, 96], sizes = [256, 32], strides = [1, 1]} : vector<256x128xf32> to vector<256x32xf32>
    %55 = math.tanh %54 : vector<256x32xf32>
    %56 = arith.mulf %52, %3 : vector<256x32xf32>
    %57 = arith.mulf %51, %55 : vector<256x32xf32>
    %58 = arith.addf %56, %57 : vector<256x32xf32>
    %59 = math.tanh %58 : vector<256x32xf32>
    %60 = arith.mulf %53, %59 : vector<256x32xf32>
    %61 = arith.truncf %60 : vector<256x32xf32> to vector<256x32xbf16>
    %62 = arith.truncf %5 : vector<256x32xf32> to vector<256x32xbf16>
    %cst_32 = arith.constant dense<0.000000e+00> : vector<256x96xf32>
    %63 = tpu.matmul %61, %8, %cst_32 {dimension_numbers = #tpu.dot_dimension_numbers<[1], [0], [0], [1], [0, 0, 1, 1], [], []>} : vector<256x32xbf16>, vector<32x96xbf16>, vector<256x96xf32> -> vector<256x96xf32>
    %64 = vector.broadcast %18 : vector<1x96xf32> to vector<256x96xf32>
    %65 = arith.addf %63, %64 : vector<256x96xf32>
    %cst_33 = arith.constant dense<0.000000e+00> : vector<256x64xf32>
    %66 = tpu.matmul %62, %9, %cst_33 {dimension_numbers = #tpu.dot_dimension_numbers<[1], [0], [0], [1], [0, 0, 1, 1], [], []>} : vector<256x32xbf16>, vector<32x64xbf16>, vector<256x64xf32> -> vector<256x64xf32>
    %67 = vector.broadcast %19 : vector<1x64xf32> to vector<256x64xf32>
    %68 = arith.addf %66, %67 : vector<256x64xf32>
    %69 = vector.extract_strided_slice %65 {offsets = [0, 0], sizes = [256, 32], strides = [1, 1]} : vector<256x96xf32> to vector<256x32xf32>
    %70 = arith.truncf %69 : vector<256x32xf32> to vector<256x32xbf16>
    %71 = vector.extract_strided_slice %65 {offsets = [0, 32], sizes = [256, 32], strides = [1, 1]} : vector<256x96xf32> to vector<256x32xf32>
    %72 = vector.extract_strided_slice %65 {offsets = [0, 64], sizes = [256, 32], strides = [1, 1]} : vector<256x96xf32> to vector<256x32xf32>
    %73 = arith.truncf %72 : vector<256x32xf32> to vector<256x32xbf16>
    %74 = vector.extract_strided_slice %68 {offsets = [0, 0], sizes = [256, 32], strides = [1, 1]} : vector<256x64xf32> to vector<256x32xf32>
    %75 = vector.extract_strided_slice %68 {offsets = [0, 32], sizes = [256, 32], strides = [1, 1]} : vector<256x64xf32> to vector<256x32xf32>
    %76 = arith.truncf %75 : vector<256x32xf32> to vector<256x32xbf16>
    %77 = tpu.concatenate %71, %74 in 0 : vector<256x32xf32>, vector<256x32xf32> -> vector<512x32xf32>
    %78 = arith.truncf %77 : vector<512x32xf32> to vector<512x32xbf16>
    %cst_34 = arith.constant dense<0.000000e+00> : vector<256x512xf32>
    %79 = tpu.matmul %70, %78, %cst_34 {dimension_numbers = #tpu.dot_dimension_numbers<[1], [1], [0], [0], [0, 0, 1, 0], [], []>} : vector<256x32xbf16>, vector<512x32xbf16>, vector<256x512xf32> -> vector<256x512xf32>
    %80 = vector.extract_strided_slice %79 {offsets = [0, 0], sizes = [256, 256], strides = [1, 1]} : vector<256x512xf32> to vector<256x256xf32>
    %81 = vector.extract_strided_slice %79 {offsets = [0, 256], sizes = [256, 256], strides = [1, 1]} : vector<256x512xf32> to vector<256x256xf32>
    %cst_35 = arith.constant dense<0xFF800000> : vector<256xf32>
    %82 = vector.multi_reduction <maximumf>, %80, %cst_35 [1] : vector<256x256xf32> to vector<256xf32>
    %83 = vector.shape_cast %82 : vector<256xf32> to vector<256x1xf32>
    %84 = vector.broadcast %83 : vector<256x1xf32> to vector<256x256xf32>
    %85 = arith.subf %80, %84 : vector<256x256xf32>
    %86 = arith.truncf %85 : vector<256x256xf32> to vector<256x256xbf16>
    %87 = math.exp %86 : vector<256x256xbf16>
    %cst_36 = arith.constant dense<0xFF800000> : vector<256xf32>
    %88 = vector.multi_reduction <maximumf>, %81, %cst_36 [1] : vector<256x256xf32> to vector<256xf32>
    %89 = vector.shape_cast %88 : vector<256xf32> to vector<256x1xf32>
    %90 = vector.broadcast %89 : vector<256x1xf32> to vector<256x256xf32>
    %91 = arith.subf %81, %90 : vector<256x256xf32>
    %92 = arith.truncf %91 : vector<256x256xf32> to vector<256x256xbf16>
    %93 = math.exp %92 : vector<256x256xbf16>
    %94 = arith.extf %87 : vector<256x256xbf16> to vector<256x256xf32>
    %cst_37 = arith.constant dense<0.000000e+00> : vector<256xf32>
    %95 = vector.multi_reduction <add>, %94, %cst_37 [1] : vector<256x256xf32> to vector<256xf32>
    %96 = vector.shape_cast %95 : vector<256xf32> to vector<256x1xf32>
    %97 = tpu.reciprocal %96 {approx = true} : vector<256x1xf32> -> vector<256x1xf32>
    %98 = arith.extf %93 : vector<256x256xbf16> to vector<256x256xf32>
    %cst_38 = arith.constant dense<0.000000e+00> : vector<256xf32>
    %99 = vector.multi_reduction <add>, %98, %cst_38 [1] : vector<256x256xf32> to vector<256xf32>
    %100 = vector.shape_cast %99 : vector<256xf32> to vector<256x1xf32>
    %101 = tpu.reciprocal %100 {approx = true} : vector<256x1xf32> -> vector<256x1xf32>
    %102 = arith.truncf %97 : vector<256x1xf32> to vector<256x1xbf16>
    %103 = vector.broadcast %102 : vector<256x1xbf16> to vector<256x256xbf16>
    %104 = arith.mulf %87, %103 : vector<256x256xbf16>
    %105 = arith.truncf %101 : vector<256x1xf32> to vector<256x1xbf16>
    %106 = vector.broadcast %105 : vector<256x1xbf16> to vector<256x256xbf16>
    %107 = arith.mulf %93, %106 : vector<256x256xbf16>
    %108 = tpu.concatenate %104, %107 in 1 : vector<256x256xbf16>, vector<256x256xbf16> -> vector<256x512xbf16>
    %cst_39 = arith.constant dense<0.000000e+00> : vector<256x64xf32>
    %109 = tpu.matmul %73, %10, %cst_39 {dimension_numbers = #tpu.dot_dimension_numbers<[1], [0], [0], [1], [0, 0, 1, 1], [], []>} : vector<256x32xbf16>, vector<32x64xbf16>, vector<256x64xf32> -> vector<256x64xf32>
    %cst_40 = arith.constant dense<0.000000e+00> : vector<256x64xf32>
    %110 = tpu.matmul %76, %11, %cst_40 {dimension_numbers = #tpu.dot_dimension_numbers<[1], [0], [0], [1], [0, 0, 1, 1], [], []>} : vector<256x32xbf16>, vector<32x64xbf16>, vector<256x64xf32> -> vector<256x64xf32>
    %111 = tpu.concatenate %109, %110 in 0 : vector<256x64xf32>, vector<256x64xf32> -> vector<512x64xf32>
    %112 = arith.truncf %111 : vector<512x64xf32> to vector<512x64xbf16>
    %cst_41 = arith.constant dense<0.000000e+00> : vector<256x64xf32>
    %113 = tpu.matmul %108, %112, %cst_41 {dimension_numbers = #tpu.dot_dimension_numbers<[1], [0], [0], [1], [0, 0, 1, 1], [], []>} : vector<256x512xbf16>, vector<512x64xbf16>, vector<256x64xf32> -> vector<256x64xf32>
    %114 = vector.broadcast %20 : vector<1x64xf32> to vector<256x64xf32>
    %115 = arith.addf %113, %114 : vector<256x64xf32>
    %116 = arith.truncf %115 : vector<256x64xf32> to vector<256x64xbf16>
    %cst_42 = arith.constant dense<0.000000e+00> : vector<256x96xf32>
    %117 = tpu.matmul %116, %12, %cst_42 {dimension_numbers = #tpu.dot_dimension_numbers<[1], [0], [0], [1], [0, 0, 1, 1], [], []>} : vector<256x64xbf16>, vector<64x96xbf16>, vector<256x96xf32> -> vector<256x96xf32>
    %cst_43 = arith.constant dense<0.000000e+00> : vector<256x96xf32>
    %118 = tpu.matmul %61, %13, %cst_43 {dimension_numbers = #tpu.dot_dimension_numbers<[1], [0], [0], [1], [0, 0, 1, 1], [], []>} : vector<256x32xbf16>, vector<32x96xbf16>, vector<256x96xf32> -> vector<256x96xf32>
    %119 = arith.addf %117, %118 : vector<256x96xf32>
    %120 = vector.broadcast %21 : vector<1x96xf32> to vector<256x96xf32>
    %121 = arith.addf %119, %120 : vector<256x96xf32>
    %122 = vector.extract_strided_slice %121 {offsets = [0, 0], sizes = [256, 64], strides = [1, 1]} : vector<256x96xf32> to vector<256x64xf32>
    %123 = arith.negf %122 : vector<256x64xf32>
    %124 = math.exp %123 : vector<256x64xf32>
    %cst_44 = arith.constant 1.000000e+00 : f32
    %125 = vector.broadcast %cst_44 : f32 to vector<256x64xf32>
    %126 = arith.addf %125, %124 : vector<256x64xf32>
    %127 = arith.divf %125, %126 : vector<256x64xf32>
    %128 = vector.extract_strided_slice %127 {offsets = [0, 0], sizes = [256, 32], strides = [1, 1]} : vector<256x64xf32> to vector<256x32xf32>
    %129 = vector.extract_strided_slice %127 {offsets = [0, 32], sizes = [256, 32], strides = [1, 1]} : vector<256x64xf32> to vector<256x32xf32>
    %130 = vector.extract_strided_slice %121 {offsets = [0, 64], sizes = [256, 32], strides = [1, 1]} : vector<256x96xf32> to vector<256x32xf32>
    %131 = math.tanh %130 : vector<256x32xf32>
    %cst_45 = arith.constant 1.000000e+00 : f32
    %132 = vector.broadcast %cst_45 : f32 to vector<256x32xf32>
    %133 = arith.subf %132, %129 : vector<256x32xf32>
    %134 = arith.mulf %133, %5 : vector<256x32xf32>
    %135 = arith.mulf %129, %131 : vector<256x32xf32>
    %136 = arith.addf %134, %135 : vector<256x32xf32>
    %137 = arith.mulf %128, %136 : vector<256x32xf32>
    %cst_46 = arith.constant 0.000000e+00 : f32
    %138 = vector.broadcast %cst_46 : f32 to vector<256x32xf32>
    %139 = tpu.concatenate %137, %58, %136, %138 in 1 : vector<256x32xf32>, vector<256x32xf32>, vector<256x32xf32>, vector<256x32xf32> -> vector<256x128xf32>
    %c0_47 = arith.constant 0 : index
    %c0_48 = arith.constant 0 : index
    %c0_49 = arith.constant 0 : index
    %140 = vector.load %arg13[%c0_47, %c0_48, %c0_49] : memref<1x256x128xf32, #tpu.memory_space<vmem>>, vector<1x256x128xf32>
    %141 = vector.shape_cast %140 : vector<1x256x128xf32> to vector<256x128xf32>
    %142 = vector.shape_cast %139 : vector<256x128xf32> to vector<1x256x128xf32>
    tpu.vector_store %arg13[%c0_47, %c0_48, %c0_49], %142 {strides = array<i32>} : memref<1x256x128xf32, #tpu.memory_space<vmem>>, vector<1x256x128xf32>,
    return
  }
  func.func @transform_0(%arg0: i32) -> (i32, i32, i32) {
    %c0_i32 = arith.constant 0 : i32
    %c0_i32_0 = arith.constant 0 : i32
    %c0_i32_1 = arith.constant 0 : i32
    return %arg0, %c0_i32, %c0_i32_0 : i32, i32, i32
  }
  func.func @transform_1(%arg0: i32) -> (i32, i32, i32) {
    %c0_i32 = arith.constant 0 : i32
    %c0_i32_0 = arith.constant 0 : i32
    %c0_i32_1 = arith.constant 0 : i32
    return %arg0, %c0_i32, %c0_i32_0 : i32, i32, i32
  }
  func.func @transform_2(%arg0: i32) -> (i32, i32, i32) {
    %c0_i32 = arith.constant 0 : i32
    %c0_i32_0 = arith.constant 0 : i32
    %c0_i32_1 = arith.constant 0 : i32
    return %arg0, %c0_i32, %c0_i32_0 : i32, i32, i32
  }
  func.func @transform_3(%arg0: i32) -> (i32, i32) {
    %c0_i32 = arith.constant 0 : i32
    %c0_i32_0 = arith.constant 0 : i32
    %c0_i32_1 = arith.constant 0 : i32
    return %c0_i32, %c0_i32_0 : i32, i32
  }
  func.func @transform_4(%arg0: i32) -> (i32, i32) {
    %c0_i32 = arith.constant 0 : i32
    %c0_i32_0 = arith.constant 0 : i32
    %c0_i32_1 = arith.constant 0 : i32
    return %c0_i32, %c0_i32_0 : i32, i32
  }
  func.func @transform_5(%arg0: i32) -> (i32, i32) {
    %c0_i32 = arith.constant 0 : i32
    %c0_i32_0 = arith.constant 0 : i32
    %c0_i32_1 = arith.constant 0 : i32
    return %c0_i32, %c0_i32_0 : i32, i32
  }
  func.func @transform_6(%arg0: i32) -> (i32, i32) {
    %c0_i32 = arith.constant 0 : i32
    %c0_i32_0 = arith.constant 0 : i32
    %c0_i32_1 = arith.constant 0 : i32
    return %c0_i32, %c0_i32_0 : i32, i32
  }
  func.func @transform_7(%arg0: i32) -> (i32, i32) {
    %c0_i32 = arith.constant 0 : i32
    %c0_i32_0 = arith.constant 0 : i32
    %c0_i32_1 = arith.constant 0 : i32
    return %c0_i32, %c0_i32_0 : i32, i32
  }
  func.func @transform_8(%arg0: i32) -> (i32, i32) {
    %c0_i32 = arith.constant 0 : i32
    %c0_i32_0 = arith.constant 0 : i32
    %c0_i32_1 = arith.constant 0 : i32
    return %c0_i32, %c0_i32_0 : i32, i32
  }
  func.func @transform_9(%arg0: i32) -> (i32, i32) {
    %c0_i32 = arith.constant 0 : i32
    %c0_i32_0 = arith.constant 0 : i32
    %c0_i32_1 = arith.constant 0 : i32
    return %c0_i32, %c0_i32_0 : i32, i32
  }
  func.func @transform_10(%arg0: i32) -> (i32, i32) {
    %c0_i32 = arith.constant 0 : i32
    %c0_i32_0 = arith.constant 0 : i32
    %c0_i32_1 = arith.constant 0 : i32
    return %c0_i32, %c0_i32_0 : i32, i32
  }
  func.func @transform_11(%arg0: i32) -> (i32, i32) {
    %c0_i32 = arith.constant 0 : i32
    %c0_i32_0 = arith.constant 0 : i32
    %c0_i32_1 = arith.constant 0 : i32
    return %c0_i32, %c0_i32_0 : i32, i32
  }
  func.func @transform_12(%arg0: i32) -> (i32, i32, i32) {
    %c0_i32 = arith.constant 0 : i32
    %c0_i32_0 = arith.constant 0 : i32
    %c0_i32_1 = arith.constant 0 : i32
    return %arg0, %c0_i32, %c0_i32_0 : i32, i32, i32
  }
}

</mosaic_0001>

<bundles_post_ra>
// kernel: tpu_custom_call.1
= control target key start
LH: loop header
LB: loop body
LE: loop exit
PB: predicated region body
PF: predicated region fallthrough
CT: control target
= control target key end

     0   :  { %17 = vsyncpa [#allocation3], 0  ;;  %s13921_s0 = inlined_call_operand.vmem [shape: bf16[2,256,384], index: 0, kind: input, shape index: {}]   ;;  %s13922_s1 = inlined_call_operand.vmem [shape: f32[2,256,32], index: 1, kind: input, shape index: {}]   ;;  %s13923_s2 = inlined_call_operand.vmem [shape: f32[2,256,32], index: 2, kind: input, shape index: {}]   ;;  %s13924_s3 = inlined_call_operand.vmem [shape: bf16[384,128], index: 3, kind: input, shape index: {}]   ;;  %s13925_s4 = inlined_call_operand.vmem [shape: f32[3,128], index: 4, kind: input, shape index: {}]   ;;  %s13926_s5 = inlined_call_operand.vmem [shape: bf16[32,96], index: 5, kind: input, shape index: {}]   ;;  %s13927_s6 = inlined_call_operand.vmem [shape: bf16[32,64], index: 6, kind: input, shape index: {}]   ;;  %s13928_s7 = inlined_call_operand.vmem [shape: bf16[32,64], index: 7, kind: input, shape index: {}]   ;;  %s13929_s8 = inlined_call_operand.vmem [shape: bf16[32,64], index: 8, kind: input, shape index: {}]   ;;  %s13930_s9 = inlined_call_operand.vmem [shape: bf16[64,96], index: 9, kind: input, shape index: {}]   ;;  %s13931_s10 = inlined_call_operand.vmem [shape: bf16[32,96], index: 10, kind: input, shape index: {}]   ;;  %s13932_s11 = inlined_call_operand.vmem [shape: f32[4,96], index: 11, kind: input, shape index: {}]   ;;  %s13933_s12 = inlined_call_operand.hbm [shape: f32[2,256,128], index: 12, kind: output, shape index: {}]  }
   0x1   :  { %19 = vsyncpa [#allocation3 + $0x1], 0  ;;  %s9644_s21 = smov 0   ;;  %s9646_s22 = smov 0  }
   0x2   :  { %s9648_s23 = smov 0   ;;  %s9650_s24 = smov 0  }
   0x3 LB: > { %14179 = sst [smem:[#allocation5_spill]] %s9567_s23  ;;  %s9665_s25 = sadd.s32 4294967295, %s9571_s24   ;;  %s9571_s24 = sphi %s9650_s24, %s14687_s24   ;;  %s9567_s23 = sphi %s9648_s23, %s14689_s23   ;;  %s9563_s22 = sphi %s9646_s22, %s14691_s22   ;;  %s9559_s21 = sphi %s9644_s21, %s14690_s21  }
   0x4   : > { %s7349_s26 = sadd.s32 4294967294, %s9571_s24   ;;  %s9669_s27 = sadd.s32 1, %s9571_s24  }
   0x5   : > { %14180 = sst [smem:[#allocation6_spill]] %s9669_s27  ;;  %s299_s28 = sadd.s32 1, %s9567_s23 }
   0x6   : > { %s296_s29 = ssub.s32 %s9571_s24, %s9669_s27  ;;  %p309_p0 = scmp.ne.s32.totalorder %s9567_s23, %s9563_s22 }
   0x7   : > { %p297_p1 = scmp.eq.s32.totalorder %s296_s29, 0  ;;  %p310_p2 = scmp.eq.s32.totalorder %s9665_s25, 1 }
   0x8   : > { %p315_p3 = scmp.ne.s32.totalorder %s9563_s22, %s9559_s21  ;;  %p316_p4 = scmp.eq.s32.totalorder %s7349_s26, 1 }
   0x9   : > { %s9680_s30 = scalar_select %p297_p1, %s9567_s23, %s299_s28  }
   0xa   : > { %p9682_p5 = por %p310_p2, %p309_p0  ;;  %p9686_p6 = por %p316_p4, %p315_p3 }
   0xb   : > { %14181 = sst [smem:[#allocation7_spill]] %s9680_s30  ;;  %p7352_p7 = scmp.ge.s32.totalorder %s9571_s24, 1 }
   0xc   : > { %p385_p8 = scmp.lt.s32.totalorder %s9571_s24, 3 }
   0xe   : > { %p386_p9 = pnand %p7352_p7, %p385_p8 }
  0x10   : > { %389 = sbr.rel (%p386_p9) target bundleno = 3097 (0xc19), region = 68 }
  0x17   : > { %v8668_v0 = vld [vmem:[%s13924_s3 + $0x40] sm:$0xff]   ;;  %v8670_v2 = vld [vmem:[%s13924_s3 + $0x48] sm:$0xff]   ;;  %p437_p10 = scmp.lt.s32.totalorder %s9665_s25, 1  ;;  %v8672_v4 = vld [vmem:[%s13924_s3 + $0x50] sm:$0xff]   ;;  %s9573_s30 = smov 32   ;;  %vm2624_vm0 = vcmask 261120  }
  0x18   : > { %v8669_v1 = vld [vmem:[%s13924_s3] sm:$0xff]   ;;  %7645 = vmatprep.subr.bf16.mxu0 %v8668_v0  ;;  %v8671_v3 = vld [vmem:[%s13924_s3 + $0x8] sm:$0xff]   ;;  %v8673_v5 = vld [vmem:[%s13924_s3 + $0x10] sm:$0xff]   ;;  %s9574_s23 = smov 64   ;;  %s9575_s15 = smov 96   ;;  %vm6010_vm1 = vcmask 523264  }
  0x19   : > { %7646 = vmatpush3.bf16.msra.mxu0 %v8669_v1  ;;  %s9709_s16 = scalar_select %p437_p10, %s9665_s25, 1  ;;  %v8674_v6 = vld [vmem:[%s13924_s3 + $0x58] sm:$0xff]   ;;  %v8676_v8 = vld [vmem:[%s13924_s3 + $0x60] sm:$0xff]   ;;  %v8678_v10 = vld [vmem:[%s13924_s3 + $0x68] sm:$0xff]   ;;  %vm7184_vm2 = vcmask 785408  }
  0x1a   : > { %7647 = vmatprep.subr.bf16.mxu0 %v8670_v2  ;;  %v8675_v7 = vld [vmem:[%s13924_s3 + $0x18] sm:$0xff]   ;;  %v8677_v9 = vld [vmem:[%s13924_s3 + $0x20] sm:$0xff]   ;;  %v8679_v13 = vld [vmem:[%s13924_s3 + $0x28] sm:$0xff]  }
  0x1b   : > { %s8543_s26 = smul.u32 384, %s9709_s16  ;;  %v8687_v12 = vld [vmem:[%s13924_s3 + $0x80] sm:$0xff]   ;;  %v8680_v14 = vld [vmem:[%s13924_s3 + $0x70] sm:$0xff]   ;;  %v8694_v15 = vld [vmem:[%s13924_s3 + $0x88] sm:$0xff]  }
  0x1c   : > { %8479 = vmatprep.subr.bf16.mxu1 %v8687_v12  ;;  %v8681_v16 = vld [vmem:[%s13924_s3 + $0x30] sm:$0xff]   ;;  %v8682_v17 = vld [vmem:[%s13924_s3 + $0x78] sm:$0xff]   ;;  %v8709_v22 = vld [vmem:[%s13924_s3 + $0xa0] sm:$0xff]  }
  0x1d   : > { %7648 = vmatpush3.bf16.msra.mxu0 %v8671_v3  ;;  %s9727_s17 = scalar_lea.vmem %s13921_s0, %s8543_s26  ;;  %8487 = vmatpush3.bf16.msra.mxu1 %v8687_v12  ;;  %v8701_v18 = vld [vmem:[%s13924_s3 + $0x90] sm:$0xff]   ;;  %v8683_v19 = vld [vmem:[%s13924_s3 + $0x38] sm:$0xff]   ;;  %v8713_v24 = vld [vmem:[%s13924_s3 + $0xa8] sm:$0xff]  }
  0x1e   : > { %7649 = vmatprep.subr.bf16.mxu0 %v8672_v4  ;;  %v8686_v11 = vld [vmem:[%s9727_s17 + $0x4] ss:$12 sps:$4 sm:$0xff]   ;;  %8480 = vmatprep.subr.bf16.mxu1 %v8694_v15  ;;  %v8684_v20 = vld [vmem:[%s9727_s17] ss:$12 sps:$4 sm:$0xff]   ;;  %v8708_v21 = vld [vmem:[%s13924_s3 + $0x98] sm:$0xff]  }
  0x1f   : > { %1095 = vmatprep.mubr.bf16.mxu0 %v8686_v11  ;;  %v8688_v23 = vld [vmem:[%s9727_s17 + $0x1c] ss:$12 sps:$4 sm:$0xff]   ;;  %v8690_v26 = vld [vmem:[%s9727_s17 + $0x18] ss:$12 sps:$4 sm:$0xff]   ;;  %v8714_v27 = vld [vmem:[%s13924_s3 + $0xb0] sm:$0xff]  }
  0x20   : > { %v8719_v25 = vld [vmem:[%s9727_s17 + $0xc8] ss:$12 sps:$4 sm:$0xff]   ;;  %v8718_v29 = vld [vmem:[%s13924_s3 + $0xb8] sm:$0xff]   ;;  %v8720_v32 = vld [vmem:[%s9727_s17 + $0xe0] ss:$12 sps:$4 sm:$0xff]  }
  0x21   : > { %7650 = vmatpush3.bf16.msra.mxu0 %v8673_v5  ;;  %8488 = vmatpush3.bf16.msra.mxu1 %v8694_v15  ;;  %v8691_v28 = vld [vmem:[%s9727_s17 + $0x34] ss:$12 sps:$4 sm:$0xff]   ;;  %v8693_v30 = vld [vmem:[%s9727_s17 + $0x30] ss:$12 sps:$4 sm:$0xff]   ;;  %v8695_v31 = vld [vmem:[%s9727_s17 + $0x4c] ss:$12 sps:$4 sm:$0xff]  }
  0x22   : > { %7651 = vmatprep.subr.bf16.mxu0 %v8674_v6  ;;  %8481 = vmatprep.subr.bf16.mxu1 %v8701_v18  ;;  %v8727_v33 = vld [vmem:[%s9727_s17 + $0xf8] ss:$12 sps:$4 sm:$0xff]   ;;  %v8697_v34 = vld [vmem:[%s9727_s17 + $0x48] ss:$12 sps:$4 sm:$0xff]   ;;  %v8728_v36 = vld [vmem:[%s9727_s17 + $0x110] ss:$12 sps:$4 sm:$0xff]  }
  0x23   : > { %8243 = vmatprep.mubr.bf16.mxu1 %v8719_v25  ;;  %v8698_v35 = vld [vmem:[%s9727_s17 + $0x64] ss:$12 sps:$4 sm:$0xff]   ;;  %v8735_v37 = vld [vmem:[%s9727_s17 + $0x128] ss:$12 sps:$4 sm:$0xff]   ;;  %v8700_v38 = vld [vmem:[%s9727_s17 + $0x60] ss:$12 sps:$4 sm:$0xff]  }
  0x24   : > { %v8702_v39 = vld [vmem:[%s9727_s17 + $0x7c] ss:$12 sps:$4 sm:$0xff]   ;;  %v8736_v40 = vld [vmem:[%s9727_s17 + $0x140] ss:$12 sps:$4 sm:$0xff]   ;;  %v8743_v41 = vld [vmem:[%s9727_s17 + $0x158] ss:$12 sps:$4 sm:$0xff]  }
  0x25   : > { %7652 = vmatpush3.bf16.msra.mxu0 %v8675_v7  ;;  %8489 = vmatpush3.bf16.msra.mxu1 %v8701_v18  ;;  %v8704_v42 = vld [vmem:[%s9727_s17 + $0x78] ss:$12 sps:$4 sm:$0xff]   ;;  %v8705_v43 = vld [vmem:[%s9727_s17 + $0x94] ss:$12 sps:$4 sm:$0xff]   ;;  %v8744_v44 = vld [vmem:[%s9727_s17 + $0x170] ss:$12 sps:$4 sm:$0xff]  }
  0x26   : > { %7653 = vmatprep.subr.bf16.mxu0 %v8676_v8  ;;  %8482 = vmatprep.subr.bf16.mxu1 %v8708_v21  ;;  %v8707_v45 = vld [vmem:[%s9727_s17 + $0x90] ss:$12 sps:$4 sm:$0xff]   ;;  %v8710_v46 = vld [vmem:[%s9727_s17 + $0xac] ss:$12 sps:$4 sm:$0xff]   ;;  %v8712_v47 = vld [vmem:[%s9727_s17 + $0xa8] ss:$12 sps:$4 sm:$0xff]  }
  0x27   : > { %v8715_v48 = vld [vmem:[%s9727_s17 + $0xc4] ss:$12 sps:$4 sm:$0xff]   ;;  %v8717_v49 = vld [vmem:[%s9727_s17 + $0xc0] ss:$12 sps:$4 sm:$0xff]   ;;  %v8721_v50 = vld [vmem:[%s9727_s17 + $0xdc] ss:$12 sps:$4 sm:$0xff]  }
  0x28   : > { %v8723_v51 = vld [vmem:[%s9727_s17 + $0xd8] ss:$12 sps:$4 sm:$0xff]   ;;  %v8724_v52 = vld [vmem:[%s9727_s17 + $0xf4] ss:$12 sps:$4 sm:$0xff]   ;;  %v8726_v53 = vld [vmem:[%s9727_s17 + $0xf0] ss:$12 sps:$4 sm:$0xff]  }
  0x29   : > { %7654 = vmatpush3.bf16.msra.mxu0 %v8677_v9  ;;  %8490 = vmatpush3.bf16.msra.mxu1 %v8708_v21  ;;  %v8729_v54 = vld [vmem:[%s9727_s17 + $0x10c] ss:$12 sps:$4 sm:$0xff]   ;;  %v8731_v55 = vld [vmem:[%s9727_s17 + $0x108] ss:$12 sps:$4 sm:$0xff]   ;;  %v8732_v56 = vld [vmem:[%s9727_s17 + $0x124] ss:$12 sps:$4 sm:$0xff]  }
  0x2a   : > { %7655 = vmatprep.subr.bf16.mxu0 %v8678_v10  ;;  %8483 = vmatprep.subr.bf16.mxu1 %v8709_v22  ;;  %v8734_v57 = vld [vmem:[%s9727_s17 + $0x120] ss:$12 sps:$4 sm:$0xff]   ;;  %v8737_v58 = vld [vmem:[%s9727_s17 + $0x13c] ss:$12 sps:$4 sm:$0xff]   ;;  %v8739_v59 = vld [vmem:[%s9727_s17 + $0x138] ss:$12 sps:$4 sm:$0xff]  }
  0x2b   : > { %v8740_v60 = vld [vmem:[%s9727_s17 + $0x154] ss:$12 sps:$4 sm:$0xff]   ;;  %v8742_v61 = vld [vmem:[%s9727_s17 + $0x150] ss:$12 sps:$4 sm:$0xff]   ;;  %v8745_v62 = vld [vmem:[%s9727_s17 + $0x16c] ss:$12 sps:$4 sm:$0xff]  }
  0x2c   : > { %v8747_v63 = vld [vmem:[%s9727_s17 + $0x168] ss:$12 sps:$4 sm:$0xff]   ;;  %v8749_v1 = vld [vmem:[%s9727_s17 + $0x20] ss:$12 sps:$4 sm:$0xff]   ;;  %v8750_v2 = vld [vmem:[%s9727_s17 + $0x38] ss:$12 sps:$4 sm:$0xff]  }
  0x2d   : > { %7656 = vmatpush3.bf16.msra.mxu0 %v8679_v13  ;;  %8491 = vmatpush3.bf16.msra.mxu1 %v8709_v22  ;;  %v8748_v0 = vld [vmem:[%s9727_s17 + $0x8] ss:$12 sps:$4 sm:$0xff]   ;;  %v8751_v3 = vld [vmem:[%s9727_s17 + $0x50] ss:$12 sps:$4 sm:$0xff]   ;;  %v8753_v5 = vld [vmem:[%s9727_s17 + $0x80] ss:$12 sps:$4 sm:$0xff]  }
  0x2e   : > { %7657 = vmatprep.subr.bf16.mxu0 %v8680_v14  ;;  %8484 = vmatprep.subr.bf16.mxu1 %v8713_v24  ;;  %v8752_v4 = vld [vmem:[%s9727_s17 + $0x68] ss:$12 sps:$4 sm:$0xff]   ;;  %v8754_v6 = vld [vmem:[%s9727_s17 + $0x98] ss:$12 sps:$4 sm:$0xff]   ;;  %v8755_v7 = vld [vmem:[%s9727_s17 + $0xb0] ss:$12 sps:$4 sm:$0xff]  }
  0x2f   : > { %s7642_s17 = sshll.u32 %s9709_s16, 8  ;;  %s9576_s16 = smov [#allocation2]  }
  0x30   : > { %s9892_s20 = scalar_lea.vmem %s13922_s1, %s7642_s17  ;;  %s10803_s18 = scalar_lea.vmem %s13923_s2, %s7642_s17 }
  0x31   : > { %7658 = vmatpush3.bf16.msra.mxu0 %v8681_v16  ;;  %8492 = vmatpush3.bf16.msra.mxu1 %v8713_v24  ;;  %s9513_s17 = sshll.u32 %s9576_s16, 4  ;;  %s9514_s17 = int_to_ptr.vmem [resolvable:$false] %s9513_s17 }
  0x32   : > { %7659 = vmatprep.subr.bf16.mxu0 %v8682_v17  ;;  %8485 = vmatprep.subr.bf16.mxu1 %v8714_v27  ;;  %s9515_s19 = scalar_lea.vmem %s9514_s17, 8192 }
  0x35   : > { %7660 = vmatpush3.bf16.msra.mxu0 %v8683_v19  ;;  %8493 = vmatpush3.bf16.msra.mxu1 %v8714_v27 }
  0x36   : > { %8211 = vmatprep.subr.bf16.mxu0 %v8687_v12  ;;  %8486 = vmatprep.subr.bf16.mxu1 %v8718_v29 }
  0x38   : > { %1096 = vmatmul.mubr.bf16.vlgmr.msra.gmra.mrb[0].mxu0 %v8684_v20 }
  0x39   : > { %8212 = vmatpush3.bf16.msra.mxu0 %v8687_v12  ;;  %1103 = vmatprep.mubr.bf16.mxu0 %v8688_v23 }
  0x3a   : > { %8213 = vmatprep.subr.bf16.mxu0 %v8694_v15  ;;  %8494 = vmatpush3.bf16.msra.mxu1 %v8718_v29 }
  0x3d   : > { %8214 = vmatpush3.bf16.msra.mxu0 %v8694_v15  ;;  %8244 = vmatmul.mubr.bf16.vlgmr.msra.gmra.mrb[0].mxu1 %v8720_v32 }
  0x3e   : > { %8215 = vmatprep.subr.bf16.mxu0 %v8701_v18  ;;  %8247 = vmatprep.mubr.bf16.mxu1 %v8727_v33 }
  0x40   : > { %1104 = vmatmul.mubr.bf16.gmra.mrb[4].mxu0 %v8690_v26 }
  0x41   : > { %1111 = vmatprep.mubr.bf16.mxu0 %v8691_v28  ;;  %8216 = vmatpush3.bf16.msra.mxu0 %v8701_v18 }
  0x42   : > { %8217 = vmatprep.subr.bf16.mxu0 %v8708_v21 }
  0x45   : > { %8218 = vmatpush3.bf16.msra.mxu0 %v8708_v21  ;;  %8248 = vmatmul.mubr.bf16.gmra.mrb[4].mxu1 %v8728_v36 }
  0x46   : > { %8219 = vmatprep.subr.bf16.mxu0 %v8709_v22  ;;  %8251 = vmatprep.mubr.bf16.mxu1 %v8735_v37 }
  0x48   : > { %1112 = vmatmul.mubr.bf16.gmra.mrb[8].mxu0 %v8693_v30 }
  0x49   : > { %1119 = vmatprep.mubr.bf16.mxu0 %v8695_v31  ;;  %8220 = vmatpush3.bf16.msra.mxu0 %v8709_v22 }
  0x4a   : > { %8221 = vmatprep.subr.bf16.mxu0 %v8713_v24 }
  0x4d   : > { %8222 = vmatpush3.bf16.msra.mxu0 %v8713_v24  ;;  %8252 = vmatmul.mubr.bf16.gmra.mrb[8].mxu1 %v8736_v40 }
  0x4e   : > { %8223 = vmatprep.subr.bf16.mxu0 %v8714_v27  ;;  %8255 = vmatprep.mubr.bf16.mxu1 %v8743_v41 }
  0x50   : > { %1120 = vmatmul.mubr.bf16.gmra.mrb[12].mxu0 %v8697_v34 }
  0x51   : > { %1127 = vmatprep.mubr.bf16.mxu0 %v8698_v35  ;;  %8224 = vmatpush3.bf16.msra.mxu0 %v8714_v27 }
  0x52   : > { %8225 = vmatprep.subr.bf16.mxu0 %v8718_v29 }
  0x55   : > { %8226 = vmatpush3.bf16.msra.mxu0 %v8718_v29  ;;  %8256 = vmatmul.mubr.bf16.gmra.mrb[12].mxu1 %v8744_v44 }
  0x58   : > { %1128 = vmatmul.mubr.bf16.gmra.mrb[16].mxu0 %v8700_v38 }
  0x59   : > { %1135 = vmatprep.mubr.bf16.mxu0 %v8702_v39 }
  0x60   : > { %1136 = vmatmul.mubr.bf16.gmra.mrb[20].mxu0 %v8704_v42 }
  0x61   : > { %1143 = vmatprep.mubr.bf16.mxu0 %v8705_v43 }
  0x68   : > { %1144 = vmatmul.mubr.bf16.gmra.mrb[24].mxu0 %v8707_v45 }
  0x69   : > { %1151 = vmatprep.mubr.bf16.mxu0 %v8710_v46 }
  0x70   : > { %1152 = vmatmul.mubr.bf16.gmra.mrb[28].mxu0 %v8712_v47 }
  0x71   : > { %1159 = vmatprep.mubr.bf16.mxu0 %v8715_v48 }
  0x78   : > { %1160 = vmatmul.mubr.bf16.gmra.mrb[32].mxu0 %v8717_v49 }
  0x79   : > { %1167 = vmatprep.mubr.bf16.mxu0 %v8721_v50 }
  0x80   : > { %1168 = vmatmul.mubr.bf16.gmra.mrb[36].mxu0 %v8723_v51 }
  0x81   : > { %1175 = vmatprep.mubr.bf16.mxu0 %v8724_v52 }
  0x88   : > { %1176 = vmatmul.mubr.bf16.gmra.mrb[40].mxu0 %v8726_v53 }
  0x89   : > { %1183 = vmatprep.mubr.bf16.mxu0 %v8729_v54 }
  0x90   : > { %1184 = vmatmul.mubr.bf16.gmra.mrb[44].mxu0 %v8731_v55 }
  0x91   : > { %1191 = vmatprep.mubr.bf16.mxu0 %v8732_v56 }
  0x98   : > { %1192 = vmatmul.mubr.bf16.gmra.mrb[48].mxu0 %v8734_v57 }
  0x99   : > { %1199 = vmatprep.mubr.bf16.mxu0 %v8737_v58 }
  0xa0   : > { %1200 = vmatmul.mubr.bf16.gmra.mrb[52].mxu0 %v8739_v59 }
  0xa1   : > { %1207 = vmatprep.mubr.bf16.mxu0 %v8740_v60 }
  0xa8   : > { %1208 = vmatmul.mubr.bf16.gmra.mrb[56].mxu0 %v8742_v61 }
  0xa9   : > { %1215 = vmatprep.mubr.bf16.mxu0 %v8745_v62 }
  0xb0   : > { %1216 = vmatmul.mubr.bf16.gmra.mrb[60].mxu0 %v8747_v63 }
  0xb1   : > { %8227 = vmatprep.mubr.bf16.mxu0 %v8748_v0 }
  0xb8   : > { %8228 = vmatmul.mubr.bf16.vlgmr.msra.gmra.mrb[64].mxu0 %v8749_v1 }
  0xb9   : > { %8231 = vmatprep.mubr.bf16.mxu0 %v8750_v2  ;;  %v659_v2 = vlaneseq }
  0xc0   : > { %8232 = vmatmul.mubr.bf16.gmra.mrb[68].mxu0 %v8751_v3 }
  0xc1   : > { %8235 = vmatprep.mubr.bf16.mxu0 %v8752_v4 }
  0xc8   : > { %8236 = vmatmul.mubr.bf16.gmra.mrb[72].mxu0 %v8753_v5 }
  0xc9   : > { %8239 = vmatprep.mubr.bf16.mxu0 %v8754_v6 }
  0xd0   : > { %8240 = vmatmul.mubr.bf16.gmra.mrb[76].mxu0 %v8755_v7  ;;  %v9884_v7 = vshrl.u32 %v659_v2, 7 }
  0xd2   : > { %14184 = vst [vmem:[#allocation8_spill] sm:$0xff] %v9884_v7 }
 0x10b   : > { %v7661_v8 = vpop.f32.mrb[0].mxu0 }
 0x10c   : > { %v7662_v9 = vpop.f32.mrb[1].mxu0 }
 0x10d   : > { %v9822_v10 = vadd.f32 %v7662_v9, %v7661_v8  ;;  %v7664_v11 = vpop.f32.mrb[2].mxu0 }
 0x10e   : > { %v7665_v12 = vpop.f32.mrb[3].mxu0 }
 0x10f   : > { %v9824_v13 = vadd.f32 %v7665_v12, %v7664_v11  ;;  %v518_v11 = vld [vmem:[%s9892_s20 + $0x8] sm:$0xff]  ;;  %v13938_v12 = vsub.s32 0, %v9884_v7 }
 0x110   : > { %v9832_v24 = vpop.f32.mrb[0].mxu1  ;;  %1890 = vrot.lane.b32.xlu1 %v518_v11, %s9573_s30 }
 0x111   : > { %v9834_v26 = vpop.f32.mrb[1].mxu1 }
 0x112   : > { %v9838_v28 = vpop.f32.mrb[2].mxu1 }
 0x113   : > { %v7667_v14 = vpop.f32.mrb[4].mxu0  ;;  %v9840_v29 = vpop.f32.mrb[3].mxu1 }
 0x114   : > { %v7668_v15 = vpop.f32.mrb[5].mxu0 }
 0x115   : > { %v9826_v16 = vadd.f32 %v7668_v15, %v7667_v14  ;;  %v7670_v17 = vpop.f32.mrb[6].mxu0  ;;  %v9902_v14 = vld [vmem:[%s13925_s4] sm:$0x7] }
 0x116   : > { %v7671_v18 = vpop.f32.mrb[7].mxu0 }
 0x117   : > { %v9828_v19 = vadd.f32 %v7671_v18, %v7670_v17  ;;  %v517_v18 = vld [vmem:[%s9892_s20] sm:$0xff] }
 0x118   : > { %v9844_v34 = vpop.f32.mrb[4].mxu1  ;;  %1888 = vrot.lane.b32.xlu0 %v517_v18, %s9573_s30 }
 0x119   : > { %v9846_v36 = vpop.f32.mrb[5].mxu1 }
 0x11a   : > { %v9850_v38 = vpop.f32.mrb[6].mxu1 }
 0x11b   : > { %v7673_v20 = vpop.f32.mrb[8].mxu0  ;;  %v9852_v39 = vpop.f32.mrb[7].mxu1 }
 0x11c   : > { %v7674_v21 = vpop.f32.mrb[9].mxu0 }
 0x11d   : > { %v9830_v22 = vadd.f32 %v7674_v21, %v7673_v20  ;;  %v7676_v23 = vpop.f32.mrb[10].mxu0 }
 0x11e   : > { %v7677_v25 = vpop.f32.mrb[11].mxu0 }
 0x11f   : > { %v9836_v27 = vadd.f32 %v7677_v25, %v7676_v23  ;;  %v9908_v23 = vrot.slane %v9902_v14, %v13938_v12 }
 0x120   : > { %v9856_v44 = vpop.f32.mrb[8].mxu1 }
 0x121   : > { %v9858_v46 = vpop.f32.mrb[9].mxu1 }
 0x122   : > { %v9862_v48 = vpop.f32.mrb[10].mxu1 }
 0x123   : > { %v7679_v30 = vpop.f32.mrb[12].mxu0  ;;  %v9864_v49 = vpop.f32.mrb[11].mxu1 }
 0x124   : > { %v7680_v31 = vpop.f32.mrb[13].mxu0 }
 0x125   : > { %v9842_v32 = vadd.f32 %v7680_v31, %v7679_v30  ;;  %v7682_v33 = vpop.f32.mrb[14].mxu0 }
 0x126   : > { %v7683_v35 = vpop.f32.mrb[15].mxu0 }
 0x127   : > { %v9848_v37 = vadd.f32 %v7683_v35, %v7682_v33 }
 0x128   : > { %v9868_v54 = vpop.f32.mrb[12].mxu1 }
 0x129   : > { %v9870_v56 = vpop.f32.mrb[13].mxu1 }
 0x12a   : > { %v9874_v58 = vpop.f32.mrb[14].mxu1 }
 0x12b   : > { %v7685_v40 = vpop.f32.mrb[16].mxu0  ;;  %v9876_v59 = vpop.f32.mrb[15].mxu1 }
 0x12c   : > { %v7686_v41 = vpop.f32.mrb[17].mxu0 }
 0x12d   : > { %v9854_v42 = vadd.f32 %v7686_v41, %v7685_v40  ;;  %v7688_v43 = vpop.f32.mrb[18].mxu0 }
 0x12e   : > { %v7689_v45 = vpop.f32.mrb[19].mxu0 }
 0x12f   : > { %v9860_v47 = vadd.f32 %v7689_v45, %v7688_v43 }
 0x133   : > { %v7691_v50 = vpop.f32.mrb[20].mxu0 }
 0x134   : > { %v7692_v51 = vpop.f32.mrb[21].mxu0 }
 0x135   : > { %v9866_v52 = vadd.f32 %v7692_v51, %v7691_v50  ;;  %v7694_v53 = vpop.f32.mrb[22].mxu0 }
 0x136   : > { %v7695_v55 = vpop.f32.mrb[23].mxu0 }
 0x137   : > { %v9872_v57 = vadd.f32 %v7695_v55, %v7694_v53 }
 0x13b   : > { %v7697_v60 = vpop.f32.mrb[24].mxu0 }
 0x13c   : > { %v7698_v61 = vpop.f32.mrb[25].mxu0 }
 0x13d   : > { %v9878_v62 = vadd.f32 %v7698_v61, %v7697_v60  ;;  %v7700_v63 = vpop.f32.mrb[26].mxu0  ;;  %v520_v60 = vld [vmem:[%s9892_s20 + $0x18] sm:$0xff] }
 0x13e   : > { %v7701_v0 = vpop.f32.mrb[27].mxu0  ;;  %1894 = vrot.lane.b32.xlu1 %v520_v60, %s9573_s30 }
 0x13f   : > { %v9880_v1 = vadd.f32 %v7701_v0, %v7700_v63 }
 0x143   : > { %v7703_v3 = vpop.f32.mrb[28].mxu0 }
 0x144   : > { %v7704_v4 = vpop.f32.mrb[29].mxu0 }
 0x145   : > { %v9882_v5 = vadd.f32 %v7704_v4, %v7703_v3  ;;  %v7706_v6 = vpop.f32.mrb[30].mxu0 }
 0x146   : > { %v7707_v8 = vpop.f32.mrb[31].mxu0 }
 0x147   : > { %v9894_v9 = vadd.f32 %v7707_v8, %v7706_v6 }
 0x14b   : > { %v7709_v15 = vpop.f32.mrb[32].mxu0 }
 0x14c   : > { %v7710_v17 = vpop.f32.mrb[33].mxu0 }
 0x14d   : > { %v7711_v20 = vadd.f32 %v7710_v17, %v7709_v15  ;;  %v7712_v21 = vpop.f32.mrb[34].mxu0 }
 0x14e   : > { %v7713_v25 = vpop.f32.mrb[35].mxu0 }
 0x14f   : > { %v7714_v30 = vadd.f32 %v7713_v25, %v7712_v21  ;;  %v1162_v31 = vadd.f32 %v7711_v20, %v9908_v23 }
 0x151   : > { %v9913_v33 = vadd.f32 %v9834_v26, %v1162_v31  ;;  %v1165_v35 = vadd.f32 %v7714_v30, %v9908_v23 }
 0x153   : > { %v9917_v40 = vadd.f32 %v9840_v29, %v1165_v35  ;;  %v7715_v41 = vpop.f32.mrb[36].mxu0 }
 0x154   : > { %v7716_v43 = vpop.f32.mrb[37].mxu0 }
 0x155   : > { %v7717_v45 = vadd.f32 %v7716_v43, %v7715_v41  ;;  %v7718_v50 = vpop.f32.mrb[38].mxu0 }
 0x156   : > { %v7719_v51 = vpop.f32.mrb[39].mxu0 }
 0x157   : > { %v1170_v53 = vadd.f32 %v7717_v45, %v9908_v23  ;;  %v7720_v55 = vadd.f32 %v7719_v51, %v7718_v50 }
 0x159   : > { %v9923_v61 = vadd.f32 %v9832_v24, %v1170_v53  ;;  %v1173_v26 = vadd.f32 %v7720_v55, %v9908_v23 }
 0x15b   : > { %v9927_v63 = vadd.f32 %v9838_v28, %v1173_v26  ;;  %v7721_v29 = vpop.f32.mrb[40].mxu0 }
 0x15c   : > { %v7722_v0 = vpop.f32.mrb[41].mxu0 }
 0x15d   : > { %v7723_v2 = vadd.f32 %v7722_v0, %v7721_v29  ;;  %v7724_v3 = vpop.f32.mrb[42].mxu0 }
 0x15e   : > { %v7725_v4 = vpop.f32.mrb[43].mxu0 }
 0x15f   : > { %v7726_v6 = vadd.f32 %v7725_v4, %v7724_v3  ;;  %v1178_v8 = vadd.f32 %v7723_v2, %v9908_v23 }
 0x161   : > { %v9931_v11 = vadd.f32 %v9846_v36, %v1178_v8  ;;  %v1181_v15 = vadd.f32 %v7726_v6, %v9908_v23 }
 0x163   : > { %v9935_v24 = vadd.f32 %v9852_v39, %v1181_v15  ;;  %v7727_v17 = vpop.f32.mrb[44].mxu0 }
 0x164   : > { %v7728_v18 = vpop.f32.mrb[45].mxu0 }
 0x165   : > { %v7729_v28 = vadd.f32 %v7728_v18, %v7727_v17  ;;  %v7730_v20 = vpop.f32.mrb[46].mxu0 }
 0x166   : > { %v7731_v21 = vpop.f32.mrb[47].mxu0 }
 0x167   : > { %v1186_v25 = vadd.f32 %v7729_v28, %v9908_v23  ;;  %v7732_v30 = vadd.f32 %v7731_v21, %v7730_v20 }
 0x169   : > { %v9939_v31 = vadd.f32 %v9844_v34, %v1186_v25  ;;  %v1189_v36 = vadd.f32 %v7732_v30, %v9908_v23 }
 0x16b   : > { %v9943_v35 = vadd.f32 %v9850_v38, %v1189_v36  ;;  %v7733_v41 = vpop.f32.mrb[48].mxu0  ;;  %v519_v38 = vld [vmem:[%s9892_s20 + $0x10] sm:$0xff] }
 0x16c   : > { %v7734_v39 = vpop.f32.mrb[49].mxu0  ;;  %1892 = vrot.lane.b32.xlu0 %v519_v38, %s9573_s30 }
 0x16d   : > { %v7735_v43 = vadd.f32 %v7734_v39, %v7733_v41  ;;  %v7736_v45 = vpop.f32.mrb[50].mxu0 }
 0x16e   : > { %v7737_v50 = vpop.f32.mrb[51].mxu0 }
 0x16f   : > { %v7738_v51 = vadd.f32 %v7737_v50, %v7736_v45  ;;  %v1194_v53 = vadd.f32 %v7735_v43, %v9908_v23 }
 0x171   : > { %v9947_v55 = vadd.f32 %v9858_v46, %v1194_v53  ;;  %v1197_v60 = vadd.f32 %v7738_v51, %v9908_v23 }
 0x173   : > { %v9951_v34 = vadd.f32 %v9864_v49, %v1197_v60  ;;  %v7739_v26 = vpop.f32.mrb[52].mxu0 }
 0x174   : > { %v7740_v29 = vpop.f32.mrb[53].mxu0 }
 0x175   : > { %v7741_v0 = vadd.f32 %v7740_v29, %v7739_v26  ;;  %v7742_v2 = vpop.f32.mrb[54].mxu0  ;;  %v1098_v29 = vadd.f32 %v9822_v10, %v9908_v23 }
 0x176   : > { %v7743_v3 = vpop.f32.mrb[55].mxu0 }
 0x177   : > { %v1202_v4 = vadd.f32 %v7741_v0, %v9908_v23  ;;  %v7744_v6 = vadd.f32 %v7743_v3, %v7742_v2  ;;  %v1109_v2 = vadd.f32 %v9828_v19, %v9908_v23 }
 0x179   : > { %v9957_v8 = vadd.f32 %v9856_v44, %v1202_v4  ;;  %v1205_v46 = vadd.f32 %v7744_v6, %v9908_v23  ;;  %v1101_v4 = vadd.f32 %v9824_v13, %v9908_v23 }
 0x17b   : > { %v9961_v15 = vadd.f32 %v9862_v48, %v1205_v46  ;;  %v7745_v49 = vpop.f32.mrb[56].mxu0  ;;  %v1122_v46 = vadd.f32 %v9842_v32, %v9908_v23  ;;  %v1117_v32 = vadd.f32 %v9836_v27, %v9908_v23 }
 0x17c   : > { %v7746_v17 = vpop.f32.mrb[57].mxu0 }
 0x17d   : > { %v7747_v18 = vadd.f32 %v7746_v17, %v7745_v49  ;;  %v7748_v28 = vpop.f32.mrb[58].mxu0  ;;  %v1114_v17 = vadd.f32 %v9830_v22, %v9908_v23 }
 0x17e   : > { %v7749_v20 = vpop.f32.mrb[59].mxu0 }
 0x17f   : > { %v7750_v21 = vadd.f32 %v7749_v20, %v7748_v28  ;;  %v1210_v25 = vadd.f32 %v7747_v18, %v9908_v23  ;;  %v1125_v28 = vadd.f32 %v9848_v37, %v9908_v23 }
 0x181   : > { %v9965_v30 = vadd.f32 %v9870_v56, %v1210_v25  ;;  %v1213_v36 = vadd.f32 %v7750_v21, %v9908_v23  ;;  %v1106_v56 = vadd.f32 %v9826_v16, %v9908_v23 }
 0x183   : > { %v9969_v44 = vadd.f32 %v9876_v59, %v1213_v36  ;;  %v7751_v41 = vpop.f32.mrb[60].mxu0  ;;  %v522_v36 = vld [vmem:[%s9892_s20 + $0x28] sm:$0xff] }
 0x184   : > { %v7752_v39 = vpop.f32.mrb[61].mxu0  ;;  %1898 = vrot.lane.b32.xlu1 %v522_v36, %s9573_s30 }
 0x185   : > { %v7753_v48 = vadd.f32 %v7752_v39, %v7751_v41  ;;  %v7754_v43 = vpop.f32.mrb[62].mxu0  ;;  %v521_v41 = vld [vmem:[%s9892_s20 + $0x20] sm:$0xff] }
 0x186   : > { %v7755_v45 = vpop.f32.mrb[63].mxu0  ;;  %1896 = vrot.lane.b32.xlu0 %v521_v41, %s9573_s30 }
 0x187   : > { %v1218_v50 = vadd.f32 %v7753_v48, %v9908_v23  ;;  %v7756_v51 = vadd.f32 %v7755_v45, %v7754_v43  ;;  %v1138_v45 = vadd.f32 %v9866_v52, %v9908_v23  ;;  %v1133_v52 = vadd.f32 %v9860_v47, %v9908_v23 }
 0x188   : > { %v1146_v47 = vadd.f32 %v9878_v62, %v9908_v23 }
 0x189   : > { %v9973_v53 = vadd.f32 %v9868_v54, %v1218_v50  ;;  %v1221_v60 = vadd.f32 %v7756_v51, %v9908_v23  ;;  %v1130_v51 = vadd.f32 %v9854_v42, %v9908_v23 }
 0x18b   : > { %v9979_v26 = vadd.f32 %v9874_v58, %v1221_v60  ;;  %v8229_v59 = vpop.f32.mrb[64].mxu0 }
 0x18c   : > { %v9983_v38 = vadd.f32 %v8229_v59, %v1106_v56  ;;  %v1258_v0 = vpop.f32.mrb[65].mxu0  ;;  %v1141_v59 = vadd.f32 %v9872_v57, %v9908_v23  ;;  %v1154_v57 = vadd.f32 %v9882_v5, %v9908_v23 }
 0x18d   : > { %v9987_v54 = vadd.f32 %v1258_v0, %v1098_v29  ;;  %v8230_v3 = vpop.f32.mrb[66].mxu0 }
 0x18e   : > { %v9991_v16 = vadd.f32 %v8230_v3, %v1109_v2  ;;  %v1261_v58 = vpop.f32.mrb[67].mxu0 }
 0x18f   : > { %v9993_v6 = vadd.f32 %v1261_v58, %v1101_v4 }
 0x191   : > { %v1385_v10 = vadd.f32 %v9993_v6, %v9987_v54 }
 0x193   : > { %v1386_v19 = vadd.f32 %v1385_v10, %v9983_v38  ;;  %v8233_v49 = vpop.f32.mrb[68].mxu0 }
 0x194   : > { %v10002_v13 = vadd.f32 %v8233_v49, %v1122_v46  ;;  %v1274_v18 = vpop.f32.mrb[69].mxu0 }
 0x195   : > { %v10006_v20 = vadd.f32 %v1274_v18, %v1114_v17  ;;  %v1387_v21 = vadd.f32 %v1386_v19, %v9991_v16  ;;  %v8234_v25 = vpop.f32.mrb[70].mxu0  ;;  %v1157_v18 = vadd.f32 %v9894_v9, %v9908_v23 }
 0x196   : > { %v10013_v39 = vadd.f32 %v8234_v25, %v1125_v28  ;;  %v1277_v48 = vpop.f32.mrb[71].mxu0  ;;  %v1149_v25 = vadd.f32 %v9880_v1, %v9908_v23 }
 0x197   : > { %v1388_v22 = vadd.f32 %v1387_v21, %v10006_v20  ;;  %v10018_v37 = vadd.f32 %v1277_v48, %v1117_v32 }
 0x199   : > { %v1389_v43 = vadd.f32 %v1388_v22, %v10018_v37  ;;  %v524_v22 = vld [vmem:[%s9892_s20 + $0x38] sm:$0xff] }
 0x19a   : > { %1902 = vrot.lane.b32.xlu1 %v524_v22, %s9573_s30  ;;  %v537_v22 = vld [vmem:[%s9892_s20 + $0xa0] sm:$0xff] }
 0x19b   : > { %v1390_v27 = vadd.f32 %v1389_v43, %v10002_v13  ;;  %v8237_v50 = vpop.f32.mrb[72].mxu0  ;;  %v523_v43 = vld [vmem:[%s9892_s20 + $0x30] sm:$0xff] }
 0x19c   : > { %v10026_v60 = vadd.f32 %v8237_v50, %v1138_v45  ;;  %v1290_v56 = vpop.f32.mrb[73].mxu0  ;;  %1900 = vrot.lane.b32.xlu0 %v523_v43, %s9573_s30  ;;  %v526_v45 = vld [vmem:[%s9892_s20 + $0x48] sm:$0xff] }
 0x19d   : > { %v10030_v29 = vadd.f32 %v1290_v56, %v1130_v51  ;;  %v1391_v0 = vadd.f32 %v1390_v27, %v10013_v39  ;;  %v8238_v2 = vpop.f32.mrb[74].mxu0  ;;  %v525_v27 = vld [vmem:[%s9892_s20 + $0x40] sm:$0xff]  ;;  %v528_v56 = vld [vmem:[%s9892_s20 + $0x58] sm:$0xff] }
 0x19e   : > { %v10035_v3 = vadd.f32 %v8238_v2, %v1141_v59  ;;  %v1293_v4 = vpop.f32.mrb[75].mxu0  ;;  %1906 = vrot.lane.b32.xlu1 %v526_v45, %s9573_s30  ;;  %v527_v59 = vld [vmem:[%s9892_s20 + $0x50] sm:$0xff] }
 0x19f   : > { %v1392_v58 = vadd.f32 %v1391_v0, %v10030_v29  ;;  %v10038_v42 = vadd.f32 %v1293_v4, %v1133_v52  ;;  %v530_v52 = vld [vmem:[%s9892_s20 + $0x68] sm:$0xff]  ;;  %v529_v4 = vld [vmem:[%s9892_s20 + $0x60] sm:$0xff]  ;;  %v539_v45 = vld [vmem:[%s9892_s20 + $0xb0] sm:$0xff] }
 0x1a0   : > { %1904 = vrot.lane.b32.xlu0 %v525_v27, %s9573_s30 }
 0x1a1   : > { %v1393_v10 = vadd.f32 %v1392_v58, %v10038_v42 }
 0x1a2   : > { %1910 = vrot.lane.b32.xlu1 %v528_v56, %s9573_s30  ;;  %v541_v56 = vld [vmem:[%s9892_s20 + $0xc0] sm:$0xff] }
 0x1a3   : > { %v1394_v46 = vadd.f32 %v1393_v10, %v10026_v60  ;;  %v8241_v19 = vpop.f32.mrb[76].mxu0 }
 0x1a4   : > { %v10046_v49 = vadd.f32 %v8241_v19, %v1154_v57  ;;  %v1306_v17 = vpop.f32.mrb[77].mxu0  ;;  %1908 = vrot.lane.b32.xlu0 %v527_v59, %s9573_s30  ;;  %v532_v57 = vld [vmem:[%s9892_s20 + $0x78] sm:$0xff] }
 0x1a5   : > { %v10050_v28 = vadd.f32 %v1306_v17, %v1146_v47  ;;  %v1395_v21 = vadd.f32 %v1394_v46, %v10035_v3  ;;  %v8242_v5 = vpop.f32.mrb[78].mxu0  ;;  %v531_v46 = vld [vmem:[%s9892_s20 + $0x70] sm:$0xff]  ;;  %v534_v17 = vld [vmem:[%s9892_s20 + $0x88] sm:$0xff] }
 0x1a6   : > { %v10055_v32 = vadd.f32 %v8242_v5, %v1157_v18  ;;  %v1309_v36 = vpop.f32.mrb[79].mxu0  ;;  %1914 = vrot.lane.b32.xlu1 %v530_v52, %s9573_s30  ;;  %v533_v18 = vld [vmem:[%s9892_s20 + $0x80] sm:$0xff]  ;;  %v543_v52 = vld [vmem:[%s9892_s20 + $0xd0] sm:$0xff] }
 0x1a7   : > { %v1396_v62 = vadd.f32 %v1395_v21, %v10050_v28  ;;  %v10058_v41 = vadd.f32 %v1309_v36, %v1149_v25  ;;  %v536_v25 = vld [vmem:[%s9892_s20 + $0x98] sm:$0xff]  ;;  %v535_v36 = vld [vmem:[%s9892_s20 + $0x90] sm:$0xff] }
 0x1a8   : > { %1912 = vrot.lane.b32.xlu0 %v529_v4, %s9573_s30 }
 0x1a9   : > { %v1397_v9 = vadd.f32 %v1396_v62, %v10058_v41 }
 0x1aa   : > { %1918 = vrot.lane.b32.xlu1 %v532_v57, %s9573_s30 }
 0x1ab   : > { %v1398_v48 = vadd.f32 %v1397_v9, %v10046_v49 }
 0x1ac   : > { %1916 = vrot.lane.b32.xlu0 %v531_v46, %s9573_s30 }
 0x1ad   : > { %v1399_v1 = vadd.f32 %v1398_v48, %v10055_v32  ;;  %v538_v48 = vld [vmem:[%s9892_s20 + $0xa8] sm:$0xff] }
 0x1ae   : > { %1922 = vrot.lane.b32.xlu1 %v534_v17, %s9573_s30 }
 0x1af   : > { %v1400_v23 = vadd.f32 %v1399_v1, %v9913_v33 }
 0x1b0   : > { %1920 = vrot.lane.b32.xlu0 %v533_v18, %s9573_s30 }
 0x1b1   : > { %v1401_v50 = vadd.f32 %v1400_v23, %v9917_v40  ;;  %v540_v23 = vld [vmem:[%s9892_s20 + $0xb8] sm:$0xff] }
 0x1b2   : > { %1926 = vrot.lane.b32.xlu1 %v536_v25, %s9573_s30 }
 0x1b3   : > { %v1402_v51 = vadd.f32 %v1401_v50, %v9923_v61 }
 0x1b4   : > { %1924 = vrot.lane.b32.xlu0 %v535_v36, %s9573_s30 }
 0x1b5   : > { %v1403_v0 = vadd.f32 %v1402_v51, %v9927_v63  ;;  %v542_v51 = vld [vmem:[%s9892_s20 + $0xc8] sm:$0xff] }
 0x1b6   : > { %1930 = vrot.lane.b32.xlu1 %v538_v48, %s9573_s30 }
 0x1b7   : > { %v1404_v2 = vadd.f32 %v1403_v0, %v9931_v11 }
 0x1b8   : > { %1928 = vrot.lane.b32.xlu0 %v537_v22, %s9573_s30 }
 0x1b9   : > { %v1405_v58 = vadd.f32 %v1404_v2, %v9935_v24  ;;  %v544_v2 = vld [vmem:[%s9892_s20 + $0xd8] sm:$0xff] }
 0x1ba   : > { %1934 = vrot.lane.b32.xlu1 %v540_v23, %s9573_s30 }
 0x1bb   : > { %v1406_v10 = vadd.f32 %v1405_v58, %v9939_v31 }
 0x1bc   : > { %1932 = vrot.lane.b32.xlu0 %v539_v45, %s9573_s30 }
 0x1bd   : > { %v1407_v19 = vadd.f32 %v1406_v10, %v9943_v35 }
 0x1be   : > { %1938 = vrot.lane.b32.xlu1 %v542_v51, %s9573_s30 }
 0x1bf   : > { %v1408_v47 = vadd.f32 %v1407_v19, %v9947_v55 }
 0x1c0   : > { %1936 = vrot.lane.b32.xlu0 %v541_v56, %s9573_s30 }
 0x1c1   : > { %v1409_v21 = vadd.f32 %v1408_v47, %v9951_v34 }
 0x1c2   : > { %1942 = vrot.lane.b32.xlu1 %v544_v2, %s9573_s30 }
 0x1c3   : > { %v1410_v5 = vadd.f32 %v1409_v21, %v9957_v8 }
 0x1c4   : > { %1940 = vrot.lane.b32.xlu0 %v543_v52, %s9573_s30 }
 0x1c5   : > { %v1411_v62 = vadd.f32 %v1410_v5, %v9961_v15 }
 0x1c7   : > { %v1412_v9 = vadd.f32 %v1411_v62, %v9965_v30 }
 0x1c9   : > { %v1413_v43 = vadd.f32 %v1412_v9, %v9969_v44 }
 0x1cb   : > { %v1414_v1 = vadd.f32 %v1413_v43, %v9973_v53 }
 0x1cd   : > { %v1415_v27 = vadd.f32 %v1414_v1, %v9979_v26 }
 0x1cf   : > { %v1416_v50 = vrot.slane %v1415_v27, 4 }
 0x1d1   : > { %v1417_v59 = vadd.f32 %v1416_v50, %v1415_v27 }
 0x1d3   : > { %v1418_v0 = vrot.slane %v1417_v59, 2 }
 0x1d5   : > { %v1419_v4 = vadd.f32 %v1418_v0, %v1417_v59 }
 0x1d7   : > { %v1420_v58 = vrot.slane %v1419_v4, 1 }
 0x1d9   : > { %v1421_v10 = vadd.f32 %v1420_v58, %v1419_v4 }
 0x1db   : > { %v1423_v57 = vmul.f32 0.00390625, %v1421_v10 }
 0x1dd   : > { %v10124_v46 = vsub.f32 %v10030_v29, %v1423_v57  ;;  %v10127_v19 = vsub.f32 %v10038_v42, %v1423_v57  ;;  %v10130_v47 = vsub.f32 %v10026_v60, %v1423_v57  ;;  %v10133_v17 = vsub.f32 %v10035_v3, %v1423_v57 }
 0x1de   : > { %v10136_v18 = vsub.f32 %v10050_v28, %v1423_v57  ;;  %v10139_v21 = vsub.f32 %v10058_v41, %v1423_v57  ;;  %v10142_v5 = vsub.f32 %v10046_v49, %v1423_v57  ;;  %v10145_v29 = vsub.f32 %v10055_v32, %v1423_v57 }
 0x1df   : > { %v10148_v42 = vsub.f32 %v9913_v33, %v1423_v57  ;;  %v10151_v60 = vsub.f32 %v9917_v40, %v1423_v57  ;;  %v10154_v3 = vsub.f32 %v9923_v61, %v1423_v57  ;;  %v10157_v28 = vsub.f32 %v9927_v63, %v1423_v57 }
 0x1e0   : > { %v10160_v41 = vsub.f32 %v9931_v11, %v1423_v57  ;;  %v10163_v49 = vsub.f32 %v9935_v24, %v1423_v57  ;;  %v10166_v32 = vsub.f32 %v9939_v31, %v1423_v57  ;;  %v10169_v33 = vsub.f32 %v9943_v35, %v1423_v57 }
 0x1e1   : > { %v10172_v40 = vsub.f32 %v9947_v55, %v1423_v57  ;;  %v10175_v61 = vsub.f32 %v9951_v34, %v1423_v57  ;;  %v10178_v63 = vsub.f32 %v9957_v8, %v1423_v57  ;;  %v10181_v11 = vsub.f32 %v9961_v15, %v1423_v57 }
 0x1e2   : > { %v10184_v24 = vsub.f32 %v9965_v30, %v1423_v57  ;;  %v10187_v31 = vsub.f32 %v9969_v44, %v1423_v57  ;;  %v10190_v35 = vsub.f32 %v9973_v53, %v1423_v57  ;;  %v10193_v55 = vsub.f32 %v9979_v26, %v1423_v57 }
 0x1e3   : > { %v10196_v34 = vsub.f32 %v9987_v54, %v1423_v57  ;;  %v10199_v8 = vsub.f32 %v9993_v6, %v1423_v57  ;;  %v10202_v15 = vsub.f32 %v9983_v38, %v1423_v57  ;;  %v10209_v53 = vsub.f32 %v9991_v16, %v1423_v57 }
 0x1e4   : > { %v10212_v26 = vsub.f32 %v10006_v20, %v1423_v57  ;;  %v10217_v25 = vsub.f32 %v10018_v37, %v1423_v57  ;;  %v10222_v62 = vsub.f32 %v10002_v13, %v1423_v57  ;;  %v10227_v20 = vsub.f32 %v10013_v39, %v1423_v57 }
 0x1e5   : > { %v1456_v30 = vmul.f32 %v10196_v34, %v10196_v34  ;;  %v1457_v44 = vmul.f32 %v10199_v8, %v10199_v8  ;;  %v1458_v54 = vmul.f32 %v10202_v15, %v10202_v15  ;;  %v1459_v38 = vmul.f32 %v10209_v53, %v10209_v53 }
 0x1e6   : > { %v1460_v16 = vmul.f32 %v10212_v26, %v10212_v26  ;;  %v1461_v48 = vmul.f32 %v10217_v25, %v10217_v25  ;;  %v1462_v37 = vmul.f32 %v10222_v62, %v10222_v62  ;;  %v1463_v1 = vmul.f32 %v10227_v20, %v10227_v20 }
 0x1e7   : > { %v1488_v6 = vadd.f32 %v1457_v44, %v1456_v30  ;;  %v1464_v23 = vmul.f32 %v10124_v46, %v10124_v46  ;;  %v1465_v39 = vmul.f32 %v10127_v19, %v10127_v19  ;;  %v1466_v50 = vmul.f32 %v10130_v47, %v10130_v47 }
 0x1e8   : > { %v1467_v56 = vmul.f32 %v10133_v17, %v10133_v17  ;;  %v1468_v0 = vmul.f32 %v10136_v18, %v10136_v18  ;;  %v1469_v52 = vmul.f32 %v10139_v21, %v10139_v21  ;;  %v1470_v58 = vmul.f32 %v10142_v5, %v10142_v5 }
 0x1e9   : > { %v1489_v36 = vadd.f32 %v1488_v6, %v1458_v54  ;;  %v1471_v57 = vmul.f32 %v10145_v29, %v10145_v29  ;;  %v1472_v44 = vmul.f32 %v10148_v42, %v10148_v42  ;;  %v1473_v6 = vmul.f32 %v10151_v60, %v10151_v60 }
 0x1eb   : > { %v1490_v9 = vadd.f32 %v1489_v36, %v1459_v38  ;;  %v1474_v36 = vmul.f32 %v10154_v3, %v10154_v3 }
 0x1ed   : > { %v1491_v22 = vadd.f32 %v1490_v9, %v1460_v16  ;;  %v1475_v9 = vmul.f32 %v10157_v28, %v10157_v28 }
 0x1ef   : > { %v1492_v43 = vadd.f32 %v1491_v22, %v1461_v48  ;;  %v1476_v22 = vmul.f32 %v10160_v41, %v10160_v41 }
 0x1f1   : > { %v1493_v13 = vadd.f32 %v1492_v43, %v1462_v37  ;;  %v1477_v43 = vmul.f32 %v10163_v49, %v10163_v49 }
 0x1f3   : > { %v1494_v45 = vadd.f32 %v1493_v13, %v1463_v1  ;;  %v1478_v13 = vmul.f32 %v10166_v32, %v10166_v32 }
 0x1f5   : > { %v1495_v27 = vadd.f32 %v1494_v45, %v1464_v23  ;;  %v1479_v45 = vmul.f32 %v10169_v33, %v10169_v33 }
 0x1f7   : > { %v1496_v51 = vadd.f32 %v1495_v27, %v1465_v39  ;;  %v1480_v27 = vmul.f32 %v10172_v40, %v10172_v40 }
 0x1f9   : > { %v1497_v59 = vadd.f32 %v1496_v51, %v1466_v50  ;;  %v1481_v51 = vmul.f32 %v10175_v61, %v10175_v61 }
 0x1fb   : > { %v1498_v2 = vadd.f32 %v1497_v59, %v1467_v56  ;;  %v1482_v59 = vmul.f32 %v10178_v63, %v10178_v63 }
 0x1fd   : > { %v1499_v4 = vadd.f32 %v1498_v2, %v1468_v0  ;;  %v1483_v2 = vmul.f32 %v10181_v11, %v10181_v11 }
 0x1ff   : > { %v1500_v10 = vadd.f32 %v1499_v4, %v1469_v52  ;;  %v1484_v4 = vmul.f32 %v10184_v24, %v10184_v24 }
 0x201   : > { %v1501_v30 = vadd.f32 %v1500_v10, %v1470_v58  ;;  %v1485_v10 = vmul.f32 %v10187_v31, %v10187_v31 }
 0x203   : > { %v1502_v54 = vadd.f32 %v1501_v30, %v1471_v57  ;;  %v1486_v30 = vmul.f32 %v10190_v35, %v10190_v35 }
 0x205   : > { %v1503_v38 = vadd.f32 %v1502_v54, %v1472_v44  ;;  %v1487_v54 = vmul.f32 %v10193_v55, %v10193_v55 }
 0x207   : > { %v1504_v16 = vadd.f32 %v1503_v38, %v1473_v6 }
 0x209   : > { %v1505_v48 = vadd.f32 %v1504_v16, %v1474_v36 }
 0x20b   : > { %v1506_v37 = vadd.f32 %v1505_v48, %v1475_v9 }
 0x20d   : > { %v1507_v1 = vadd.f32 %v1506_v37, %v1476_v22 }
 0x20f   : > { %v1508_v23 = vadd.f32 %v1507_v1, %v1477_v43 }
 0x211   : > { %v1509_v39 = vadd.f32 %v1508_v23, %v1478_v13  ;;  %v13939_v13 = vsub.s32 1, %v9884_v7 }
 0x213   : > { %v1510_v50 = vadd.f32 %v1509_v39, %v1479_v45  ;;  %v10289_v45 = vrot.slane %v9902_v14, %v13939_v13  ;;  %v13937_v39 = vsub.s32 2, %v9884_v7 }
 0x215   : > { %v1511_v56 = vadd.f32 %v1510_v50, %v1480_v27 }
 0x217   : > { %v1512_v0 = vadd.f32 %v1511_v56, %v1481_v51  ;;  %v10299_v51 = vrot.slane %v9902_v14, %v13937_v39 }
 0x219   : > { %v1513_v52 = vadd.f32 %v1512_v0, %v1482_v59 }
 0x21b   : > { %v1514_v58 = vadd.f32 %v1513_v52, %v1483_v2 }
 0x21d   : > { %v1515_v57 = vadd.f32 %v1514_v58, %v1484_v4 }
 0x21f   : > { %v1516_v44 = vadd.f32 %v1515_v57, %v1485_v10 }
 0x221   : > { %v1517_v6 = vadd.f32 %v1516_v44, %v1486_v30 }
 0x223   : > { %v1518_v38 = vadd.f32 %v1517_v6, %v1487_v54 }
 0x225   : > { %v1519_v36 = vrot.slane %v1518_v38, 4 }
 0x227   : > { %v1520_v16 = vadd.f32 %v1519_v36, %v1518_v38 }
 0x229   : > { %v1521_v9 = vrot.slane %v1520_v16, 2 }
 0x22b   : > { %v1522_v48 = vadd.f32 %v1521_v9, %v1520_v16 }
 0x22d   : > { %v1523_v22 = vrot.slane %v1522_v48, 1 }
 0x22f   : > { %v1524_v37 = vadd.f32 %v1523_v22, %v1522_v48 }
 0x231   : > { %v1525_v43 = vmul.f32 0.00390625, %v1524_v37 }
 0x233   : > { %v1526_v1 = vadd.f32 1e-05, %v1525_v43 }
 0x235   : > { %8770 = vrsqrt.f32 %v1526_v1 }
 0x23f   : > { %v10284_v23 = vpop.eup %8770 }
 0x240   : > { %v1528_v27 = vmul.f32 %v10284_v23, %v10196_v34  ;;  %v1530_v50 = vmul.f32 %v10284_v23, %v10202_v15  ;;  %v1529_v56 = vmul.f32 %v10284_v23, %v10199_v8  ;;  %v1531_v0 = vmul.f32 %v10284_v23, %v10209_v53 }
 0x241   : > { %v1532_v34 = vmul.f32 %v10284_v23, %v10212_v26  ;;  %v1533_v14 = vmul.f32 %v10284_v23, %v10217_v25  ;;  %v1534_v53 = vmul.f32 %v10284_v23, %v10222_v62  ;;  %v1535_v10 = vmul.f32 %v10284_v23, %v10227_v20 }
 0x242   : > { %v1564_v59 = vmul.f32 %v10289_v45, %v1528_v27  ;;  %v1566_v2 = vmul.f32 %v10289_v45, %v1530_v50  ;;  %v1565_v15 = vmul.f32 %v10289_v45, %v1529_v56  ;;  %v1567_v8 = vmul.f32 %v10289_v45, %v1531_v0 }
 0x243   : > { %v1568_v58 = vmul.f32 %v10289_v45, %v1532_v34  ;;  %v1569_v25 = vmul.f32 %v10289_v45, %v1533_v14  ;;  %v1536_v62 = vmul.f32 %v10284_v23, %v10124_v46  ;;  %v1570_v30 = vmul.f32 %v10289_v45, %v1534_v53 }
 0x244   : > { %v10311_v52 = vadd.f32 %v10299_v51, %v1564_v59  ;;  %v10317_v4 = vadd.f32 %v10299_v51, %v1566_v2  ;;  %v10323_v26 = vadd.f32 %v10299_v51, %v1565_v15  ;;  %v10330_v57 = vadd.f32 %v10299_v51, %v1567_v8 }
 0x245   : > { %v10337_v44 = vadd.f32 %v10299_v51, %v1568_v58  ;;  %v1537_v20 = vmul.f32 %v10284_v23, %v10127_v19  ;;  %v1571_v54 = vmul.f32 %v10289_v45, %v1535_v10  ;;  %v10344_v6 = vadd.f32 %v10299_v51, %v1569_v25 }
 0x246   : > { %8772 = vtanh.f32 %v10311_v52  ;;  %v1538_v46 = vmul.f32 %v10284_v23, %v10130_v47  ;;  %v1572_v38 = vmul.f32 %v10289_v45, %v1536_v62  ;;  %v10351_v36 = vadd.f32 %v10299_v51, %v1570_v30 }
 0x247   : > { %8774 = vtanh.f32 %v10317_v4  ;;  %v1539_v19 = vmul.f32 %v10284_v23, %v10133_v17  ;;  %v1573_v9 = vmul.f32 %v10289_v45, %v1537_v20  ;;  %v10358_v48 = vadd.f32 %v10299_v51, %v1571_v54 }
 0x248   : > { %8776 = vtanh.f32 %v10323_v26  ;;  %v1540_v22 = vmul.f32 %v10284_v23, %v10136_v18  ;;  %v1574_v37 = vmul.f32 %v10289_v45, %v1538_v46  ;;  %v10366_v43 = vadd.f32 %v10299_v51, %v1572_v38 }
 0x249   : > { %8778 = vtanh.f32 %v10330_v57  ;;  %v1541_v1 = vmul.f32 %v10284_v23, %v10139_v21  ;;  %v1575_v27 = vmul.f32 %v10289_v45, %v1539_v19  ;;  %v10374_v50 = vadd.f32 %v10299_v51, %v1573_v9 }
 0x24a   : > { %8780 = vtanh.f32 %v10337_v44  ;;  %v1542_v56 = vmul.f32 %v10284_v23, %v10142_v5  ;;  %v1576_v59 = vmul.f32 %v10289_v45, %v1540_v22  ;;  %v10382_v0 = vadd.f32 %v10299_v51, %v1574_v37 }
 0x24b   : > { %8782 = vtanh.f32 %v10344_v6  ;;  %v1577_v2 = vmul.f32 %v10289_v45, %v1541_v1  ;;  %v1543_v34 = vmul.f32 %v10284_v23, %v10145_v29  ;;  %v10390_v15 = vadd.f32 %v10299_v51, %v1575_v27 }
 0x24c   : > { %8784 = vtanh.f32 %v10351_v36  ;;  %v1544_v14 = vmul.f32 %v10284_v23, %v10148_v42  ;;  %v1578_v8 = vmul.f32 %v10289_v45, %v1542_v56  ;;  %v10398_v53 = vadd.f32 %v10299_v51, %v1576_v59 }
 0x24d   : > { %8786 = vtanh.f32 %v10358_v48  ;;  %v10403_v58 = vadd.f32 %v10299_v51, %v1577_v2  ;;  %v1545_v10 = vmul.f32 %v10284_v23, %v10151_v60  ;;  %v1579_v25 = vmul.f32 %v10289_v45, %v1543_v34 }
 0x24e   : > { %8788 = vtanh.f32 %v10366_v43  ;;  %v1546_v62 = vmul.f32 %v10284_v23, %v10154_v3  ;;  %v1580_v30 = vmul.f32 %v10289_v45, %v1544_v14  ;;  %v10414_v20 = vadd.f32 %v10299_v51, %v1578_v8 }
 0x24f   : > { %8790 = vtanh.f32 %v10374_v50  ;;  %v1547_v54 = vmul.f32 %v10284_v23, %v10157_v28  ;;  %v1581_v46 = vmul.f32 %v10289_v45, %v1545_v10  ;;  %v10423_v38 = vadd.f32 %v10299_v51, %v1579_v25 }
 0x250   : > { %v8773_v16 = vpop.eup %8772  ;;  %8792 = vtanh.f32 %v10382_v0  ;;  %v1582_v19 = vmul.f32 %v10289_v45, %v1546_v62  ;;  %v10430_v9 = vadd.f32 %v10299_v51, %v1580_v30  ;;  %v7441_v39 = vmul.f32 -1.442695, %v10382_v0 }
 0x251   : > { %2048 = vrot.lane.b32.xlu0 %v8773_v16, %s9573_s30  ;;  %v8775_v47 = vpop.eup %8774  ;;  %8794 = vtanh.f32 %v10390_v15  ;;  %v1548_v16 = vmul.f32 %v10284_v23, %v10160_v41  ;;  %v1583_v22 = vmul.f32 %v10289_v45, %v1547_v54  ;;  %v10438_v37 = vadd.f32 %v10299_v51, %v1581_v46 }
 0x252   : > { %2052 = vrot.lane.b32.xlu1 %v8775_v47, %s9573_s30  ;;  %v8777_v17 = vpop.eup %8776  ;;  %8796 = vtanh.f32 %v10398_v53  ;;  %v1549_v47 = vmul.f32 %v10284_v23, %v10163_v49  ;;  %v10446_v27 = vadd.f32 %v10299_v51, %v1582_v19  ;;  %v1556_v54 = vmul.f32 %v10284_v23, %v10184_v24 }
 0x253   : > { %v8779_v18 = vpop.eup %8778  ;;  %8798 = vtanh.f32 %v10403_v58  ;;  %v1584_v1 = vmul.f32 %v10289_v45, %v1548_v16  ;;  %v10454_v59 = vadd.f32 %v10299_v51, %v1583_v22  ;;  %v1557_v19 = vmul.f32 %v10284_v23, %v10187_v31 }
 0x254   : > { %v8781_v21 = vpop.eup %8780  ;;  %8800 = vtanh.f32 %v10414_v20  ;;  %v1585_v56 = vmul.f32 %v10289_v45, %v1549_v47  ;;  %v1558_v22 = vmul.f32 %v10284_v23, %v10190_v35 }
 0x255   : > { %2050 = vrot.lane.b32.xlu0 %v8777_v17, %s9573_s30  ;;  %v8783_v5 = vpop.eup %8782  ;;  %8802 = vtanh.f32 %v10423_v38  ;;  %v1550_v17 = vmul.f32 %v10284_v23, %v10166_v32  ;;  %v10462_v34 = vadd.f32 %v10299_v51, %v1584_v1 }
 0x256   : > { %2054 = vrot.lane.b32.xlu1 %v8779_v18, %s9573_s30  ;;  %v8785_v29 = vpop.eup %8784  ;;  %8804 = vtanh.f32 %v10430_v9  ;;  %v1551_v18 = vmul.f32 %v10284_v23, %v10169_v33  ;;  %v10470_v8 = vadd.f32 %v10299_v51, %v1585_v56 }
 0x257   : > { %v8787_v42 = vpop.eup %8786  ;;  %8806 = vtanh.f32 %v10438_v37  ;;  %v1586_v2 = vmul.f32 %v10289_v45, %v1550_v17 }
 0x258   : > { %v8789_v60 = vpop.eup %8788  ;;  %8808 = vtanh.f32 %v10446_v27  ;;  %v1587_v14 = vmul.f32 %v10289_v45, %v1551_v18  ;;  %v1593_v18 = vmul.f32 %v10289_v45, %v1557_v19 }
 0x259   : > { %2056 = vrot.lane.b32.xlu0 %v8781_v21, %s9573_s30  ;;  %v8791_v3 = vpop.eup %8790  ;;  %v1552_v21 = vmul.f32 %v10284_v23, %v10172_v40  ;;  %8810 = vtanh.f32 %v10454_v59  ;;  %v10478_v25 = vadd.f32 %v10299_v51, %v1586_v2 }
 0x25a   : > { %2058 = vrot.lane.b32.xlu1 %v8783_v5, %s9573_s30  ;;  %v8793_v28 = vpop.eup %8792  ;;  %v1553_v5 = vmul.f32 %v10284_v23, %v10175_v61  ;;  %8812 = vtanh.f32 %v10462_v34  ;;  %v10486_v30 = vadd.f32 %v10299_v51, %v1587_v14 }
 0x25b   : > { %v8795_v41 = vpop.eup %8794  ;;  %v1588_v10 = vmul.f32 %v10289_v45, %v1552_v21  ;;  %8814 = vtanh.f32 %v10470_v8  ;;  %v1594_v21 = vmul.f32 %v10289_v45, %v1558_v22 }
 0x25c   : > { %v8797_v49 = vpop.eup %8796  ;;  %v1589_v62 = vmul.f32 %v10289_v45, %v1553_v5  ;;  %8816 = vtanh.f32 %v10478_v25 }
 0x25d   : > { %2060 = vrot.lane.b32.xlu0 %v8785_v29, %s9573_s30  ;;  %v8799_v32 = vpop.eup %8798  ;;  %v1554_v29 = vmul.f32 %v10284_v23, %v10178_v63  ;;  %v10489_v63 = vpop.permute.xlu0 %1888  ;;  %8818 = vtanh.f32 %v10486_v30 }
 0x25e   : > { %2062 = vrot.lane.b32.xlu1 %v8787_v42, %s9573_s30  ;;  %v8801_v33 = vpop.eup %8800  ;;  %v1555_v42 = vmul.f32 %v10284_v23, %v10181_v11  ;;  %v10499_v11 = vpop.permute.xlu1 %1890  ;;  %v10506_v47 = vadd.f32 %v10299_v51, %v1589_v62 }
 0x25f   : > { %v8803_v40 = vpop.eup %8802  ;;  %v1590_v46 = vmul.f32 %v10289_v45, %v1554_v29 }
 0x260   : > { %v8805_v61 = vpop.eup %8804 }
 0x261   : > { %2064 = vrot.lane.b32.xlu0 %v8789_v60, %s9573_s30  ;;  %v8807_v60 = vpop.eup %8806  ;;  %v10514_v17 = vadd.f32 %v10299_v51, %v1590_v46  ;;  %v10517_v31 = vpop.permute.xlu0 %1892 }
 0x262   : > { %2066 = vrot.lane.b32.xlu1 %v8791_v3, %s9573_s30  ;;  %v10496_v3 = vadd.f32 %v10299_v51, %v1588_v10  ;;  %v8809_v16 = vpop.eup %8808  ;;  %v10527_v35 = vpop.permute.xlu1 %1894 }
 0x263   : > { %v8811_v24 = vpop.eup %8810 }
 0x264   : > { %8820 = vtanh.f32 %v10496_v3  ;;  %v8813_v1 = vpop.eup %8812 }
 0x265   : > { %2068 = vrot.lane.b32.xlu0 %v8793_v28, %s9573_s30  ;;  %v1591_v28 = vmul.f32 %v10289_v45, %v1555_v42  ;;  %8822 = vtanh.f32 %v10506_v47  ;;  %v10541_v5 = vpop.permute.xlu0 %1896 }
 0x266   : > { %2070 = vrot.lane.b32.xlu1 %v8795_v41, %s9573_s30  ;;  %v1592_v41 = vmul.f32 %v10289_v45, %v1556_v54  ;;  %8824 = vtanh.f32 %v10514_v17  ;;  %v10548_v29 = vpop.permute.xlu1 %1898 }
 0x267   : > { %v10524_v56 = vadd.f32 %v10299_v51, %v1591_v28 }
 0x268   : > { %v10532_v2 = vadd.f32 %v10299_v51, %v1592_v41 }
 0x269   : > { %2072 = vrot.lane.b32.xlu0 %v8797_v49, %s9573_s30  ;;  %v1559_v49 = vmul.f32 %v10284_v23, %v10193_v55  ;;  %8826 = vtanh.f32 %v10524_v56  ;;  %v10557_v42 = vpop.permute.xlu0 %1900 }
 0x26a   : > { %2074 = vrot.lane.b32.xlu1 %v8799_v32, %s9573_s30  ;;  %v8815_v32 = vpop.eup %8814  ;;  %8828 = vtanh.f32 %v10532_v2 }
 0x26b   : > { %v8817_v55 = vpop.eup %8816  ;;  %v1595_v23 = vmul.f32 %v10289_v45, %v1559_v49 }
 0x26c   : > { %v8819_v14 = vpop.eup %8818 }
 0x26d   : > { %2076 = vrot.lane.b32.xlu0 %v8801_v33, %s9573_s30  ;;  %v10538_v33 = vadd.f32 %v10299_v51, %v1593_v18  ;;  %v10552_v10 = vadd.f32 %v10299_v51, %v1595_v23  ;;  %v10565_v46 = vpop.permute.xlu0 %1904  ;;  %v7431_v23 = vmul.f32 -1.442695, %v10311_v52 }
 0x26e   : > { %2078 = vrot.lane.b32.xlu1 %v8803_v40, %s9573_s30  ;;  %v10545_v40 = vadd.f32 %v10299_v51, %v1594_v21  ;;  %v8821_v45 = vpop.eup %8820 }
 0x26f   : > { %8830 = vtanh.f32 %v10538_v33 }
 0x270   : > { %8832 = vtanh.f32 %v10545_v40 }
 0x271   : > { %2080 = vrot.lane.b32.xlu0 %v8805_v61, %s9573_s30  ;;  %v8823_v61 = vpop.eup %8822  ;;  %8834 = vtanh.f32 %v10552_v10  ;;  %v10572_v22 = vpop.permute.xlu0 %1908 }
 0x272   : > { %2082 = vrot.lane.b32.xlu1 %v8807_v60, %s9573_s30  ;;  %v8825_v62 = vpop.eup %8824  ;;  %v10561_v60 = vpop.permute.xlu1 %1902  ;;  %8836 = vpow2.f32 %v7431_v23 }
 0x273   : > { %v8827_v51 = vpop.eup %8826 }
 0x274   : > { %v8829_v54 = vpop.eup %8828 }
 0x275   : > { %2084 = vrot.lane.b32.xlu0 %v8809_v16, %s9573_s30 }
 0x276   : > { %2086 = vrot.lane.b32.xlu1 %v8811_v24, %s9573_s30  ;;  %v10568_v19 = vpop.permute.xlu1 %1906 }
 0x279   : > { %2088 = vrot.lane.b32.xlu0 %v8813_v1, %s9573_s30  ;;  %v8831_v16 = vpop.eup %8830  ;;  %v10577_v1 = vpop.permute.xlu0 %1912 }
 0x27a   : > { %2090 = vrot.lane.b32.xlu1 %v8815_v32, %s9573_s30  ;;  %v8833_v28 = vpop.eup %8832  ;;  %v10575_v41 = vpop.permute.xlu1 %1910 }
 0x27b   : > { %v8835_v24 = vpop.eup %8834 }
 0x27d   : > { %2092 = vrot.lane.b32.xlu0 %v8817_v55, %s9573_s30  ;;  %v10581_v18 = vpop.permute.xlu0 %1916 }
 0x27e   : > { %2094 = vrot.lane.b32.xlu1 %v8819_v14, %s9573_s30  ;;  %v10579_v49 = vpop.permute.xlu1 %1914  ;;  %v7432_v14 = vmul.f32 -1.442695, %v10323_v26  ;;  %v7437_v26 = vmul.f32 -1.442695, %v10351_v36 }
 0x280   : > { %8838 = vpow2.f32 %v7432_v14 }
 0x281   : > { %2096 = vrot.lane.b32.xlu0 %v8821_v45, %s9573_s30  ;;  %v10585_v21 = vpop.permute.xlu0 %1920 }
 0x282   : > { %2098 = vrot.lane.b32.xlu1 %v8823_v61, %s9573_s30  ;;  %v10583_v32 = vpop.permute.xlu1 %1918  ;;  %v7433_v61 = vmul.f32 -1.442695, %v10317_v4  ;;  %v8837_v4 = vpop.eup %8836 }
 0x283   : > { %v1728_v14 = vadd.f32 1.0, %v8837_v4 }
 0x284   : > { %8840 = vpow2.f32 %v7433_v61 }
 0x285   : > { %2100 = vrot.lane.b32.xlu0 %v8825_v62, %s9573_s30  ;;  %v10591_v45 = vpop.permute.xlu0 %1924 }
 0x286   : > { %2102 = vrot.lane.b32.xlu1 %v8827_v51, %s9573_s30  ;;  %v10587_v55 = vpop.permute.xlu1 %1922  ;;  %v7434_v51 = vmul.f32 -1.442695, %v10330_v57  ;;  %v7439_v57 = vmul.f32 -1.442695, %v10366_v43  ;;  %v7442_v43 = vmul.f32 -1.442695, %v10390_v15 }
 0x288   : > { %8842 = vpow2.f32 %v7434_v51  ;;  %v7440_v51 = vmul.f32 -1.442695, %v10374_v50 }
 0x289   : > { %2104 = vrot.lane.b32.xlu0 %v8829_v54, %s9573_s30  ;;  %v7435_v54 = vmul.f32 -1.442695, %v10337_v44 }
 0x28a   : > { %2106 = vrot.lane.b32.xlu1 %v8831_v16, %s9573_s30  ;;  %v10594_v62 = vpop.permute.xlu1 %1926  ;;  %v10598_v16 = vpop.permute.xlu0 %1928 }
 0x28b   : > { %8844 = vpow2.f32 %v7435_v54  ;;  %v8839_v44 = vpop.eup %8838 }
 0x28c   : > { %v1729_v36 = vadd.f32 1.0, %v8839_v44  ;;  %v7444_v44 = vmul.f32 -1.442695, %v10403_v58  ;;  %v7447_v58 = vmul.f32 -1.442695, %v10430_v9 }
 0x28d   : > { %2108 = vrot.lane.b32.xlu0 %v8833_v28, %s9573_s30  ;;  %v7436_v28 = vmul.f32 -1.442695, %v10344_v6  ;;  %v7449_v9 = vmul.f32 -1.442695, %v10446_v27 }
 0x28e   : > { %2110 = vrot.lane.b32.xlu1 %v8835_v24, %s9573_s30  ;;  %v10601_v52 = vpop.permute.xlu1 %1930  ;;  %v7438_v24 = vmul.f32 -1.442695, %v10358_v48  ;;  %v10605_v23 = vpop.permute.xlu0 %1932 }
 0x28f   : > { %8846 = vpow2.f32 %v7436_v28  ;;  %v8841_v6 = vpop.eup %8840 }
 0x290   : > { %8848 = vpow2.f32 %v7437_v26  ;;  %v1730_v48 = vadd.f32 1.0, %v8841_v6  ;;  %v7443_v26 = vmul.f32 -1.442695, %v10398_v53 }
 0x291   : > { %8850 = vpow2.f32 %v7438_v24 }
 0x292   : > { %v10608_v61 = vpop.permute.xlu1 %1934  ;;  %8852 = vpow2.f32 %v7439_v57  ;;  %v8843_v54 = vpop.eup %8842 }
 0x293   : > { %14185 = vst [vmem:[#allocation9_spill] sm:$0xff] %v10608_v61  ;;  %8854 = vrcp.f32 %v1728_v14  ;;  %v10612_v28 = vpop.permute.xlu0 %1936  ;;  %v1731_v50 = vadd.f32 1.0, %v8843_v54  ;;  %v7445_v14 = vmul.f32 -1.442695, %v10414_v20 }
 0x294   : > { %14186 = vst [vmem:[#allocation10_spill] sm:$0xff] %v10612_v28  ;;  %8856 = vpow2.f32 %v7440_v51 }
 0x295   : > { %v8845_v12 = vpop.eup %8844  ;;  %8858 = vpow2.f32 %v7441_v39 }
 0x296   : > { %v10616_v4 = vpop.permute.xlu1 %1938  ;;  %8860 = vrcp.f32 %v1729_v36  ;;  %v1732_v24 = vadd.f32 1.0, %v8845_v12  ;;  %v7446_v12 = vmul.f32 -1.442695, %v10423_v38 }
 0x297   : > { %14187 = vst [vmem:[#allocation11_spill] sm:$0xff] %v10616_v4  ;;  %8862 = vrcp.f32 %v1730_v48  ;;  %v10620_v6 = vpop.permute.xlu0 %1940 }
 0x298   : > { %8864 = vpow2.f32 %v7442_v43  ;;  %14188 = vst [vmem:[#allocation12_spill] sm:$0xff] %v10620_v6 }
 0x299   : > { %v8847_v0 = vpop.eup %8846  ;;  %8866 = vpow2.f32 %v7443_v26 }
 0x29a   : > { %v8849_v57 = vpop.eup %8848  ;;  %v1733_v15 = vadd.f32 1.0, %v8847_v0  ;;  %8868 = vrcp.f32 %v1731_v50  ;;  %v10622_v51 = vpop.permute.xlu1 %1942 }
 0x29b   : > { %v8851_v53 = vpop.eup %8850  ;;  %v1734_v39 = vadd.f32 1.0, %v8849_v57  ;;  %8870 = vrcp.f32 %v1732_v24  ;;  %14189 = vst [vmem:[#allocation13_spill] sm:$0xff] %v10622_v51 }
 0x29c   : > { %v8853_v36 = vpop.eup %8852  ;;  %8872 = vpow2.f32 %v7444_v44  ;;  %v1735_v43 = vadd.f32 1.0, %v8851_v53  ;;  %v7448_v44 = vmul.f32 -1.442695, %v10438_v37 }
 0x29d   : > { %v10625_v54 = vpop.eup %8854  ;;  %8874 = vpow2.f32 %v7445_v14  ;;  %v1736_v0 = vadd.f32 1.0, %v8853_v36 }
 0x29e   : > { %v8857_v48 = vpop.eup %8856  ;;  %8876 = vrcp.f32 %v1733_v15 }
 0x29f   : > { %v8859_v50 = vpop.eup %8858  ;;  %8878 = vrcp.f32 %v1734_v39  ;;  %v1737_v53 = vadd.f32 1.0, %v8857_v48 }
 0x2a0   : > { %v10629_v57 = vpop.eup %8860  ;;  %8880 = vpow2.f32 %v7446_v12  ;;  %v1738_v13 = vadd.f32 1.0, %v8859_v50 }
 0x2a1   : > { %v10633_v38 = vpop.eup %8862  ;;  %8882 = vpow2.f32 %v7447_v58  ;;  %v7450_v58 = vmul.f32 -1.442695, %v10454_v59 }
 0x2a2   : > { %v8865_v15 = vpop.eup %8864  ;;  %8884 = vrcp.f32 %v1735_v43 }
 0x2a3   : > { %8886 = vrcp.f32 %v1736_v0 }
 0x2a4   : > { %8888 = vpow2.f32 %v7448_v44 }
 0x2a5   : > { %8890 = vpow2.f32 %v7449_v9 }
 0x2a6   : > { %8892 = vrcp.f32 %v1737_v53 }
 0x2a7   : > { %8894 = vrcp.f32 %v1738_v13 }
 0x2a8   : > { %8896 = vpow2.f32 %v7450_v58  ;;  %v7451_v58 = vmul.f32 -1.442695, %v10462_v34 }
 0x2c3   : > { %v2049_v20 = vpop.permute.xlu0 %2048 }
 0x2c4   : > { %v2144_v26 = vmul.f32 %v10625_v54, %v2049_v20  ;;  %v2053_v24 = vpop.permute.xlu1 %2052  ;;  %v8867_v20 = vpop.eup %8866 }
 0x2c5   : > { %v2146_v36 = vmul.f32 %v10633_v38, %v2053_v24  ;;  %v10638_v12 = vpop.eup %8868 }
 0x2c6   : > { %2208 = vrot.lane.b32.xlu0 %v2144_v26, %s9573_s30  ;;  %v10642_v27 = vpop.eup %8870  ;;  %v1739_v26 = vadd.f32 1.0, %v8865_v15 }
 0x2c7   : > { %v2051_v14 = vpop.permute.xlu0 %2050  ;;  %v8873_v43 = vpop.eup %8872 }
 0x2c8   : > { %v2145_v39 = vmul.f32 %v10629_v57, %v2051_v14  ;;  %v2055_v37 = vpop.permute.xlu1 %2054  ;;  %v8875_v24 = vpop.eup %8874  ;;  %v1740_v14 = vadd.f32 1.0, %v8867_v20  ;;  %v1741_v53 = vadd.f32 1.0, %v8873_v43  ;;  %8898 = vrcp.f32 %v1739_v26 }
 0x2c9   : > { %v2147_v50 = vmul.f32 %v10638_v12, %v2055_v37  ;;  %v1742_v13 = vadd.f32 1.0, %v8875_v24 }
 0x2ca   : > { %2210 = vrot.lane.b32.xlu1 %v2145_v39, %s9573_s30  ;;  %2212 = vrot.lane.b32.xlu0 %v2146_v36, %s9573_s30  ;;  %v10647_v39 = vpop.eup %8876  ;;  %8900 = vrcp.f32 %v1740_v14 }
 0x2cb   : > { %v2057_v48 = vpop.permute.xlu0 %2056  ;;  %v10651_v59 = vpop.eup %8878  ;;  %8902 = vrcp.f32 %v1741_v53 }
 0x2cc   : > { %v2148_v0 = vmul.f32 %v10642_v27, %v2057_v48  ;;  %v2059_v44 = vpop.permute.xlu1 %2058  ;;  %v8881_v15 = vpop.eup %8880  ;;  %8904 = vrcp.f32 %v1742_v13 }
 0x2cd   : > { %v2149_v36 = vmul.f32 %v10647_v39, %v2059_v44  ;;  %v8883_v20 = vpop.eup %8882  ;;  %8906 = vpow2.f32 %v7451_v58  ;;  %v7454_v58 = vmul.f32 -1.442695, %v10486_v30  ;;  %v7456_v30 = vmul.f32 -1.442695, %v10506_v47 }
 0x2ce   : > { %2214 = vrot.lane.b32.xlu1 %v2147_v50, %s9573_s30  ;;  %2216 = vrot.lane.b32.xlu0 %v2148_v0, %s9573_s30  ;;  %v10655_v7 = vpop.eup %8884  ;;  %v1743_v0 = vadd.f32 1.0, %v8881_v15  ;;  %v7453_v15 = vmul.f32 -1.442695, %v10478_v25  ;;  %v7458_v47 = vmul.f32 -1.442695, %v10524_v56 }
 0x2cf   : > { %v2061_v9 = vpop.permute.xlu0 %2060  ;;  %v10659_v50 = vpop.eup %8886 }
 0x2d0   : > { %v2150_v37 = vmul.f32 %v10651_v59, %v2061_v9  ;;  %v2063_v48 = vpop.permute.xlu1 %2062  ;;  %v8889_v26 = vpop.eup %8888  ;;  %v1744_v9 = vadd.f32 1.0, %v8883_v20  ;;  %8908 = vrcp.f32 %v1743_v0 }
 0x2d1   : > { %v2151_v44 = vmul.f32 %v10655_v7, %v2063_v48  ;;  %v8891_v14 = vpop.eup %8890 }
 0x2d2   : > { %2218 = vrot.lane.b32.xlu1 %v2149_v36, %s9573_s30  ;;  %2220 = vrot.lane.b32.xlu0 %v2150_v37, %s9573_s30  ;;  %v10664_v6 = vpop.eup %8892  ;;  %v7452_v36 = vmul.f32 -1.442695, %v10470_v8  ;;  %v1745_v37 = vadd.f32 1.0, %v8889_v26  ;;  %8910 = vrcp.f32 %v1744_v9 }
 0x2d3   : > { %v2065_v43 = vpop.permute.xlu0 %2064  ;;  %v10669_v34 = vpop.eup %8894 }
 0x2d4   : > { %v2152_v24 = vmul.f32 %v10659_v50, %v2065_v43  ;;  %v2067_v51 = vpop.permute.xlu1 %2066  ;;  %v8897_v48 = vpop.eup %8896  ;;  %v1746_v43 = vadd.f32 1.0, %v8891_v14  ;;  %8912 = vpow2.f32 %v7452_v36 }
 0x2d5   : > { %v2153_v20 = vmul.f32 %v10664_v6, %v2067_v51  ;;  %v10674_v4 = vpop.eup %8898  ;;  %8914 = vpow2.f32 %v7453_v15  ;;  %v7455_v51 = vmul.f32 -1.442695, %v10496_v3  ;;  %v7457_v15 = vmul.f32 -1.442695, %v10514_v17 }
 0x2d6   : > { %2222 = vrot.lane.b32.xlu1 %v2151_v44, %s9573_s30  ;;  %2224 = vrot.lane.b32.xlu0 %v2152_v24, %s9573_s30  ;;  %v10678_v25 = vpop.eup %8900  ;;  %8916 = vrcp.f32 %v1745_v37  ;;  %v1747_v24 = vadd.f32 1.0, %v8897_v48 }
 0x2d7   : > { %v2069_v53 = vpop.permute.xlu0 %2068  ;;  %8918 = vrcp.f32 %v1746_v43  ;;  %v10684_v9 = vpop.eup %8902 }
 0x2d8   : > { %v2154_v13 = vmul.f32 %v10669_v34, %v2069_v53  ;;  %v2071_v8 = vpop.permute.xlu1 %2070  ;;  %v10688_v36 = vpop.eup %8904  ;;  %8920 = vpow2.f32 %v7454_v58  ;;  %v7459_v58 = vmul.f32 -1.442695, %v10532_v2  ;;  %v7461_v2 = vmul.f32 -1.442695, %v10545_v40 }
 0x2d9   : > { %v2155_v0 = vmul.f32 %v10674_v4, %v2071_v8  ;;  %8922 = vpow2.f32 %v7455_v51 }
 0x2da   : > { %2226 = vrot.lane.b32.xlu1 %v2153_v20, %s9573_s30  ;;  %2228 = vrot.lane.b32.xlu0 %v2154_v13, %s9573_s30  ;;  %v8907_v20 = vpop.eup %8906  ;;  %8924 = vrcp.f32 %v1747_v24 }
 0x2db   : > { %v2073_v26 = vpop.permute.xlu0 %2072  ;;  %v10694_v48 = vpop.eup %8908  ;;  %8926 = vpow2.f32 %v7456_v30 }
 0x2dc   : > { %v2156_v44 = vmul.f32 %v10678_v25, %v2073_v26  ;;  %v2075_v14 = vpop.permute.xlu1 %2074  ;;  %v10698_v43 = vpop.eup %8910  ;;  %8928 = vpow2.f32 %v7457_v15 }
 0x2dd   : > { %v2157_v53 = vmul.f32 %v10684_v9, %v2075_v14  ;;  %8930 = vpow2.f32 %v7458_v47  ;;  %v7462_v47 = vmul.f32 -1.442695, %v10552_v10 }
 0x2de   : > { %2230 = vrot.lane.b32.xlu1 %v2155_v0, %s9573_s30  ;;  %2232 = vrot.lane.b32.xlu0 %v2156_v44, %s9573_s30  ;;  %v8913_v8 = vpop.eup %8912  ;;  %v1748_v44 = vadd.f32 1.0, %v8907_v20  ;;  %8932 = vpow2.f32 %v7459_v58  ;;  %v545_v58 = vld [vmem:[%s9892_s20 + $0xe0] sm:$0xff] }
 0x2df   : > { %v2077_v3 = vpop.permute.xlu0 %2076  ;;  %v8915_v0 = vpop.eup %8914  ;;  %v1749_v15 = vadd.f32 1.0, %v8913_v8 }
 0x2e0   : > { %v2158_v37 = vmul.f32 %v10688_v36, %v2077_v3  ;;  %v2079_v13 = vpop.permute.xlu1 %2078  ;;  %v10704_v14 = vpop.eup %8916  ;;  %v7460_v3 = vmul.f32 -1.442695, %v10538_v33  ;;  %8934 = vrcp.f32 %v1748_v44 }
 0x2e1   : > { %v2159_v26 = vmul.f32 %v10694_v48, %v2079_v13  ;;  %v10709_v56 = vpop.eup %8918  ;;  %v1750_v13 = vadd.f32 1.0, %v8915_v0 }
 0x2e2   : > { %2234 = vrot.lane.b32.xlu1 %v2157_v53, %s9573_s30  ;;  %2236 = vrot.lane.b32.xlu0 %v2158_v37, %s9573_s30  ;;  %v8921_v20 = vpop.eup %8920  ;;  %8936 = vpow2.f32 %v7460_v3 }
 0x2e3   : > { %v2081_v17 = vpop.permute.xlu0 %2080  ;;  %8938 = vpow2.f32 %v7461_v2  ;;  %v546_v2 = vld [vmem:[%s9892_s20 + $0xe8] sm:$0xff] }
 0x2e4   : > { %v2160_v51 = vmul.f32 %v10698_v43, %v2081_v17  ;;  %v2083_v24 = vpop.permute.xlu1 %2082  ;;  %v8923_v17 = vpop.eup %8922  ;;  %8940 = vrcp.f32 %v1749_v15 }
 0x2e5   : > { %v2161_v53 = vmul.f32 %v10704_v14, %v2083_v24  ;;  %v10716_v40 = vpop.eup %8924  ;;  %v1752_v44 = vadd.f32 1.0, %v8923_v17  ;;  %8942 = vrcp.f32 %v1750_v13 }
 0x2e6   : > { %2238 = vrot.lane.b32.xlu1 %v2159_v26, %s9573_s30  ;;  %2240 = vrot.lane.b32.xlu0 %v2160_v51, %s9573_s30  ;;  %v1751_v26 = vadd.f32 1.0, %v8921_v20  ;;  %v8927_v0 = vpop.eup %8926  ;;  %8944 = vpow2.f32 %v7462_v47 }
 0x2e7   : > { %v2085_v30 = vpop.permute.xlu0 %2084  ;;  %v8929_v3 = vpop.eup %8928 }
 0x2e8   : > { %v2162_v37 = vmul.f32 %v10709_v56, %v2085_v30  ;;  %v2087_v33 = vpop.permute.xlu1 %2086  ;;  %v547_v30 = vld [vmem:[%s9892_s20 + $0xf0] sm:$0xff]  ;;  %8946 = vrcp.f32 %v1751_v26  ;;  %v1754_v15 = vadd.f32 1.0, %v8929_v3 }
 0x2e9   : > { %v2163_v51 = vmul.f32 %v10716_v40, %v2087_v33  ;;  %8948 = vrcp.f32 %v1752_v44 }
 0x2ea   : > { %2242 = vrot.lane.b32.xlu1 %v2161_v53, %s9573_s30  ;;  %2244 = vrot.lane.b32.xlu0 %v2162_v37, %s9573_s30  ;;  %v1753_v53 = vadd.f32 1.0, %v8927_v0  ;;  %v8931_v37 = vpop.eup %8930 }
 0x2eb   : > { %v2089_v8 = vpop.permute.xlu0 %2088  ;;  %v8933_v33 = vpop.eup %8932  ;;  %v1755_v47 = vadd.f32 1.0, %v8931_v37 }
 0x2ec   : > { %v2091_v24 = vpop.permute.xlu1 %2090  ;;  %v10727_v13 = vpop.eup %8934  ;;  %8950 = vrcp.f32 %v1753_v53  ;;  %v1756_v26 = vadd.f32 1.0, %v8933_v33 }
 0x2ed   : > { %v2164_v28 = vmul.f32 %v10727_v13, %v2089_v8  ;;  %8952 = vrcp.f32 %v1754_v15 }
 0x2ee   : > { %2246 = vrot.lane.b32.xlu1 %v2163_v51, %s9573_s30  ;;  %1944 = vrot.lane.b32.xlu0 %v545_v58, %s9573_s30  ;;  %v548_v58 = vld [vmem:[%s9892_s20 + $0xf8] sm:$0xff]  ;;  %v8937_v51 = vpop.eup %8936  ;;  %8954 = vrcp.f32 %v1755_v47  ;;  %s434_s20 = sand.u32 1, %s9563_s22  }
 0x2ef   : > { %v2093_v10 = vpop.permute.xlu0 %2092  ;;  %v8939_v0 = vpop.eup %8938  ;;  %8956 = vrcp.f32 %v1756_v26  ;;  %s7353_s28 = sshll.u32 %s434_s20, 8 }
 0x2f0   : > { %v2095_v20 = vpop.permute.xlu1 %2094  ;;  %v10731_v3 = vpop.eup %8940  ;;  %v1758_v8 = vadd.f32 1.0, %v8939_v0 }
 0x2f1   : > { %v10735_v44 = vpop.eup %8942  ;;  %v2165_v61 = vmul.f32 %v10731_v3, %v2091_v24 }
 0x2f2   : > { %1946 = vrot.lane.b32.xlu1 %v546_v2, %s9573_s30  ;;  %1948 = vrot.lane.b32.xlu0 %v547_v30, %s9573_s30  ;;  %v1757_v30 = vadd.f32 1.0, %v8937_v51  ;;  %v2166_v53 = vmul.f32 %v10735_v44, %v2093_v10  ;;  %v8945_v37 = vpop.eup %8944 }
 0x2f3   : > { %v2097_v17 = vpop.permute.xlu0 %2096  ;;  %v10739_v15 = vpop.eup %8946  ;;  %v1759_v24 = vadd.f32 1.0, %v8945_v37 }
 0x2f4   : > { %v2099_v2 = vpop.permute.xlu1 %2098  ;;  %8958 = vrcp.f32 %v1757_v30 }
 0x2f5   : > { %8960 = vrcp.f32 %v1758_v8 }
 0x2f6   : > { %1950 = vrot.lane.b32.xlu1 %v548_v58, %s9573_s30  ;;  %2248 = vrot.lane.b32.xlu0 %v2164_v28, %s9573_s30  ;;  %v10743_v28 = vpop.eup %8948  ;;  %v2167_v58 = vmul.f32 %v10739_v15, %v2095_v20  ;;  %8962 = vrcp.f32 %v1759_v24 }
 0x2f7   : > { %v2101_v33 = vpop.permute.xlu0 %2100  ;;  %v2168_v51 = vmul.f32 %v10743_v28, %v2097_v17  ;;  %v10747_v47 = vpop.eup %8950 }
 0x2f8   : > { %v2103_v10 = vpop.permute.xlu1 %2102  ;;  %v10751_v0 = vpop.eup %8952  ;;  %v2169_v26 = vmul.f32 %v10747_v47, %v2099_v2 }
 0x2f9   : > { %v2170_v30 = vmul.f32 %v10751_v0, %v2101_v33  ;;  %v10755_v20 = vpop.eup %8954 }
 0x2fa   : > { %2250 = vrot.lane.b32.xlu1 %v2165_v61, %s9573_s30  ;;  %2252 = vrot.lane.b32.xlu0 %v2166_v53, %s9573_s30  ;;  %v10759_v17 = vpop.eup %8956  ;;  %v2171_v37 = vmul.f32 %v10755_v20, %v2103_v10 }
 0x2fb   : > { %v2105_v61 = vpop.permute.xlu0 %2104 }
 0x2fc   : > { %v2107_v53 = vpop.permute.xlu1 %2106  ;;  %v2172_v8 = vmul.f32 %v10759_v17, %v2105_v61 }
 0x2fe   : > { %2254 = vrot.lane.b32.xlu1 %v2167_v58, %s9573_s30  ;;  %2256 = vrot.lane.b32.xlu0 %v2168_v51, %s9573_s30  ;;  %v10763_v51 = vpop.eup %8958 }
 0x2ff   : > { %v2109_v58 = vpop.permute.xlu0 %2108  ;;  %v10767_v2 = vpop.eup %8960  ;;  %v2173_v33 = vmul.f32 %v10763_v51, %v2107_v53  ;;  %v1985_v53 = vmul.f32 %v10629_v57, %v10499_v11  ;;  %v8756_v11 = vld [vmem:[%s13927_s6] sm:$0xff]  }
 0x300   : > { %v2174_v24 = vmul.f32 %v10767_v2, %v2109_v58  ;;  %v10773_v10 = vpop.eup %8962  ;;  %v1986_v58 = vmul.f32 %v10633_v38, %v10517_v31  ;;  %8295 = vmatprep.subr.bf16.mxu0 %v8756_v11 }
 0x301   : > { %14190 = vst [vmem:[#allocation14_spill] sm:$0xff] %v10773_v10  ;;  %8296 = vmatpush3.bf16.msra.mxu0 %v8756_v11 }
 0x302   : > { %2258 = vrot.lane.b32.xlu1 %v2169_v26, %s9573_s30  ;;  %2260 = vrot.lane.b32.xlu0 %v2170_v30, %s9573_s30  ;;  %v2111_v26 = vpop.permute.xlu1 %2110  ;;  %v1984_v30 = vmul.f32 %v10625_v54, %v10489_v63  ;;  %v1987_v63 = vmul.f32 %v10638_v12, %v10527_v35 }
 0x303   : > { %v2175_v61 = vmul.f32 %v10773_v10, %v2111_v26 }
 0x306   : > { %2262 = vrot.lane.b32.xlu1 %v2171_v37, %s9573_s30  ;;  %2264 = vrot.lane.b32.xlu0 %v2172_v8, %s9573_s30 }
 0x30a   : > { %2266 = vrot.lane.b32.xlu1 %v2173_v33, %s9573_s30  ;;  %2268 = vrot.lane.b32.xlu0 %v2174_v24, %s9573_s30 }
 0x30e   : > { %2270 = vrot.lane.b32.xlu1 %v2175_v61, %s9573_s30  ;;  %v1988_v61 = vmul.f32 %v10642_v27, %v10541_v5 }
 0x338   : > { %v2209_v37 = vpop.permute.xlu0 %2208 }
 0x339   : > { %v10779_v8 = vadd.f32 %v2209_v37, %v1984_v30  ;;  %v1989_v37 = vmul.f32 %v10647_v39, %v10548_v29 }
 0x33b   : > { %14191 = vst [vmem:[#allocation15_spill] sm:$0xff] %v10779_v8  ;;  %8964 = vtanh.f32 %v10779_v8 }
 0x33c   : > { %v2211_v33 = vpop.permute.xlu1 %2210  ;;  %v2213_v24 = vpop.permute.xlu0 %2212 }
 0x33d   : > { %v10786_v26 = vadd.f32 %v2211_v33, %v1985_v53  ;;  %v10788_v10 = vadd.f32 %v2213_v24, %v1986_v58  ;;  %v1990_v53 = vmul.f32 %v10651_v59, %v10557_v42  ;;  %v8757_v58 = vld [vmem:[%s13927_s6 + $0x8] sm:$0xff]   ;;  %v549_v33 = vld [vmem:[%s10803_s18] sm:$0xff] }
 0x33e   : > { %v550_v24 = vld [vmem:[%s10803_s18 + $0x8] sm:$0xff]  ;;  %8297 = vmatprep.subr.bf16.mxu0 %v8757_v58 }
 0x33f   : > { %14192 = vst [vmem:[#allocation16_spill] sm:$0xff] %v10786_v26  ;;  %14193 = vst [vmem:[#allocation17_spill] sm:$0xff] %v10788_v10  ;;  %8966 = vtanh.f32 %v10786_v26  ;;  %v2544_v11 = vpack.c.bf16 %v550_v24, %v549_v33  ;;  %8298 = vmatpush3.bf16.msra.mxu0 %v8757_v58  ;;  %v551_v33 = vld [vmem:[%s10803_s18 + $0x10] sm:$0xff] }
 0x340   : > { %8968 = vtanh.f32 %v10788_v10  ;;  %v2215_v31 = vpop.permute.xlu1 %2214  ;;  %v2217_v35 = vpop.permute.xlu0 %2216 }
 0x341   : > { %v10806_v30 = vadd.f32 %v2215_v31, %v1987_v63  ;;  %v10808_v5 = vadd.f32 %v2217_v35, %v1988_v61  ;;  %v1991_v35 = vmul.f32 %v10655_v7, %v10561_v60  ;;  %8299 = vmatprep.mubr.msk.bf16.mxu0 %vm2624_vm0, %v2544_v11  ;;  %v1994_v11 = vmul.f32 %v10669_v34, %v10572_v22 }
 0x342   : > { %v1995_v22 = vmul.f32 %v10674_v4, %v10575_v41 }
 0x343   : > { %14194 = vst [vmem:[#allocation18_spill] sm:$0xff] %v10806_v30  ;;  %14195 = vst [vmem:[#allocation19_spill] sm:$0xff] %v10808_v5  ;;  %8970 = vtanh.f32 %v10806_v30 }
 0x344   : > { %8972 = vtanh.f32 %v10808_v5  ;;  %v2219_v63 = vpop.permute.xlu1 %2218  ;;  %v2221_v61 = vpop.permute.xlu0 %2220  ;;  %v1992_v5 = vmul.f32 %v10659_v50, %v10565_v46  ;;  %v1993_v46 = vmul.f32 %v10664_v6, %v10568_v19 }
 0x345   : > { %v8965_v29 = vpop.eup %8964  ;;  %v10821_v31 = vadd.f32 %v2219_v63, %v1989_v37  ;;  %v10823_v42 = vadd.f32 %v2221_v61, %v1990_v53  ;;  %v552_v37 = vld [vmem:[%s10803_s18 + $0x18] sm:$0xff] }
 0x346   : > { %2400 = vrot.lane.b32.xlu0 %v8965_v29, %s9573_s30  ;;  %v2545_v63 = vpack.c.bf16 %v552_v37, %v551_v33  ;;  %v553_v33 = vld [vmem:[%s10803_s18 + $0x20] sm:$0xff] }
 0x347   : > { %14196 = vst [vmem:[#allocation20_spill] sm:$0xff] %v10821_v31  ;;  %14197 = vst [vmem:[#allocation21_spill] sm:$0xff] %v10823_v42  ;;  %8974 = vtanh.f32 %v10821_v31 }
 0x348   : > { %8976 = vtanh.f32 %v10823_v42  ;;  %v2223_v53 = vpop.permute.xlu1 %2222  ;;  %v2225_v24 = vpop.permute.xlu0 %2224  ;;  %8300 = vmatmul.mubr.msk.bf16.vlgmr.msra.gmra.mrb[80].mxu0 %vm2624_vm0, %v2545_v63 }
 0x349   : > { %v8967_v58 = vpop.eup %8966  ;;  %v10835_v61 = vadd.f32 %v2223_v53, %v1991_v35  ;;  %v10837_v60 = vadd.f32 %v2225_v24, %v1992_v5  ;;  %v554_v35 = vld [vmem:[%s10803_s18 + $0x28] sm:$0xff] }
 0x34a   : > { %v8969_v29 = vpop.eup %8968  ;;  %2402 = vrot.lane.b32.xlu1 %v8967_v58, %s9573_s30  ;;  %v2546_v53 = vpack.c.bf16 %v554_v35, %v553_v33  ;;  %v555_v33 = vld [vmem:[%s10803_s18 + $0x30] sm:$0xff] }
 0x34b   : > { %14198 = vst [vmem:[#allocation22_spill] sm:$0xff] %v10835_v61  ;;  %14199 = vst [vmem:[#allocation23_spill] sm:$0xff] %v10837_v60  ;;  %8978 = vtanh.f32 %v10835_v61  ;;  %2404 = vrot.lane.b32.xlu0 %v8969_v29, %s9573_s30  ;;  %v1996_v29 = vmul.f32 %v10678_v25, %v10577_v1  ;;  %v1997_v1 = vmul.f32 %v10684_v9, %v10579_v49 }
 0x34c   : > { %8980 = vtanh.f32 %v10837_v60  ;;  %v2227_v5 = vpop.permute.xlu1 %2226  ;;  %v2229_v37 = vpop.permute.xlu0 %2228  ;;  %8303 = vmatprep.mubr.msk.bf16.mxu0 %vm2624_vm0, %v2546_v53 }
 0x34d   : > { %v8971_v24 = vpop.eup %8970  ;;  %v10850_v63 = vadd.f32 %v2227_v5, %v1993_v46  ;;  %v10852_v19 = vadd.f32 %v2229_v37, %v1994_v11  ;;  %v556_v46 = vld [vmem:[%s10803_s18 + $0x38] sm:$0xff] }
 0x34e   : > { %v8973_v58 = vpop.eup %8972  ;;  %2406 = vrot.lane.b32.xlu1 %v8971_v24, %s9573_s30  ;;  %v2547_v5 = vpack.c.bf16 %v556_v46, %v555_v33  ;;  %v557_v33 = vld [vmem:[%s10803_s18 + $0x40] sm:$0xff] }
 0x34f   : > { %14200 = vst [vmem:[#allocation24_spill] sm:$0xff] %v10850_v63  ;;  %14201 = vst [vmem:[#allocation25_spill] sm:$0xff] %v10852_v19  ;;  %8982 = vtanh.f32 %v10850_v63  ;;  %2408 = vrot.lane.b32.xlu0 %v8973_v58, %s9573_s30  ;;  %v1998_v58 = vmul.f32 %v10688_v36, %v10581_v18  ;;  %v1999_v18 = vmul.f32 %v10694_v48, %v10583_v32 }
 0x350   : > { %8984 = vtanh.f32 %v10852_v19  ;;  %v2231_v11 = vpop.permute.xlu1 %2230  ;;  %v2233_v35 = vpop.permute.xlu0 %2232  ;;  %8304 = vmatmul.mubr.msk.bf16.gmra.mrb[84].mxu0 %vm2624_vm0, %v2547_v5 }
 0x351   : > { %v8975_v37 = vpop.eup %8974  ;;  %v10865_v53 = vadd.f32 %v2231_v11, %v1995_v22  ;;  %v10867_v41 = vadd.f32 %v2233_v35, %v1996_v29  ;;  %v558_v22 = vld [vmem:[%s10803_s18 + $0x48] sm:$0xff] }
 0x352   : > { %v8977_v24 = vpop.eup %8976  ;;  %2410 = vrot.lane.b32.xlu1 %v8975_v37, %s9573_s30  ;;  %v2548_v11 = vpack.c.bf16 %v558_v22, %v557_v33  ;;  %v559_v33 = vld [vmem:[%s10803_s18 + $0x50] sm:$0xff] }
 0x353   : > { %14202 = vst [vmem:[#allocation26_spill] sm:$0xff] %v10865_v53  ;;  %14203 = vst [vmem:[#allocation27_spill] sm:$0xff] %v10867_v41  ;;  %8986 = vtanh.f32 %v10865_v53  ;;  %2412 = vrot.lane.b32.xlu0 %v8977_v24, %s9573_s30  ;;  %v2000_v24 = vmul.f32 %v10698_v43, %v10585_v21  ;;  %v2001_v21 = vmul.f32 %v10704_v14, %v10587_v55 }
 0x354   : > { %8988 = vtanh.f32 %v10867_v41  ;;  %v2235_v29 = vpop.permute.xlu1 %2234  ;;  %v2237_v46 = vpop.permute.xlu0 %2236  ;;  %8307 = vmatprep.mubr.msk.bf16.mxu0 %vm2624_vm0, %v2548_v11  ;;  %v575_v41 = vld [vmem:[%s10803_s18 + $0xd0] sm:$0xff] }
 0x355   : > { %v8979_v35 = vpop.eup %8978  ;;  %v10880_v5 = vadd.f32 %v2235_v29, %v1997_v1  ;;  %v10882_v49 = vadd.f32 %v2237_v46, %v1998_v58  ;;  %v560_v1 = vld [vmem:[%s10803_s18 + $0x58] sm:$0xff] }
 0x356   : > { %v8981_v37 = vpop.eup %8980  ;;  %2414 = vrot.lane.b32.xlu1 %v8979_v35, %s9573_s30  ;;  %v2549_v29 = vpack.c.bf16 %v560_v1, %v559_v33 }
 0x357   : > { %14204 = vst [vmem:[#allocation28_spill] sm:$0xff] %v10880_v5  ;;  %14205 = vst [vmem:[#allocation29_spill] sm:$0xff] %v10882_v49  ;;  %8990 = vtanh.f32 %v10880_v5  ;;  %2416 = vrot.lane.b32.xlu0 %v8981_v37, %s9573_s30  ;;  %v2002_v37 = vmul.f32 %v10709_v56, %v10591_v45  ;;  %v2003_v45 = vmul.f32 %v10716_v40, %v10594_v62 }
 0x358   : > { %8992 = vtanh.f32 %v10882_v49  ;;  %v2239_v58 = vpop.permute.xlu1 %2238  ;;  %v2241_v22 = vpop.permute.xlu0 %2240  ;;  %8308 = vmatmul.mubr.msk.bf16.gmra.mrb[88].mxu0 %vm2624_vm0, %v2549_v29  ;;  %v576_v49 = vld [vmem:[%s10803_s18 + $0xd8] sm:$0xff] }
 0x359   : > { %v8983_v46 = vpop.eup %8982  ;;  %v10895_v11 = vadd.f32 %v2239_v58, %v1999_v18  ;;  %v10897_v32 = vadd.f32 %v2241_v22, %v2000_v24  ;;  %v561_v18 = vld [vmem:[%s10803_s18 + $0x60] sm:$0xff]  ;;  %v562_v24 = vld [vmem:[%s10803_s18 + $0x68] sm:$0xff] }
 0x35a   : > { %v8985_v35 = vpop.eup %8984  ;;  %2418 = vrot.lane.b32.xlu1 %v8983_v46, %s9573_s30  ;;  %v2550_v58 = vpack.c.bf16 %v562_v24, %v561_v18 }
 0x35b   : > { %14206 = vst [vmem:[#allocation30_spill] sm:$0xff] %v10895_v11  ;;  %14207 = vst [vmem:[#allocation31_spill] sm:$0xff] %v10897_v32  ;;  %8994 = vtanh.f32 %v10895_v11  ;;  %2420 = vrot.lane.b32.xlu0 %v8985_v35, %s9573_s30  ;;  %v563_v35 = vld [vmem:[%s10803_s18 + $0x70] sm:$0xff] }
 0x35c   : > { %8996 = vtanh.f32 %v10897_v32  ;;  %v2243_v33 = vpop.permute.xlu1 %2242  ;;  %v2245_v1 = vpop.permute.xlu0 %2244  ;;  %8311 = vmatprep.mubr.msk.bf16.mxu0 %vm2624_vm0, %v2550_v58  ;;  %v565_v58 = vld [vmem:[%s10803_s18 + $0x80] sm:$0xff] }
 0x35d   : > { %v8987_v22 = vpop.eup %8986  ;;  %v10910_v29 = vadd.f32 %v2243_v33, %v2001_v21  ;;  %v10912_v55 = vadd.f32 %v2245_v1, %v2002_v37  ;;  %v564_v21 = vld [vmem:[%s10803_s18 + $0x78] sm:$0xff] }
 0x35e   : > { %v8989_v46 = vpop.eup %8988  ;;  %2422 = vrot.lane.b32.xlu1 %v8987_v22, %s9573_s30  ;;  %v2551_v24 = vpack.c.bf16 %v564_v21, %v563_v35  ;;  %v566_v22 = vld [vmem:[%s10803_s18 + $0x88] sm:$0xff]  ;;  %v568_v21 = vld [vmem:[%s10803_s18 + $0x98] sm:$0xff] }
 0x35f   : > { %14208 = vst [vmem:[#allocation32_spill] sm:$0xff] %v10910_v29  ;;  %14209 = vst [vmem:[#allocation33_spill] sm:$0xff] %v10912_v55  ;;  %8998 = vtanh.f32 %v10910_v29  ;;  %2424 = vrot.lane.b32.xlu0 %v8989_v46, %s9573_s30  ;;  %v567_v46 = vld [vmem:[%s10803_s18 + $0x90] sm:$0xff]  ;;  %v2552_v35 = vpack.c.bf16 %v566_v22, %v565_v58  ;;  %v2005_v22 = vmul.f32 %v10731_v3, %v10601_v52 }
 0x360   : > { %9000 = vtanh.f32 %v10912_v55  ;;  %v2247_v37 = vpop.permute.xlu1 %2246  ;;  %v10923_v18 = vpop.permute.xlu0 %1944  ;;  %8312 = vmatmul.mubr.msk.bf16.gmra.mrb[92].mxu0 %vm2624_vm0, %v2551_v24  ;;  %v2553_v24 = vpack.c.bf16 %v568_v21, %v567_v46  ;;  %v2006_v46 = vmul.f32 %v10735_v44, %v10605_v23 }
 0x361   : > { %v8991_v33 = vpop.eup %8990  ;;  %v10925_v1 = vadd.f32 %v2247_v37, %v2003_v45  ;;  %8315 = vmatprep.mubr.msk.bf16.mxu0 %vm2624_vm0, %v2552_v35 }
 0x362   : > { %v8993_v62 = vpop.eup %8992  ;;  %2426 = vrot.lane.b32.xlu1 %v8991_v33, %s9573_s30  ;;  %v2004_v33 = vmul.f32 %v10727_v13, %v10598_v16 }
 0x363   : > { %14210 = vst [vmem:[#allocation34_spill] sm:$0xff] %v10925_v1  ;;  %9002 = vtanh.f32 %v10925_v1  ;;  %2428 = vrot.lane.b32.xlu0 %v8993_v62, %s9573_s30 }
 0x364   : > { %v10934_v29 = vpop.permute.xlu1 %1946  ;;  %v10936_v32 = vpop.permute.xlu0 %1948 }
 0x365   : > { %v8995_v45 = vpop.eup %8994 }
 0x366   : > { %v8997_v37 = vpop.eup %8996  ;;  %2430 = vrot.lane.b32.xlu1 %v8995_v45, %s9573_s30  ;;  %v14214_v45 = vld [vmem:[#allocation9_spill] sm:$0xff] }
 0x367   : > { %2432 = vrot.lane.b32.xlu0 %v8997_v37, %s9573_s30  ;;  %v2007_v52 = vmul.f32 %v10739_v15, %v14214_v45  ;;  %v14215_v37 = vld [vmem:[#allocation10_spill] sm:$0xff] }
 0x368   : > { %v10944_v62 = vpop.permute.xlu1 %1950  ;;  %v2249_v1 = vpop.permute.xlu0 %2248  ;;  %8316 = vmatmul.mubr.msk.bf16.gmra.mrb[96].mxu0 %vm2624_vm0, %v2553_v24  ;;  %v2008_v23 = vmul.f32 %v10743_v28, %v14215_v37 }
 0x369   : > { %v8999_v55 = vpop.eup %8998  ;;  %v10946_v5 = vadd.f32 %v2249_v1, %v2004_v33 }
 0x36a   : > { %v9001_v58 = vpop.eup %9000  ;;  %2434 = vrot.lane.b32.xlu1 %v8999_v55, %s9573_s30 }
 0x36b   : > { %14211 = vst [vmem:[#allocation35_spill] sm:$0xff] %v10946_v5  ;;  %9004 = vtanh.f32 %v10946_v5  ;;  %2436 = vrot.lane.b32.xlu0 %v9001_v58, %s9573_s30 }
 0x36c   : > { %v2251_v16 = vpop.permute.xlu1 %2250  ;;  %v2253_v35 = vpop.permute.xlu0 %2252 }
 0x36d   : > { %v9003_v1 = vpop.eup %9002  ;;  %v10956_v21 = vadd.f32 %v2251_v16, %v2005_v22  ;;  %v10958_v55 = vadd.f32 %v2253_v35, %v2006_v46  ;;  %v14218_v46 = vld [vmem:[#allocation11_spill] sm:$0xff]  ;;  %v569_v35 = vld [vmem:[%s10803_s18 + $0xa0] sm:$0xff] }
 0x36e   : > { %2438 = vrot.lane.b32.xlu1 %v9003_v1, %s9573_s30  ;;  %v2009_v16 = vmul.f32 %v10747_v47, %v14218_v46  ;;  %v570_v1 = vld [vmem:[%s10803_s18 + $0xa8] sm:$0xff]  ;;  %v8758_v46 = vld [vmem:[%s13926_s5] sm:$0xff]  }
 0x36f   : > { %14212 = vst [vmem:[#allocation36_spill] sm:$0xff] %v10956_v21  ;;  %14213 = vst [vmem:[#allocation37_spill] sm:$0xff] %v10958_v55  ;;  %9006 = vtanh.f32 %v10956_v21  ;;  %v2554_v37 = vpack.c.bf16 %v570_v1, %v569_v35  ;;  %8259 = vmatprep.subr.bf16.mxu1 %v8758_v46 }
 0x370   : > { %9008 = vtanh.f32 %v10958_v55  ;;  %v2255_v24 = vpop.permute.xlu1 %2254  ;;  %v2257_v33 = vpop.permute.xlu0 %2256  ;;  %8260 = vmatpush3.bf16.msra.mxu1 %v8758_v46  ;;  %v574_v55 = vld [vmem:[%s10803_s18 + $0xc8] sm:$0xff] }
 0x371   : > { %v10967_v58 = vadd.f32 %v2255_v24, %v2007_v52  ;;  %v10969_v22 = vadd.f32 %v2257_v33, %v2008_v23  ;;  %8319 = vmatprep.mubr.msk.bf16.mxu0 %vm2624_vm0, %v2554_v37  ;;  %v571_v52 = vld [vmem:[%s10803_s18 + $0xb0] sm:$0xff]  ;;  %v572_v23 = vld [vmem:[%s10803_s18 + $0xb8] sm:$0xff] }
 0x372   : > { %v2555_v24 = vpack.c.bf16 %v572_v23, %v571_v52  ;;  %v14220_v23 = vld [vmem:[#allocation12_spill] sm:$0xff] }
 0x373   : > { %14216 = vst [vmem:[#allocation9_spill] sm:$0xff] %v10967_v58  ;;  %14217 = vst [vmem:[#allocation10_spill] sm:$0xff] %v10969_v22  ;;  %9010 = vtanh.f32 %v10967_v58  ;;  %v573_v58 = vld [vmem:[%s10803_s18 + $0xc0] sm:$0xff] }
 0x374   : > { %9012 = vtanh.f32 %v10969_v22  ;;  %v2259_v45 = vpop.permute.xlu1 %2258  ;;  %8320 = vmatmul.mubr.msk.bf16.gmra.mrb[100].mxu0 %vm2624_vm0, %v2555_v24  ;;  %v2261_v1 = vpop.permute.xlu0 %2260  ;;  %v2010_v24 = vmul.f32 %v10751_v0, %v14220_v23  ;;  %v2556_v11 = vpack.c.bf16 %v574_v55, %v573_v58  ;;  %v2557_v23 = vpack.c.bf16 %v576_v49, %v575_v41 }
 0x375   : > { %v9005_v21 = vpop.eup %9004  ;;  %v10977_v5 = vadd.f32 %v2259_v45, %v2009_v16  ;;  %v2013_v41 = vmul.f32 %v10763_v51, %v10934_v29  ;;  %v2014_v29 = vmul.f32 %v10767_v2, %v10936_v32 }
 0x376   : > { %2440 = vrot.lane.b32.xlu0 %v9005_v21, %s9573_s30  ;;  %v10998_v46 = vadd.f32 %v2261_v1, %v2010_v24  ;;  %8323 = vmatprep.mubr.msk.bf16.mxu0 %vm2624_vm0, %v2556_v11  ;;  %v2012_v1 = vmul.f32 %v10759_v17, %v10923_v18 }
 0x377   : > { %14219 = vst [vmem:[#allocation11_spill] sm:$0xff] %v10977_v5  ;;  %9014 = vtanh.f32 %v10977_v5 }
 0x378   : > { %v2263_v45 = vpop.permute.xlu1 %2262  ;;  %v2265_v37 = vpop.permute.xlu0 %2264  ;;  %14221 = vst [vmem:[#allocation12_spill] sm:$0xff] %v10998_v46  ;;  %9016 = vtanh.f32 %v10998_v46 }
 0x379   : > { %v9007_v33 = vpop.eup %9006  ;;  %v11016_v55 = vadd.f32 %v2265_v37, %v2012_v1  ;;  %v14227_v1 = vld [vmem:[#allocation14_spill] sm:$0xff] }
 0x37a   : > { %v9009_v22 = vpop.eup %9008  ;;  %2442 = vrot.lane.b32.xlu1 %v9007_v33, %s9573_s30  ;;  %v2015_v32 = vmul.f32 %v14227_v1, %v10944_v62 }
 0x37b   : > { %2444 = vrot.lane.b32.xlu0 %v9009_v22, %s9573_s30  ;;  %v8759_v22 = vld [vmem:[%s13926_s5 + $0x8] sm:$0xff]   ;;  %14224 = vst [vmem:[#allocation38_spill] sm:$0xff] %v11016_v55 }
 0x37c   : > { %v2267_v52 = vpop.permute.xlu1 %2266  ;;  %v2269_v33 = vpop.permute.xlu0 %2268  ;;  %8261 = vmatprep.subr.bf16.mxu1 %v8759_v22  ;;  %8324 = vmatmul.mubr.msk.bf16.gmra.mrb[104].mxu0 %vm2624_vm0, %v2557_v23 }
 0x37d   : > { %v9011_v21 = vpop.eup %9010  ;;  %8262 = vmatpush3.bf16.msra.mxu1 %v8759_v22 }
 0x37e   : > { %v9013_v16 = vpop.eup %9012  ;;  %2446 = vrot.lane.b32.xlu1 %v9011_v21, %s9573_s30  ;;  %v14222_v21 = vld [vmem:[#allocation13_spill] sm:$0xff] }
 0x37f   : > { %2448 = vrot.lane.b32.xlu0 %v9013_v16, %s9573_s30  ;;  %v2011_v16 = vmul.f32 %v10755_v20, %v14222_v21 }
 0x381   : > { %v9015_v35 = vpop.eup %9014  ;;  %v11007_v63 = vadd.f32 %v2263_v45, %v2011_v16 }
 0x382   : > { %2450 = vrot.lane.b32.xlu1 %v9015_v35, %s9573_s30  ;;  %v2271_v35 = vpop.permute.xlu1 %2270 }
 0x383   : > { %14223 = vst [vmem:[#allocation13_spill] sm:$0xff] %v11007_v63  ;;  %9018 = vtanh.f32 %v11007_v63 }
 0x384   : > { %9020 = vtanh.f32 %v11016_v55 }
 0x3b8   : > { %v2401_v5 = vpop.permute.xlu0 %2400 }
 0x3b9   : > { %v2496_v24 = vmul.f32 %v10625_v54, %v2401_v5  ;;  %v11024_v54 = vadd.f32 %v2267_v52, %v2013_v41  ;;  %v9017_v5 = vpop.eup %9016  ;;  %v11033_v52 = vadd.f32 %v2269_v33, %v2014_v29 }
 0x3ba   : > { %v9019_v23 = vpop.eup %9018 }
 0x3bb   : > { %14225 = vst [vmem:[#allocation39_spill] sm:$0xff] %v11024_v54  ;;  %9022 = vtanh.f32 %v11024_v54  ;;  %14226 = vst [vmem:[#allocation40_spill] sm:$0xff] %v11033_v52 }
 0x3bc   : > { %v2403_v22 = vpop.permute.xlu1 %2402  ;;  %9024 = vtanh.f32 %v11033_v52 }
 0x3bd   : > { %v2497_v21 = vmul.f32 %v10629_v57, %v2403_v22  ;;  %v2405_v60 = vpop.permute.xlu0 %2404 }
 0x3be   : > { %v2498_v11 = vmul.f32 %v10633_v38, %v2405_v60 }
 0x3bf   : > { %v2528_v58 = vpack.c.bf16 %v2497_v21, %v2496_v24  ;;  %v577_v24 = vld [vmem:[%s10803_s18 + $0xe0] sm:$0xff]  ;;  %v579_v21 = vld [vmem:[%s10803_s18 + $0xf0] sm:$0xff] }
 0x3c0   : > { %v2407_v49 = vpop.permute.xlu1 %2406 }
 0x3c1   : > { %v2499_v18 = vmul.f32 %v10638_v12, %v2407_v49  ;;  %v2409_v45 = vpop.permute.xlu0 %2408  ;;  %2580 = vrot.lane.b32.xlu0 %v2528_v58, %s9574_s23  ;;  %v580_v49 = vld [vmem:[%s10803_s18 + $0xf8] sm:$0xff] }
 0x3c2   : > { %v2500_v38 = vmul.f32 %v10642_v27, %v2409_v45  ;;  %v578_v27 = vld [vmem:[%s10803_s18 + $0xe8] sm:$0xff]  ;;  %v2559_v62 = vpack.c.bf16 %v580_v49, %v579_v21  ;;  %v9021_v45 = vpop.eup %9020 }
 0x3c3   : > { %v2529_v57 = vpack.c.bf16 %v2499_v18, %v2498_v11  ;;  %v2558_v33 = vpack.c.bf16 %v578_v27, %v577_v24  ;;  %v11046_v11 = vadd.f32 %v2271_v35, %v2015_v32 }
 0x3c4   : > { %v2411_v37 = vpop.permute.xlu1 %2410 }
 0x3c5   : > { %v2501_v12 = vmul.f32 %v10647_v39, %v2411_v37  ;;  %v2413_v60 = vpop.permute.xlu0 %2412  ;;  %2452 = vrot.lane.b32.xlu0 %v9017_v5, %s9573_s30  ;;  %2582 = vrot.lane.b32.xlu1 %v2529_v57, %s9574_s23  ;;  %14228 = vst [vmem:[#allocation14_spill] sm:$0xff] %v11046_v11  ;;  %9026 = vtanh.f32 %v11046_v11  ;;  %v9023_v29 = vpop.eup %9022 }
 0x3c6   : > { %v2502_v39 = vmul.f32 %v10651_v59, %v2413_v60  ;;  %8327 = vmatprep.mubr.msk.bf16.mxu0 %vm2624_vm0, %v2558_v33 }
 0x3c7   : > { %v2530_v16 = vpack.c.bf16 %v2501_v12, %v2500_v38  ;;  %8328 = vmatmul.mubr.msk.bf16.gmra.mrb[108].mxu0 %vm2624_vm0, %v2559_v62 }
 0x3c8   : > { %v2415_v22 = vpop.permute.xlu1 %2414 }
 0x3c9   : > { %v2503_v58 = vmul.f32 %v10655_v7, %v2415_v22  ;;  %v2417_v41 = vpop.permute.xlu0 %2416  ;;  %2454 = vrot.lane.b32.xlu1 %v9019_v23, %s9573_s30  ;;  %2584 = vrot.lane.b32.xlu0 %v2530_v16, %s9574_s23 }
 0x3ca   : > { %v2504_v7 = vmul.f32 %v10659_v50, %v2417_v41  ;;  %v9025_v50 = vpop.eup %9024 }
 0x3cb   : > { %v2531_v18 = vpack.c.bf16 %v2503_v58, %v2502_v39 }
 0x3cc   : > { %v2419_v57 = vpop.permute.xlu1 %2418 }
 0x3cd   : > { %v2505_v59 = vmul.f32 %v10664_v6, %v2419_v57  ;;  %v2421_v5 = vpop.permute.xlu0 %2420  ;;  %2456 = vrot.lane.b32.xlu0 %v9021_v45, %s9573_s30  ;;  %2586 = vrot.lane.b32.xlu1 %v2531_v18, %s9574_s23 }
 0x3ce   : > { %v2506_v38 = vmul.f32 %v10669_v34, %v2421_v5 }
 0x3cf   : > { %v2532_v35 = vpack.c.bf16 %v2505_v59, %v2504_v7  ;;  %v9027_v24 = vpop.eup %9026 }
 0x3d0   : > { %v2423_v37 = vpop.permute.xlu1 %2422 }
 0x3d1   : > { %v2507_v12 = vmul.f32 %v10674_v4, %v2423_v37  ;;  %v2425_v60 = vpop.permute.xlu0 %2424  ;;  %2458 = vrot.lane.b32.xlu1 %v9023_v29, %s9573_s30  ;;  %2588 = vrot.lane.b32.xlu0 %v2532_v35, %s9574_s23 }
 0x3d2   : > { %v2508_v23 = vmul.f32 %v10678_v25, %v2425_v60 }
 0x3d3   : > { %v2533_v6 = vpack.c.bf16 %v2507_v12, %v2506_v38 }
 0x3d4   : > { %v2427_v16 = vpop.permute.xlu1 %2426 }
 0x3d5   : > { %v2509_v32 = vmul.f32 %v10684_v9, %v2427_v16  ;;  %v2429_v22 = vpop.permute.xlu0 %2428  ;;  %2460 = vrot.lane.b32.xlu0 %v9025_v50, %s9573_s30  ;;  %2590 = vrot.lane.b32.xlu1 %v2533_v6, %s9574_s23 }
 0x3d6   : > { %v2510_v27 = vmul.f32 %v10688_v36, %v2429_v22 }
 0x3d7   : > { %v2534_v34 = vpack.c.bf16 %v2509_v32, %v2508_v23 }
 0x3d8   : > { %v2431_v4 = vpop.permute.xlu1 %2430 }
 0x3d9   : > { %v2511_v21 = vmul.f32 %v10694_v48, %v2431_v4  ;;  %v2433_v39 = vpop.permute.xlu0 %2432  ;;  %2462 = vrot.lane.b32.xlu1 %v9027_v24, %s9573_s30  ;;  %2592 = vrot.lane.b32.xlu0 %v2534_v34, %s9574_s23 }
 0x3da   : > { %v2512_v9 = vmul.f32 %v10698_v43, %v2433_v39 }
 0x3db   : > { %v2535_v25 = vpack.c.bf16 %v2511_v21, %v2510_v27 }
 0x3dc   : > { %v2435_v58 = vpop.permute.xlu1 %2434 }
 0x3dd   : > { %v2513_v41 = vmul.f32 %v10704_v14, %v2435_v58  ;;  %2594 = vrot.lane.b32.xlu1 %v2535_v25, %s9574_s23  ;;  %v2437_v33 = vpop.permute.xlu0 %2436 }
 0x3de   : > { %v2514_v36 = vmul.f32 %v10709_v56, %v2437_v33 }
 0x3df   : > { %v2536_v49 = vpack.c.bf16 %v2513_v41, %v2512_v9 }
 0x3e0   : > { %v2439_v62 = vpop.permute.xlu1 %2438 }
 0x3e1   : > { %v2515_v48 = vmul.f32 %v10716_v40, %v2439_v62  ;;  %2596 = vrot.lane.b32.xlu0 %v2536_v49, %s9574_s23 }
 0x3e3   : > { %v2537_v18 = vpack.c.bf16 %v2515_v48, %v2514_v36 }
 0x3e5   : > { %2598 = vrot.lane.b32.xlu1 %v2537_v18, %s9574_s23 }
 0x3e8   : > { %v2441_v45 = vpop.permute.xlu0 %2440 }
 0x3e9   : > { %v2516_v43 = vmul.f32 %v10727_v13, %v2441_v45 }
 0x3ec   : > { %v2443_v57 = vpop.permute.xlu1 %2442 }
 0x3ed   : > { %v2517_v14 = vmul.f32 %v10731_v3, %v2443_v57  ;;  %v2445_v7 = vpop.permute.xlu0 %2444  ;;  %v11086_v3 = vld [vmem:[%s13932_s11] sm:$0xf] }
 0x3ee   : > { %v2518_v35 = vmul.f32 %v10735_v44, %v2445_v7  ;;  %v14229_v44 = vld [vmem:[#allocation8_spill] sm:$0xff] }
 0x3ef   : > { %v2538_v59 = vpack.c.bf16 %v2517_v14, %v2516_v43 }
 0x3f0   : > { %v2447_v5 = vpop.permute.xlu1 %2446 }
 0x3f1   : > { %v2519_v56 = vmul.f32 %v10739_v15, %v2447_v5  ;;  %2600 = vrot.lane.b32.xlu0 %v2538_v59, %s9574_s23  ;;  %v2449_v40 = vpop.permute.xlu0 %2448  ;;  %v14230_v15 = vsub.s32 1, %v14229_v44 }
 0x3f2   : > { %v2520_v38 = vmul.f32 %v10743_v28, %v2449_v40 }
 0x3f3   : > { %v2539_v29 = vpack.c.bf16 %v2519_v56, %v2518_v35  ;;  %v11091_v60 = vrot.slane %v11086_v3, %v14230_v15 }
 0x3f4   : > { %v2451_v37 = vpop.permute.xlu1 %2450 }
 0x3f5   : > { %v2521_v12 = vmul.f32 %v10747_v47, %v2451_v37  ;;  %2602 = vrot.lane.b32.xlu1 %v2539_v29, %s9574_s23 }
 0x3f7   : > { %v2540_v13 = vpack.c.bf16 %v2521_v12, %v2520_v38 }
 0x3f9   : > { %2604 = vrot.lane.b32.xlu0 %v2540_v13, %s9574_s23 }
 0x41b   : > { %v8301_v6 = vpop.f32.mrb[80].mxu0 }
 0x41c   : > { %v11094_v28 = vadd.f32 %v8301_v6, %v11091_v60  ;;  %v2932_v47 = vpop.f32.mrb[81].mxu0 }
 0x41d   : > { %v11097_v50 = vadd.f32 %v2932_v47, %v11091_v60  ;;  %v8302_v16 = vpop.f32.mrb[82].mxu0 }
 0x41e   : > { %v11100_v23 = vadd.f32 %v8302_v16, %v11091_v60  ;;  %v2935_v32 = vpop.f32.mrb[83].mxu0 }
 0x41f   : > { %v11103_v22 = vadd.f32 %v2935_v32, %v11091_v60 }
 0x420   : > { %v8598_v34 = vpack.i.bf16 %v11100_v23, %v11094_v28 }
 0x421   : > { %v8588_v4 = vpack.i.bf16 %v11103_v22, %v11097_v50 }
 0x423   : > { %v8305_v21 = vpop.f32.mrb[84].mxu0 }
 0x424   : > { %v11114_v39 = vadd.f32 %v8305_v21, %v11091_v60  ;;  %v2948_v25 = vpop.f32.mrb[85].mxu0 }
 0x425   : > { %v11117_v58 = vadd.f32 %v2948_v25, %v11091_v60  ;;  %v8306_v9 = vpop.f32.mrb[86].mxu0 }
 0x426   : > { %v11120_v41 = vadd.f32 %v8306_v9, %v11091_v60  ;;  %v2951_v33 = vpop.f32.mrb[87].mxu0 }
 0x427   : > { %v11123_v49 = vadd.f32 %v2951_v33, %v11091_v60 }
 0x428   : > { %v8618_v62 = vpack.i.bf16 %v11120_v41, %v11114_v39 }
 0x429   : > { %v8608_v48 = vpack.i.bf16 %v11123_v49, %v11117_v58 }
 0x42b   : > { %v8309_v45 = vpop.f32.mrb[88].mxu0 }
 0x42c   : > { %v11134_v57 = vadd.f32 %v8309_v45, %v11091_v60  ;;  %v2964_v43 = vpop.f32.mrb[89].mxu0 }
 0x42d   : > { %v8310_v14 = vpop.f32.mrb[90].mxu0  ;;  %v11140_v59 = vadd.f32 %v2964_v43, %v11091_v60 }
 0x42e   : > { %v11137_v7 = vadd.f32 %v8310_v14, %v11091_v60  ;;  %v2967_v40 = vpop.f32.mrb[91].mxu0 }
 0x42f   : > { %v11151_v29 = vadd.f32 %v2967_v40, %v11091_v60 }
 0x430   : > { %v8638_v5 = vpack.i.bf16 %v11137_v7, %v11134_v57 }
 0x431   : > { %v8628_v38 = vpack.i.bf16 %v11151_v29, %v11140_v59 }
 0x433   : > { %v11146_v56 = vpop.permute.xlu0 %2580  ;;  %v8313_v37 = vpop.f32.mrb[92].mxu0 }
 0x434   : > { %14231 = vst [vmem:[#allocation41_spill] sm:$0xff] %v11146_v56  ;;  %8263 = vmatprep.mubr.msk.bf16.mxu1 %vm2624_vm0, %v11146_v56  ;;  %v2980_v13 = vpop.f32.mrb[93].mxu0  ;;  %v11160_v47 = vadd.f32 %v8313_v37, %v11091_v60 }
 0x435   : > { %v11165_v16 = vadd.f32 %v2980_v13, %v11091_v60  ;;  %v8314_v32 = vpop.f32.mrb[94].mxu0 }
 0x436   : > { %v11168_v21 = vadd.f32 %v8314_v32, %v11091_v60  ;;  %v2983_v25 = vpop.f32.mrb[95].mxu0 }
 0x437   : > { %v11157_v15 = vpop.permute.xlu1 %2582  ;;  %v2453_v6 = vpop.permute.xlu0 %2452  ;;  %v11171_v9 = vadd.f32 %v2983_v25, %v11091_v60 }
 0x438   : > { %14232 = vst [vmem:[#allocation42_spill] sm:$0xff] %v11157_v15  ;;  %8264 = vmatmul.mubr.msk.bf16.vlgmr.msra.gmra.mrb[16].mxu1 %vm2624_vm0, %v11157_v15  ;;  %v2522_v40 = vmul.f32 %v10751_v0, %v2453_v6 }
 0x43b   : > { %v2455_v33 = vpop.permute.xlu1 %2454  ;;  %v11173_v45 = vpop.permute.xlu0 %2584 }
 0x43c   : > { %14233 = vst [vmem:[#allocation43_spill] sm:$0xff] %v11173_v45  ;;  %v2523_v37 = vmul.f32 %v10755_v20, %v2455_v33  ;;  %8267 = vmatprep.mubr.msk.bf16.mxu1 %vm2624_vm0, %v11173_v45  ;;  %v8317_v25 = vpop.f32.mrb[96].mxu0 }
 0x43d   : > { %v2996_v36 = vpop.f32.mrb[97].mxu0  ;;  %v11190_v14 = vadd.f32 %v8317_v25, %v11091_v60 }
 0x43e   : > { %v2541_v35 = vpack.c.bf16 %v2523_v37, %v2522_v40  ;;  %v11196_v0 = vadd.f32 %v2996_v36, %v11091_v60  ;;  %v8318_v20 = vpop.f32.mrb[98].mxu0 }
 0x43f   : > { %v11187_v24 = vpop.permute.xlu1 %2586  ;;  %v2457_v12 = vpop.permute.xlu0 %2456  ;;  %v11199_v6 = vadd.f32 %v8318_v20, %v11091_v60 }
 0x440   : > { %14234 = vst [vmem:[#allocation44_spill] sm:$0xff] %v11187_v24  ;;  %2606 = vrot.lane.b32.xlu1 %v2541_v35, %s9574_s23  ;;  %8268 = vmatmul.mubr.msk.bf16.gmra.mrb[20].mxu1 %vm2624_vm0, %v11187_v24  ;;  %v2999_v33 = vpop.f32.mrb[99].mxu0  ;;  %v2524_v36 = vmul.f32 %v10759_v17, %v2457_v12 }
 0x441   : > { %v11202_v40 = vadd.f32 %v2999_v33, %v11091_v60  ;;  %v8603_v35 = vpack.i.bf16 %v11199_v6, %v11190_v14 }
 0x443   : > { %v2459_v37 = vpop.permute.xlu1 %2458  ;;  %v11204_v32 = vpop.permute.xlu0 %2588  ;;  %v8593_v20 = vpack.i.bf16 %v11202_v40, %v11196_v0 }
 0x444   : > { %14235 = vst [vmem:[#allocation45_spill] sm:$0xff] %v11204_v32  ;;  %v2525_v18 = vmul.f32 %v10763_v51, %v2459_v37  ;;  %8271 = vmatprep.mubr.msk.bf16.mxu1 %vm2624_vm0, %v11204_v32 }
 0x446   : > { %v2542_v27 = vpack.c.bf16 %v2525_v18, %v2524_v36 }
 0x447   : > { %v11218_v43 = vpop.permute.xlu1 %2590  ;;  %v2461_v13 = vpop.permute.xlu0 %2460 }
 0x448   : > { %14236 = vst [vmem:[#allocation46_spill] sm:$0xff] %v11218_v43  ;;  %2608 = vrot.lane.b32.xlu0 %v2542_v27, %s9574_s23  ;;  %8272 = vmatmul.mubr.msk.bf16.gmra.mrb[24].mxu1 %vm2624_vm0, %v11218_v43  ;;  %v2526_v12 = vmul.f32 %v10767_v2, %v2461_v13  ;;  %v8321_v18 = vpop.f32.mrb[100].mxu0 }
 0x449   : > { %v11234_v36 = vadd.f32 %v8321_v18, %v11091_v60  ;;  %v3012_v25 = vpop.f32.mrb[101].mxu0 }
 0x44a   : > { %v11239_v2 = vadd.f32 %v3012_v25, %v11091_v60 }
 0x44b   : > { %v2463_v17 = vpop.permute.xlu1 %2462  ;;  %v11223_v51 = vpop.permute.xlu0 %2592 }
 0x44c   : > { %14237 = vst [vmem:[#allocation47_spill] sm:$0xff] %v11223_v51  ;;  %v2527_v37 = vmul.f32 %v14227_v1, %v2463_v17  ;;  %8275 = vmatprep.mubr.msk.bf16.mxu1 %vm2624_vm0, %v11223_v51  ;;  %8589 = vrot.lane.b32.xlu0 %v8588_v4, %s9573_s30  ;;  %v8322_v1 = vpop.f32.mrb[102].mxu0 }
 0x44d   : > { %v11245_v13 = vadd.f32 %v8322_v1, %v11091_v60  ;;  %v3015_v4 = vpop.f32.mrb[103].mxu0 }
 0x44e   : > { %v2543_v27 = vpack.c.bf16 %v2527_v37, %v2526_v12  ;;  %v11252_v17 = vadd.f32 %v3015_v4, %v11091_v60 }
 0x44f   : > { %v11236_v33 = vpop.permute.xlu1 %2594  ;;  %v8623_v25 = vpack.i.bf16 %v11245_v13, %v11234_v36 }
 0x450   : > { %14238 = vst [vmem:[#allocation48_spill] sm:$0xff] %v11236_v33  ;;  %2610 = vrot.lane.b32.xlu1 %v2543_v27, %s9574_s23  ;;  %8276 = vmatmul.mubr.msk.bf16.gmra.mrb[28].mxu1 %vm2624_vm0, %v11236_v33  ;;  %v8613_v18 = vpack.i.bf16 %v11252_v17, %v11239_v2 }
 0x451   : > { %8599 = vrot.lane.b32.xlu0 %v8598_v34, %s9573_s30 }
 0x453   : > { %v11258_v37 = vpop.permute.xlu0 %2596 }
 0x454   : > { %14239 = vst [vmem:[#allocation49_spill] sm:$0xff] %v11258_v37  ;;  %8279 = vmatprep.mubr.msk.bf16.mxu1 %vm2624_vm0, %v11258_v37  ;;  %8594 = vrot.lane.b32.xlu1 %v8593_v20, %s9573_s30  ;;  %v8325_v20 = vpop.f32.mrb[104].mxu0 }
 0x455   : > { %8609 = vrot.lane.b32.xlu0 %v8608_v48, %s9573_s30  ;;  %v11311_v1 = vadd.f32 %v8325_v20, %v11091_v60  ;;  %v3028_v4 = vpop.f32.mrb[105].mxu0 }
 0x457   : > { %v11271_v34 = vpop.permute.xlu1 %2598 }
 0x458   : > { %14240 = vst [vmem:[#allocation50_spill] sm:$0xff] %v11271_v34  ;;  %8280 = vmatmul.mubr.msk.bf16.gmra.mrb[32].mxu1 %vm2624_vm0, %v11271_v34  ;;  %8604 = vrot.lane.b32.xlu1 %v8603_v35, %s9573_s30 }
 0x459   : > { %8619 = vrot.lane.b32.xlu0 %v8618_v62, %s9573_s30  ;;  %v14242_v62 = vpack.i.bf16 %v11171_v9, %v11165_v16 }
 0x45c   : > { %8614 = vrot.lane.b32.xlu1 %v8613_v18, %s9573_s30  ;;  %v8326_v18 = vpop.f32.mrb[106].mxu0 }
 0x45d   : > { %8629 = vrot.lane.b32.xlu0 %v8628_v38, %s9573_s30  ;;  %v14244_v38 = vpack.i.bf16 %v11168_v21, %v11160_v47  ;;  %v3031_v12 = vpop.f32.mrb[107].mxu0 }
 0x460   : > { %8624 = vrot.lane.b32.xlu1 %v8623_v25, %s9573_s30  ;;  %v11314_v25 = vadd.f32 %v3028_v4, %v11091_v60 }
 0x461   : > { %8639 = vrot.lane.b32.xlu0 %v8638_v5, %s9573_s30 }
 0x463   : > { %v11290_v48 = vpop.permute.xlu0 %2600 }
 0x464   : > { %14241 = vst [vmem:[#allocation51_spill] sm:$0xff] %v11290_v48  ;;  %8283 = vmatprep.mubr.msk.bf16.mxu1 %vm2624_vm0, %v11290_v48 }
 0x465   : > { %8649 = vrot.lane.b32.xlu0 %v14242_v62, %s9573_s30  ;;  %v11317_v62 = vadd.f32 %v8326_v18, %v11091_v60 }
 0x467   : > { %v11298_v35 = vpop.permute.xlu1 %2602  ;;  %v8643_v27 = vpack.i.bf16 %v11317_v62, %v11311_v1 }
 0x468   : > { %14243 = vst [vmem:[#allocation52_spill] sm:$0xff] %v11298_v35  ;;  %8284 = vmatmul.mubr.msk.bf16.gmra.mrb[36].mxu1 %vm2624_vm0, %v11298_v35 }
 0x469   : > { %8659 = vrot.lane.b32.xlu0 %v14244_v38, %s9573_s30  ;;  %v11320_v38 = vadd.f32 %v3031_v12, %v11091_v60 }
 0x46b   : > { %v11306_v5 = vpop.permute.xlu0 %2604  ;;  %v8633_v20 = vpack.i.bf16 %v11320_v38, %v11314_v25 }
 0x46c   : > { %14245 = vst [vmem:[#allocation53_spill] sm:$0xff] %v11306_v5  ;;  %8287 = vmatprep.mubr.msk.bf16.mxu1 %vm2624_vm0, %v11306_v5 }
 0x46d   : > { %8634 = vrot.lane.b32.xlu1 %v8633_v20, %s9573_s30 }
 0x471   : > { %8644 = vrot.lane.b32.xlu1 %v8643_v27, %s9573_s30  ;;  %v14249_v27 = vsub.s32 0, %v14229_v44 }
 0x49a   : > { %v8329_v18 = vpop.f32.mrb[108].mxu0 }
 0x49b   : > { %v11333_v12 = vadd.f32 %v8329_v18, %v11091_v60  ;;  %v3044_v52 = vpop.f32.mrb[109].mxu0 }
 0x49c   : > { %v11336_v54 = vadd.f32 %v3044_v52, %v11091_v60  ;;  %v8330_v55 = vpop.f32.mrb[110].mxu0 }
 0x49d   : > { %v11339_v11 = vadd.f32 %v8330_v55, %v11091_v60  ;;  %v3047_v63 = vpop.f32.mrb[111].mxu0 }
 0x49e   : > { %v11342_v46 = vadd.f32 %v3047_v63, %v11091_v60 }
 0x49f   : > { %v8663_v20 = vpack.i.bf16 %v11339_v11, %v11333_v12 }
 0x4a0   : > { %v8653_v18 = vpack.i.bf16 %v11342_v46, %v11336_v54 }
 0x4a2   : > { %8654 = vrot.lane.b32.xlu1 %v8653_v18, %s9573_s30  ;;  %v11369_v18 = vrot.slane %v11086_v3, %v14249_v27 }
 0x4a6   : > { %8664 = vrot.lane.b32.xlu1 %v8663_v20, %s9573_s30 }
 0x4b2   : > { %v11354_v55 = vpop.permute.xlu1 %2606 }
 0x4b3   : > { %14246 = vst [vmem:[#allocation54_spill] sm:$0xff] %v11354_v55  ;;  %8288 = vmatmul.mubr.msk.bf16.gmra.mrb[40].mxu1 %vm2624_vm0, %v11354_v55 }
 0x4ba   : > { %v11358_v63 = vpop.permute.xlu0 %2608 }
 0x4bb   : > { %14247 = vst [vmem:[#allocation55_spill] sm:$0xff] %v11358_v63  ;;  %8291 = vmatprep.mubr.msk.bf16.mxu1 %vm2624_vm0, %v11358_v63 }
 0x4be   : > { %v8590_v4 = vpop.permute.xlu0 %8589 }
 0x4bf   : > { %v8592_v8 = vunpack.i.h.bf16 %v8590_v4  ;;  %v8591_v30 = vunpack.i.l.bf16 %v8590_v4 }
 0x4c1   : > { %v3219_v3 = vpack.c.bf16 %v8592_v8, %v8591_v30 }
 0x4c2   : > { %v11362_v60 = vpop.permute.xlu1 %2610 }
 0x4c3   : > { %14248 = vst [vmem:[#allocation56_spill] sm:$0xff] %v11362_v60  ;;  %8292 = vmatmul.mubr.msk.bf16.gmra.mrb[44].mxu1 %vm2624_vm0, %v11362_v60 }
 0x50b   : > { %v8265_v20 = vpop.f32.mrb[16].mxu1 }
 0x50c   : > { %v2707_v52 = vpop.f32.mrb[17].mxu1  ;;  %v2716_v19 = vadd.f32 %v8265_v20, %v11369_v18 }
 0x50d   : > { %v8266_v53 = vpop.f32.mrb[18].mxu1  ;;  %v2708_v42 = vadd.f32 %v2707_v52, %v11369_v18 }
 0x50e   : > { %v2719_v31 = vadd.f32 %v8266_v53, %v11369_v18  ;;  %v2710_v61 = vpop.f32.mrb[19].mxu1 }
 0x50f   : > { %v2711_v26 = vadd.f32 %v2710_v61, %v11369_v18  ;;  %v8600_v61 = vpop.permute.xlu0 %8599 }
 0x510   : > { %v11375_v10 = vpack.c.bf16 %v2719_v31, %v2716_v19  ;;  %v8602_v19 = vunpack.i.h.bf16 %v8600_v61  ;;  %v8601_v4 = vunpack.i.l.bf16 %v8600_v61 }
 0x511   : > { %v11377_v60 = vpack.c.bf16 %v2711_v26, %v2708_v42 }
 0x512   : > { %v3220_v55 = vpack.c.bf16 %v8602_v19, %v8601_v4 }
 0x513   : > { %v8269_v27 = vpop.f32.mrb[20].mxu1  ;;  %7881 = vmatprep.mubr.msk.bf16.mxu0 %vm2624_vm0, %v11377_v60  ;;  %3267 = vrot.lane.b32.xlu0 %v11377_v60, %s9575_s15 }
 0x514   : > { %7833 = vmatprep.mubr.msk.bf16.mxu1 %vm2624_vm0, %v11377_v60  ;;  %v2723_v53 = vpop.f32.mrb[21].mxu1  ;;  %v2732_v31 = vadd.f32 %v8269_v27, %v11369_v18 }
 0x515   : > { %v8270_v52 = vpop.f32.mrb[22].mxu1  ;;  %v2724_v8 = vadd.f32 %v2723_v53, %v11369_v18 }
 0x516   : > { %v2735_v26 = vadd.f32 %v8270_v52, %v11369_v18  ;;  %v2726_v42 = vpop.f32.mrb[23].mxu1  ;;  %v8610_v52 = vpop.permute.xlu0 %8609 }
 0x517   : > { %v2727_v30 = vadd.f32 %v2726_v42, %v11369_v18  ;;  %3299 = vrot.lane.b32.xlu0 %v3219_v3, %s9575_s15 }
 0x518   : > { %v11390_v20 = vpack.c.bf16 %v2735_v26, %v2732_v31  ;;  %v8612_v31 = vunpack.i.h.bf16 %v8610_v52  ;;  %v8611_v26 = vunpack.i.l.bf16 %v8610_v52 }
 0x519   : > { %v11392_v63 = vpack.c.bf16 %v2727_v30, %v2724_v8 }
 0x51a   : > { %v3221_v19 = vpack.c.bf16 %v8612_v31, %v8611_v26 }
 0x51b   : > { %v8273_v5 = vpop.f32.mrb[24].mxu1  ;;  %3269 = vrot.lane.b32.xlu0 %v11375_v10, %s9575_s15 }
 0x51c   : > { %v2739_v27 = vpop.f32.mrb[25].mxu1  ;;  %v2748_v53 = vadd.f32 %v8273_v5, %v11369_v18 }
 0x51d   : > { %v8274_v35 = vpop.f32.mrb[26].mxu1  ;;  %v2740_v3 = vadd.f32 %v2739_v27, %v11369_v18 }
 0x51e   : > { %v2751_v42 = vadd.f32 %v8274_v35, %v11369_v18  ;;  %v2742_v48 = vpop.f32.mrb[27].mxu1  ;;  %v8620_v35 = vpop.permute.xlu0 %8619 }
 0x51f   : > { %v2743_v61 = vadd.f32 %v2742_v48, %v11369_v18  ;;  %3301 = vrot.lane.b32.xlu0 %v3220_v55, %s9575_s15 }
 0x520   : > { %v11401_v8 = vpack.c.bf16 %v2751_v42, %v2748_v53  ;;  %v8622_v53 = vunpack.i.h.bf16 %v8620_v35  ;;  %v8621_v42 = vunpack.i.l.bf16 %v8620_v35 }
 0x521   : > { %v11403_v30 = vpack.c.bf16 %v2743_v61, %v2740_v3 }
 0x522   : > { %v3222_v31 = vpack.c.bf16 %v8622_v53, %v8621_v42  ;;  %v8630_v33 = vpop.permute.xlu0 %8629 }
 0x523   : > { %v8277_v4 = vpop.f32.mrb[28].mxu1  ;;  %3271 = vrot.lane.b32.xlu0 %v11392_v63, %s9575_s15 }
 0x524   : > { %v2755_v5 = vpop.f32.mrb[29].mxu1  ;;  %v2764_v27 = vadd.f32 %v8277_v4, %v11369_v18  ;;  %v8595_v4 = vpop.permute.xlu1 %8594 }
 0x525   : > { %v8278_v34 = vpop.f32.mrb[30].mxu1  ;;  %v2756_v55 = vadd.f32 %v2755_v5, %v11369_v18  ;;  %v8597_v43 = vunpack.i.h.bf16 %v8595_v4  ;;  %v8596_v35 = vunpack.i.l.bf16 %v8595_v4 }
 0x526   : > { %v2767_v48 = vadd.f32 %v8278_v34, %v11369_v18  ;;  %v2758_v37 = vpop.f32.mrb[31].mxu1 }
 0x527   : > { %v2759_v52 = vadd.f32 %v2758_v37, %v11369_v18  ;;  %3303 = vrot.lane.b32.xlu0 %v3221_v19, %s9575_s15  ;;  %v3227_v44 = vpack.c.bf16 %v8597_v43, %v8596_v35 }
 0x528   : > { %v11412_v3 = vpack.c.bf16 %v2767_v48, %v2764_v27 }
 0x529   : > { %v11414_v61 = vpack.c.bf16 %v2759_v52, %v2756_v55  ;;  %v8632_v55 = vunpack.i.h.bf16 %v8630_v33  ;;  %v8631_v52 = vunpack.i.l.bf16 %v8630_v33 }
 0x52b   : > { %v8281_v26 = vpop.f32.mrb[32].mxu1  ;;  %3273 = vrot.lane.b32.xlu0 %v11390_v20, %s9575_s15  ;;  %v3223_v32 = vpack.c.bf16 %v8632_v55, %v8631_v52 }
 0x52c   : > { %v2771_v34 = vpop.f32.mrb[33].mxu1  ;;  %v2780_v5 = vadd.f32 %v8281_v26, %v11369_v18  ;;  %v8640_v26 = vpop.permute.xlu0 %8639 }
 0x52d   : > { %v8282_v51 = vpop.f32.mrb[34].mxu1  ;;  %v2772_v27 = vadd.f32 %v2771_v34, %v11369_v18  ;;  %v8642_v4 = vunpack.i.h.bf16 %v8640_v26  ;;  %v8641_v34 = vunpack.i.l.bf16 %v8640_v26 }
 0x52e   : > { %v2783_v37 = vadd.f32 %v8282_v51, %v11369_v18  ;;  %v2774_v19 = vpop.f32.mrb[35].mxu1  ;;  %v8605_v51 = vpop.permute.xlu1 %8604 }
 0x52f   : > { %v2775_v48 = vadd.f32 %v2774_v19, %v11369_v18  ;;  %3305 = vrot.lane.b32.xlu0 %v3222_v31, %s9575_s15  ;;  %v8607_v31 = vunpack.i.h.bf16 %v8605_v51  ;;  %v8606_v33 = vunpack.i.l.bf16 %v8605_v51 }
 0x530   : > { %v11423_v53 = vpack.c.bf16 %v2783_v37, %v2780_v5  ;;  %v3224_v37 = vpack.c.bf16 %v8642_v4, %v8641_v34 }
 0x531   : > { %v11425_v42 = vpack.c.bf16 %v2775_v48, %v2772_v27  ;;  %v3228_v5 = vpack.c.bf16 %v8607_v31, %v8606_v33  ;;  %v8650_v27 = vpop.permute.xlu0 %8649 }
 0x532   : > { %v8615_v19 = vpop.permute.xlu1 %8614  ;;  %v8652_v33 = vunpack.i.h.bf16 %v8650_v27  ;;  %v8651_v4 = vunpack.i.l.bf16 %v8650_v27 }
 0x533   : > { %3283 = vrot.lane.b32.xlu1 %v11425_v42, %s9575_s15  ;;  %3275 = vrot.lane.b32.xlu0 %v11403_v30, %s9575_s15  ;;  %v8617_v52 = vunpack.i.h.bf16 %v8615_v19  ;;  %v8616_v51 = vunpack.i.l.bf16 %v8615_v19 }
 0x534   : > { %v3225_v45 = vpack.c.bf16 %v8652_v33, %v8651_v4 }
 0x535   : > { %v8660_v19 = vpop.permute.xlu0 %8659 }
 0x537   : > { %3315 = vrot.lane.b32.xlu1 %v3227_v44, %s9575_s15  ;;  %3307 = vrot.lane.b32.xlu0 %v3223_v32, %s9575_s15 }
 0x53b   : > { %3285 = vrot.lane.b32.xlu1 %v11423_v53, %s9575_s15  ;;  %v8285_v43 = vpop.f32.mrb[36].mxu1  ;;  %3277 = vrot.lane.b32.xlu0 %v11401_v8, %s9575_s15 }
 0x53c   : > { %v2787_v35 = vpop.f32.mrb[37].mxu1  ;;  %v2796_v44 = vadd.f32 %v8285_v43, %v11369_v18  ;;  %v3229_v43 = vpack.c.bf16 %v8617_v52, %v8616_v51  ;;  %v14252_v52 = vpack.c.bf16 %v11151_v29, %v11140_v59 }
 0x53d   : > { %v8286_v48 = vpop.f32.mrb[38].mxu1  ;;  %v2788_v26 = vadd.f32 %v2787_v35, %v11369_v18  ;;  %v8625_v35 = vpop.permute.xlu1 %8624 }
 0x53e   : > { %v2799_v32 = vadd.f32 %v8286_v48, %v11369_v18  ;;  %v2790_v55 = vpop.f32.mrb[39].mxu1  ;;  %v8627_v27 = vunpack.i.h.bf16 %v8625_v35  ;;  %v8626_v48 = vunpack.i.l.bf16 %v8625_v35 }
 0x53f   : > { %v2791_v31 = vadd.f32 %v2790_v55, %v11369_v18  ;;  %3317 = vrot.lane.b32.xlu1 %v3228_v5, %s9575_s15  ;;  %3309 = vrot.lane.b32.xlu0 %v3224_v37, %s9575_s15  ;;  %v8662_v5 = vunpack.i.h.bf16 %v8660_v19  ;;  %v8661_v37 = vunpack.i.l.bf16 %v8660_v19  ;;  %v14251_v55 = vpack.c.bf16 %v11123_v49, %v11117_v58 }
 0x540   : > { %v11443_v34 = vpack.c.bf16 %v2799_v32, %v2796_v44  ;;  %v3230_v32 = vpack.c.bf16 %v8627_v27, %v8626_v48  ;;  %v14255_v58 = vpack.c.bf16 %v11252_v17, %v11239_v2  ;;  %v14256_v19 = vpack.c.bf16 %v11320_v38, %v11314_v25 }
 0x541   : > { %v11445_v24 = vpack.c.bf16 %v2791_v31, %v2788_v26  ;;  %v3226_v44 = vpack.c.bf16 %v8662_v5, %v8661_v37 }
 0x543   : > { %3287 = vrot.lane.b32.xlu1 %v11445_v24, %s9575_s15  ;;  %3279 = vrot.lane.b32.xlu0 %v11414_v61, %s9575_s15 }
 0x547   : > { %3319 = vrot.lane.b32.xlu1 %v3229_v43, %s9575_s15  ;;  %3311 = vrot.lane.b32.xlu0 %v3225_v45, %s9575_s15  ;;  %v14250_v45 = vpack.c.bf16 %v11103_v22, %v11097_v50  ;;  %v14253_v50 = vpack.c.bf16 %v11171_v9, %v11165_v16  ;;  %v14254_v22 = vpack.c.bf16 %v11202_v40, %v11196_v0  ;;  %v8635_v40 = vpop.permute.xlu1 %8634 }
 0x548   : > { %v8637_v33 = vunpack.i.h.bf16 %v8635_v40  ;;  %v8636_v4 = vunpack.i.l.bf16 %v8635_v40 }
 0x54a   : > { %v3231_v2 = vpack.c.bf16 %v8637_v33, %v8636_v4 }
 0x54b   : > { %3289 = vrot.lane.b32.xlu1 %v11443_v34, %s9575_s15  ;;  %3281 = vrot.lane.b32.xlu0 %v11412_v3, %s9575_s15  ;;  %v8645_v17 = vpop.permute.xlu1 %8644 }
 0x54c   : > { %v8647_v35 = vunpack.i.h.bf16 %v8645_v17  ;;  %v8646_v5 = vunpack.i.l.bf16 %v8645_v17 }
 0x54f   : > { %3313 = vrot.lane.b32.xlu0 %v3226_v44, %s9575_s15  ;;  %3321 = vrot.lane.b32.xlu1 %v3230_v32, %s9575_s15  ;;  %v3232_v44 = vpack.c.bf16 %v8647_v35, %v8646_v5 }
 0x553   : > { %4917 = vrot.lane.b32.xlu0 %v11377_v60, %s9574_s23 }
 0x557   : > { %5186 = vrot.lane.b32.xlu0 %v14250_v45, %s9575_s15 }
 0x55b   : > { %4921 = vrot.lane.b32.xlu0 %v11392_v63, %s9574_s23 }
 0x55f   : > { %5190 = vrot.lane.b32.xlu0 %v14251_v55, %s9575_s15 }
 0x563   : > { %4925 = vrot.lane.b32.xlu0 %v11403_v30, %s9574_s23 }
 0x567   : > { %5194 = vrot.lane.b32.xlu0 %v14252_v52, %s9575_s15 }
 0x56b   : > { %4929 = vrot.lane.b32.xlu0 %v11414_v61, %s9574_s23 }
 0x56f   : > { %5198 = vrot.lane.b32.xlu0 %v14253_v50, %s9575_s15 }
 0x573   : > { %4933 = vrot.lane.b32.xlu0 %v11425_v42, %s9574_s23 }
 0x577   : > { %5202 = vrot.lane.b32.xlu0 %v14254_v22, %s9575_s15  ;;  %v8655_v22 = vpop.permute.xlu1 %8654 }
 0x57b   : > { %4937 = vrot.lane.b32.xlu0 %v11445_v24, %s9574_s23 }
 0x57f   : > { %5206 = vrot.lane.b32.xlu0 %v14255_v58, %s9575_s15 }
 0x585   : > { %v3268_v37 = vpop.permute.xlu0 %3267 }
 0x586   : > { %v8289_v49 = vpop.f32.mrb[40].mxu1  ;;  %v3380_v33 = vsel %vm2624_vm0, %v3268_v37, 0 }
 0x587   : > { %v2803_v59 = vpop.f32.mrb[41].mxu1  ;;  %v2812_v16 = vadd.f32 %v8289_v49, %v11369_v18  ;;  %v8657_v49 = vunpack.i.h.bf16 %v8655_v22 }
 0x588   : > { %v8290_v29 = vpop.f32.mrb[42].mxu1  ;;  %v2804_v26 = vadd.f32 %v2803_v59, %v11369_v18  ;;  %v8656_v59 = vunpack.i.l.bf16 %v8655_v22 }
 0x589   : > { %v2815_v9 = vadd.f32 %v8290_v29, %v11369_v18  ;;  %v2806_v51 = vpop.f32.mrb[43].mxu1  ;;  %v3300_v38 = vpop.permute.xlu0 %3299 }
 0x58a   : > { %v2807_v0 = vadd.f32 %v2806_v51, %v11369_v18  ;;  %v8665_v51 = vpop.permute.xlu1 %8664 }
 0x58b   : > { %v11499_v31 = vpack.c.bf16 %v2815_v9, %v2812_v16  ;;  %v3233_v16 = vpack.c.bf16 %v8657_v49, %v8656_v59  ;;  %v14262_v49 = vpack.c.bf16 %v11199_v6, %v11190_v14 }
 0x58c   : > { %v11501_v43 = vpack.c.bf16 %v2807_v0, %v2804_v26  ;;  %v8667_v26 = vunpack.i.h.bf16 %v8665_v51  ;;  %v8666_v0 = vunpack.i.l.bf16 %v8665_v51 }
 0x58d   : > { %v3270_v9 = vpop.permute.xlu0 %3269 }
 0x58e   : > { %3291 = vrot.lane.b32.xlu1 %v11501_v43, %s9575_s15  ;;  %4941 = vrot.lane.b32.xlu0 %v11501_v43, %s9574_s23  ;;  %v3234_v17 = vpack.c.bf16 %v8667_v26, %v8666_v0  ;;  %v3383_v35 = vsel %vm2624_vm0, %v3270_v9, 0 }
 0x591   : > { %v3302_v4 = vpop.permute.xlu0 %3301 }
 0x592   : > { %3323 = vrot.lane.b32.xlu1 %v3231_v2, %s9575_s15  ;;  %5210 = vrot.lane.b32.xlu0 %v14256_v19, %s9575_s15  ;;  %v3428_v2 = vsel %vm2624_vm0, %v3300_v38, 0  ;;  %v3431_v5 = vsel %vm2624_vm0, %v3302_v4, 0 }
 0x596   : > { %3293 = vrot.lane.b32.xlu1 %v11499_v31, %s9575_s15  ;;  %v8293_v27 = vpop.f32.mrb[44].mxu1 }
 0x597   : > { %v2819_v48 = vpop.f32.mrb[45].mxu1  ;;  %v2828_v45 = vadd.f32 %v8293_v27, %v11369_v18  ;;  %v14258_v27 = vpack.c.bf16 %v11100_v23, %v11094_v28  ;;  %v14259_v28 = vpack.c.bf16 %v11120_v41, %v11114_v39  ;;  %v14260_v39 = vpack.c.bf16 %v11137_v7, %v11134_v57 }
 0x598   : > { %v8294_v32 = vpop.f32.mrb[46].mxu1  ;;  %v2820_v50 = vadd.f32 %v2819_v48, %v11369_v18  ;;  %v14261_v41 = vpack.c.bf16 %v11168_v21, %v11160_v47  ;;  %v14263_v57 = vpack.c.bf16 %v11245_v13, %v11234_v36  ;;  %v14264_v7 = vpack.c.bf16 %v11317_v62, %v11311_v1 }
 0x599   : > { %v2831_v55 = vadd.f32 %v8294_v32, %v11369_v18  ;;  %v2822_v52 = vpop.f32.mrb[47].mxu1  ;;  %v14265_v47 = vpack.c.bf16 %v11339_v11, %v11333_v12 }
 0x59a   : > { %v2823_v25 = vadd.f32 %v2822_v52, %v11369_v18  ;;  %3325 = vrot.lane.b32.xlu1 %v3232_v44, %s9575_s15  ;;  %v14257_v18 = vpack.c.bf16 %v11342_v46, %v11336_v54  ;;  %v3272_v46 = vpop.permute.xlu0 %3271 }
 0x59b   : > { %v11519_v58 = vpack.c.bf16 %v2831_v55, %v2828_v45  ;;  %v3386_v32 = vsel %vm2624_vm0, %v3272_v46, 0 }
 0x59c   : > { %v11521_v29 = vpack.c.bf16 %v2823_v25, %v2820_v50 }
 0x59e   : > { %3295 = vrot.lane.b32.xlu1 %v11521_v29, %s9575_s15  ;;  %4945 = vrot.lane.b32.xlu0 %v11521_v29, %s9574_s23  ;;  %v3304_v48 = vpop.permute.xlu0 %3303 }
 0x59f   : > { %v3434_v45 = vsel %vm2624_vm0, %v3304_v48, 0 }
 0x5a2   : > { %3327 = vrot.lane.b32.xlu1 %v3233_v16, %s9575_s15  ;;  %5214 = vrot.lane.b32.xlu0 %v14257_v18, %s9575_s15  ;;  %v3274_v55 = vpop.permute.xlu0 %3273 }
 0x5a3   : > { %v3389_v50 = vsel %vm2624_vm0, %v3274_v55, 0 }
 0x5a5   : > { %v3284_v40 = vpop.permute.xlu1 %3283 }
 0x5a6   : > { %8527 = vmatprep.subr.msk.bf16.mxu1 %vm2624_vm0, %v3284_v40  ;;  %3297 = vrot.lane.b32.xlu1 %v11519_v58, %s9575_s15  ;;  %v3306_v25 = vpop.permute.xlu0 %3305 }
 0x5a7   : > { %7818 = vmatpush3.bf16.xpose.msra.mxu1 %v3380_v33  ;;  %v3437_v38 = vsel %vm2624_vm0, %v3306_v25, 0 }
 0x5a9   : > { %v3316_v19 = vpop.permute.xlu1 %3315 }
 0x5aa   : > { %3329 = vrot.lane.b32.xlu1 %v3234_v17, %s9575_s15  ;;  %8535 = vmatprep.subr.msk.bf16.mxu0 %vm2624_vm0, %v3316_v19  ;;  %v3276_v21 = vpop.permute.xlu0 %3275  ;;  %v8760_v19 = vld [vmem:[%s13928_s7] sm:$0xff]  }
 0x5ab   : > { %7866 = vmatpush3.bf16.xpose.msra.mxu0 %v3428_v2  ;;  %v3392_v13 = vsel %vm2624_vm0, %v3276_v21, 0 }
 0x5ad   : > { %v3286_v54 = vpop.permute.xlu1 %3285 }
 0x5ae   : > { %4919 = vrot.lane.b32.xlu1 %v11375_v10, %s9574_s23  ;;  %8528 = vmatprep.subr.msk.bf16.mxu1 %vm2624_vm0, %v3286_v54  ;;  %v3308_v14 = vpop.permute.xlu0 %3307 }
 0x5af   : > { %7820 = vmatpush3.bf16.xpose.msra.mxu1 %v3383_v35  ;;  %v3440_v62 = vsel %vm2624_vm0, %v3308_v14, 0 }
 0x5b1   : > { %v3318_v37 = vpop.permute.xlu1 %3317 }
 0x5b2   : > { %5188 = vrot.lane.b32.xlu1 %v14258_v27, %s9575_s15  ;;  %8536 = vmatprep.subr.msk.bf16.mxu0 %vm2624_vm0, %v3318_v37  ;;  %v3278_v6 = vpop.permute.xlu0 %3277  ;;  %v8761_v37 = vld [vmem:[%s13928_s7 + $0x8] sm:$0xff]  }
 0x5b3   : > { %7868 = vmatpush3.bf16.xpose.msra.mxu0 %v3431_v5  ;;  %v3395_v11 = vsel %vm2624_vm0, %v3278_v6, 0  ;;  %v8762_v5 = vld [vmem:[%s13929_s8] sm:$0xff]   ;;  %v8763_v27 = vld [vmem:[%s13929_s8 + $0x8] sm:$0xff]  }
 0x5b5   : > { %v3288_v44 = vpop.permute.xlu1 %3287 }
 0x5b6   : > { %4923 = vrot.lane.b32.xlu1 %v11390_v20, %s9574_s23  ;;  %8529 = vmatprep.subr.msk.bf16.mxu1 %vm2624_vm0, %v3288_v44  ;;  %v3310_v59 = vpop.permute.xlu0 %3309 }
 0x5b7   : > { %7822 = vmatpush3.bf16.xpose.msra.mxu1 %v3386_v32  ;;  %v3443_v51 = vsel %vm2624_vm0, %v3310_v59, 0 }
 0x5b9   : > { %v3320_v52 = vpop.permute.xlu1 %3319 }
 0x5ba   : > { %5192 = vrot.lane.b32.xlu1 %v14259_v28, %s9575_s15  ;;  %8537 = vmatprep.subr.msk.bf16.mxu0 %vm2624_vm0, %v3320_v52  ;;  %v3280_v12 = vpop.permute.xlu0 %3279 }
 0x5bb   : > { %7870 = vmatpush3.bf16.xpose.msra.mxu0 %v3434_v45  ;;  %v3398_v0 = vsel %vm2624_vm0, %v3280_v12, 0 }
 0x5bd   : > { %v3290_v23 = vpop.permute.xlu1 %3289 }
 0x5be   : > { %4927 = vrot.lane.b32.xlu1 %v11401_v8, %s9574_s23  ;;  %8530 = vmatprep.subr.msk.bf16.mxu1 %vm2624_vm0, %v3290_v23  ;;  %v3312_v18 = vpop.permute.xlu0 %3311 }
 0x5bf   : > { %7824 = vmatpush3.bf16.xpose.msra.mxu1 %v3389_v50  ;;  %v3446_v33 = vsel %vm2624_vm0, %v3312_v18, 0 }
 0x5c1   : > { %v3322_v22 = vpop.permute.xlu1 %3321 }
 0x5c2   : > { %5196 = vrot.lane.b32.xlu1 %v14260_v39, %s9575_s15  ;;  %8538 = vmatprep.subr.msk.bf16.mxu0 %vm2624_vm0, %v3322_v22  ;;  %v3282_v4 = vpop.permute.xlu0 %3281 }
 0x5c3   : > { %7872 = vmatpush3.bf16.xpose.msra.mxu0 %v3437_v38  ;;  %v3401_v17 = vsel %vm2624_vm0, %v3282_v4, 0 }
 0x5c6   : > { %4931 = vrot.lane.b32.xlu1 %v11412_v3, %s9574_s23  ;;  %v3314_v46 = vpop.permute.xlu0 %3313 }
 0x5c7   : > { %v3449_v35 = vsel %vm2624_vm0, %v3314_v46, 0 }
 0x5ca   : > { %5200 = vrot.lane.b32.xlu1 %v14261_v41, %s9575_s15 }
 0x5ce   : > { %4935 = vrot.lane.b32.xlu1 %v11423_v53, %s9574_s23 }
 0x5d2   : > { %5204 = vrot.lane.b32.xlu1 %v14262_v49, %s9575_s15 }
 0x5d6   : > { %4939 = vrot.lane.b32.xlu1 %v11443_v34, %s9574_s23 }
 0x5da   : > { %5208 = vrot.lane.b32.xlu1 %v14263_v57, %s9575_s15 }
 0x5de   : > { %4943 = vrot.lane.b32.xlu1 %v11499_v31, %s9574_s23 }
 0x5e2   : > { %5212 = vrot.lane.b32.xlu1 %v14264_v7, %s9575_s15 }
 0x5e6   : > { %4947 = vrot.lane.b32.xlu1 %v11519_v58, %s9574_s23 }
 0x5ea   : > { %5216 = vrot.lane.b32.xlu1 %v14265_v47, %s9575_s15 }
 0x600   : > { %v3292_v36 = vpop.permute.xlu1 %3291 }
 0x601   : > { %8531 = vmatprep.subr.msk.bf16.mxu1 %vm2624_vm0, %v3292_v36 }
 0x602   : > { %7826 = vmatpush3.bf16.xpose.msra.mxu1 %v3392_v13 }
 0x604   : > { %v3324_v1 = vpop.permute.xlu1 %3323 }
 0x605   : > { %8539 = vmatprep.subr.msk.bf16.mxu0 %vm2624_vm0, %v3324_v1 }
 0x606   : > { %7874 = vmatpush3.bf16.xpose.msra.mxu0 %v3440_v62 }
 0x608   : > { %v3294_v16 = vpop.permute.xlu1 %3293 }
 0x609   : > { %8532 = vmatprep.subr.msk.bf16.mxu1 %vm2624_vm0, %v3294_v16 }
 0x60a   : > { %7828 = vmatpush3.bf16.xpose.msra.mxu1 %v3395_v11 }
 0x60c   : > { %v3326_v9 = vpop.permute.xlu1 %3325 }
 0x60d   : > { %8540 = vmatprep.subr.msk.bf16.mxu0 %vm2624_vm0, %v3326_v9 }
 0x60e   : > { %7876 = vmatpush3.bf16.xpose.msra.mxu0 %v3443_v51 }
 0x610   : > { %v3296_v26 = vpop.permute.xlu1 %3295 }
 0x611   : > { %8533 = vmatprep.subr.msk.bf16.mxu1 %vm2624_vm0, %v3296_v26 }
 0x612   : > { %7830 = vmatpush3.bf16.xpose.msra.mxu1 %v3398_v0 }
 0x614   : > { %v3328_v40 = vpop.permute.xlu1 %3327 }
 0x615   : > { %8541 = vmatprep.subr.msk.bf16.mxu0 %vm2624_vm0, %v3328_v40 }
 0x616   : > { %7878 = vmatpush3.bf16.xpose.msra.mxu0 %v3446_v33 }
 0x618   : > { %v3298_v2 = vpop.permute.xlu1 %3297 }
 0x619   : > { %8534 = vmatprep.subr.msk.bf16.mxu1 %vm2624_vm0, %v3298_v2 }
 0x61a   : > { %7832 = vmatpush3.bf16.xpose.msra.mxu1 %v3401_v17 }
 0x61b   : > { %8331 = vmatprep.subr.bf16.mxu1 %v8760_v19 }
 0x61c   : > { %v3330_v54 = vpop.permute.xlu1 %3329 }
 0x61d   : > { %8542 = vmatprep.subr.msk.bf16.mxu0 %vm2624_vm0, %v3330_v54 }
 0x61e   : > { %7880 = vmatpush3.bf16.xpose.msra.mxu0 %v3449_v35 }
 0x61f   : > { %8367 = vmatprep.subr.bf16.mxu0 %v8762_v5 }
 0x621   : > { %7834 = vmatmul.mubr.msk.bf16.vlgmr.msra.gmra.mrb[48].mxu1 %vm2624_vm0, %v11377_v60 }
 0x622   : > { %7835 = vmatprep.mubr.msk.bf16.mxu1 %vm2624_vm0, %v11375_v10  ;;  %8332 = vmatpush3.bf16.msra.mxu1 %v8760_v19 }
 0x623   : > { %8333 = vmatprep.subr.bf16.mxu1 %v8761_v37 }
 0x625   : > { %7882 = vmatmul.mubr.msk.bf16.vlgmr.msra.gmra.mrb[112].mxu0 %vm2624_vm0, %v11377_v60 }
 0x626   : > { %7883 = vmatprep.mubr.msk.bf16.mxu0 %vm2624_vm0, %v11375_v10  ;;  %8334 = vmatpush3.bf16.msra.mxu1 %v8761_v37 }
 0x627   : > { %8368 = vmatpush3.bf16.msra.mxu0 %v8762_v5 }
 0x628   : > { %8369 = vmatprep.subr.bf16.mxu0 %v8763_v27 }
 0x629   : > { %7836 = vmatmul.mubr.msk.bf16.gmra.mrb[52].mxu1 %vm2624_vm0, %v11375_v10 }
 0x62a   : > { %7837 = vmatprep.mubr.msk.bf16.mxu1 %vm2624_vm0, %v11392_v63 }
 0x62b   : > { %8370 = vmatpush3.bf16.msra.mxu0 %v8763_v27 }
 0x62d   : > { %7884 = vmatmul.mubr.msk.bf16.gmra.mrb[116].mxu0 %vm2624_vm0, %v11375_v10  ;;  %v4918_v10 = vpop.permute.xlu0 %4917 }
 0x62e   : > { %7885 = vmatprep.mubr.msk.bf16.mxu0 %vm2624_vm0, %v11392_v63 }
 0x631   : > { %7838 = vmatmul.mubr.msk.bf16.gmra.mrb[56].mxu1 %vm2624_vm0, %v11392_v63 }
 0x632   : > { %7839 = vmatprep.mubr.msk.bf16.mxu1 %vm2624_vm0, %v11390_v20 }
 0x635   : > { %7886 = vmatmul.mubr.msk.bf16.gmra.mrb[120].mxu0 %vm2624_vm0, %v11392_v63  ;;  %v5187_v63 = vpop.permute.xlu0 %5186 }
 0x636   : > { %7887 = vmatprep.mubr.msk.bf16.mxu0 %vm2624_vm0, %v11390_v20 }
 0x639   : > { %7840 = vmatmul.mubr.msk.bf16.gmra.mrb[60].mxu1 %vm2624_vm0, %v11390_v20 }
 0x63a   : > { %7841 = vmatprep.mubr.msk.bf16.mxu1 %vm2624_vm0, %v11403_v30 }
 0x63d   : > { %7888 = vmatmul.mubr.msk.bf16.gmra.mrb[124].mxu0 %vm2624_vm0, %v11390_v20  ;;  %v4922_v20 = vpop.permute.xlu0 %4921 }
 0x63e   : > { %7889 = vmatprep.mubr.msk.bf16.mxu0 %vm2624_vm0, %v11403_v30 }
 0x641   : > { %7842 = vmatmul.mubr.msk.bf16.gmra.mrb[64].mxu1 %vm2624_vm0, %v11403_v30 }
 0x642   : > { %7843 = vmatprep.mubr.msk.bf16.mxu1 %vm2624_vm0, %v11401_v8 }
 0x645   : > { %7890 = vmatmul.mubr.msk.bf16.gmra.mrb[128].mxu0 %vm2624_vm0, %v11403_v30  ;;  %v5191_v30 = vpop.permute.xlu0 %5190 }
 0x646   : > { %7891 = vmatprep.mubr.msk.bf16.mxu0 %vm2624_vm0, %v11401_v8 }
 0x649   : > { %7844 = vmatmul.mubr.msk.bf16.gmra.mrb[68].mxu1 %vm2624_vm0, %v11401_v8 }
 0x64a   : > { %7845 = vmatprep.mubr.msk.bf16.mxu1 %vm2624_vm0, %v11414_v61 }
 0x64d   : > { %7892 = vmatmul.mubr.msk.bf16.gmra.mrb[132].mxu0 %vm2624_vm0, %v11401_v8 }
 0x64e   : > { %7893 = vmatprep.mubr.msk.bf16.mxu0 %vm2624_vm0, %v11414_v61 }
 0x651   : > { %7846 = vmatmul.mubr.msk.bf16.gmra.mrb[72].mxu1 %vm2624_vm0, %v11414_v61 }
 0x652   : > { %7847 = vmatprep.mubr.msk.bf16.mxu1 %vm2624_vm0, %v11412_v3 }
 0x655   : > { %7894 = vmatmul.mubr.msk.bf16.gmra.mrb[136].mxu0 %vm2624_vm0, %v11414_v61  ;;  %v4926_v61 = vpop.permute.xlu0 %4925 }
 0x656   : > { %7895 = vmatprep.mubr.msk.bf16.mxu0 %vm2624_vm0, %v11412_v3 }
 0x659   : > { %7848 = vmatmul.mubr.msk.bf16.gmra.mrb[76].mxu1 %vm2624_vm0, %v11412_v3 }
 0x65a   : > { %7849 = vmatprep.mubr.msk.bf16.mxu1 %vm2624_vm0, %v11425_v42 }
 0x65d   : > { %7896 = vmatmul.mubr.msk.bf16.gmra.mrb[140].mxu0 %vm2624_vm0, %v11412_v3 }
 0x65e   : > { %7897 = vmatprep.mubr.msk.bf16.mxu0 %vm2624_vm0, %v11425_v42 }
 0x661   : > { %7850 = vmatmul.mubr.msk.bf16.gmra.mrb[80].mxu1 %vm2624_vm0, %v11425_v42 }
 0x662   : > { %7851 = vmatprep.mubr.msk.bf16.mxu1 %vm2624_vm0, %v11423_v53 }
 0x665   : > { %7898 = vmatmul.mubr.msk.bf16.gmra.mrb[144].mxu0 %vm2624_vm0, %v11425_v42  ;;  %v5195_v42 = vpop.permute.xlu0 %5194 }
 0x666   : > { %7899 = vmatprep.mubr.msk.bf16.mxu0 %vm2624_vm0, %v11423_v53 }
 0x669   : > { %7852 = vmatmul.mubr.msk.bf16.gmra.mrb[84].mxu1 %vm2624_vm0, %v11423_v53 }
 0x66a   : > { %7853 = vmatprep.mubr.msk.bf16.mxu1 %vm2624_vm0, %v11445_v24 }
 0x66d   : > { %7900 = vmatmul.mubr.msk.bf16.gmra.mrb[148].mxu0 %vm2624_vm0, %v11423_v53 }
 0x66e   : > { %7901 = vmatprep.mubr.msk.bf16.mxu0 %vm2624_vm0, %v11445_v24 }
 0x671   : > { %7854 = vmatmul.mubr.msk.bf16.gmra.mrb[88].mxu1 %vm2624_vm0, %v11445_v24 }
 0x672   : > { %7855 = vmatprep.mubr.msk.bf16.mxu1 %vm2624_vm0, %v11443_v34 }
 0x675   : > { %7902 = vmatmul.mubr.msk.bf16.gmra.mrb[152].mxu0 %vm2624_vm0, %v11445_v24  ;;  %v4920_v24 = vpop.permute.xlu1 %4919 }
 0x676   : > { %7903 = vmatprep.mubr.msk.bf16.mxu0 %vm2624_vm0, %v11443_v34 }
 0x679   : > { %7856 = vmatmul.mubr.msk.bf16.gmra.mrb[92].mxu1 %vm2624_vm0, %v11443_v34  ;;  %v5189_v60 = vpop.permute.xlu1 %5188 }
 0x67a   : > { %7857 = vmatprep.mubr.msk.bf16.mxu1 %vm2624_vm0, %v11501_v43 }
 0x67d   : > { %7904 = vmatmul.mubr.msk.bf16.gmra.mrb[156].mxu0 %vm2624_vm0, %v11443_v34  ;;  %v4924_v8 = vpop.permute.xlu1 %4923 }
 0x67e   : > { %7905 = vmatprep.mubr.msk.bf16.mxu0 %vm2624_vm0, %v11501_v43 }
 0x681   : > { %7858 = vmatmul.mubr.msk.bf16.gmra.mrb[96].mxu1 %vm2624_vm0, %v11501_v43  ;;  %v5193_v3 = vpop.permute.xlu1 %5192 }
 0x682   : > { %7859 = vmatprep.mubr.msk.bf16.mxu1 %vm2624_vm0, %v11499_v31 }
 0x685   : > { %7906 = vmatmul.mubr.msk.bf16.gmra.mrb[160].mxu0 %vm2624_vm0, %v11501_v43  ;;  %v4928_v53 = vpop.permute.xlu1 %4927 }
 0x686   : > { %7907 = vmatprep.mubr.msk.bf16.mxu0 %vm2624_vm0, %v11499_v31 }
 0x689   : > { %7860 = vmatmul.mubr.msk.bf16.gmra.mrb[100].mxu1 %vm2624_vm0, %v11499_v31  ;;  %v5197_v34 = vpop.permute.xlu1 %5196 }
 0x68a   : > { %7861 = vmatprep.mubr.msk.bf16.mxu1 %vm2624_vm0, %v11521_v29 }
 0x68d   : > { %7908 = vmatmul.mubr.msk.bf16.gmra.mrb[164].mxu0 %vm2624_vm0, %v11499_v31  ;;  %v4930_v31 = vpop.permute.xlu0 %4929  ;;  %v4932_v43 = vpop.permute.xlu1 %4931 }
 0x68e   : > { %7909 = vmatprep.mubr.msk.bf16.mxu0 %vm2624_vm0, %v11521_v29 }
 0x691   : > { %7862 = vmatmul.mubr.msk.bf16.gmra.mrb[104].mxu1 %vm2624_vm0, %v11521_v29  ;;  %v5201_v48 = vpop.permute.xlu1 %5200 }
 0x692   : > { %7863 = vmatprep.mubr.msk.bf16.mxu1 %vm2624_vm0, %v11519_v58 }
 0x695   : > { %7910 = vmatmul.mubr.msk.bf16.gmra.mrb[168].mxu0 %vm2624_vm0, %v11521_v29  ;;  %v5199_v29 = vpop.permute.xlu0 %5198  ;;  %v4936_v44 = vpop.permute.xlu1 %4935 }
 0x696   : > { %7911 = vmatprep.mubr.msk.bf16.mxu0 %vm2624_vm0, %v11519_v58 }
 0x699   : > { %7864 = vmatmul.mubr.msk.bf16.gmra.mrb[108].mxu1 %vm2624_vm0, %v11519_v58  ;;  %v5205_v45 = vpop.permute.xlu1 %5204 }
 0x69a   : > { %8335 = vmatprep.mubr.msk.bf16.mxu1 %vm2624_vm0, %v4918_v10 }
 0x69d   : > { %7912 = vmatmul.mubr.msk.bf16.gmra.mrb[172].mxu0 %vm2624_vm0, %v11519_v58  ;;  %v4934_v58 = vpop.permute.xlu0 %4933  ;;  %v4940_v52 = vpop.permute.xlu1 %4939 }
 0x69e   : > { %8371 = vmatprep.mubr.msk.bf16.mxu0 %vm2624_vm0, %v5187_v63 }
 0x6a1   : > { %8336 = vmatmul.mubr.msk.bf16.vlgmr.msra.gmra.mrb[112].mxu1 %vm2624_vm0, %v4920_v24  ;;  %v5203_v32 = vpop.permute.xlu0 %5202  ;;  %v5209_v23 = vpop.permute.xlu1 %5208 }
 0x6a2   : > { %8339 = vmatprep.mubr.msk.bf16.mxu1 %vm2624_vm0, %v4922_v20 }
 0x6a5   : > { %8372 = vmatmul.mubr.msk.bf16.vlgmr.msra.gmra.mrb[176].mxu0 %vm2624_vm0, %v5189_v60  ;;  %v4938_v55 = vpop.permute.xlu0 %4937  ;;  %v4944_v25 = vpop.permute.xlu1 %4943 }
 0x6a6   : > { %8375 = vmatprep.mubr.msk.bf16.mxu0 %vm2624_vm0, %v5191_v30 }
 0x6a9   : > { %8340 = vmatmul.mubr.msk.bf16.gmra.mrb[116].mxu1 %vm2624_vm0, %v4924_v8  ;;  %v5207_v28 = vpop.permute.xlu0 %5206  ;;  %v5213_v39 = vpop.permute.xlu1 %5212 }
 0x6aa   : > { %8343 = vmatprep.mubr.msk.bf16.mxu1 %vm2624_vm0, %v4926_v61 }
 0x6ad   : > { %8376 = vmatmul.mubr.msk.bf16.gmra.mrb[180].mxu0 %vm2624_vm0, %v5193_v3  ;;  %v4942_v50 = vpop.permute.xlu0 %4941  ;;  %v4948_v49 = vpop.permute.xlu1 %4947 }
 0x6ae   : > { %8379 = vmatprep.mubr.msk.bf16.mxu0 %vm2624_vm0, %v5195_v42 }
 0x6b1   : > { %8344 = vmatmul.mubr.msk.bf16.gmra.mrb[120].mxu1 %vm2624_vm0, %v4928_v53  ;;  %v5211_v38 = vpop.permute.xlu0 %5210  ;;  %v5217_v57 = vpop.permute.xlu1 %5216 }
 0x6b2   : > { %8347 = vmatprep.mubr.msk.bf16.mxu1 %vm2624_vm0, %v4930_v31 }
 0x6b5   : > { %8380 = vmatmul.mubr.msk.bf16.gmra.mrb[184].mxu0 %vm2624_vm0, %v5197_v34  ;;  %v4946_v22 = vpop.permute.xlu0 %4945 }
 0x6b6   : > { %8383 = vmatprep.mubr.msk.bf16.mxu0 %vm2624_vm0, %v5199_v29 }
 0x6b9   : > { %8348 = vmatmul.mubr.msk.bf16.gmra.mrb[124].mxu1 %vm2624_vm0, %v4932_v43  ;;  %v5215_v41 = vpop.permute.xlu0 %5214 }
 0x6ba   : > { %8351 = vmatprep.mubr.msk.bf16.mxu1 %vm2624_vm0, %v4934_v58 }
 0x6bd   : > { %8384 = vmatmul.mubr.msk.bf16.gmra.mrb[188].mxu0 %vm2624_vm0, %v5201_v48 }
 0x6be   : > { %8387 = vmatprep.mubr.msk.bf16.mxu0 %vm2624_vm0, %v5203_v32 }
 0x6c1   : > { %8352 = vmatmul.mubr.msk.bf16.gmra.mrb[128].mxu1 %vm2624_vm0, %v4936_v44 }
 0x6c2   : > { %8355 = vmatprep.mubr.msk.bf16.mxu1 %vm2624_vm0, %v4938_v55 }
 0x6c5   : > { %8388 = vmatmul.mubr.msk.bf16.gmra.mrb[192].mxu0 %vm2624_vm0, %v5205_v45 }
 0x6c6   : > { %8391 = vmatprep.mubr.msk.bf16.mxu0 %vm2624_vm0, %v5207_v28 }
 0x6c9   : > { %8356 = vmatmul.mubr.msk.bf16.gmra.mrb[132].mxu1 %vm2624_vm0, %v4940_v52 }
 0x6ca   : > { %8359 = vmatprep.mubr.msk.bf16.mxu1 %vm2624_vm0, %v4942_v50 }
 0x6cd   : > { %8392 = vmatmul.mubr.msk.bf16.gmra.mrb[196].mxu0 %vm2624_vm0, %v5209_v23 }
 0x6ce   : > { %8395 = vmatprep.mubr.msk.bf16.mxu0 %vm2624_vm0, %v5211_v38 }
 0x6d1   : > { %8360 = vmatmul.mubr.msk.bf16.gmra.mrb[136].mxu1 %vm2624_vm0, %v4944_v25 }
 0x6d2   : > { %8363 = vmatprep.mubr.msk.bf16.mxu1 %vm2624_vm0, %v4946_v22 }
 0x6d5   : > { %8396 = vmatmul.mubr.msk.bf16.gmra.mrb[200].mxu0 %vm2624_vm0, %v5213_v39 }
 0x6d6   : > { %8399 = vmatprep.mubr.msk.bf16.mxu0 %vm2624_vm0, %v5215_v41 }
 0x6d9   : > { %8364 = vmatmul.mubr.msk.bf16.gmra.mrb[140].mxu1 %vm2624_vm0, %v4948_v49 }
 0x6dd   : > { %8400 = vmatmul.mubr.msk.bf16.gmra.mrb[204].mxu0 %vm2624_vm0, %v5217_v57 }
 0x6f4   : > { %v11783_v7 = vpop.f32.mrb[48].mxu1 }
 0x6f5   : > { %14266 = vst [vmem:[#allocation57_spill] sm:$0xff] %v11783_v7  ;;  %v11785_v47 = vpop.f32.mrb[49].mxu1 }
 0x6f6   : > { %14267 = vst [vmem:[#allocation58_spill] sm:$0xff] %v11785_v47  ;;  %v11789_v14 = vpop.f32.mrb[50].mxu1 }
 0x6f7   : > { %14268 = vst [vmem:[#allocation59_spill] sm:$0xff] %v11789_v14  ;;  %v11791_v6 = vpop.f32.mrb[51].mxu1 }
 0x6f8   : > { %14269 = vst [vmem:[#allocation60_spill] sm:$0xff] %v11791_v6  ;;  %v11795_v13 = vpop.f32.mrb[112].mxu0 }
 0x6f9   : > { %v11797_v59 = vpop.f32.mrb[113].mxu0 }
 0x6fa   : > { %v4149_v1 = vmax.f32 %v11795_v13, %v11797_v59  ;;  %v11801_v62 = vpop.f32.mrb[114].mxu0 }
 0x6fb   : > { %v11803_v16 = vpop.f32.mrb[115].mxu0 }
 0x6fc   : > { %v4152_v11 = vmax.f32 %v11801_v62, %v11803_v16  ;;  %v11807_v12 = vpop.f32.mrb[52].mxu1  ;;  %4150 = vmax.xlane.f32.xlu0 %v4149_v1 }
 0x6fd   : > { %14270 = vst [vmem:[#allocation61_spill] sm:$0xff] %v11807_v12  ;;  %v11809_v9 = vpop.f32.mrb[53].mxu1 }
 0x6fe   : > { %14271 = vst [vmem:[#allocation62_spill] sm:$0xff] %v11809_v9  ;;  %v11813_v18 = vpop.f32.mrb[54].mxu1 }
 0x6ff   : > { %14272 = vst [vmem:[#allocation63_spill] sm:$0xff] %v11813_v18  ;;  %v11815_v26 = vpop.f32.mrb[55].mxu1 }
 0x700   : > { %14273 = vst [vmem:[#allocation64_spill] sm:$0xff] %v11815_v26  ;;  %4153 = vmax.xlane.f32.xlu0 %v4152_v11  ;;  %v11819_v40 = vpop.f32.mrb[116].mxu0 }
 0x701   : > { %v11821_v33 = vpop.f32.mrb[117].mxu0 }
 0x702   : > { %v4155_v4 = vmax.f32 %v11819_v40, %v11821_v33  ;;  %v11825_v2 = vpop.f32.mrb[118].mxu0 }
 0x703   : > { %v11827_v17 = vpop.f32.mrb[119].mxu0 }
 0x704   : > { %v4158_v19 = vmax.f32 %v11825_v2, %v11827_v17  ;;  %v11831_v46 = vpop.f32.mrb[56].mxu1  ;;  %4156 = vmax.xlane.f32.xlu1 %v4155_v4 }
 0x705   : > { %14274 = vst [vmem:[#allocation65_spill] sm:$0xff] %v11831_v46  ;;  %v11833_v54 = vpop.f32.mrb[57].mxu1 }
 0x706   : > { %14275 = vst [vmem:[#allocation66_spill] sm:$0xff] %v11833_v54  ;;  %v11837_v5 = vpop.f32.mrb[58].mxu1  ;;  %4159 = vmax.xlane.f32.xlu0 %v4158_v19 }
 0x707   : > { %14276 = vst [vmem:[#allocation67_spill] sm:$0xff] %v11837_v5  ;;  %v11839_v37 = vpop.f32.mrb[59].mxu1 }
 0x708   : > { %14277 = vst [vmem:[#allocation68_spill] sm:$0xff] %v11839_v37  ;;  %v11843_v10 = vpop.f32.mrb[120].mxu0 }
 0x709   : > { %v11845_v24 = vpop.f32.mrb[121].mxu0 }
 0x70a   : > { %v4161_v63 = vmax.f32 %v11843_v10, %v11845_v24  ;;  %v11849_v60 = vpop.f32.mrb[122].mxu0 }
 0x70b   : > { %v11851_v20 = vpop.f32.mrb[123].mxu0 }
 0x70c   : > { %v4164_v8 = vmax.f32 %v11849_v60, %v11851_v20  ;;  %v11855_v30 = vpop.f32.mrb[60].mxu1  ;;  %4162 = vmax.xlane.f32.xlu1 %v4161_v63 }
 0x70d   : > { %14278 = vst [vmem:[#allocation69_spill] sm:$0xff] %v11855_v30  ;;  %v11857_v3 = vpop.f32.mrb[61].mxu1 }
 0x70e   : > { %14279 = vst [vmem:[#allocation70_spill] sm:$0xff] %v11857_v3  ;;  %v11861_v53 = vpop.f32.mrb[62].mxu1  ;;  %4165 = vmax.xlane.f32.xlu0 %v4164_v8 }
 0x70f   : > { %14280 = vst [vmem:[#allocation71_spill] sm:$0xff] %v11861_v53  ;;  %v11863_v42 = vpop.f32.mrb[63].mxu1 }
 0x710   : > { %14281 = vst [vmem:[#allocation72_spill] sm:$0xff] %v11863_v42  ;;  %v11867_v31 = vpop.f32.mrb[124].mxu0 }
 0x711   : > { %v11869_v43 = vpop.f32.mrb[125].mxu0 }
 0x712   : > { %v4167_v29 = vmax.f32 %v11867_v31, %v11869_v43  ;;  %v11873_v48 = vpop.f32.mrb[126].mxu0 }
 0x713   : > { %v11875_v58 = vpop.f32.mrb[127].mxu0 }
 0x714   : > { %v4170_v44 = vmax.f32 %v11873_v48, %v11875_v58  ;;  %v11879_v32 = vpop.f32.mrb[64].mxu1  ;;  %4168 = vmax.xlane.f32.xlu1 %v4167_v29 }
 0x715   : > { %v11881_v45 = vpop.f32.mrb[65].mxu1 }
 0x716   : > { %v11885_v52 = vpop.f32.mrb[66].mxu1  ;;  %4171 = vmax.xlane.f32.xlu0 %v4170_v44 }
 0x717   : > { %v11887_v28 = vpop.f32.mrb[67].mxu1 }
 0x718   : > { %v11891_v50 = vpop.f32.mrb[128].mxu0 }
 0x719   : > { %v11893_v25 = vpop.f32.mrb[129].mxu0 }
 0x71a   : > { %v4173_v38 = vmax.f32 %v11891_v50, %v11893_v25  ;;  %v11897_v22 = vpop.f32.mrb[130].mxu0 }
 0x71b   : > { %v11899_v39 = vpop.f32.mrb[131].mxu0 }
 0x71c   : > { %v4176_v41 = vmax.f32 %v11897_v22, %v11899_v39  ;;  %v11903_v49 = vpop.f32.mrb[68].mxu1  ;;  %4174 = vmax.xlane.f32.xlu1 %v4173_v38 }
 0x71d   : > { %14282 = vst [vmem:[#allocation73_spill] sm:$0xff] %v11903_v49  ;;  %v11905_v57 = vpop.f32.mrb[69].mxu1 }
 0x71e   : > { %14283 = vst [vmem:[#allocation74_spill] sm:$0xff] %v11905_v57  ;;  %v11909_v11 = vpop.f32.mrb[70].mxu1  ;;  %4177 = vmax.xlane.f32.xlu0 %v4176_v41 }
 0x71f   : > { %14284 = vst [vmem:[#allocation75_spill] sm:$0xff] %v11909_v11  ;;  %v11911_v4 = vpop.f32.mrb[71].mxu1 }
 0x720   : > { %14285 = vst [vmem:[#allocation76_spill] sm:$0xff] %v11911_v4  ;;  %v11915_v63 = vpop.f32.mrb[132].mxu0 }
 0x721   : > { %14286 = vst [vmem:[#allocation77_spill] sm:$0xff] %v11915_v63  ;;  %v11917_v8 = vpop.f32.mrb[133].mxu0 }
 0x722   : > { %14287 = vst [vmem:[#allocation78_spill] sm:$0xff] %v11917_v8  ;;  %v4179_v29 = vmax.f32 %v11915_v63, %v11917_v8  ;;  %v11921_v44 = vpop.f32.mrb[134].mxu0 }
 0x723   : > { %14288 = vst [vmem:[#allocation79_spill] sm:$0xff] %v11921_v44  ;;  %v11923_v38 = vpop.f32.mrb[135].mxu0 }
 0x724   : > { %14289 = vst [vmem:[#allocation80_spill] sm:$0xff] %v11923_v38  ;;  %v4182_v1 = vmax.f32 %v11921_v44, %v11923_v38  ;;  %v11927_v41 = vpop.f32.mrb[72].mxu1  ;;  %4180 = vmax.xlane.f32.xlu1 %v4179_v29 }
 0x725   : > { %14290 = vst [vmem:[#allocation81_spill] sm:$0xff] %v11927_v41  ;;  %v11929_v55 = vpop.f32.mrb[73].mxu1 }
 0x726   : > { %14291 = vst [vmem:[#allocation82_spill] sm:$0xff] %v11929_v55  ;;  %v11933_v23 = vpop.f32.mrb[74].mxu1  ;;  %4183 = vmax.xlane.f32.xlu0 %v4182_v1 }
 0x727   : > { %14292 = vst [vmem:[#allocation83_spill] sm:$0xff] %v11933_v23  ;;  %v11935_v34 = vpop.f32.mrb[75].mxu1 }
 0x728   : > { %14293 = vst [vmem:[#allocation84_spill] sm:$0xff] %v11935_v34  ;;  %v11939_v27 = vpop.f32.mrb[136].mxu0 }
 0x729   : > { %14294 = vst [vmem:[#allocation85_spill] sm:$0xff] %v11939_v27  ;;  %v11941_v35 = vpop.f32.mrb[137].mxu0 }
 0x72a   : > { %14295 = vst [vmem:[#allocation86_spill] sm:$0xff] %v11941_v35  ;;  %v4185_v29 = vmax.f32 %v11939_v27, %v11941_v35  ;;  %v11945_v0 = vpop.f32.mrb[138].mxu0 }
 0x72b   : > { %14296 = vst [vmem:[#allocation87_spill] sm:$0xff] %v11945_v0  ;;  %v11947_v51 = vpop.f32.mrb[139].mxu0 }
 0x72c   : > { %14297 = vst [vmem:[#allocation88_spill] sm:$0xff] %v11947_v51  ;;  %v4188_v19 = vmax.f32 %v11945_v0, %v11947_v51  ;;  %v11951_v1 = vpop.f32.mrb[76].mxu1  ;;  %4186 = vmax.xlane.f32.xlu1 %v4185_v29 }
 0x72d   : > { %14298 = vst [vmem:[#allocation89_spill] sm:$0xff] %v11951_v1  ;;  %v11953_v21 = vpop.f32.mrb[77].mxu1 }
 0x72e   : > { %14299 = vst [vmem:[#allocation90_spill] sm:$0xff] %v11953_v21  ;;  %v11957_v36 = vpop.f32.mrb[78].mxu1  ;;  %4189 = vmax.xlane.f32.xlu0 %v4188_v19 }
 0x72f   : > { %14300 = vst [vmem:[#allocation91_spill] sm:$0xff] %v11957_v36  ;;  %v11959_v15 = vpop.f32.mrb[79].mxu1 }
 0x730   : > { %14301 = vst [vmem:[#allocation92_spill] sm:$0xff] %v11959_v15  ;;  %v11963_v35 = vpop.f32.mrb[140].mxu0 }
 0x731   : > { %14302 = vst [vmem:[#allocation93_spill] sm:$0xff] %v11963_v35  ;;  %v11965_v27 = vpop.f32.mrb[141].mxu0 }
 0x732   : > { %14303 = vst [vmem:[#allocation94_spill] sm:$0xff] %v11965_v27  ;;  %v4191_v29 = vmax.f32 %v11963_v35, %v11965_v27  ;;  %v11969_v51 = vpop.f32.mrb[142].mxu0  ;;  %v14321_v27 = vmax.f32 %v11783_v7, %v11785_v47  ;;  %v14328_v47 = vmax.f32 %v11807_v12, %v11809_v9  ;;  %v14341_v12 = vmax.f32 %v11837_v5, %v11839_v37 }
 0x733   : > { %14304 = vst [vmem:[#allocation95_spill] sm:$0xff] %v11969_v51  ;;  %v11971_v0 = vpop.f32.mrb[143].mxu0  ;;  %v14348_v37 = vmax.f32 %v11855_v30, %v11857_v3 }
 0x734   : > { %14305 = vst [vmem:[#allocation96_spill] sm:$0xff] %v11971_v0  ;;  %v4194_v61 = vmax.f32 %v11969_v51, %v11971_v0  ;;  %v11975_v19 = vpop.f32.mrb[80].mxu1  ;;  %4192 = vmax.xlane.f32.xlu1 %v4191_v29 }
 0x735   : > { %14306 = vst [vmem:[#allocation97_spill] sm:$0xff] %v11975_v19  ;;  %v11977_v21 = vpop.f32.mrb[81].mxu1 }
 0x736   : > { %14307 = vst [vmem:[#allocation98_spill] sm:$0xff] %v11977_v21  ;;  %v11981_v1 = vpop.f32.mrb[82].mxu1  ;;  %4195 = vmax.xlane.f32.xlu0 %v4194_v61 }
 0x737   : > { %14308 = vst [vmem:[#allocation99_spill] sm:$0xff] %v11981_v1  ;;  %v11983_v15 = vpop.f32.mrb[83].mxu1 }
 0x738   : > { %14309 = vst [vmem:[#allocation100_spill] sm:$0xff] %v11983_v15  ;;  %v11987_v35 = vpop.f32.mrb[144].mxu0 }
 0x739   : > { %14310 = vst [vmem:[#allocation101_spill] sm:$0xff] %v11987_v35  ;;  %v11989_v36 = vpop.f32.mrb[145].mxu0 }
 0x73a   : > { %14311 = vst [vmem:[#allocation102_spill] sm:$0xff] %v11989_v36  ;;  %v4197_v29 = vmax.f32 %v11987_v35, %v11989_v36  ;;  %v11993_v0 = vpop.f32.mrb[146].mxu0  ;;  %v14318_v35 = vmax.f32 %v11789_v14, %v11791_v6  ;;  %v14331_v14 = vmax.f32 %v11813_v18, %v11815_v26  ;;  %v14338_v26 = vmax.f32 %v11831_v46, %v11833_v54 }
 0x73b   : > { %14312 = vst [vmem:[#allocation103_spill] sm:$0xff] %v11993_v0  ;;  %v11995_v51 = vpop.f32.mrb[147].mxu0  ;;  %v14349_v46 = vmax.f32 %v11861_v53, %v11863_v42 }
 0x73c   : > { %14313 = vst [vmem:[#allocation104_spill] sm:$0xff] %v11995_v51  ;;  %v4200_v56 = vmax.f32 %v11993_v0, %v11995_v51  ;;  %v11999_v61 = vpop.f32.mrb[84].mxu1  ;;  %4198 = vmax.xlane.f32.xlu1 %v4197_v29 }
 0x73d   : > { %14314 = vst [vmem:[#allocation105_spill] sm:$0xff] %v11999_v61  ;;  %v12001_v21 = vpop.f32.mrb[85].mxu1 }
 0x73e   : > { %14315 = vst [vmem:[#allocation106_spill] sm:$0xff] %v12001_v21  ;;  %v12005_v19 = vpop.f32.mrb[86].mxu1  ;;  %4201 = vmax.xlane.f32.xlu0 %v4200_v56 }
 0x73f   : > { %14316 = vst [vmem:[#allocation107_spill] sm:$0xff] %v12005_v19  ;;  %v12007_v15 = vpop.f32.mrb[87].mxu1 }
 0x740   : > { %14317 = vst [vmem:[#allocation108_spill] sm:$0xff] %v12007_v15  ;;  %3865 = vmax.xlane.f32.xlu1 %v14318_v35  ;;  %v12014_v51 = vpop.f32.mrb[148].mxu0 }
 0x741   : > { %14319 = vst [vmem:[#allocation109_spill] sm:$0xff] %v12014_v51  ;;  %v12016_v29 = vpop.f32.mrb[149].mxu0 }
 0x742   : > { %14320 = vst [vmem:[#allocation110_spill] sm:$0xff] %v12016_v29  ;;  %v4203_v0 = vmax.f32 %v12014_v51, %v12016_v29  ;;  %3862 = vmax.xlane.f32.xlu0 %v14321_v27  ;;  %v12023_v56 = vpop.f32.mrb[150].mxu0 }
 0x743   : > { %14322 = vst [vmem:[#allocation111_spill] sm:$0xff] %v12023_v56  ;;  %v12025_v21 = vpop.f32.mrb[151].mxu0 }
 0x744   : > { %14323 = vst [vmem:[#allocation112_spill] sm:$0xff] %v12025_v21  ;;  %v4206_v36 = vmax.f32 %v12023_v56, %v12025_v21  ;;  %v12029_v6 = vpop.f32.mrb[88].mxu1  ;;  %4204 = vmax.xlane.f32.xlu1 %v4203_v0 }
 0x745   : > { %14324 = vst [vmem:[#allocation113_spill] sm:$0xff] %v12029_v6  ;;  %v12031_v35 = vpop.f32.mrb[89].mxu1 }
 0x746   : > { %14325 = vst [vmem:[#allocation114_spill] sm:$0xff] %v12031_v35  ;;  %v12035_v29 = vpop.f32.mrb[90].mxu1  ;;  %4207 = vmax.xlane.f32.xlu0 %v4206_v36 }
 0x747   : > { %14326 = vst [vmem:[#allocation115_spill] sm:$0xff] %v12035_v29  ;;  %v12037_v51 = vpop.f32.mrb[91].mxu1 }
 0x748   : > { %14327 = vst [vmem:[#allocation116_spill] sm:$0xff] %v12037_v51  ;;  %3868 = vmax.xlane.f32.xlu1 %v14328_v47  ;;  %v12044_v21 = vpop.f32.mrb[152].mxu0 }
 0x749   : > { %14329 = vst [vmem:[#allocation117_spill] sm:$0xff] %v12044_v21  ;;  %v12046_v0 = vpop.f32.mrb[153].mxu0 }
 0x74a   : > { %14330 = vst [vmem:[#allocation118_spill] sm:$0xff] %v12046_v0  ;;  %v4209_v56 = vmax.f32 %v12044_v21, %v12046_v0  ;;  %3871 = vmax.xlane.f32.xlu0 %v14331_v14  ;;  %v12053_v36 = vpop.f32.mrb[154].mxu0 }
 0x74b   : > { %14332 = vst [vmem:[#allocation119_spill] sm:$0xff] %v12053_v36  ;;  %v12055_v35 = vpop.f32.mrb[155].mxu0 }
 0x74c   : > { %14333 = vst [vmem:[#allocation120_spill] sm:$0xff] %v12055_v35  ;;  %v4212_v27 = vmax.f32 %v12053_v36, %v12055_v35  ;;  %v12059_v9 = vpop.f32.mrb[92].mxu1  ;;  %4210 = vmax.xlane.f32.xlu1 %v4209_v56 }
 0x74d   : > { %14334 = vst [vmem:[#allocation121_spill] sm:$0xff] %v12059_v9  ;;  %v12061_v47 = vpop.f32.mrb[93].mxu1 }
 0x74e   : > { %14335 = vst [vmem:[#allocation122_spill] sm:$0xff] %v12061_v47  ;;  %v12065_v0 = vpop.f32.mrb[94].mxu1  ;;  %4213 = vmax.xlane.f32.xlu0 %v4212_v27 }
 0x74f   : > { %14336 = vst [vmem:[#allocation123_spill] sm:$0xff] %v12065_v0  ;;  %v12067_v21 = vpop.f32.mrb[95].mxu1 }
 0x750   : > { %14337 = vst [vmem:[#allocation124_spill] sm:$0xff] %v12067_v21  ;;  %3874 = vmax.xlane.f32.xlu1 %v14338_v26  ;;  %v12074_v35 = vpop.f32.mrb[156].mxu0 }
 0x751   : > { %14339 = vst [vmem:[#allocation125_spill] sm:$0xff] %v12074_v35  ;;  %v12076_v56 = vpop.f32.mrb[157].mxu0 }
 0x752   : > { %14340 = vst [vmem:[#allocation126_spill] sm:$0xff] %v12076_v56  ;;  %v4215_v36 = vmax.f32 %v12074_v35, %v12076_v56  ;;  %3877 = vmax.xlane.f32.xlu0 %v14341_v12  ;;  %v12083_v27 = vpop.f32.mrb[158].mxu0 }
 0x753   : > { %14342 = vst [vmem:[#allocation127_spill] sm:$0xff] %v12083_v27  ;;  %v12085_v18 = vpop.f32.mrb[159].mxu0 }
 0x754   : > { %14343 = vst [vmem:[#allocation128_spill] sm:$0xff] %v12085_v18  ;;  %v4218_v14 = vmax.f32 %v12083_v27, %v12085_v18  ;;  %v12089_v54 = vpop.f32.mrb[96].mxu1  ;;  %4216 = vmax.xlane.f32.xlu1 %v4215_v36 }
 0x755   : > { %14344 = vst [vmem:[#allocation129_spill] sm:$0xff] %v12089_v54  ;;  %v12091_v26 = vpop.f32.mrb[97].mxu1 }
 0x756   : > { %14345 = vst [vmem:[#allocation130_spill] sm:$0xff] %v12091_v26  ;;  %v12095_v56 = vpop.f32.mrb[98].mxu1  ;;  %4219 = vmax.xlane.f32.xlu0 %v4218_v14 }
 0x757   : > { %14346 = vst [vmem:[#allocation131_spill] sm:$0xff] %v12095_v56  ;;  %v12097_v35 = vpop.f32.mrb[99].mxu1 }
 0x758   : > { %14347 = vst [vmem:[#allocation132_spill] sm:$0xff] %v12097_v35  ;;  %3880 = vmax.xlane.f32.xlu1 %v14348_v37  ;;  %v12104_v18 = vpop.f32.mrb[160].mxu0 }
 0x759   : > { %v12106_v36 = vpop.f32.mrb[161].mxu0 }
 0x75a   : > { %3883 = vmax.xlane.f32.xlu0 %v14349_v46  ;;  %v12113_v14 = vpop.f32.mrb[162].mxu0 }
 0x75b   : > { %v12115_v5 = vpop.f32.mrb[163].mxu0 }
 0x75c   : > { %v12119_v3 = vpop.f32.mrb[100].mxu1 }
 0x75d   : > { %14350 = vst [vmem:[#allocation133_spill] sm:$0xff] %v12119_v3  ;;  %v12121_v37 = vpop.f32.mrb[101].mxu1 }
 0x75e   : > { %14351 = vst [vmem:[#allocation134_spill] sm:$0xff] %v12121_v37  ;;  %v12125_v26 = vpop.f32.mrb[102].mxu1 }
 0x75f   : > { %14352 = vst [vmem:[#allocation135_spill] sm:$0xff] %v12125_v26  ;;  %v12127_v27 = vpop.f32.mrb[103].mxu1 }
 0x760   : > { %14353 = vst [vmem:[#allocation136_spill] sm:$0xff] %v12127_v27  ;;  %v12131_v42 = vpop.f32.mrb[164].mxu0 }
 0x761   : > { %14354 = vst [vmem:[#allocation137_spill] sm:$0xff] %v12131_v42  ;;  %v12133_v53 = vpop.f32.mrb[165].mxu0 }
 0x762   : > { %14355 = vst [vmem:[#allocation138_spill] sm:$0xff] %v12133_v53  ;;  %v12137_v54 = vpop.f32.mrb[166].mxu0 }
 0x763   : > { %14356 = vst [vmem:[#allocation139_spill] sm:$0xff] %v12137_v54  ;;  %v12139_v35 = vpop.f32.mrb[167].mxu0 }
 0x764   : > { %14357 = vst [vmem:[#allocation140_spill] sm:$0xff] %v12139_v35  ;;  %v12143_v37 = vpop.f32.mrb[104].mxu1 }
 0x765   : > { %14358 = vst [vmem:[#allocation141_spill] sm:$0xff] %v12143_v37  ;;  %v12145_v3 = vpop.f32.mrb[105].mxu1 }
 0x766   : > { %14359 = vst [vmem:[#allocation142_spill] sm:$0xff] %v12145_v3  ;;  %v12149_v27 = vpop.f32.mrb[106].mxu1 }
 0x767   : > { %14360 = vst [vmem:[#allocation143_spill] sm:$0xff] %v12149_v27  ;;  %v12151_v26 = vpop.f32.mrb[107].mxu1 }
 0x768   : > { %14361 = vst [vmem:[#allocation144_spill] sm:$0xff] %v12151_v26  ;;  %v12155_v56 = vpop.f32.mrb[168].mxu0 }
 0x769   : > { %14362 = vst [vmem:[#allocation145_spill] sm:$0xff] %v12155_v56  ;;  %v12157_v47 = vpop.f32.mrb[169].mxu0 }
 0x76a   : > { %14363 = vst [vmem:[#allocation146_spill] sm:$0xff] %v12157_v47  ;;  %v12161_v9 = vpop.f32.mrb[170].mxu0 }
 0x76b   : > { %14364 = vst [vmem:[#allocation147_spill] sm:$0xff] %v12161_v9  ;;  %v12163_v21 = vpop.f32.mrb[171].mxu0 }
 0x76c   : > { %14365 = vst [vmem:[#allocation148_spill] sm:$0xff] %v12163_v21  ;;  %v12167_v3 = vpop.f32.mrb[108].mxu1 }
 0x76d   : > { %14366 = vst [vmem:[#allocation149_spill] sm:$0xff] %v12167_v3  ;;  %v12169_v37 = vpop.f32.mrb[109].mxu1 }
 0x76e   : > { %14367 = vst [vmem:[#allocation150_spill] sm:$0xff] %v12169_v37  ;;  %v12173_v26 = vpop.f32.mrb[110].mxu1 }
 0x76f   : > { %14368 = vst [vmem:[#allocation151_spill] sm:$0xff] %v12173_v26  ;;  %v12175_v27 = vpop.f32.mrb[111].mxu1 }
 0x770   : > { %14369 = vst [vmem:[#allocation152_spill] sm:$0xff] %v12175_v27  ;;  %v12179_v47 = vpop.f32.mrb[172].mxu0 }
 0x771   : > { %14370 = vst [vmem:[#allocation153_spill] sm:$0xff] %v12179_v47  ;;  %v12181_v56 = vpop.f32.mrb[173].mxu0 }
 0x772   : > { %14371 = vst [vmem:[#allocation154_spill] sm:$0xff] %v12181_v56  ;;  %v12185_v21 = vpop.f32.mrb[174].mxu0 }
 0x773   : > { %14372 = vst [vmem:[#allocation155_spill] sm:$0xff] %v12185_v21  ;;  %v12187_v9 = vpop.f32.mrb[175].mxu0 }
 0x774   : > { %14373 = vst [vmem:[#allocation156_spill] sm:$0xff] %v12187_v9  ;;  %v12191_v37 = vpop.f32.mrb[112].mxu1 }
 0x775   : > { %v12193_v3 = vpop.f32.mrb[113].mxu1 }
 0x776   : > { %v12195_v0 = vpop.f32.mrb[114].mxu1 }
 0x777   : > { %v12199_v27 = vpop.f32.mrb[115].mxu1 }
 0x778   : > { %v12203_v56 = vpop.f32.mrb[176].mxu0 }
 0x779   : > { %v12205_v47 = vpop.f32.mrb[177].mxu0 }
 0x77a   : > { %v12207_v26 = vpop.f32.mrb[178].mxu0 }
 0x77b   : > { %v12211_v9 = vpop.f32.mrb[179].mxu0 }
 0x77c   : > { %v12215_v30 = vpop.f32.mrb[116].mxu1 }
 0x77d   : > { %v12217_v6 = vpop.f32.mrb[117].mxu1 }
 0x77e   : > { %v12219_v51 = vpop.f32.mrb[118].mxu1 }
 0x77f   : > { %v12223_v29 = vpop.f32.mrb[119].mxu1 }
 0x780   : > { %v12227_v12 = vpop.f32.mrb[180].mxu0 }
 0x781   : > { %v12229_v61 = vpop.f32.mrb[181].mxu0 }
 0x782   : > { %v12231_v15 = vpop.f32.mrb[182].mxu0 }
 0x783   : > { %v12235_v19 = vpop.f32.mrb[183].mxu0 }
 0x784   : > { %v12239_v46 = vpop.f32.mrb[120].mxu1 }
 0x785   : > { %v12241_v53 = vpop.f32.mrb[121].mxu1 }
 0x786   : > { %v12243_v42 = vpop.f32.mrb[122].mxu1 }
 0x787   : > { %v12247_v35 = vpop.f32.mrb[123].mxu1 }
 0x788   : > { %v12251_v21 = vpop.f32.mrb[184].mxu0 }
 0x789   : > { %14374 = vst [vmem:[#allocation157_spill] sm:$0xff] %v12251_v21  ;;  %v12253_v55 = vpop.f32.mrb[185].mxu0  ;;  %v4151_v41 = vpop.xlane.xlu0 %4150 }
 0x78a   : > { %14375 = vst [vmem:[#allocation158_spill] sm:$0xff] %v12253_v55  ;;  %v12255_v1 = vpop.f32.mrb[186].mxu0  ;;  %v4245_v8 = vsub.f32 %v11795_v13, %v4151_v41  ;;  %v4246_v63 = vsub.f32 %v11797_v59, %v4151_v41 }
 0x78b   : > { %14376 = vst [vmem:[#allocation159_spill] sm:$0xff] %v12255_v1  ;;  %v12259_v23 = vpop.f32.mrb[187].mxu0 }
 0x78c   : > { %14377 = vst [vmem:[#allocation160_spill] sm:$0xff] %v12259_v23  ;;  %v12263_v38 = vpop.f32.mrb[124].mxu1 }
 0x78d   : > { %14378 = vst [vmem:[#allocation161_spill] sm:$0xff] %v12263_v38  ;;  %v12265_v44 = vpop.f32.mrb[125].mxu1  ;;  %v4154_v54 = vpop.xlane.xlu0 %4153 }
 0x78e   : > { %14379 = vst [vmem:[#allocation162_spill] sm:$0xff] %v12265_v44  ;;  %v4247_v57 = vsub.f32 %v11801_v62, %v4154_v54  ;;  %v4248_v49 = vsub.f32 %v11803_v16, %v4154_v54  ;;  %v12271_v4 = vpop.f32.mrb[126].mxu1 }
 0x78f   : > { %14380 = vst [vmem:[#allocation163_spill] sm:$0xff] %v12271_v4  ;;  %v12275_v21 = vpop.f32.mrb[127].mxu1 }
 0x790   : > { %14381 = vst [vmem:[#allocation164_spill] sm:$0xff] %v12275_v21  ;;  %v4309_v7 = vpack.c.bf16 %v4247_v57, %v4245_v8  ;;  %v4310_v1 = vpack.c.bf16 %v4248_v49, %v4246_v63  ;;  %v12279_v55 = vpop.f32.mrb[188].mxu0 }
 0x791   : > { %14382 = vst [vmem:[#allocation165_spill] sm:$0xff] %v12279_v55  ;;  %v4157_v13 = vpop.xlane.xlu1 %4156  ;;  %v12281_v59 = vpop.f32.mrb[189].mxu0 }
 0x792   : > { %14383 = vst [vmem:[#allocation166_spill] sm:$0xff] %v12281_v59  ;;  %v4342_v62 = vmul.bf16 1069105081, %v4309_v7  ;;  %v4345_v41 = vmul.bf16 1069105081, %v4310_v1  ;;  %v12283_v16 = vpop.f32.mrb[190].mxu0  ;;  %v4249_v54 = vsub.f32 %v11819_v40, %v4157_v13  ;;  %v4250_v34 = vsub.f32 %v11821_v33, %v4157_v13 }
 0x793   : > { %14384 = vst [vmem:[#allocation167_spill] sm:$0xff] %v12283_v16  ;;  %v12289_v49 = vpop.f32.mrb[191].mxu0  ;;  %v4160_v63 = vpop.xlane.xlu0 %4159 }
 0x794   : > { %9028 = vpow.bf16 %v4342_v62  ;;  %v4251_v11 = vsub.f32 %v11825_v2, %v4160_v63  ;;  %v4252_v7 = vsub.f32 %v11827_v17, %v4160_v63  ;;  %v8353_v1 = vpop.f32.mrb[128].mxu1 }
 0x795   : > { %9030 = vpow.bf16 %v4345_v41  ;;  %v5107_v38 = vpop.f32.mrb[129].mxu1  ;;  %v14385_v41 = vpack.c.bf16 %v12199_v27, %v12193_v3 }
 0x796   : > { %v4311_v40 = vpack.c.bf16 %v4251_v11, %v4249_v54  ;;  %v4312_v4 = vpack.c.bf16 %v4252_v7, %v4250_v34  ;;  %v8354_v33 = vpop.f32.mrb[130].mxu1 }
 0x797   : > { %v5448_v13 = vpack.c.bf16 %v8354_v33, %v8353_v1  ;;  %v5110_v44 = vpop.f32.mrb[131].mxu1 }
 0x798   : > { %v5447_v57 = vpack.c.bf16 %v5110_v44, %v5107_v38  ;;  %v8389_v55 = vpop.f32.mrb[192].mxu0  ;;  %v4348_v23 = vmul.bf16 1069105081, %v4311_v40  ;;  %v4351_v8 = vmul.bf16 1069105081, %v4312_v4 }
 0x799   : > { %v4163_v16 = vpop.xlane.xlu1 %4162  ;;  %v5376_v21 = vpop.f32.mrb[193].mxu0 }
 0x79a   : > { %v8390_v62 = vpop.f32.mrb[194].mxu0  ;;  %7949 = vmatprep.subr.bf16.mxu1 %v5447_v57  ;;  %v4253_v2 = vsub.f32 %v11843_v10, %v4163_v16  ;;  %v4254_v11 = vsub.f32 %v11845_v24, %v4163_v16  ;;  %9032 = vpow.bf16 %v4348_v23  ;;  %v14387_v24 = vpack.c.bf16 %v12211_v9, %v12205_v47 }
 0x79b   : > { %v5464_v59 = vpack.c.bf16 %v8390_v62, %v8389_v55  ;;  %v5379_v17 = vpop.f32.mrb[195].mxu0  ;;  %7950 = vmatpush3.bf16.msra.mxu1 %v14385_v41  ;;  %v4166_v34 = vpop.xlane.xlu0 %4165  ;;  %9034 = vpow.bf16 %v4351_v8  ;;  %v14388_v8 = vpack.c.bf16 %v12223_v29, %v12217_v6 }
 0x79c   : > { %v5463_v54 = vpack.c.bf16 %v5379_v17, %v5376_v21  ;;  %v4255_v44 = vsub.f32 %v11849_v60, %v4166_v34  ;;  %v4256_v38 = vsub.f32 %v11851_v20, %v4166_v34  ;;  %v8357_v63 = vpop.f32.mrb[132].mxu1  ;;  %7951 = vmatprep.subr.bf16.mxu1 %v5448_v13  ;;  %v14386_v21 = vpack.c.bf16 %v12195_v0, %v12191_v37 }
 0x79d   : > { %v5123_v57 = vpop.f32.mrb[133].mxu1 }
 0x79e   : > { %v12302_v4 = vpack.c.bf16 %v4255_v44, %v4253_v2  ;;  %v12304_v10 = vpack.c.bf16 %v4256_v38, %v4254_v11  ;;  %v8358_v55 = vpop.f32.mrb[134].mxu1  ;;  %8061 = vmatprep.subr.bf16.mxu0 %v5463_v54 }
 0x79f   : > { %v12306_v7 = vpop.eup %9028  ;;  %v5450_v3 = vpack.c.bf16 %v8358_v55, %v8357_v63  ;;  %v5126_v27 = vpop.f32.mrb[135].mxu1  ;;  %7952 = vmatpush3.bf16.msra.mxu1 %v14386_v21  ;;  %8062 = vmatpush3.bf16.msra.mxu0 %v14387_v24  ;;  %v14392_v55 = vmax.f32 %v11885_v52, %v11887_v28 }
 0x7a0   : > { %v12314_v60 = vpop.eup %9030  ;;  %v5449_v20 = vpack.c.bf16 %v5126_v27, %v5123_v57  ;;  %v8393_v16 = vpop.f32.mrb[196].mxu0  ;;  %8063 = vmatprep.subr.bf16.mxu0 %v5464_v59  ;;  %v4631_v1 = vunpack.c.h.bf16 %v12306_v7  ;;  %v4629_v13 = vunpack.c.l.bf16 %v12306_v7  ;;  %v14389_v59 = vpack.c.bf16 %v12207_v26, %v12203_v56 }
 0x7a1   : > { %v4169_v40 = vpop.xlane.xlu1 %4168  ;;  %v5392_v23 = vpop.f32.mrb[197].mxu0  ;;  %v4632_v33 = vunpack.c.h.bf16 %v12314_v60  ;;  %v4630_v0 = vunpack.c.l.bf16 %v12314_v60 }
 0x7a2   : > { %v4257_v37 = vsub.f32 %v11867_v31, %v4169_v40  ;;  %v8394_v9 = vpop.f32.mrb[198].mxu0  ;;  %7953 = vmatprep.subr.bf16.mxu1 %v5449_v20  ;;  %v4258_v34 = vsub.f32 %v11869_v43, %v4169_v40  ;;  %v14390_v43 = vpack.c.bf16 %v12219_v51, %v12215_v30  ;;  %v14395_v40 = vpack.c.bf16 %v12231_v15, %v12227_v12 }
 0x7a3   : > { %v5466_v47 = vpack.c.bf16 %v8394_v9, %v8393_v16  ;;  %v5395_v62 = vpop.f32.mrb[199].mxu0  ;;  %7954 = vmatpush3.bf16.msra.mxu1 %v14388_v8  ;;  %8064 = vmatpush3.bf16.msra.mxu0 %v14389_v59  ;;  %v4172_v2 = vpop.xlane.xlu0 %4171  ;;  %v4696_v17 = vadd.f32 %v4632_v33, %v4631_v1  ;;  %v4693_v41 = vadd.f32 %v4630_v0, %v4629_v13  ;;  %v14399_v8 = vld [vmem:[#allocation160_spill] sm:$0xff]  ;;  %v14400_v59 = vld [vmem:[#allocation158_spill] sm:$0xff] }
 0x7a4   : > { %v5465_v11 = vpack.c.bf16 %v5395_v62, %v5392_v23  ;;  %v4259_v31 = vsub.f32 %v11873_v48, %v4172_v2  ;;  %v4260_v54 = vsub.f32 %v11875_v58, %v4172_v2  ;;  %v8361_v44 = vpop.f32.mrb[136].mxu1  ;;  %7955 = vmatprep.subr.bf16.mxu1 %v5450_v3  ;;  %v14391_v48 = vpack.c.bf16 %v12235_v19, %v12229_v61 }
 0x7a5   : > { %4697 = vadd.xlane.f32.xlu0 %v4696_v17  ;;  %4694 = vadd.xlane.f32.xlu1 %v4693_v41  ;;  %v5139_v6 = vpop.f32.mrb[137].mxu1  ;;  %v14393_v3 = vmax.f32 %v11879_v32, %v11881_v45  ;;  %v12346_v24 = vpop.eup %9032  ;;  %v4354_v19 = vmul.bf16 1069105081, %v12302_v4  ;;  %v14394_v1 = vpack.c.bf16 %v12247_v35, %v12241_v53  ;;  %v14396_v53 = vmax.f32 %v12113_v14, %v12115_v5 }
 0x7a6   : > { %v12330_v29 = vpack.c.bf16 %v4259_v31, %v4257_v37  ;;  %v12332_v38 = vpack.c.bf16 %v4260_v54, %v4258_v34  ;;  %v8362_v56 = vpop.f32.mrb[138].mxu1  ;;  %8065 = vmatprep.subr.bf16.mxu0 %v5465_v11  ;;  %v12348_v30 = vpop.eup %9034  ;;  %v14397_v15 = vmax.f32 %v12104_v18, %v12106_v36  ;;  %v14398_v62 = vpack.c.bf16 %v12243_v42, %v12239_v46  ;;  %v14402_v31 = vld [vmem:[#allocation75_spill] sm:$0xff]  ;;  %v14403_v54 = vld [vmem:[#allocation76_spill] sm:$0xff]  ;;  %v14406_v42 = vld [vmem:[#allocation74_spill] sm:$0xff] }
 0x7a7   : > { %v5452_v26 = vpack.c.bf16 %v8362_v56, %v8361_v44  ;;  %v5142_v63 = vpop.f32.mrb[139].mxu1  ;;  %7956 = vmatpush3.bf16.msra.mxu1 %v14390_v43  ;;  %8066 = vmatpush3.bf16.msra.mxu0 %v14391_v48  ;;  %v4636_v9 = vunpack.c.h.bf16 %v12348_v30  ;;  %v14401_v2 = vpack.c.bf16 %v14399_v8, %v14400_v59  ;;  %v4633_v17 = vunpack.c.l.bf16 %v12346_v24  ;;  %v14408_v48 = vld [vmem:[#allocation77_spill] sm:$0xff]  ;;  %v14427_v8 = vld [vmem:[#allocation82_spill] sm:$0xff] }
 0x7a8   : > { %v5451_v58 = vpack.c.bf16 %v5142_v63, %v5139_v6  ;;  %v8397_v57 = vpop.f32.mrb[200].mxu0  ;;  %8067 = vmatprep.subr.bf16.mxu0 %v5466_v47  ;;  %v4634_v41 = vunpack.c.l.bf16 %v12348_v30  ;;  %9036 = vpow.bf16 %v4354_v19  ;;  %v14404_v44 = vmax.f32 %v14402_v31, %v14403_v54  ;;  %v14405_v6 = vld [vmem:[#allocation73_spill] sm:$0xff] }
 0x7a9   : > { %3889 = vmax.xlane.f32.xlu0 %v14392_v55  ;;  %3886 = vmax.xlane.f32.xlu1 %v14393_v3  ;;  %v4175_v27 = vpop.xlane.xlu1 %4174  ;;  %v5408_v21 = vpop.f32.mrb[201].mxu0  ;;  %v14407_v46 = vmax.f32 %v14405_v6, %v14406_v42  ;;  %v14409_v3 = vld [vmem:[#allocation164_spill] sm:$0xff]  ;;  %v14413_v19 = vld [vmem:[#allocation157_spill] sm:$0xff] }
 0x7aa   : > { %v8398_v51 = vpop.f32.mrb[202].mxu0  ;;  %7957 = vmatprep.subr.bf16.mxu1 %v5451_v58  ;;  %v4261_v61 = vsub.f32 %v11891_v50, %v4175_v27  ;;  %v4262_v33 = vsub.f32 %v11893_v25, %v4175_v27  ;;  %v4357_v50 = vmul.bf16 1069105081, %v12304_v10  ;;  %v14410_v27 = vld [vmem:[#allocation162_spill] sm:$0xff] }
 0x7ab   : > { %v5468_v20 = vpack.c.bf16 %v8398_v51, %v8397_v57  ;;  %v5411_v16 = vpop.f32.mrb[203].mxu0  ;;  %7958 = vmatpush3.bf16.msra.mxu1 %v14394_v1  ;;  %8068 = vmatpush3.bf16.msra.mxu0 %v14395_v40  ;;  %v4178_v23 = vpop.xlane.xlu0 %4177  ;;  %v14412_v51 = vld [vmem:[#allocation159_spill] sm:$0xff]  ;;  %v14415_v1 = vld [vmem:[#allocation78_spill] sm:$0xff] }
 0x7ac   : > { %v5467_v13 = vpack.c.bf16 %v5411_v16, %v5408_v21  ;;  %v4263_v0 = vsub.f32 %v11897_v22, %v4178_v23  ;;  %v4264_v4 = vsub.f32 %v11899_v39, %v4178_v23  ;;  %v8365_v37 = vpop.f32.mrb[140].mxu1  ;;  %7959 = vmatprep.subr.bf16.mxu1 %v5452_v26  ;;  %v4635_v39 = vunpack.c.h.bf16 %v12346_v24 }
 0x7ad   : > { %4225 = vmax.xlane.f32.xlu0 %v14396_v53  ;;  %4222 = vmax.xlane.f32.xlu1 %v14397_v15  ;;  %v5155_v35 = vpop.f32.mrb[141].mxu1  ;;  %9038 = vpow.bf16 %v4357_v50  ;;  %v14411_v21 = vpack.c.bf16 %v14409_v3, %v14410_v27  ;;  %v4699_v16 = vadd.f32 %v4634_v41, %v4633_v17  ;;  %v14418_v53 = vld [vmem:[#allocation163_spill] sm:$0xff]  ;;  %v14419_v15 = vld [vmem:[#allocation161_spill] sm:$0xff]  ;;  %v14439_v3 = vld [vmem:[#allocation140_spill] sm:$0xff] }
 0x7ae   : > { %v12368_v12 = vpack.c.bf16 %v4263_v0, %v4261_v61  ;;  %v12370_v25 = vpack.c.bf16 %v4264_v4, %v4262_v33  ;;  %v8366_v22 = vpop.f32.mrb[142].mxu1  ;;  %8069 = vmatprep.subr.bf16.mxu0 %v5467_v13  ;;  %v4702_v43 = vadd.f32 %v4636_v9, %v4635_v39  ;;  %v14414_v61 = vpack.c.bf16 %v14412_v51, %v14413_v19  ;;  %v14416_v33 = vld [vmem:[#allocation79_spill] sm:$0xff]  ;;  %v14417_v0 = vld [vmem:[#allocation80_spill] sm:$0xff]  ;;  %v14442_v51 = vld [vmem:[#allocation138_spill] sm:$0xff] }
 0x7af   : > { %v5454_v10 = vpack.c.bf16 %v8366_v22, %v8365_v37  ;;  %v5158_v47 = vpop.f32.mrb[143].mxu1  ;;  %7960 = vmatpush3.bf16.msra.mxu1 %v14398_v62  ;;  %8070 = vmatpush3.bf16.msra.mxu0 %v14401_v2  ;;  %v14421_v22 = vld [vmem:[#allocation166_spill] sm:$0xff]  ;;  %v14423_v9 = vld [vmem:[#allocation83_spill] sm:$0xff] }
 0x7b0   : > { %v5453_v34 = vpack.c.bf16 %v5158_v47, %v5155_v35  ;;  %v8401_v11 = vpop.f32.mrb[204].mxu0  ;;  %8071 = vmatprep.subr.bf16.mxu0 %v5468_v20  ;;  %v14420_v35 = vpack.c.bf16 %v14418_v53, %v14419_v15  ;;  %v14422_v39 = vpack.c.bf16 %v12289_v49, %v14421_v22  ;;  %v14424_v47 = vld [vmem:[#allocation84_spill] sm:$0xff]  ;;  %v14430_v41 = vld [vmem:[#allocation167_spill] sm:$0xff]  ;;  %v14434_v49 = vld [vmem:[#allocation85_spill] sm:$0xff] }
 0x7b1   : > { %3895 = vmax.xlane.f32.xlu0 %v14404_v44  ;;  %3892 = vmax.xlane.f32.xlu1 %v14407_v46  ;;  %v4181_v56 = vpop.xlane.xlu1 %4180  ;;  %v5424_v26 = vpop.f32.mrb[205].mxu0  ;;  %v14425_v62 = vmax.f32 %v14423_v9, %v14424_v47  ;;  %v14448_v53 = vld [vmem:[#allocation90_spill] sm:$0xff] }
 0x7b2   : > { %v8402_v63 = vpop.f32.mrb[206].mxu0  ;;  %7961 = vmatprep.subr.bf16.mxu1 %v5453_v34  ;;  %v4265_v58 = vsub.f32 %v14408_v48, %v4181_v56  ;;  %v4266_v40 = vsub.f32 %v14415_v1, %v4181_v56  ;;  %v14431_v34 = vld [vmem:[#allocation165_spill] sm:$0xff] }
 0x7b3   : > { %v5470_v57 = vpack.c.bf16 %v8402_v63, %v8401_v11  ;;  %v5427_v55 = vpop.f32.mrb[207].mxu0  ;;  %7962 = vmatpush3.bf16.msra.mxu1 %v14411_v21  ;;  %8072 = vmatpush3.bf16.msra.mxu0 %v14414_v61  ;;  %v4184_v20 = vpop.xlane.xlu0 %4183  ;;  %v14432_v11 = vpack.c.bf16 %v14430_v41, %v14431_v34  ;;  %v14441_v21 = vld [vmem:[#allocation137_spill] sm:$0xff]  ;;  %v14451_v41 = vld [vmem:[#allocation94_spill] sm:$0xff] }
 0x7b4   : > { %v5469_v23 = vpack.c.bf16 %v5427_v55, %v5424_v26  ;;  %v4267_v13 = vsub.f32 %v14416_v33, %v4184_v20  ;;  %v4268_v4 = vsub.f32 %v14417_v0, %v4184_v20  ;;  %7963 = vmatprep.subr.bf16.mxu1 %v5454_v10  ;;  %v14426_v10 = vld [vmem:[#allocation81_spill] sm:$0xff]  ;;  %v12414_v17 = vpop.eup %9036  ;;  %v14435_v26 = vld [vmem:[#allocation86_spill] sm:$0xff]  ;;  %v14438_v55 = vld [vmem:[#allocation139_spill] sm:$0xff]  ;;  %v14443_v19 = vmax.f32 %v14441_v21, %v14442_v51 }
 0x7b5   : > { %4703 = vadd.xlane.f32.xlu0 %v4702_v43  ;;  %4700 = vadd.xlane.f32.xlu1 %v4699_v16  ;;  %v14428_v59 = vmax.f32 %v14426_v10, %v14427_v8  ;;  %14429 = vst [vmem:[#allocation160_spill] sm:$0xff] %v12414_v17  ;;  %v14436_v43 = vld [vmem:[#allocation87_spill] sm:$0xff]  ;;  %v14440_v27 = vmax.f32 %v14438_v55, %v14439_v3  ;;  %v4639_v16 = vunpack.c.h.bf16 %v12414_v17 }
 0x7b6   : > { %v12398_v37 = vpack.c.bf16 %v4267_v13, %v4265_v58  ;;  %v12400_v50 = vpack.c.bf16 %v4268_v4, %v4266_v40  ;;  %8073 = vmatprep.subr.bf16.mxu0 %v5469_v23  ;;  %v14437_v58 = vld [vmem:[#allocation88_spill] sm:$0xff]  ;;  %v4637_v40 = vunpack.c.l.bf16 %v12414_v17  ;;  %v14444_v33 = vld [vmem:[#allocation91_spill] sm:$0xff]  ;;  %v14447_v4 = vld [vmem:[#allocation89_spill] sm:$0xff] }
 0x7b7   : > { %7964 = vmatpush3.bf16.msra.mxu1 %v14420_v35  ;;  %8074 = vmatpush3.bf16.msra.mxu0 %v14422_v39  ;;  %v14445_v13 = vld [vmem:[#allocation92_spill] sm:$0xff]  ;;  %v14449_v15 = vmax.f32 %v14447_v4, %v14448_v53  ;;  %v14472_v17 = vld [vmem:[#allocation57_spill] sm:$0xff] }
 0x7b8   : > { %8075 = vmatprep.subr.bf16.mxu0 %v5470_v57  ;;  %v12419_v46 = vpop.eup %9038  ;;  %v14446_v0 = vmax.f32 %v14444_v33, %v14445_v13 }
 0x7b9   : > { %3901 = vmax.xlane.f32.xlu0 %v14425_v62  ;;  %3898 = vmax.xlane.f32.xlu1 %v14428_v59  ;;  %v4187_v2 = vpop.xlane.xlu1 %4186  ;;  %14433 = vst [vmem:[#allocation158_spill] sm:$0xff] %v12419_v46  ;;  %v4640_v1 = vunpack.c.h.bf16 %v12419_v46  ;;  %v4638_v23 = vunpack.c.l.bf16 %v12419_v46  ;;  %v14450_v59 = vld [vmem:[#allocation93_spill] sm:$0xff] }
 0x7ba   : > { %v4269_v56 = vsub.f32 %v14434_v49, %v4187_v2  ;;  %v4270_v63 = vsub.f32 %v14435_v26, %v4187_v2  ;;  %v14453_v49 = vld [vmem:[#allocation96_spill] sm:$0xff] }
 0x7bb   : > { %8076 = vmatpush3.bf16.msra.mxu0 %v14432_v11  ;;  %v4190_v44 = vpop.xlane.xlu0 %4189  ;;  %v4708_v39 = vadd.f32 %v4640_v1, %v4639_v16  ;;  %v4705_v62 = vadd.f32 %v4638_v23, %v4637_v40  ;;  %v14452_v11 = vld [vmem:[#allocation95_spill] sm:$0xff]  ;;  %v14460_v40 = vld [vmem:[#allocation101_spill] sm:$0xff] }
 0x7bc   : > { %v4271_v48 = vsub.f32 %v14436_v43, %v4190_v44  ;;  %v4272_v57 = vsub.f32 %v14437_v58, %v4190_v44  ;;  %v14454_v43 = vld [vmem:[#allocation99_spill] sm:$0xff] }
 0x7bd   : > { %4231 = vmax.xlane.f32.xlu0 %v14440_v27  ;;  %4228 = vmax.xlane.f32.xlu1 %v14443_v19  ;;  %v14458_v27 = vld [vmem:[#allocation98_spill] sm:$0xff] }
 0x7be   : > { %v12431_v61 = vpack.c.bf16 %v4271_v48, %v4269_v56  ;;  %v12433_v20 = vpack.c.bf16 %v4272_v57, %v4270_v63  ;;  %v14455_v48 = vld [vmem:[#allocation100_spill] sm:$0xff]  ;;  %v14457_v57 = vld [vmem:[#allocation97_spill] sm:$0xff] }
 0x7bf   : > { %v14456_v58 = vmax.f32 %v14454_v43, %v14455_v48  ;;  %v14459_v19 = vmax.f32 %v14457_v57, %v14458_v27  ;;  %v14482_v27 = vld [vmem:[#allocation111_spill] sm:$0xff] }
 0x7c1   : > { %3907 = vmax.xlane.f32.xlu0 %v14446_v0  ;;  %3904 = vmax.xlane.f32.xlu1 %v14449_v15  ;;  %v4193_v35 = vpop.xlane.xlu1 %4192  ;;  %v14461_v0 = vld [vmem:[#allocation102_spill] sm:$0xff] }
 0x7c2   : > { %v4273_v2 = vsub.f32 %v14450_v59, %v4193_v35  ;;  %v4274_v34 = vsub.f32 %v14451_v41, %v4193_v35  ;;  %v14462_v35 = vld [vmem:[#allocation103_spill] sm:$0xff] }
 0x7c3   : > { %v4196_v22 = vpop.xlane.xlu0 %4195  ;;  %v14464_v59 = vld [vmem:[#allocation107_spill] sm:$0xff] }
 0x7c4   : > { %v4275_v44 = vsub.f32 %v14452_v11, %v4196_v22  ;;  %v4276_v56 = vsub.f32 %v14453_v49, %v4196_v22  ;;  %v14468_v11 = vld [vmem:[#allocation106_spill] sm:$0xff] }
 0x7c5   : > { %4709 = vadd.xlane.f32.xlu0 %v4708_v39  ;;  %4706 = vadd.xlane.f32.xlu1 %v4705_v62  ;;  %v14463_v39 = vld [vmem:[#allocation104_spill] sm:$0xff] }
 0x7c6   : > { %v12449_v26 = vpack.c.bf16 %v4275_v44, %v4273_v2  ;;  %v12451_v63 = vpack.c.bf16 %v4276_v56, %v4274_v34  ;;  %v14465_v2 = vld [vmem:[#allocation108_spill] sm:$0xff]  ;;  %v14467_v34 = vld [vmem:[#allocation105_spill] sm:$0xff] }
 0x7c7   : > { %v14466_v41 = vmax.f32 %v14464_v59, %v14465_v2  ;;  %v14469_v44 = vmax.f32 %v14467_v34, %v14468_v11  ;;  %v14474_v2 = vld [vmem:[#allocation115_spill] sm:$0xff]  ;;  %v14477_v11 = vld [vmem:[#allocation113_spill] sm:$0xff] }
 0x7c9   : > { %3913 = vmax.xlane.f32.xlu0 %v14456_v58  ;;  %3910 = vmax.xlane.f32.xlu1 %v14459_v19  ;;  %v4199_v16 = vpop.xlane.xlu1 %4198 }
 0x7ca   : > { %v4277_v23 = vsub.f32 %v14460_v40, %v4199_v16  ;;  %v4278_v15 = vsub.f32 %v14461_v0, %v4199_v16  ;;  %v14470_v40 = vld [vmem:[#allocation59_spill] sm:$0xff]  ;;  %v14471_v0 = vld [vmem:[#allocation60_spill] sm:$0xff] }
 0x7cb   : > { %v4202_v1 = vpop.xlane.xlu0 %4201 }
 0x7cc   : > { %v4279_v22 = vsub.f32 %v14462_v35, %v4202_v1  ;;  %v4280_v62 = vsub.f32 %v14463_v39, %v4202_v1  ;;  %v14473_v39 = vld [vmem:[#allocation58_spill] sm:$0xff] }
 0x7cd   : > { %3919 = vmax.xlane.f32.xlu0 %v14466_v41  ;;  %3916 = vmax.xlane.f32.xlu1 %v14469_v44  ;;  %v3866_v49 = vpop.xlane.xlu1 %3865  ;;  %v14475_v41 = vld [vmem:[#allocation116_spill] sm:$0xff]  ;;  %v14478_v44 = vld [vmem:[#allocation114_spill] sm:$0xff] }
 0x7ce   : > { %v12469_v56 = vpack.c.bf16 %v4279_v22, %v4277_v23  ;;  %v12471_v58 = vpack.c.bf16 %v4280_v62, %v4278_v15  ;;  %v3959_v16 = vsub.f32 %v14470_v40, %v3866_v49  ;;  %v3960_v35 = vsub.f32 %v14471_v0, %v3866_v49  ;;  %v14480_v62 = vld [vmem:[#allocation109_spill] sm:$0xff]  ;;  %v14481_v40 = vld [vmem:[#allocation110_spill] sm:$0xff] }
 0x7cf   : > { %v3863_v19 = vpop.xlane.xlu0 %3862  ;;  %v14476_v59 = vmax.f32 %v14474_v2, %v14475_v41  ;;  %v14479_v34 = vmax.f32 %v14477_v11, %v14478_v44  ;;  %v14484_v41 = vld [vmem:[#allocation123_spill] sm:$0xff]  ;;  %v14487_v44 = vld [vmem:[#allocation121_spill] sm:$0xff] }
 0x7d0   : > { %v3957_v1 = vsub.f32 %v14472_v17, %v3863_v19  ;;  %v3958_v46 = vsub.f32 %v14473_v39, %v3863_v19  ;;  %v14483_v39 = vld [vmem:[#allocation112_spill] sm:$0xff] }
 0x7d1   : > { %3925 = vmax.xlane.f32.xlu0 %v14476_v59  ;;  %3922 = vmax.xlane.f32.xlu1 %v14479_v34  ;;  %v4205_v23 = vpop.xlane.xlu1 %4204  ;;  %v14485_v59 = vld [vmem:[#allocation124_spill] sm:$0xff]  ;;  %v14488_v34 = vld [vmem:[#allocation122_spill] sm:$0xff] }
 0x7d2   : > { %v4021_v15 = vpack.c.bf16 %v3959_v16, %v3957_v1  ;;  %v4022_v22 = vpack.c.bf16 %v3960_v35, %v3958_v46  ;;  %v4281_v48 = vsub.f32 %v14480_v62, %v4205_v23  ;;  %v4282_v43 = vsub.f32 %v14481_v40, %v4205_v23  ;;  %v14492_v23 = vld [vmem:[#allocation61_spill] sm:$0xff]  ;;  %v14494_v62 = vld [vmem:[#allocation63_spill] sm:$0xff] }
 0x7d3   : > { %v4208_v49 = vpop.xlane.xlu0 %4207  ;;  %v14486_v2 = vmax.f32 %v14484_v41, %v14485_v59  ;;  %v14489_v11 = vmax.f32 %v14487_v44, %v14488_v34  ;;  %v14497_v59 = vld [vmem:[#allocation132_spill] sm:$0xff] }
 0x7d4   : > { %v4054_v0 = vmul.bf16 1069105081, %v4021_v15  ;;  %v4057_v17 = vmul.bf16 1069105081, %v4022_v22  ;;  %v4283_v19 = vsub.f32 %v14482_v27, %v4208_v49  ;;  %v4284_v57 = vsub.f32 %v14483_v39, %v4208_v49  ;;  %v14493_v15 = vld [vmem:[#allocation62_spill] sm:$0xff]  ;;  %v14495_v49 = vld [vmem:[#allocation64_spill] sm:$0xff] }
 0x7d5   : > { %3931 = vmax.xlane.f32.xlu0 %v14486_v2  ;;  %3928 = vmax.xlane.f32.xlu1 %v14489_v11  ;;  %v3869_v46 = vpop.xlane.xlu1 %3868  ;;  %v14496_v39 = vld [vmem:[#allocation131_spill] sm:$0xff]  ;;  %v14499_v11 = vld [vmem:[#allocation129_spill] sm:$0xff] }
 0x7d6   : > { %9040 = vpow.bf16 %v4054_v0  ;;  %v12493_v16 = vpack.c.bf16 %v4283_v19, %v4281_v48  ;;  %v12495_v35 = vpack.c.bf16 %v4284_v57, %v4282_v43  ;;  %v3961_v27 = vsub.f32 %v14492_v23, %v3869_v46  ;;  %v14500_v0 = vld [vmem:[#allocation130_spill] sm:$0xff]  ;;  %v14502_v19 = vld [vmem:[#allocation117_spill] sm:$0xff] }
 0x7d7   : > { %9042 = vpow.bf16 %v4057_v17  ;;  %v3872_v1 = vpop.xlane.xlu0 %3871  ;;  %v3962_v22 = vsub.f32 %v14493_v15, %v3869_v46  ;;  %v14498_v41 = vmax.f32 %v14496_v39, %v14497_v59  ;;  %v14501_v48 = vmax.f32 %v14499_v11, %v14500_v0  ;;  %v14503_v23 = vld [vmem:[#allocation118_spill] sm:$0xff]  ;;  %v14506_v59 = vld [vmem:[#allocation135_spill] sm:$0xff]  ;;  %v14509_v0 = vld [vmem:[#allocation133_spill] sm:$0xff] }
 0x7d8   : > { %14490 = vst [vmem:[#allocation75_spill] sm:$0xff] %v12493_v16  ;;  %14491 = vst [vmem:[#allocation76_spill] sm:$0xff] %v12495_v35  ;;  %v3963_v40 = vsub.f32 %v14494_v62, %v3872_v1  ;;  %v3964_v2 = vsub.f32 %v14495_v49, %v3872_v1  ;;  %v14504_v35 = vld [vmem:[#allocation119_spill] sm:$0xff]  ;;  %v14505_v49 = vld [vmem:[#allocation120_spill] sm:$0xff] }
 0x7d9   : > { %3937 = vmax.xlane.f32.xlu0 %v14498_v41  ;;  %3934 = vmax.xlane.f32.xlu1 %v14501_v48  ;;  %v4211_v43 = vpop.xlane.xlu1 %4210  ;;  %v14507_v41 = vld [vmem:[#allocation136_spill] sm:$0xff]  ;;  %v14510_v48 = vld [vmem:[#allocation134_spill] sm:$0xff] }
 0x7da   : > { %v4023_v57 = vpack.c.bf16 %v3963_v40, %v3961_v27  ;;  %v4024_v17 = vpack.c.bf16 %v3964_v2, %v3962_v22  ;;  %v4285_v34 = vsub.f32 %v14502_v19, %v4211_v43  ;;  %v4286_v44 = vsub.f32 %v14503_v23, %v4211_v43  ;;  %v14513_v43 = vld [vmem:[#allocation65_spill] sm:$0xff]  ;;  %v14515_v23 = vld [vmem:[#allocation67_spill] sm:$0xff] }
 0x7db   : > { %v4214_v46 = vpop.xlane.xlu0 %4213  ;;  %v14508_v39 = vmax.f32 %v14506_v59, %v14507_v41  ;;  %v14511_v11 = vmax.f32 %v14509_v0, %v14510_v48  ;;  %v4360_v22 = vmul.bf16 1069105081, %v12330_v29  ;;  %v14518_v29 = vld [vmem:[#allocation143_spill] sm:$0xff] }
 0x7dc   : > { %v4060_v15 = vmul.bf16 1069105081, %v4023_v57  ;;  %v4063_v62 = vmul.bf16 1069105081, %v4024_v17  ;;  %v4287_v1 = vsub.f32 %v14504_v35, %v4214_v46  ;;  %v4288_v16 = vsub.f32 %v14505_v49, %v4214_v46  ;;  %v14514_v17 = vld [vmem:[#allocation66_spill] sm:$0xff]  ;;  %v14516_v46 = vld [vmem:[#allocation68_spill] sm:$0xff] }
 0x7dd   : > { %3943 = vmax.xlane.f32.xlu0 %v14508_v39  ;;  %3940 = vmax.xlane.f32.xlu1 %v14511_v11  ;;  %v3875_v27 = vpop.xlane.xlu1 %3874  ;;  %v4363_v11 = vmul.bf16 1069105081, %v12332_v38  ;;  %v14527_v0 = vld [vmem:[#allocation127_spill] sm:$0xff] }
 0x7de   : > { %9044 = vpow.bf16 %v4060_v15  ;;  %v12518_v40 = vpack.c.bf16 %v4287_v1, %v4285_v34  ;;  %v12520_v2 = vpack.c.bf16 %v4288_v16, %v4286_v44  ;;  %v3965_v57 = vsub.f32 %v14513_v43, %v3875_v27  ;;  %v14519_v15 = vld [vmem:[#allocation144_spill] sm:$0xff]  ;;  %v14521_v44 = vld [vmem:[#allocation141_spill] sm:$0xff]  ;;  %v14522_v16 = vld [vmem:[#allocation142_spill] sm:$0xff] }
 0x7df   : > { %9046 = vpow.bf16 %v4063_v62  ;;  %v3878_v35 = vpop.xlane.xlu0 %3877  ;;  %v3966_v19 = vsub.f32 %v14514_v17, %v3875_v27  ;;  %v14520_v34 = vmax.f32 %v14518_v29, %v14519_v15  ;;  %v14523_v62 = vmax.f32 %v14521_v44, %v14522_v16 }
 0x7e0   : > { %14512 = vst [vmem:[#allocation73_spill] sm:$0xff] %v12520_v2  ;;  %v3967_v39 = vsub.f32 %v14515_v23, %v3878_v35  ;;  %v3968_v49 = vsub.f32 %v14516_v46, %v3878_v35  ;;  %9048 = vpow.bf16 %v4360_v22  ;;  %v14525_v23 = vld [vmem:[#allocation125_spill] sm:$0xff]  ;;  %v14526_v46 = vld [vmem:[#allocation126_spill] sm:$0xff] }
 0x7e1   : > { %v12526_v41 = vpop.eup %9040  ;;  %3949 = vmax.xlane.f32.xlu0 %v14520_v34  ;;  %3946 = vmax.xlane.f32.xlu1 %v14523_v62  ;;  %v4217_v1 = vpop.xlane.xlu1 %4216  ;;  %v14528_v62 = vld [vmem:[#allocation128_spill] sm:$0xff]  ;;  %9050 = vpow.bf16 %v4363_v11  ;;  %v14531_v11 = vld [vmem:[#allocation71_spill] sm:$0xff] }
 0x7e2   : > { %14517 = vst [vmem:[#allocation74_spill] sm:$0xff] %v12526_v41  ;;  %v12535_v43 = vpop.eup %9042  ;;  %v4025_v27 = vpack.c.bf16 %v3967_v39, %v3965_v57  ;;  %v4026_v17 = vpack.c.bf16 %v3968_v49, %v3966_v19  ;;  %v4289_v35 = vsub.f32 %v14525_v23, %v4217_v1  ;;  %v4290_v59 = vsub.f32 %v14526_v46, %v4217_v1  ;;  %v14530_v23 = vld [vmem:[#allocation70_spill] sm:$0xff] }
 0x7e3   : > { %14524 = vst [vmem:[#allocation77_spill] sm:$0xff] %v12535_v43  ;;  %v4220_v48 = vpop.xlane.xlu0 %4219  ;;  %v4439_v38 = vunpack.c.h.bf16 %v12526_v41  ;;  %v4440_v15 = vunpack.c.h.bf16 %v12535_v43  ;;  %v4437_v57 = vunpack.c.l.bf16 %v12526_v41  ;;  %v4438_v19 = vunpack.c.l.bf16 %v12535_v43 }
 0x7e4   : > { %v4066_v34 = vmul.bf16 1069105081, %v4025_v27  ;;  %v4069_v29 = vmul.bf16 1069105081, %v4026_v17  ;;  %v4291_v16 = vsub.f32 %v14527_v0, %v4220_v48  ;;  %v4292_v44 = vsub.f32 %v14528_v62, %v4220_v48  ;;  %v14529_v17 = vld [vmem:[#allocation69_spill] sm:$0xff] }
 0x7e5   : > { %v3881_v2 = vpop.xlane.xlu1 %3880  ;;  %v4504_v22 = vadd.f32 %v4440_v15, %v4439_v38  ;;  %v4501_v1 = vadd.f32 %v4438_v19, %v4437_v57  ;;  %v14532_v15 = vld [vmem:[#allocation72_spill] sm:$0xff] }
 0x7e6   : > { %9052 = vpow.bf16 %v4066_v34  ;;  %v12545_v39 = vpack.c.bf16 %v4291_v16, %v4289_v35  ;;  %v12547_v49 = vpack.c.bf16 %v4292_v44, %v4290_v59  ;;  %v3969_v0 = vsub.f32 %v14529_v17, %v3881_v2  ;;  %v14535_v44 = vld [vmem:[#allocation147_spill] sm:$0xff]  ;;  %v14536_v35 = vld [vmem:[#allocation148_spill] sm:$0xff] }
 0x7e7   : > { %9054 = vpow.bf16 %v4069_v29  ;;  %4505 = vadd.xlane.f32.xlu0 %v4504_v22  ;;  %v3884_v27 = vpop.xlane.xlu0 %3883  ;;  %v3970_v48 = vsub.f32 %v14530_v23, %v3881_v2  ;;  %4502 = vadd.xlane.f32.xlu1 %v4501_v1  ;;  %v14537_v22 = vmax.f32 %v14535_v44, %v14536_v35  ;;  %v14539_v1 = vld [vmem:[#allocation145_spill] sm:$0xff] }
 0x7e8   : > { %v3971_v46 = vsub.f32 %v14531_v11, %v3884_v27  ;;  %v3972_v38 = vsub.f32 %v14532_v15, %v3884_v27  ;;  %v14540_v11 = vld [vmem:[#allocation146_spill] sm:$0xff] }
 0x7e9   : > { %v12553_v62 = vpop.eup %9044 }
 0x7ea   : > { %14533 = vst [vmem:[#allocation164_spill] sm:$0xff] %v12553_v62  ;;  %v12555_v34 = vpop.eup %9046  ;;  %v4027_v16 = vpack.c.bf16 %v3971_v46, %v3969_v0  ;;  %v4028_v59 = vpack.c.bf16 %v3972_v38, %v3970_v48  ;;  %v4443_v29 = vunpack.c.h.bf16 %v12553_v62  ;;  %v4441_v2 = vunpack.c.l.bf16 %v12553_v62  ;;  %v14545_v62 = vld [vmem:[#allocation151_spill] sm:$0xff] }
 0x7eb   : > { %14534 = vst [vmem:[#allocation162_spill] sm:$0xff] %v12555_v34  ;;  %4237 = vmax.xlane.f32.xlu0 %v14537_v22  ;;  %v4444_v57 = vunpack.c.h.bf16 %v12555_v34  ;;  %v4442_v19 = vunpack.c.l.bf16 %v12555_v34  ;;  %v12564_v23 = vpop.eup %9048  ;;  %v14541_v0 = vmax.f32 %v14539_v1, %v14540_v11  ;;  %v14546_v34 = vld [vmem:[#allocation152_spill] sm:$0xff] }
 0x7ec   : > { %v4072_v27 = vmul.bf16 1069105081, %v4027_v16  ;;  %v4075_v17 = vmul.bf16 1069105081, %v4028_v59  ;;  %14538 = vst [vmem:[#allocation159_spill] sm:$0xff] %v12564_v23  ;;  %v12569_v15 = vpop.eup %9050  ;;  %v14547_v43 = vmax.f32 %v14545_v62, %v14546_v34 }
 0x7ed   : > { %4234 = vmax.xlane.f32.xlu1 %v14541_v0  ;;  %v4510_v48 = vadd.f32 %v4444_v57, %v4443_v29  ;;  %v4507_v46 = vadd.f32 %v4442_v19, %v4441_v2  ;;  %14542 = vst [vmem:[#allocation157_spill] sm:$0xff] %v12569_v15  ;;  %v14548_v2 = vld [vmem:[#allocation149_spill] sm:$0xff]  ;;  %v14549_v19 = vld [vmem:[#allocation150_spill] sm:$0xff]  ;;  %v4642_v41 = vunpack.c.l.bf16 %v12569_v15 }
 0x7ee   : > { %9056 = vpow.bf16 %v4072_v27  ;;  %v14550_v27 = vmax.f32 %v14548_v2, %v14549_v19 }
 0x7ef   : > { %9058 = vpow.bf16 %v4075_v17  ;;  %4511 = vadd.xlane.f32.xlu0 %v4510_v48  ;;  %v4643_v48 = vunpack.c.h.bf16 %v12564_v23 }
 0x7f1   : > { %v12571_v38 = vpop.eup %9052  ;;  %4508 = vadd.xlane.f32.xlu1 %v4507_v46  ;;  %v4644_v46 = vunpack.c.h.bf16 %v12569_v15  ;;  %v14556_v15 = vld [vmem:[#allocation154_spill] sm:$0xff] }
 0x7f2   : > { %14543 = vst [vmem:[#allocation78_spill] sm:$0xff] %v12571_v38  ;;  %v12573_v22 = vpop.eup %9054  ;;  %v4447_v16 = vunpack.c.h.bf16 %v12571_v38  ;;  %v4445_v59 = vunpack.c.l.bf16 %v12571_v38  ;;  %v4641_v38 = vunpack.c.l.bf16 %v12564_v23  ;;  %v14552_v23 = vld [vmem:[#allocation155_spill] sm:$0xff] }
 0x7f3   : > { %14544 = vst [vmem:[#allocation79_spill] sm:$0xff] %v12573_v22  ;;  %3955 = vmax.xlane.f32.xlu0 %v14547_v43  ;;  %v4448_v29 = vunpack.c.h.bf16 %v12573_v22  ;;  %v4446_v57 = vunpack.c.l.bf16 %v12573_v22  ;;  %v4714_v34 = vadd.f32 %v4644_v46, %v4643_v48  ;;  %v14555_v46 = vld [vmem:[#allocation153_spill] sm:$0xff] }
 0x7f4   : > { %v14557_v2 = vmax.f32 %v14555_v46, %v14556_v15 }
 0x7f5   : > { %3952 = vmax.xlane.f32.xlu1 %v14550_v27  ;;  %v4516_v17 = vadd.f32 %v4448_v29, %v4447_v16  ;;  %v4513_v0 = vadd.f32 %v4446_v57, %v4445_v59  ;;  %v4711_v59 = vadd.f32 %v4642_v41, %v4641_v38 }
 0x7f7   : > { %4517 = vadd.xlane.f32.xlu0 %v4516_v17 }
 0x7f9   : > { %v12589_v43 = vpop.eup %9056  ;;  %4514 = vadd.xlane.f32.xlu1 %v4513_v0  ;;  %v14553_v0 = vld [vmem:[#allocation156_spill] sm:$0xff] }
 0x7fa   : > { %14551 = vst [vmem:[#allocation80_spill] sm:$0xff] %v12589_v43  ;;  %v12591_v22 = vpop.eup %9058  ;;  %v4451_v19 = vunpack.c.h.bf16 %v12589_v43  ;;  %v4449_v16 = vunpack.c.l.bf16 %v12589_v43  ;;  %v14554_v48 = vmax.f32 %v14552_v23, %v14553_v0  ;;  %v4369_v43 = vmul.bf16 1069105081, %v12370_v25 }
 0x7fb   : > { %4715 = vadd.xlane.f32.xlu0 %v4714_v34  ;;  %v4452_v29 = vunpack.c.h.bf16 %v12591_v22  ;;  %v4450_v57 = vunpack.c.l.bf16 %v12591_v22  ;;  %v4366_v34 = vmul.bf16 1069105081, %v12368_v12 }
 0x7fd   : > { %4712 = vadd.xlane.f32.xlu1 %v4711_v59  ;;  %v4522_v27 = vadd.f32 %v4452_v29, %v4451_v19  ;;  %v4519_v17 = vadd.f32 %v4450_v57, %v4449_v16  ;;  %v4372_v19 = vmul.bf16 1069105081, %v12398_v37  ;;  %v4375_v16 = vmul.bf16 1069105081, %v12400_v50 }
 0x7ff   : > { %4523 = vadd.xlane.f32.xlu0 %v4522_v27 }
 0x801   : > { %4520 = vadd.xlane.f32.xlu1 %v4519_v17 }
 0x803   : > { %4243 = vmax.xlane.f32.xlu0 %v14554_v48 }
 0x805   : > { %4240 = vmax.xlane.f32.xlu1 %v14557_v2 }
 0x832   : > { %v4695_v41 = vpop.xlane.xlu1 %4694  ;;  %v4698_v38 = vpop.xlane.xlu0 %4697 }
 0x833   : > { %9060 = vrcp.f32 %v4695_v41 }
 0x834   : > { %9062 = vrcp.f32 %v4698_v38 }
 0x835   : > { %9064 = vpow.bf16 %v4366_v34 }
 0x836   : > { %v3887_v59 = vpop.xlane.xlu1 %3886  ;;  %v3890_v29 = vpop.xlane.xlu0 %3889  ;;  %9066 = vpow.bf16 %v4369_v43 }
 0x837   : > { %v3973_v57 = vsub.f32 %v11879_v32, %v3887_v59  ;;  %v3974_v27 = vsub.f32 %v11881_v45, %v3887_v59  ;;  %v3975_v2 = vsub.f32 %v11885_v52, %v3890_v29  ;;  %v3976_v12 = vsub.f32 %v11887_v28, %v3890_v29 }
 0x838   : > { %9068 = vpow.bf16 %v4372_v19  ;;  %v4378_v28 = vmul.bf16 1069105081, %v12431_v61  ;;  %v4381_v19 = vmul.bf16 1069105081, %v12433_v20 }
 0x839   : > { %v4029_v17 = vpack.c.bf16 %v3975_v2, %v3973_v57  ;;  %v4030_v25 = vpack.c.bf16 %v3976_v12, %v3974_v27  ;;  %9070 = vpow.bf16 %v4375_v16 }
 0x83a   : > { %v4223_v48 = vpop.xlane.xlu1 %4222  ;;  %v4226_v37 = vpop.xlane.xlu0 %4225 }
 0x83b   : > { %v4078_v34 = vmul.bf16 1069105081, %v4029_v17  ;;  %v4081_v41 = vmul.bf16 1069105081, %v4030_v25  ;;  %v4293_v50 = vsub.f32 %v12104_v18, %v4223_v48  ;;  %v4294_v38 = vsub.f32 %v12106_v36, %v4223_v48 }
 0x83c   : > { %v4295_v32 = vsub.f32 %v12113_v14, %v4226_v37  ;;  %v4296_v45 = vsub.f32 %v12115_v5, %v4226_v37 }
 0x83d   : > { %v9061_v52 = vpop.eup %9060  ;;  %9072 = vpow.bf16 %v4078_v34  ;;  %v4384_v34 = vmul.bf16 1069105081, %v12449_v26 }
 0x83e   : > { %v9063_v43 = vpop.eup %9062  ;;  %9074 = vpow.bf16 %v4081_v41  ;;  %v12617_v16 = vpack.c.bf16 %v4295_v32, %v4293_v50  ;;  %v12619_v59 = vpack.c.bf16 %v4296_v45, %v4294_v38  ;;  %v3893_v29 = vpop.xlane.xlu1 %3892 }
 0x83f   : > { %v3896_v18 = vpop.xlane.xlu0 %3895  ;;  %v3977_v36 = vsub.f32 %v14405_v6, %v3893_v29  ;;  %v3978_v14 = vsub.f32 %v14406_v42, %v3893_v29  ;;  %v4869_v61 = vpack.c.bf16 %v9063_v43, %v9061_v52  ;;  %9076 = vpow.bf16 %v4378_v28 }
 0x840   : > { %v3979_v5 = vsub.f32 %v14402_v31, %v3896_v18  ;;  %v3980_v57 = vsub.f32 %v14403_v54, %v3896_v18  ;;  %v12625_v27 = vpop.eup %9064  ;;  %9078 = vpow.bf16 %v4381_v19 }
 0x841   : > { %v4885_v17 = vmul.bf16 %v12306_v7, %v4869_v61  ;;  %v4886_v25 = vmul.bf16 %v12314_v60, %v4869_v61  ;;  %v12629_v37 = vpop.eup %9066  ;;  %v4647_v7 = vunpack.c.h.bf16 %v12625_v27  ;;  %v4387_v60 = vmul.bf16 1069105081, %v12451_v63 }
 0x842   : > { %v4031_v2 = vpack.c.bf16 %v3979_v5, %v3977_v36  ;;  %v4032_v20 = vpack.c.bf16 %v3980_v57, %v3978_v14  ;;  %v4701_v12 = vpop.xlane.xlu1 %4700  ;;  %v4648_v38 = vunpack.c.h.bf16 %v12629_v37  ;;  %v4645_v32 = vunpack.c.l.bf16 %v12625_v27 }
 0x843   : > { %v4704_v48 = vpop.xlane.xlu0 %4703  ;;  %v12631_v31 = vpop.eup %9068  ;;  %9080 = vrcp.f32 %v4701_v12  ;;  %5668 = vmatprep.mubr.bf16.mxu0 %v4886_v25  ;;  %v4646_v63 = vunpack.c.l.bf16 %v12629_v37 }
 0x844   : > { %v4084_v6 = vmul.bf16 1069105081, %v4031_v2  ;;  %v4087_v42 = vmul.bf16 1069105081, %v4032_v20  ;;  %v12633_v54 = vpop.eup %9070  ;;  %5669 = vmatmul.mubr.bf16.vlgmr.msra.gmra.mrb[208].mxu0 %v4885_v17  ;;  %v4651_v19 = vunpack.c.h.bf16 %v12631_v31 }
 0x845   : > { %v4652_v29 = vunpack.c.h.bf16 %v12633_v54 }
 0x846   : > { %9082 = vpow.bf16 %v4084_v6  ;;  %v3899_v41 = vpop.xlane.xlu1 %3898 }
 0x847   : > { %9084 = vpow.bf16 %v4087_v42  ;;  %v3902_v50 = vpop.xlane.xlu0 %3901  ;;  %v3981_v45 = vsub.f32 %v14426_v10, %v3899_v41  ;;  %v3982_v52 = vsub.f32 %v14427_v8, %v3899_v41 }
 0x848   : > { %9086 = vrcp.f32 %v4704_v48  ;;  %v3983_v26 = vsub.f32 %v14423_v9, %v3902_v50  ;;  %v12643_v28 = vpop.eup %9072  ;;  %v3984_v43 = vsub.f32 %v14424_v47, %v3902_v50 }
 0x849   : > { %v12649_v18 = vpop.eup %9074  ;;  %9088 = vpow.bf16 %v4384_v34  ;;  %v4455_v10 = vunpack.c.h.bf16 %v12643_v28  ;;  %v4453_v8 = vunpack.c.l.bf16 %v12643_v28 }
 0x84a   : > { %v4033_v36 = vpack.c.bf16 %v3983_v26, %v3981_v45  ;;  %9090 = vpow.bf16 %v4387_v60  ;;  %v4034_v9 = vpack.c.bf16 %v3984_v43, %v3982_v52  ;;  %v4229_v14 = vpop.xlane.xlu1 %4228  ;;  %v4456_v47 = vunpack.c.h.bf16 %v12649_v18  ;;  %v12659_v42 = vpop.eup %9076 }
 0x84b   : > { %v4232_v5 = vpop.xlane.xlu0 %4231  ;;  %v4454_v57 = vunpack.c.l.bf16 %v12649_v18  ;;  %v4297_v2 = vsub.f32 %v14441_v21, %v4229_v14  ;;  %v4298_v20 = vsub.f32 %v14442_v51, %v4229_v14  ;;  %v4720_v60 = vadd.f32 %v4648_v38, %v4647_v7  ;;  %v12663_v41 = vpop.eup %9078 }
 0x84c   : > { %v4090_v61 = vmul.bf16 1069105081, %v4033_v36  ;;  %v4299_v12 = vsub.f32 %v14438_v55, %v4232_v5  ;;  %v4093_v17 = vmul.bf16 1069105081, %v4034_v9  ;;  %v4300_v25 = vsub.f32 %v14439_v3, %v4232_v5 }
 0x84d   : > { %v4528_v48 = vadd.f32 %v4456_v47, %v4455_v10  ;;  %v4525_v6 = vadd.f32 %v4454_v57, %v4453_v8  ;;  %v9081_v50 = vpop.eup %9080  ;;  %v4390_v21 = vmul.bf16 1069105081, %v12469_v56  ;;  %v4717_v45 = vadd.f32 %v4646_v63, %v4645_v32 }
 0x84e   : > { %9092 = vpow.bf16 %v4090_v61  ;;  %v12661_v34 = vpack.c.bf16 %v4299_v12, %v4297_v2  ;;  %v12666_v51 = vpack.c.bf16 %v4300_v25, %v4298_v20  ;;  %v3905_v55 = vpop.xlane.xlu1 %3904  ;;  %v4649_v7 = vunpack.c.l.bf16 %v12631_v31 }
 0x84f   : > { %9094 = vpow.bf16 %v4093_v17  ;;  %4529 = vadd.xlane.f32.xlu0 %v4528_v48  ;;  %4526 = vadd.xlane.f32.xlu1 %v4525_v6  ;;  %v3908_v3 = vpop.xlane.xlu0 %3907  ;;  %v3985_v52 = vsub.f32 %v14447_v4, %v3905_v55  ;;  %v3986_v26 = vsub.f32 %v14448_v53, %v3905_v55  ;;  %v4726_v36 = vadd.f32 %v4652_v29, %v4651_v19 }
 0x850   : > { %v3987_v43 = vsub.f32 %v14444_v33, %v3908_v3  ;;  %v3988_v56 = vsub.f32 %v14445_v13, %v3908_v3  ;;  %v4650_v10 = vunpack.c.l.bf16 %v12633_v54  ;;  %v4655_v8 = vunpack.c.h.bf16 %v12659_v42 }
 0x851   : > { %v12672_v38 = vpop.eup %9082  ;;  %v4656_v33 = vunpack.c.h.bf16 %v12663_v41  ;;  %9096 = vpow.bf16 %v4390_v21  ;;  %v4393_v47 = vmul.bf16 1069105081, %v12471_v58  ;;  %v4653_v3 = vunpack.c.l.bf16 %v12659_v42 }
 0x852   : > { %v12677_v9 = vpop.eup %9084  ;;  %v4035_v63 = vpack.c.bf16 %v3987_v43, %v3985_v52  ;;  %v4459_v4 = vunpack.c.h.bf16 %v12672_v38  ;;  %v4457_v53 = vunpack.c.l.bf16 %v12672_v38  ;;  %v4036_v14 = vpack.c.bf16 %v3988_v56, %v3986_v26  ;;  %v4707_v13 = vpop.xlane.xlu1 %4706  ;;  %v14561_v52 = vld [vmem:[#allocation98_spill] sm:$0xff]  ;;  %v14562_v43 = vld [vmem:[#allocation99_spill] sm:$0xff] }
 0x853   : > { %v9087_v32 = vpop.eup %9086  ;;  %4721 = vadd.xlane.f32.xlu0 %v4720_v60  ;;  %4718 = vadd.xlane.f32.xlu1 %v4717_v45  ;;  %v4710_v29 = vpop.xlane.xlu0 %4709  ;;  %v4460_v5 = vunpack.c.h.bf16 %v12677_v9  ;;  %9098 = vrcp.f32 %v4707_v13  ;;  %v4458_v61 = vunpack.c.l.bf16 %v12677_v9  ;;  %v4723_v60 = vadd.f32 %v4650_v10, %v4649_v7  ;;  %v14563_v10 = vld [vmem:[#allocation100_spill] sm:$0xff] }
 0x854   : > { %v4870_v19 = vpack.c.bf16 %v9087_v32, %v9081_v50  ;;  %v4096_v57 = vmul.bf16 1069105081, %v4035_v63  ;;  %v12685_v2 = vpop.eup %9088  ;;  %v4099_v20 = vmul.bf16 1069105081, %v4036_v14  ;;  %9100 = vrcp.f32 %v4710_v29  ;;  %v14559_v50 = vld [vmem:[#allocation75_spill] sm:$0xff]  ;;  %v14564_v13 = vld [vmem:[#allocation76_spill] sm:$0xff] }
 0x855   : > { %14558 = vst [vmem:[#allocation163_spill] sm:$0xff] %v12685_v2  ;;  %v12689_v25 = vpop.eup %9090  ;;  %v4534_v48 = vadd.f32 %v4460_v5, %v4459_v4  ;;  %v4531_v6 = vadd.f32 %v4458_v61, %v4457_v53  ;;  %v4396_v58 = vmul.bf16 1069105081, %v14559_v50  ;;  %v4654_v45 = vunpack.c.l.bf16 %v12663_v41 }
 0x856   : > { %v4888_v12 = vmul.bf16 %v12348_v30, %v4870_v19  ;;  %v4887_v17 = vmul.bf16 %v12346_v24, %v4870_v19  ;;  %9102 = vpow.bf16 %v4096_v57  ;;  %v3911_v21 = vpop.xlane.xlu1 %3910  ;;  %v14560_v24 = vld [vmem:[#allocation97_spill] sm:$0xff]  ;;  %v4732_v63 = vadd.f32 %v4656_v33, %v4655_v8 }
 0x857   : > { %9104 = vpow.bf16 %v4099_v20  ;;  %v3914_v55 = vpop.xlane.xlu0 %3913  ;;  %4535 = vadd.xlane.f32.xlu0 %v4534_v48  ;;  %v3989_v30 = vsub.f32 %v14560_v24, %v3911_v21  ;;  %v3990_v26 = vsub.f32 %v14561_v52, %v3911_v21  ;;  %4532 = vadd.xlane.f32.xlu1 %v4531_v6  ;;  %v4659_v4 = vunpack.c.h.bf16 %v12685_v2  ;;  %v14566_v6 = vld [vmem:[#allocation106_spill] sm:$0xff]  ;;  %v14567_v21 = vld [vmem:[#allocation107_spill] sm:$0xff] }
 0x858   : > { %5676 = vmatprep.mubr.bf16.mxu0 %v4888_v12  ;;  %9106 = vpow.bf16 %v4393_v47  ;;  %v3991_v56 = vsub.f32 %v14562_v43, %v3914_v55  ;;  %v3992_v32 = vsub.f32 %v14563_v10, %v3914_v55  ;;  %v4660_v53 = vunpack.c.h.bf16 %v12689_v25 }
 0x859   : > { %5677 = vmatmul.mubr.bf16.gmra.mrb[212].mxu0 %v4887_v17  ;;  %v12697_v7 = vpop.eup %9092  ;;  %v4399_v19 = vmul.bf16 1069105081, %v14564_v13  ;;  %9108 = vpow.bf16 %v4396_v58  ;;  %v14565_v17 = vld [vmem:[#allocation105_spill] sm:$0xff] }
 0x85a   : > { %v12702_v14 = vpop.eup %9094  ;;  %v4037_v29 = vpack.c.bf16 %v3991_v56, %v3989_v30  ;;  %v4463_v5 = vunpack.c.h.bf16 %v12697_v7  ;;  %v4461_v47 = vunpack.c.l.bf16 %v12697_v7  ;;  %v4038_v57 = vpack.c.bf16 %v3992_v32, %v3990_v26  ;;  %v3917_v61 = vpop.xlane.xlu1 %3916  ;;  %v14568_v30 = vld [vmem:[#allocation108_spill] sm:$0xff] }
 0x85b   : > { %v3920_v20 = vpop.xlane.xlu0 %3919  ;;  %v4464_v12 = vunpack.c.h.bf16 %v12702_v14  ;;  %v4462_v8 = vunpack.c.l.bf16 %v12702_v14  ;;  %4727 = vadd.xlane.f32.xlu0 %v4726_v36  ;;  %v3993_v48 = vsub.f32 %v14565_v17, %v3917_v61  ;;  %v3994_v50 = vsub.f32 %v14566_v6, %v3917_v61  ;;  %4724 = vadd.xlane.f32.xlu1 %v4723_v60 }
 0x85c   : > { %v4102_v33 = vmul.bf16 1069105081, %v4037_v29  ;;  %v3995_v55 = vsub.f32 %v14567_v21, %v3920_v20  ;;  %v4105_v24 = vmul.bf16 1069105081, %v4038_v57  ;;  %v3996_v52 = vsub.f32 %v14568_v30, %v3920_v20  ;;  %v12713_v43 = vpop.eup %9096 }
 0x85d   : > { %v4540_v58 = vadd.f32 %v4464_v12, %v4463_v5  ;;  %v4537_v26 = vadd.f32 %v4462_v8, %v4461_v47  ;;  %14569 = vst [vmem:[#allocation161_spill] sm:$0xff] %v12713_v43  ;;  %v9099_v56 = vpop.eup %9098  ;;  %v4657_v32 = vunpack.c.l.bf16 %v12685_v2  ;;  %v4658_v36 = vunpack.c.l.bf16 %v12689_v25  ;;  %v14570_v5 = vld [vmem:[#allocation113_spill] sm:$0xff]  ;;  %v14571_v12 = vld [vmem:[#allocation114_spill] sm:$0xff] }
 0x85e   : > { %9110 = vpow.bf16 %v4102_v33  ;;  %v4039_v10 = vpack.c.bf16 %v3995_v55, %v3993_v48  ;;  %v9101_v13 = vpop.eup %9100  ;;  %v4040_v29 = vpack.c.bf16 %v3996_v52, %v3994_v50  ;;  %v3923_v61 = vpop.xlane.xlu1 %3922  ;;  %v4729_v57 = vadd.f32 %v4654_v45, %v4653_v3  ;;  %v14572_v33 = vld [vmem:[#allocation115_spill] sm:$0xff]  ;;  %v14573_v55 = vld [vmem:[#allocation116_spill] sm:$0xff] }
 0x85f   : > { %9112 = vpow.bf16 %v4105_v24  ;;  %v3926_v17 = vpop.xlane.xlu0 %3925  ;;  %v12717_v60 = vadd.f32 %v4660_v53, %v4659_v4  ;;  %4541 = vadd.xlane.f32.xlu0 %v4540_v58  ;;  %v3997_v47 = vsub.f32 %v14570_v5, %v3923_v61  ;;  %v3998_v8 = vsub.f32 %v14571_v12, %v3923_v61  ;;  %4538 = vadd.xlane.f32.xlu1 %v4537_v26  ;;  %v14575_v61 = vld [vmem:[#allocation158_spill] sm:$0xff]  ;;  %v14579_v12 = vld [vmem:[#allocation123_spill] sm:$0xff] }
 0x860   : > { %v4108_v20 = vmul.bf16 1069105081, %v4039_v10  ;;  %v3999_v48 = vsub.f32 %v14572_v33, %v3926_v17  ;;  %9114 = vpow.bf16 %v4399_v19  ;;  %v4111_v21 = vmul.bf16 1069105081, %v4040_v29  ;;  %v14576_v29 = vld [vmem:[#allocation160_spill] sm:$0xff] }
 0x861   : > { %v12722_v6 = vpop.eup %9102  ;;  %v4000_v50 = vsub.f32 %v14573_v55, %v3926_v17  ;;  %v4871_v24 = vpack.c.bf16 %v9101_v13, %v9099_v56  ;;  %v4402_v3 = vmul.bf16 1069105081, %v12518_v40  ;;  %v4735_v53 = vadd.f32 %v4658_v36, %v4657_v32  ;;  %v14577_v56 = vld [vmem:[#allocation121_spill] sm:$0xff]  ;;  %v14578_v40 = vld [vmem:[#allocation122_spill] sm:$0xff]  ;;  %v14580_v32 = vld [vmem:[#allocation124_spill] sm:$0xff] }
 0x862   : > { %v12725_v30 = vpop.eup %9104  ;;  %v4041_v45 = vpack.c.bf16 %v3999_v48, %v3997_v47  ;;  %v4467_v4 = vunpack.c.h.bf16 %v12722_v6  ;;  %v3929_v10 = vpop.xlane.xlu1 %3928  ;;  %v4465_v17 = vunpack.c.l.bf16 %v12722_v6  ;;  %9116 = vpow.bf16 %v4108_v20 }
 0x863   : > { %v12729_v52 = vpop.eup %9106  ;;  %v4042_v58 = vpack.c.bf16 %v4000_v50, %v3998_v8  ;;  %v4890_v5 = vmul.bf16 %v14575_v61, %v4871_v24  ;;  %v3932_v19 = vpop.xlane.xlu0 %3931  ;;  %v4889_v26 = vmul.bf16 %v14576_v29, %v4871_v24  ;;  %4733 = vadd.xlane.f32.xlu0 %v4732_v63  ;;  %v4001_v13 = vsub.f32 %v14577_v56, %v3929_v10  ;;  %v14581_v50 = vld [vmem:[#allocation73_spill] sm:$0xff] }
 0x864   : > { %14574 = vst [vmem:[#allocation166_spill] sm:$0xff] %v12729_v52  ;;  %v4002_v47 = vsub.f32 %v14578_v40, %v3929_v10  ;;  %v4003_v33 = vsub.f32 %v14579_v12, %v3932_v19  ;;  %9118 = vpow.bf16 %v4111_v21  ;;  %4730 = vadd.xlane.f32.xlu1 %v4729_v57  ;;  %v4004_v36 = vsub.f32 %v14580_v32, %v3932_v19  ;;  %v12740_v55 = vpop.eup %9108  ;;  %v14582_v40 = vld [vmem:[#allocation129_spill] sm:$0xff]  ;;  %v14583_v32 = vld [vmem:[#allocation130_spill] sm:$0xff] }
 0x865   : > { %5684 = vmatprep.mubr.bf16.mxu0 %v4890_v5  ;;  %v4468_v8 = vunpack.c.h.bf16 %v12725_v30  ;;  %v4466_v48 = vunpack.c.l.bf16 %v12725_v30  ;;  %v4405_v20 = vmul.bf16 1069105081, %v14581_v50  ;;  %v4663_v24 = vunpack.c.h.bf16 %v12713_v43 }
 0x866   : > { %v12743_v63 = vpack.c.bf16 %v4003_v33, %v4001_v13  ;;  %5685 = vmatmul.mubr.bf16.gmra.mrb[216].mxu0 %v4889_v26  ;;  %v4664_v10 = vunpack.c.h.bf16 %v12729_v52  ;;  %v12747_v21 = vpack.c.bf16 %v4004_v36, %v4002_v47  ;;  %v3935_v5 = vpop.xlane.xlu1 %3934  ;;  %v4661_v29 = vunpack.c.l.bf16 %v12713_v43  ;;  %v14584_v13 = vld [vmem:[#allocation131_spill] sm:$0xff]  ;;  %v14586_v47 = vld [vmem:[#allocation132_spill] sm:$0xff] }
 0x867   : > { %v4546_v57 = vadd.f32 %v4468_v8, %v4467_v4  ;;  %v4543_v61 = vadd.f32 %v4466_v48, %v4465_v17  ;;  %v3938_v19 = vpop.xlane.xlu0 %3937  ;;  %v4114_v56 = vmul.bf16 1069105081, %v4041_v45  ;;  %v4005_v12 = vsub.f32 %v14582_v40, %v3935_v5 }
 0x868   : > { %v4006_v50 = vsub.f32 %v14583_v32, %v3935_v5  ;;  %v4007_v33 = vsub.f32 %v14584_v13, %v3938_v19  ;;  %9120 = vpow.bf16 %v4402_v3  ;;  %v4117_v2 = vmul.bf16 1069105081, %v4042_v58  ;;  %v14589_v32 = vld [vmem:[#allocation134_spill] sm:$0xff] }
 0x869   : > { %v12753_v26 = vpop.eup %9110  ;;  %4547 = vadd.xlane.f32.xlu0 %v4546_v57  ;;  %4544 = vadd.xlane.f32.xlu1 %v4543_v61  ;;  %v4008_v4 = vsub.f32 %v14586_v47, %v3938_v19  ;;  %v4662_v17 = vunpack.c.l.bf16 %v12729_v52  ;;  %9122 = vpow.bf16 %v4405_v20  ;;  %v4408_v5 = vmul.bf16 1069105081, %v12545_v39  ;;  %v14588_v20 = vld [vmem:[#allocation133_spill] sm:$0xff]  ;;  %v14591_v39 = vld [vmem:[#allocation136_spill] sm:$0xff] }
 0x86a   : > { %14585 = vst [vmem:[#allocation83_spill] sm:$0xff] %v12753_v26  ;;  %v12757_v36 = vpop.eup %9112  ;;  %v12759_v45 = vpack.c.bf16 %v4007_v33, %v4005_v12  ;;  %v4471_v8 = vunpack.c.h.bf16 %v12753_v26  ;;  %v4469_v48 = vunpack.c.l.bf16 %v12753_v26  ;;  %v3941_v3 = vpop.xlane.xlu1 %3940  ;;  %9124 = vpow.bf16 %v4114_v56  ;;  %v14590_v33 = vld [vmem:[#allocation135_spill] sm:$0xff] }
 0x86b   : > { %14587 = vst [vmem:[#allocation84_spill] sm:$0xff] %v12757_v36  ;;  %v12764_v40 = vpack.c.bf16 %v4008_v4, %v4006_v50  ;;  %v3944_v58 = vpop.xlane.xlu0 %3943  ;;  %v4472_v57 = vunpack.c.h.bf16 %v12757_v36  ;;  %v4470_v61 = vunpack.c.l.bf16 %v12757_v36  ;;  %v12768_v19 = vpop.eup %9114  ;;  %v4009_v12 = vsub.f32 %v14588_v20, %v3941_v3 }
 0x86c   : > { %v4010_v13 = vsub.f32 %v14589_v32, %v3941_v3  ;;  %v4011_v47 = vsub.f32 %v14590_v33, %v3944_v58  ;;  %9126 = vpow.bf16 %v4117_v2  ;;  %v4012_v50 = vsub.f32 %v14591_v39, %v3944_v58 }
 0x86d   : > { %4739 = vadd.xlane.f32.xlu0 %v12717_v60  ;;  %4736 = vadd.xlane.f32.xlu1 %v4735_v53  ;;  %v4552_v4 = vadd.f32 %v4472_v57, %v4471_v8  ;;  %v4549_v43 = vadd.f32 %v4470_v61, %v4469_v48  ;;  %v4411_v52 = vmul.bf16 1069105081, %v12547_v49  ;;  %v12778_v36 = vpop.eup %9116  ;;  %v4744_v32 = vadd.f32 %v4664_v10, %v4663_v24  ;;  %v14592_v53 = vld [vmem:[#allocation141_spill] sm:$0xff]  ;;  %v14593_v8 = vld [vmem:[#allocation142_spill] sm:$0xff]  ;;  %v14594_v57 = vld [vmem:[#allocation143_spill] sm:$0xff] }
 0x86e   : > { %v12776_v26 = vpack.c.bf16 %v4011_v47, %v4009_v12  ;;  %v12780_v56 = vpack.c.bf16 %v4012_v50, %v4010_v13  ;;  %v3947_v20 = vpop.xlane.xlu1 %3946  ;;  %v4741_v33 = vadd.f32 %v4662_v17, %v4661_v29  ;;  %v4120_v60 = vmul.bf16 1069105081, %v12743_v63  ;;  %v14595_v12 = vld [vmem:[#allocation144_spill] sm:$0xff] }
 0x86f   : > { %v3950_v3 = vpop.xlane.xlu0 %3949  ;;  %v12782_v2 = vpop.eup %9118  ;;  %v4013_v58 = vsub.f32 %v14592_v53, %v3947_v20  ;;  %v4014_v48 = vsub.f32 %v14593_v8, %v3947_v20  ;;  %9128 = vpow.bf16 %v4408_v5  ;;  %v4123_v61 = vmul.bf16 1069105081, %v12747_v21 }
 0x870   : > { %v4015_v49 = vsub.f32 %v14594_v57, %v3950_v3  ;;  %v4016_v13 = vsub.f32 %v14595_v12, %v3950_v3  ;;  %v4667_v24 = vunpack.c.h.bf16 %v12740_v55  ;;  %9130 = vpow.bf16 %v4411_v52 }
 0x871   : > { %4553 = vadd.xlane.f32.xlu0 %v4552_v4  ;;  %4550 = vadd.xlane.f32.xlu1 %v4549_v43  ;;  %v4414_v10 = vmul.bf16 1069105081, %v12617_v16  ;;  %v4475_v63 = vunpack.c.h.bf16 %v12778_v36  ;;  %v4476_v47 = vunpack.c.h.bf16 %v12782_v2  ;;  %v4473_v5 = vunpack.c.l.bf16 %v12778_v36 }
 0x872   : > { %v12792_v29 = vpack.c.bf16 %v4015_v49, %v4013_v58  ;;  %v12795_v17 = vpack.c.bf16 %v4016_v13, %v4014_v48  ;;  %v4474_v21 = vunpack.c.l.bf16 %v12782_v2  ;;  %9132 = vpow.bf16 %v4120_v60 }
 0x873   : > { %v12800_v43 = vpop.eup %9120  ;;  %v4668_v39 = vunpack.c.h.bf16 %v12768_v19  ;;  %v4665_v52 = vunpack.c.l.bf16 %v12740_v55  ;;  %v4666_v16 = vunpack.c.l.bf16 %v12768_v19  ;;  %9134 = vpow.bf16 %v4123_v61 }
 0x874   : > { %v12805_v50 = vpop.eup %9122  ;;  %v4506_v4 = vpop.xlane.xlu0 %4505  ;;  %v4417_v20 = vmul.bf16 1069105081, %v12619_v59  ;;  %9136 = vpow.bf16 %v4414_v10  ;;  %v4558_v58 = vadd.f32 %v4476_v47, %v4475_v63  ;;  %v4555_v60 = vadd.f32 %v4474_v21, %v4473_v5 }
 0x875   : > { %4745 = vadd.xlane.f32.xlu0 %v4744_v32  ;;  %4742 = vadd.xlane.f32.xlu1 %v4741_v33  ;;  %v12808_v3 = vpop.eup %9124  ;;  %v4503_v53 = vpop.xlane.xlu1 %4502  ;;  %v4126_v48 = vmul.bf16 1069105081, %v12759_v45  ;;  %v4750_v57 = vadd.f32 %v4668_v39, %v4667_v24  ;;  %v4747_v49 = vadd.f32 %v4666_v16, %v4665_v52  ;;  %v12816_v32 = vld [vmem:[%s13931_s10] sm:$0xff]   ;;  %v4129_v59 = vmul.bf16 1069105081, %v12764_v40 }
 0x876   : > { %9138 = vrcp.f32 %v4503_v53  ;;  %v4671_v61 = vunpack.c.h.bf16 %v12800_v43  ;;  %v4669_v12 = vunpack.c.l.bf16 %v12800_v43  ;;  %v4672_v24 = vunpack.c.h.bf16 %v12805_v50  ;;  %8403 = vmatprep.subr.bf16.mxu1 %v12816_v32 }
 0x877   : > { %v12810_v8 = vpop.eup %9126  ;;  %9140 = vrcp.f32 %v4506_v4  ;;  %v4479_v40 = vunpack.c.h.bf16 %v12808_v3  ;;  %v4477_v47 = vunpack.c.l.bf16 %v12808_v3  ;;  %v4670_v39 = vunpack.c.l.bf16 %v12805_v50 }
 0x878   : > { %v4238_v33 = vpop.xlane.xlu0 %4237  ;;  %9142 = vpow.bf16 %v4417_v20  ;;  %v4480_v63 = vunpack.c.h.bf16 %v12810_v8  ;;  %v4478_v5 = vunpack.c.l.bf16 %v12810_v8  ;;  %v4420_v16 = vmul.bf16 1069105081, %v12661_v34 }
 0x879   : > { %4559 = vadd.xlane.f32.xlu0 %v4558_v58  ;;  %4556 = vadd.xlane.f32.xlu1 %v4555_v60  ;;  %v4303_v45 = vsub.f32 %v14535_v44, %v4238_v33  ;;  %v4304_v13 = vsub.f32 %v14536_v35, %v4238_v33  ;;  %9144 = vpow.bf16 %v4126_v48  ;;  %v4132_v20 = vmul.bf16 1069105081, %v12776_v26 }
 0x87a   : > { %v4235_v10 = vpop.xlane.xlu1 %4234  ;;  %v12829_v21 = vpop.eup %9128  ;;  %9146 = vpow.bf16 %v4129_v59  ;;  %v4564_v60 = vadd.f32 %v4480_v63, %v4479_v40  ;;  %v4561_v48 = vadd.f32 %v4478_v5, %v4477_v47  ;;  %v4135_v34 = vmul.bf16 1069105081, %v12780_v56  ;;  %v14598_v56 = vld [vmem:[#allocation152_spill] sm:$0xff] }
 0x87b   : > { %14596 = vst [vmem:[#allocation81_spill] sm:$0xff] %v12829_v21  ;;  %v4301_v44 = vsub.f32 %v14539_v1, %v4235_v10  ;;  %v4302_v35 = vsub.f32 %v14540_v11, %v4235_v10  ;;  %v12834_v52 = vpop.eup %9130  ;;  %v4423_v26 = vmul.bf16 1069105081, %v12666_v51 }
 0x87c   : > { %v4512_v4 = vpop.xlane.xlu0 %4511 }
 0x87d   : > { %4751 = vadd.xlane.f32.xlu0 %v4750_v57  ;;  %4748 = vadd.xlane.f32.xlu1 %v4747_v49  ;;  %v12838_v53 = vpack.c.bf16 %v4303_v45, %v4301_v44  ;;  %v12840_v58 = vpack.c.bf16 %v4304_v13, %v4302_v35  ;;  %9148 = vrcp.f32 %v4512_v4  ;;  %v12842_v1 = vpop.eup %9132  ;;  %v4756_v57 = vadd.f32 %v4672_v24, %v4671_v61  ;;  %v14600_v4 = vld [vmem:[#allocation150_spill] sm:$0xff] }
 0x87e   : > { %14597 = vst [vmem:[#allocation82_spill] sm:$0xff] %v12842_v1  ;;  %v4509_v11 = vpop.xlane.xlu1 %4508  ;;  %v12844_v33 = vpop.eup %9134  ;;  %v4753_v49 = vadd.f32 %v4670_v39, %v4669_v12  ;;  %v4675_v45 = vunpack.c.h.bf16 %v12829_v21  ;;  %v4673_v13 = vunpack.c.l.bf16 %v12829_v21  ;;  %v4676_v61 = vunpack.c.h.bf16 %v12834_v52  ;;  %v14599_v39 = vld [vmem:[#allocation149_spill] sm:$0xff] }
 0x87f   : > { %9150 = vrcp.f32 %v4509_v11  ;;  %v12850_v10 = vpop.eup %9136  ;;  %v4483_v51 = vunpack.c.h.bf16 %v12842_v1  ;;  %v4484_v5 = vunpack.c.h.bf16 %v12844_v33  ;;  %v4481_v44 = vunpack.c.l.bf16 %v12842_v1 }
 0x880   : > { %9152 = vpow.bf16 %v4420_v16  ;;  %v3956_v59 = vpop.xlane.xlu0 %3955  ;;  %v9139_v40 = vpop.eup %9138  ;;  %v4482_v35 = vunpack.c.l.bf16 %v12844_v33 }
 0x881   : > { %4565 = vadd.xlane.f32.xlu0 %v4564_v60  ;;  %4562 = vadd.xlane.f32.xlu1 %v4561_v48  ;;  %9154 = vpow.bf16 %v4132_v20  ;;  %v4019_v63 = vsub.f32 %v14545_v62, %v3956_v59  ;;  %v4020_v47 = vsub.f32 %v14598_v56, %v3956_v59  ;;  %v9141_v12 = vpop.eup %9140  ;;  %v4138_v60 = vmul.bf16 1069105081, %v12792_v29 }
 0x882   : > { %v3953_v24 = vpop.xlane.xlu1 %3952  ;;  %9156 = vpow.bf16 %v4135_v34  ;;  %v4821_v62 = vpack.c.bf16 %v9141_v12, %v9139_v40  ;;  %v4141_v48 = vmul.bf16 1069105081, %v12795_v17  ;;  %v4674_v56 = vunpack.c.l.bf16 %v12834_v52 }
 0x883   : > { %v4017_v16 = vsub.f32 %v14599_v39, %v3953_v24  ;;  %v4018_v20 = vsub.f32 %v14600_v4, %v3953_v24  ;;  %v12861_v11 = vpop.eup %9142  ;;  %9158 = vpow.bf16 %v4423_v26  ;;  %v14601_v39 = vld [vmem:[#allocation74_spill] sm:$0xff]  ;;  %v14602_v24 = vld [vmem:[#allocation77_spill] sm:$0xff]  ;;  %v4570_v29 = vadd.f32 %v4484_v5, %v4483_v51 }
 0x884   : > { %v4518_v59 = vpop.xlane.xlu0 %4517  ;;  %v4837_v1 = vmul.bf16 %v14601_v39, %v4821_v62  ;;  %v4838_v40 = vmul.bf16 %v14602_v24, %v4821_v62  ;;  %v12872_v12 = vpop.eup %9144  ;;  %v4567_v4 = vadd.f32 %v4482_v35, %v4481_v44  ;;  %v4426_v51 = vmul.bf16 1069105081, %v12838_v53  ;;  %v14604_v24 = vld [vmem:[#allocation164_spill] sm:$0xff] }
 0x885   : > { %4757 = vadd.xlane.f32.xlu0 %v4756_v57  ;;  %4754 = vadd.xlane.f32.xlu1 %v4753_v49  ;;  %v12866_v21 = vpack.c.bf16 %v4019_v63, %v4017_v16  ;;  %v12868_v34 = vpack.c.bf16 %v4020_v47, %v4018_v20  ;;  %9160 = vrcp.f32 %v4518_v59  ;;  %v12874_v17 = vpop.eup %9146  ;;  %v4762_v63 = vadd.f32 %v4676_v61, %v4675_v45 }
 0x886   : > { %v4515_v26 = vpop.xlane.xlu1 %4514  ;;  %5507 = vmatprep.mubr.bf16.mxu1 %v4838_v40  ;;  %v4759_v16 = vadd.f32 %v4674_v56, %v4673_v13  ;;  %v4487_v20 = vunpack.c.h.bf16 %v12872_v12  ;;  %v4485_v62 = vunpack.c.l.bf16 %v12872_v12  ;;  %v4488_v35 = vunpack.c.h.bf16 %v12874_v17 }
 0x887   : > { %v9149_v57 = vpop.eup %9148  ;;  %9162 = vrcp.f32 %v4515_v26  ;;  %5508 = vmatmul.mubr.bf16.vlgmr.msra.gmra.mrb[144].mxu1 %v4837_v1  ;;  %v4679_v1 = vunpack.c.h.bf16 %v12850_v10  ;;  %v4680_v45 = vunpack.c.h.bf16 %v12861_v11  ;;  %v4677_v13 = vunpack.c.l.bf16 %v12850_v10 }
 0x888   : > { %9164 = vpow.bf16 %v4138_v60  ;;  %v4716_v49 = vpop.xlane.xlu0 %4715  ;;  %v4486_v60 = vunpack.c.l.bf16 %v12874_v17  ;;  %8404 = vmatpush3.bf16.msra.mxu1 %v12816_v32  ;;  %v4429_v53 = vmul.bf16 1069105081, %v12840_v58  ;;  %v4678_v32 = vunpack.c.l.bf16 %v12861_v11 }
 0x889   : > { %4571 = vadd.xlane.f32.xlu0 %v4570_v29  ;;  %4568 = vadd.xlane.f32.xlu1 %v4567_v4  ;;  %v9151_v47 = vpop.eup %9150  ;;  %9166 = vpow.bf16 %v4141_v48  ;;  %v14603_v48 = vld [vmem:[#allocation162_spill] sm:$0xff]  ;;  %v4144_v29 = vmul.bf16 1069105081, %v12866_v21 }
 0x88a   : > { %v4713_v5 = vpop.xlane.xlu1 %4712  ;;  %v4822_v44 = vpack.c.bf16 %v9149_v57, %v9151_v47  ;;  %v4576_v57 = vadd.f32 %v4488_v35, %v4487_v20  ;;  %v4573_v58 = vadd.f32 %v4486_v60, %v4485_v62 }
 0x88b   : > { %v12882_v59 = vpop.eup %9152  ;;  %9168 = vrcp.f32 %v4713_v5  ;;  %v4768_v5 = vadd.f32 %v4680_v45, %v4679_v1 }
 0x88c   : > { %v12887_v61 = vpop.eup %9154  ;;  %9170 = vrcp.f32 %v4716_v49  ;;  %v4840_v56 = vmul.bf16 %v14603_v48, %v4822_v44  ;;  %v4524_v39 = vpop.xlane.xlu0 %4523  ;;  %v4839_v40 = vmul.bf16 %v14604_v24, %v4822_v44  ;;  %v4765_v44 = vadd.f32 %v4678_v32, %v4677_v13 }
 0x88d   : > { %4763 = vadd.xlane.f32.xlu0 %v4762_v63  ;;  %4760 = vadd.xlane.f32.xlu1 %v4759_v16  ;;  %9172 = vrcp.f32 %v4524_v39  ;;  %v12893_v26 = vpop.eup %9156  ;;  %v4147_v63 = vmul.bf16 1069105081, %v12868_v34  ;;  %v4491_v20 = vunpack.c.h.bf16 %v12887_v61  ;;  %v4489_v60 = vunpack.c.l.bf16 %v12887_v61 }
 0x88e   : > { %9174 = vpow.bf16 %v4426_v51  ;;  %v4521_v4 = vpop.xlane.xlu1 %4520  ;;  %5515 = vmatprep.mubr.bf16.mxu1 %v4840_v56  ;;  %v12896_v49 = vpop.eup %9158  ;;  %v4492_v62 = vunpack.c.h.bf16 %v12893_v26  ;;  %v4683_v39 = vunpack.c.h.bf16 %v12882_v59 }
 0x88f   : > { %9176 = vrcp.f32 %v4521_v4  ;;  %v9161_v47 = vpop.eup %9160  ;;  %5516 = vmatmul.mubr.bf16.gmra.mrb[148].mxu1 %v4839_v40 }
 0x890   : > { %9178 = vpow.bf16 %v4429_v53  ;;  %v4244_v16 = vpop.xlane.xlu0 %4243  ;;  %v4490_v53 = vunpack.c.l.bf16 %v12893_v26 }
 0x891   : > { %4577 = vadd.xlane.f32.xlu0 %v4576_v57  ;;  %4574 = vadd.xlane.f32.xlu1 %v4573_v58  ;;  %v9163_v48 = vpop.eup %9162  ;;  %v4307_v21 = vsub.f32 %v14552_v23, %v4244_v16  ;;  %v4308_v51 = vsub.f32 %v14553_v0, %v4244_v16  ;;  %9180 = vpow.bf16 %v4144_v29  ;;  %v14605_v0 = vld [vmem:[#allocation79_spill] sm:$0xff]  ;;  %v14606_v29 = vld [vmem:[#allocation78_spill] sm:$0xff]  ;;  %v4681_v57 = vunpack.c.l.bf16 %v12882_v59 }
 0x892   : > { %v4241_v34 = vpop.xlane.xlu1 %4240  ;;  %v4823_v35 = vpack.c.bf16 %v9161_v47, %v9163_v48  ;;  %9182 = vpow.bf16 %v4147_v63  ;;  %v4579_v63 = vadd.f32 %v4490_v53, %v4489_v60  ;;  %v4682_v47 = vunpack.c.l.bf16 %v12896_v49  ;;  %v14608_v53 = vld [vmem:[#allocation159_spill] sm:$0xff] }
 0x893   : > { %v12905_v56 = vpop.eup %9164  ;;  %v4305_v1 = vsub.f32 %v14555_v46, %v4241_v34  ;;  %v4306_v23 = vsub.f32 %v14556_v15, %v4241_v34  ;;  %v4582_v46 = vadd.f32 %v4492_v62, %v4491_v20  ;;  %v4684_v15 = vunpack.c.h.bf16 %v12896_v49  ;;  %v14607_v62 = vld [vmem:[#allocation157_spill] sm:$0xff] }
 0x894   : > { %v12909_v45 = vpop.eup %9166  ;;  %v4842_v13 = vmul.bf16 %v14605_v0, %v4823_v35  ;;  %v4841_v4 = vmul.bf16 %v14606_v29, %v4823_v35  ;;  %v4493_v34 = vunpack.c.l.bf16 %v12905_v56 }
 0x895   : > { %4769 = vadd.xlane.f32.xlu0 %v4768_v5  ;;  %4766 = vadd.xlane.f32.xlu1 %v4765_v44  ;;  %v9169_v32 = vpop.eup %9168  ;;  %v4339_v24 = vpack.c.bf16 %v4307_v21, %v4305_v1  ;;  %v4340_v40 = vpack.c.bf16 %v4308_v51, %v4306_v23  ;;  %v4495_v21 = vunpack.c.h.bf16 %v12905_v56  ;;  %v4496_v51 = vunpack.c.h.bf16 %v12909_v45 }
 0x896   : > { %v9171_v58 = vpop.eup %9170  ;;  %5523 = vmatprep.mubr.bf16.mxu1 %v4842_v13  ;;  %v4494_v23 = vunpack.c.l.bf16 %v12909_v45  ;;  %v4774_v0 = vadd.f32 %v4684_v15, %v4683_v39  ;;  %v4771_v13 = vadd.f32 %v4682_v47, %v4681_v57 }
 0x897   : > { %v9173_v16 = vpop.eup %9172  ;;  %v4432_v5 = vmul.bf16 1069105081, %v4339_v24  ;;  %v4435_v44 = vmul.bf16 1069105081, %v4340_v40  ;;  %v4872_v48 = vpack.c.bf16 %v9171_v58, %v9169_v32  ;;  %5524 = vmatmul.mubr.bf16.gmra.mrb[152].mxu1 %v4841_v4  ;;  %v4588_v4 = vadd.f32 %v4496_v51, %v4495_v21 }
 0x898   : > { %v4585_v58 = vadd.f32 %v4494_v23, %v4493_v34 }
 0x899   : > { %4583 = vadd.xlane.f32.xlu0 %v4582_v46  ;;  %4580 = vadd.xlane.f32.xlu1 %v4579_v63  ;;  %v12920_v35 = vpop.eup %9174  ;;  %9184 = vpow.bf16 %v4432_v5  ;;  %v4892_v60 = vmul.bf16 %v14607_v62, %v4872_v48  ;;  %v4891_v1 = vmul.bf16 %v14608_v53, %v4872_v48  ;;  %v14609_v46 = vld [vmem:[#allocation80_spill] sm:$0xff] }
 0x89a   : > { %v9177_v20 = vpop.eup %9176  ;;  %9186 = vpow.bf16 %v4435_v44  ;;  %v4687_v39 = vunpack.c.h.bf16 %v12920_v35  ;;  %v4685_v15 = vunpack.c.l.bf16 %v12920_v35 }
 0x89b   : > { %v4824_v32 = vpack.c.bf16 %v9173_v16, %v9177_v20  ;;  %v12925_v24 = vpop.eup %9178  ;;  %5692 = vmatprep.mubr.bf16.mxu0 %v4892_v60 }
 0x89c   : > { %v12928_v29 = vpop.eup %9180  ;;  %5693 = vmatmul.mubr.bf16.gmra.mrb[220].mxu0 %v4891_v1  ;;  %v4688_v57 = vunpack.c.h.bf16 %v12925_v24  ;;  %v4686_v47 = vunpack.c.l.bf16 %v12925_v24 }
 0x89d   : > { %4775 = vadd.xlane.f32.xlu0 %v4774_v0  ;;  %4772 = vadd.xlane.f32.xlu1 %v4771_v13  ;;  %v4844_v40 = vmul.bf16 %v12591_v22, %v4824_v32  ;;  %v4843_v63 = vmul.bf16 %v14609_v46, %v4824_v32  ;;  %v12931_v5 = vpop.eup %9182  ;;  %v4499_v22 = vunpack.c.h.bf16 %v12928_v29  ;;  %v4497_v44 = vunpack.c.l.bf16 %v12928_v29  ;;  %v9478_v46 = vld [vmem:[%s10803_s18 + $0x8] sm:$0xff] }
 0x89e   : > { %v4500_v16 = vunpack.c.h.bf16 %v12931_v5  ;;  %v4498_v48 = vunpack.c.l.bf16 %v12931_v5  ;;  %v4780_v21 = vadd.f32 %v4688_v57, %v4687_v39  ;;  %v4777_v51 = vadd.f32 %v4686_v47, %v4685_v15  ;;  %v9480_v39 = vld [vmem:[%s10803_s18 + $0x20] sm:$0xff]  ;;  %v9481_v57 = vld [vmem:[%s10803_s18 + $0x28] sm:$0xff]  ;;  %v9482_v15 = vld [vmem:[%s10803_s18 + $0x30] sm:$0xff] }
 0x89f   : > { %5531 = vmatprep.mubr.bf16.mxu1 %v4844_v40  ;;  %v8765_v40 = vld [vmem:[%s13931_s10 + $0x8] sm:$0xff]   ;;  %v9483_v47 = vld [vmem:[%s10803_s18 + $0x38] sm:$0xff] }
 0x8a0   : > { %5532 = vmatmul.mubr.bf16.gmra.mrb[156].mxu1 %v4843_v63  ;;  %v4594_v62 = vadd.f32 %v4500_v16, %v4499_v22  ;;  %v4591_v60 = vadd.f32 %v4498_v48, %v4497_v44  ;;  %8405 = vmatprep.subr.bf16.mxu1 %v8765_v40  ;;  %v9479_v63 = vld [vmem:[%s10803_s18 + $0x18] sm:$0xff]  ;;  %v9484_v22 = vld [vmem:[%s10803_s18 + $0x40] sm:$0xff]  ;;  %v9485_v16 = vld [vmem:[%s10803_s18 + $0x48] sm:$0xff] }
 0x8a1   : > { %4589 = vadd.xlane.f32.xlu0 %v4588_v4  ;;  %4586 = vadd.xlane.f32.xlu1 %v4585_v58  ;;  %v9476_v4 = vld [vmem:[%s10803_s18] sm:$0xff]  ;;  %v9477_v58 = vld [vmem:[%s10803_s18 + $0x10] sm:$0xff]  ;;  %v9487_v48 = vld [vmem:[%s10803_s18 + $0x58] sm:$0xff] }
 0x8a2   : > { %8406 = vmatpush3.bf16.msra.mxu1 %v8765_v40  ;;  %v9486_v44 = vld [vmem:[%s10803_s18 + $0x50] sm:$0xff] }
 0x8a3   : > { %v9494_v40 = vld [vmem:[%s10803_s18 + $0x90] sm:$0xff] }
 0x8a4   : > { %v12941_v34 = vpop.eup %9184 }
 0x8a5   : > { %4781 = vadd.xlane.f32.xlu0 %v4780_v21  ;;  %4778 = vadd.xlane.f32.xlu1 %v4777_v51  ;;  %v12943_v20 = vpop.eup %9186  ;;  %v4691_v53 = vunpack.c.h.bf16 %v12941_v34  ;;  %v4689_v23 = vunpack.c.l.bf16 %v12941_v34  ;;  %v9488_v21 = vld [vmem:[%s10803_s18 + $0x60] sm:$0xff]  ;;  %v9489_v51 = vld [vmem:[%s10803_s18 + $0x68] sm:$0xff] }
 0x8a6   : > { %v4692_v1 = vunpack.c.h.bf16 %v12943_v20  ;;  %v4690_v0 = vunpack.c.l.bf16 %v12943_v20 }
 0x8a8   : > { %v4786_v13 = vadd.f32 %v4692_v1, %v4691_v53  ;;  %v4783_v32 = vadd.f32 %v4690_v0, %v4689_v23  ;;  %v9491_v1 = vld [vmem:[%s10803_s18 + $0x78] sm:$0xff]  ;;  %v9492_v23 = vld [vmem:[%s10803_s18 + $0x80] sm:$0xff] }
 0x8a9   : > { %4595 = vadd.xlane.f32.xlu0 %v4594_v62  ;;  %4592 = vadd.xlane.f32.xlu1 %v4591_v60  ;;  %v9490_v62 = vld [vmem:[%s10803_s18 + $0x70] sm:$0xff] }
 0x8ad   : > { %4787 = vadd.xlane.f32.xlu0 %v4786_v13  ;;  %4784 = vadd.xlane.f32.xlu1 %v4783_v32  ;;  %v9493_v32 = vld [vmem:[%s10803_s18 + $0x88] sm:$0xff] }
 0x8be   : > { %6544 = vrot.lane.b32.xlu1 %v9476_v4, %s9573_s30 }
 0x8c2   : > { %6548 = vrot.lane.b32.xlu1 %v9477_v58, %s9573_s30 }
 0x8c3   : > { %6546 = vrot.lane.b32.xlu0 %v9478_v46, %s9573_s30  ;;  %v9495_v46 = vld [vmem:[%s10803_s18 + $0x98] sm:$0xff] }
 0x8c6   : > { %6550 = vrot.lane.b32.xlu1 %v9479_v63, %s9573_s30 }
 0x8c7   : > { %6552 = vrot.lane.b32.xlu0 %v9480_v39, %s9573_s30  ;;  %v9496_v39 = vld [vmem:[%s10803_s18 + $0xa0] sm:$0xff] }
 0x8ca   : > { %6554 = vrot.lane.b32.xlu1 %v9481_v57, %s9573_s30 }
 0x8cb   : > { %6556 = vrot.lane.b32.xlu0 %v9482_v15, %s9573_s30 }
 0x8ce   : > { %6558 = vrot.lane.b32.xlu1 %v9483_v47, %s9573_s30 }
 0x8cf   : > { %6560 = vrot.lane.b32.xlu0 %v9484_v22, %s9573_s30 }
 0x8d2   : > { %6562 = vrot.lane.b32.xlu1 %v9485_v16, %s9573_s30  ;;  %v9497_v16 = vld [vmem:[%s10803_s18 + $0xa8] sm:$0xff] }
 0x8d3   : > { %6564 = vrot.lane.b32.xlu0 %v9486_v44, %s9573_s30 }
 0x8d6   : > { %6566 = vrot.lane.b32.xlu1 %v9487_v48, %s9573_s30 }
 0x8d7   : > { %6568 = vrot.lane.b32.xlu0 %v9488_v21, %s9573_s30 }
 0x8da   : > { %6570 = vrot.lane.b32.xlu1 %v9489_v51, %s9573_s30  ;;  %v9498_v51 = vld [vmem:[%s10803_s18 + $0xb0] sm:$0xff] }
 0x8db   : > { %6572 = vrot.lane.b32.xlu0 %v9490_v62, %s9573_s30 }
 0x8dc   : > { %v4527_v60 = vpop.xlane.xlu1 %4526  ;;  %v4530_v53 = vpop.xlane.xlu0 %4529 }
 0x8dd   : > { %9188 = vrcp.f32 %v4527_v60 }
 0x8de   : > { %9190 = vrcp.f32 %v4530_v53  ;;  %6574 = vrot.lane.b32.xlu1 %v9491_v1, %s9573_s30 }
 0x8df   : > { %6576 = vrot.lane.b32.xlu0 %v9492_v23, %s9573_s30  ;;  %v9499_v23 = vld [vmem:[%s10803_s18 + $0xb8] sm:$0xff] }
 0x8e0   : > { %v4719_v0 = vpop.xlane.xlu1 %4718  ;;  %v4722_v13 = vpop.xlane.xlu0 %4721 }
 0x8e1   : > { %9192 = vrcp.f32 %v4719_v0  ;;  %v9500_v0 = vld [vmem:[%s10803_s18 + $0xc0] sm:$0xff] }
 0x8e2   : > { %9194 = vrcp.f32 %v4722_v13  ;;  %6578 = vrot.lane.b32.xlu1 %v9493_v32, %s9573_s30 }
 0x8e3   : > { %6580 = vrot.lane.b32.xlu0 %v9494_v40, %s9573_s30 }
 0x8e4   : > { %v4536_v4 = vpop.xlane.xlu0 %4535  ;;  %v4533_v58 = vpop.xlane.xlu1 %4532 }
 0x8e5   : > { %9196 = vrcp.f32 %v4536_v4 }
 0x8e6   : > { %6582 = vrot.lane.b32.xlu1 %v9495_v46, %s9573_s30  ;;  %9198 = vrcp.f32 %v4533_v58  ;;  %v9501_v46 = vld [vmem:[%s10803_s18 + $0xc8] sm:$0xff] }
 0x8e7   : > { %v9189_v63 = vpop.eup %9188  ;;  %6584 = vrot.lane.b32.xlu0 %v9496_v39, %s9573_s30 }
 0x8e8   : > { %v9191_v57 = vpop.eup %9190  ;;  %v4728_v15 = vpop.xlane.xlu0 %4727 }
 0x8e9   : > { %v4825_v47 = vpack.c.bf16 %v9191_v57, %v9189_v63  ;;  %v4725_v22 = vpop.xlane.xlu1 %4724  ;;  %9200 = vrcp.f32 %v4728_v15 }
 0x8ea   : > { %6586 = vrot.lane.b32.xlu1 %v9497_v16, %s9573_s30  ;;  %9202 = vrcp.f32 %v4725_v22  ;;  %v9503_v16 = vld [vmem:[%s10803_s18 + $0xd8] sm:$0xff] }
 0x8eb   : > { %v9193_v44 = vpop.eup %9192  ;;  %v4846_v48 = vmul.bf16 %v12649_v18, %v4825_v47  ;;  %v4845_v21 = vmul.bf16 %v12643_v28, %v4825_v47  ;;  %6588 = vrot.lane.b32.xlu0 %v9498_v51, %s9573_s30 }
 0x8ec   : > { %v9195_v62 = vpop.eup %9194  ;;  %v4542_v60 = vpop.xlane.xlu0 %4541 }
 0x8ed   : > { %5539 = vmatprep.mubr.bf16.mxu1 %v4846_v48  ;;  %v4873_v53 = vpack.c.bf16 %v9195_v62, %v9193_v44  ;;  %v4539_v1 = vpop.xlane.xlu1 %4538  ;;  %9204 = vrcp.f32 %v4542_v60  ;;  %v9504_v44 = vld [vmem:[%s10803_s18 + $0xe0] sm:$0xff] }
 0x8ee   : > { %5540 = vmatmul.mubr.bf16.gmra.mrb[160].mxu1 %v4845_v21  ;;  %6590 = vrot.lane.b32.xlu1 %v9499_v23, %s9573_s30  ;;  %9206 = vrcp.f32 %v4539_v1  ;;  %v9506_v1 = vld [vmem:[%s10803_s18 + $0xf0] sm:$0xff] }
 0x8ef   : > { %v4894_v18 = vmul.bf16 %v12629_v37, %v4873_v53  ;;  %v4893_v28 = vmul.bf16 %v12625_v27, %v4873_v53  ;;  %6592 = vrot.lane.b32.xlu0 %v9500_v0, %s9573_s30  ;;  %v9197_v13 = vpop.eup %9196  ;;  %v9502_v37 = vld [vmem:[%s10803_s18 + $0xd0] sm:$0xff]  ;;  %v9505_v53 = vld [vmem:[%s10803_s18 + $0xe8] sm:$0xff] }
 0x8f0   : > { %v9199_v32 = vpop.eup %9198  ;;  %v4734_v40 = vpop.xlane.xlu0 %4733 }
 0x8f1   : > { %5700 = vmatprep.mubr.bf16.mxu0 %v4894_v18  ;;  %v4731_v4 = vpop.xlane.xlu1 %4730  ;;  %9208 = vrcp.f32 %v4734_v40  ;;  %v4826_v58 = vpack.c.bf16 %v9197_v13, %v9199_v32  ;;  %v9507_v32 = vld [vmem:[%s10803_s18 + $0xf8] sm:$0xff]  ;;  %v13029_v40 = vld [vmem:[%s13930_s9] sm:$0xff]   ;;  %s13675_s18 = scalar_lea.vmem [#allocation2], %s7353_s28 }
 0x8f2   : > { %5701 = vmatmul.mubr.bf16.gmra.mrb[224].mxu0 %v4893_v28  ;;  %6594 = vrot.lane.b32.xlu1 %v9501_v46, %s9573_s30  ;;  %9210 = vrcp.f32 %v4731_v4 }
 0x8f3   : > { %6596 = vrot.lane.b32.xlu0 %v9502_v37, %s9573_s30  ;;  %v9201_v27 = vpop.eup %9200  ;;  %v4848_v63 = vmul.bf16 %v12677_v9, %v4826_v58  ;;  %v4847_v39 = vmul.bf16 %v12672_v38, %v4826_v58  ;;  %8439 = vmatprep.subr.bf16.mxu1 %v13029_v40 }
 0x8f4   : > { %v9203_v57 = vpop.eup %9202 }
 0x8f5   : > { %5547 = vmatprep.mubr.bf16.mxu1 %v4848_v63  ;;  %v4874_v22 = vpack.c.bf16 %v9201_v27, %v9203_v57 }
 0x8f6   : > { %v4545_v15 = vpop.xlane.xlu1 %4544  ;;  %v4548_v47 = vpop.xlane.xlu0 %4547  ;;  %6598 = vrot.lane.b32.xlu1 %v9503_v16, %s9573_s30  ;;  %5548 = vmatmul.mubr.bf16.gmra.mrb[164].mxu1 %v4847_v39 }
 0x8f7   : > { %9212 = vrcp.f32 %v4545_v15  ;;  %6600 = vrot.lane.b32.xlu0 %v9504_v44, %s9573_s30  ;;  %v9205_v48 = vpop.eup %9204  ;;  %v4896_v9 = vmul.bf16 %v12633_v54, %v4874_v22  ;;  %v4895_v38 = vmul.bf16 %v12631_v31, %v4874_v22  ;;  %v14610_v44 = vld [vmem:[#allocation163_spill] sm:$0xff] }
 0x8f8   : > { %9214 = vrcp.f32 %v4548_v47  ;;  %v9207_v21 = vpop.eup %9206 }
 0x8f9   : > { %5708 = vmatprep.mubr.bf16.mxu0 %v4896_v9  ;;  %v4827_v60 = vpack.c.bf16 %v9205_v48, %v9207_v21 }
 0x8fa   : > { %v4737_v51 = vpop.xlane.xlu1 %4736  ;;  %v4740_v62 = vpop.xlane.xlu0 %4739  ;;  %6602 = vrot.lane.b32.xlu1 %v9505_v53, %s9573_s30  ;;  %5709 = vmatmul.mubr.bf16.gmra.mrb[228].mxu0 %v4895_v38 }
 0x8fb   : > { %9216 = vrcp.f32 %v4737_v51  ;;  %6604 = vrot.lane.b32.xlu0 %v9506_v1, %s9573_s30  ;;  %v9209_v23 = vpop.eup %9208  ;;  %v4850_v54 = vmul.bf16 %v12702_v14, %v4827_v60  ;;  %v4849_v31 = vmul.bf16 %v12697_v7, %v4827_v60  ;;  %v14611_v51 = vld [vmem:[#allocation84_spill] sm:$0xff]  ;;  %v14612_v60 = vld [vmem:[#allocation83_spill] sm:$0xff] }
 0x8fc   : > { %9218 = vrcp.f32 %v4740_v62  ;;  %v9211_v18 = vpop.eup %9210 }
 0x8fd   : > { %5555 = vmatprep.mubr.bf16.mxu1 %v4850_v54  ;;  %v4875_v13 = vpack.c.bf16 %v9209_v23, %v9211_v18  ;;  %v14613_v18 = vld [vmem:[#allocation166_spill] sm:$0xff] }
 0x8fe   : > { %v4551_v28 = vpop.xlane.xlu1 %4550  ;;  %v4554_v0 = vpop.xlane.xlu0 %4553  ;;  %6606 = vrot.lane.b32.xlu1 %v9507_v32, %s9573_s30  ;;  %5556 = vmatmul.mubr.bf16.gmra.mrb[168].mxu1 %v4849_v31 }
 0x8ff   : > { %9220 = vrcp.f32 %v4551_v28  ;;  %v4898_v14 = vmul.bf16 %v12663_v41, %v4875_v13  ;;  %v4897_v7 = vmul.bf16 %v12659_v42, %v4875_v13 }
 0x900   : > { %9222 = vrcp.f32 %v4554_v0  ;;  %v14614_v0 = vld [vmem:[#allocation161_spill] sm:$0xff] }
 0x901   : > { %v9213_v4 = vpop.eup %9212  ;;  %5716 = vmatprep.mubr.bf16.mxu0 %v4898_v14 }
 0x902   : > { %v9215_v58 = vpop.eup %9214  ;;  %v4743_v46 = vpop.xlane.xlu1 %4742  ;;  %5717 = vmatmul.mubr.bf16.gmra.mrb[232].mxu0 %v4897_v7 }
 0x903   : > { %v4746_v37 = vpop.xlane.xlu0 %4745  ;;  %9224 = vrcp.f32 %v4743_v46  ;;  %v4828_v27 = vpack.c.bf16 %v9215_v58, %v9213_v4 }
 0x904   : > { %9226 = vrcp.f32 %v4746_v37 }
 0x905   : > { %v9217_v63 = vpop.eup %9216  ;;  %v4852_v39 = vmul.bf16 %v12725_v30, %v4828_v27  ;;  %v4851_v57 = vmul.bf16 %v12722_v6, %v4828_v27 }
 0x906   : > { %v9219_v15 = vpop.eup %9218  ;;  %v4557_v41 = vpop.xlane.xlu1 %4556 }
 0x907   : > { %v4560_v47 = vpop.xlane.xlu0 %4559  ;;  %9228 = vrcp.f32 %v4557_v41  ;;  %5563 = vmatprep.mubr.bf16.mxu1 %v4852_v39  ;;  %v4876_v42 = vpack.c.bf16 %v9219_v15, %v9217_v63 }
 0x908   : > { %9230 = vrcp.f32 %v4560_v47  ;;  %5564 = vmatmul.mubr.bf16.gmra.mrb[172].mxu1 %v4851_v57 }
 0x909   : > { %v9221_v22 = vpop.eup %9220  ;;  %v4900_v16 = vmul.bf16 %v12689_v25, %v4876_v42  ;;  %v4899_v48 = vmul.bf16 %v14610_v44, %v4876_v42 }
 0x90a   : > { %v9223_v9 = vpop.eup %9222  ;;  %v4749_v38 = vpop.xlane.xlu1 %4748 }
 0x90b   : > { %v4752_v21 = vpop.xlane.xlu0 %4751  ;;  %9232 = vrcp.f32 %v4749_v38  ;;  %5724 = vmatprep.mubr.bf16.mxu0 %v4900_v16  ;;  %v4829_v30 = vpack.c.bf16 %v9223_v9, %v9221_v22 }
 0x90c   : > { %9234 = vrcp.f32 %v4752_v21  ;;  %5725 = vmatmul.mubr.bf16.gmra.mrb[236].mxu0 %v4899_v48 }
 0x90d   : > { %v9225_v6 = vpop.eup %9224  ;;  %v4854_v62 = vmul.bf16 %v14611_v51, %v4829_v30  ;;  %v4853_v53 = vmul.bf16 %v14612_v60, %v4829_v30 }
 0x90e   : > { %v9227_v1 = vpop.eup %9226  ;;  %v4563_v23 = vpop.xlane.xlu1 %4562 }
 0x90f   : > { %v4566_v54 = vpop.xlane.xlu0 %4565  ;;  %9236 = vrcp.f32 %v4563_v23  ;;  %5571 = vmatprep.mubr.bf16.mxu1 %v4854_v62  ;;  %v4877_v25 = vpack.c.bf16 %v9227_v1, %v9225_v6 }
 0x910   : > { %9238 = vrcp.f32 %v4566_v54  ;;  %5572 = vmatmul.mubr.bf16.gmra.mrb[176].mxu1 %v4853_v53 }
 0x911   : > { %v9229_v31 = vpop.eup %9228  ;;  %v4902_v28 = vmul.bf16 %v14613_v18, %v4877_v25  ;;  %v4901_v13 = vmul.bf16 %v14614_v0, %v4877_v25 }
 0x912   : > { %v9231_v32 = vpop.eup %9230  ;;  %v4755_v14 = vpop.xlane.xlu1 %4754 }
 0x913   : > { %v4758_v7 = vpop.xlane.xlu0 %4757  ;;  %9240 = vrcp.f32 %v4755_v14  ;;  %5732 = vmatprep.mubr.bf16.mxu0 %v4902_v28  ;;  %v4830_v4 = vpack.c.bf16 %v9231_v32, %v9229_v31  ;;  %v14615_v28 = vld [vmem:[#allocation82_spill] sm:$0xff] }
 0x914   : > { %9242 = vrcp.f32 %v4758_v7  ;;  %5733 = vmatmul.mubr.bf16.gmra.mrb[240].mxu0 %v4901_v13 }
 0x915   : > { %v9233_v58 = vpop.eup %9232  ;;  %v4856_v46 = vmul.bf16 %v12782_v2, %v4830_v4  ;;  %v4855_v37 = vmul.bf16 %v12778_v36, %v4830_v4  ;;  %v14616_v4 = vld [vmem:[#allocation81_spill] sm:$0xff] }
 0x916   : > { %v9235_v27 = vpop.eup %9234  ;;  %v4569_v63 = vpop.xlane.xlu1 %4568 }
 0x917   : > { %v4572_v39 = vpop.xlane.xlu0 %4571  ;;  %9244 = vrcp.f32 %v4569_v63  ;;  %5579 = vmatprep.mubr.bf16.mxu1 %v4856_v46  ;;  %v4878_v57 = vpack.c.bf16 %v9235_v27, %v9233_v58  ;;  %v8077_v41 = vpop.f32.mrb[208].mxu0 }
 0x918   : > { %9246 = vrcp.f32 %v4572_v39  ;;  %5580 = vmatmul.mubr.bf16.gmra.mrb[180].mxu1 %v4855_v37  ;;  %v8078_v36 = vpop.f32.mrb[209].mxu0 }
 0x919   : > { %v9237_v15 = vpop.eup %9236  ;;  %v4904_v47 = vmul.bf16 %v12768_v19, %v4878_v57  ;;  %v4903_v42 = vmul.bf16 %v12740_v55, %v4878_v57  ;;  %v13046_v48 = vadd.f32 %v8078_v36, %v8077_v41  ;;  %v8080_v9 = vpop.f32.mrb[210].mxu0 }
 0x91a   : > { %v9239_v22 = vpop.eup %9238  ;;  %v4761_v16 = vpop.xlane.xlu1 %4760 }
 0x91b   : > { %v4764_v44 = vpop.xlane.xlu0 %4763  ;;  %9248 = vrcp.f32 %v4761_v16  ;;  %5740 = vmatprep.mubr.bf16.mxu0 %v4904_v47  ;;  %v4831_v2 = vpack.c.bf16 %v9239_v22, %v9237_v15  ;;  %v8081_v21 = vpop.f32.mrb[211].mxu0 }
 0x91c   : > { %9250 = vrcp.f32 %v4764_v44  ;;  %5741 = vmatmul.mubr.bf16.gmra.mrb[244].mxu0 %v4903_v42  ;;  %v13050_v55 = vadd.f32 %v8081_v21, %v8080_v9 }
 0x91d   : > { %v9241_v38 = vpop.eup %9240  ;;  %v4858_v30 = vmul.bf16 %v12810_v8, %v4831_v2  ;;  %v4857_v19 = vmul.bf16 %v12808_v3, %v4831_v2 }
 0x91e   : > { %v9243_v6 = vpop.eup %9242  ;;  %v4575_v51 = vpop.xlane.xlu1 %4574 }
 0x91f   : > { %v4578_v62 = vpop.xlane.xlu0 %4577  ;;  %9252 = vrcp.f32 %v4575_v51  ;;  %5587 = vmatprep.mubr.bf16.mxu1 %v4858_v30  ;;  %v4879_v60 = vpack.c.bf16 %v9243_v6, %v9241_v38 }
 0x920   : > { %9254 = vrcp.f32 %v4578_v62  ;;  %5588 = vmatmul.mubr.bf16.gmra.mrb[184].mxu1 %v4857_v19 }
 0x921   : > { %v9245_v53 = vpop.eup %9244  ;;  %v4906_v1 = vmul.bf16 %v12805_v50, %v4879_v60  ;;  %v4905_v23 = vmul.bf16 %v12800_v43, %v4879_v60 }
 0x922   : > { %v9247_v54 = vpop.eup %9246  ;;  %v4767_v25 = vpop.xlane.xlu1 %4766 }
 0x923   : > { %v4770_v8 = vpop.xlane.xlu0 %4769  ;;  %9256 = vrcp.f32 %v4767_v25  ;;  %5748 = vmatprep.mubr.bf16.mxu0 %v4906_v1  ;;  %v4832_v3 = vpack.c.bf16 %v9247_v54, %v9245_v53 }
 0x924   : > { %9258 = vrcp.f32 %v4770_v8  ;;  %5749 = vmatmul.mubr.bf16.gmra.mrb[248].mxu0 %v4905_v23 }
 0x925   : > { %v9249_v31 = vpop.eup %9248  ;;  %v4860_v18 = vmul.bf16 %v12844_v33, %v4832_v3  ;;  %v4859_v0 = vmul.bf16 %v14615_v28, %v4832_v3 }
 0x926   : > { %v9251_v13 = vpop.eup %9250  ;;  %v4581_v32 = vpop.xlane.xlu1 %4580 }
 0x927   : > { %v4584_v14 = vpop.xlane.xlu0 %4583  ;;  %9260 = vrcp.f32 %v4581_v32  ;;  %5595 = vmatprep.mubr.bf16.mxu1 %v4860_v18  ;;  %v4880_v50 = vpack.c.bf16 %v9251_v13, %v9249_v31 }
 0x928   : > { %9262 = vrcp.f32 %v4584_v14  ;;  %5596 = vmatmul.mubr.bf16.gmra.mrb[188].mxu1 %v4859_v0 }
 0x929   : > { %v9253_v43 = vpop.eup %9252  ;;  %v4908_v7 = vmul.bf16 %v12834_v52, %v4880_v50  ;;  %v4907_v58 = vmul.bf16 %v14616_v4, %v4880_v50 }
 0x92a   : > { %v9255_v46 = vpop.eup %9254  ;;  %v4773_v37 = vpop.xlane.xlu1 %4772 }
 0x92b   : > { %v4776_v27 = vpop.xlane.xlu0 %4775  ;;  %9264 = vrcp.f32 %v4773_v37  ;;  %5756 = vmatprep.mubr.bf16.mxu0 %v4908_v7  ;;  %v4833_v33 = vpack.c.bf16 %v9255_v46, %v9253_v43 }
 0x92c   : > { %v8083_v63 = vpop.f32.mrb[212].mxu0  ;;  %9266 = vrcp.f32 %v4776_v27  ;;  %5757 = vmatmul.mubr.bf16.gmra.mrb[252].mxu0 %v4907_v58 }
 0x92d   : > { %v8084_v39 = vpop.f32.mrb[213].mxu0  ;;  %v9257_v57 = vpop.eup %9256  ;;  %v4862_v47 = vmul.bf16 %v12874_v17, %v4833_v33  ;;  %v4861_v52 = vmul.bf16 %v12872_v12, %v4833_v33  ;;  %v14617_v33 = vld [vmem:[#allocation41_spill] sm:$0xff] }
 0x92e   : > { %v13058_v15 = vadd.f32 %v8084_v39, %v8083_v63  ;;  %v8086_v41 = vpop.f32.mrb[214].mxu0  ;;  %v9259_v42 = vpop.eup %9258  ;;  %v8767_v39 = vld [vmem:[%s13930_s9 + $0x8] sm:$0xff]  }
 0x92f   : > { %v8087_v22 = vpop.f32.mrb[215].mxu0  ;;  %v4587_v16 = vpop.xlane.xlu1 %4586  ;;  %5603 = vmatprep.mubr.bf16.mxu1 %v4862_v47  ;;  %v4881_v2 = vpack.c.bf16 %v9259_v42, %v9257_v57  ;;  %v14620_v57 = vld [vmem:[#allocation44_spill] sm:$0xff] }
 0x930   : > { %v13062_v44 = vadd.f32 %v8087_v22, %v8086_v41  ;;  %9268 = vrcp.f32 %v4587_v16  ;;  %v4590_v36 = vpop.xlane.xlu0 %4589  ;;  %5604 = vmatmul.mubr.bf16.gmra.mrb[192].mxu1 %v4861_v52  ;;  %v14621_v41 = vld [vmem:[#allocation45_spill] sm:$0xff]  ;;  %v13105_v47 = vld [vmem:[%s13932_s11] sm:$0xf] }
 0x931   : > { %9270 = vrcp.f32 %v4590_v36  ;;  %v9261_v9 = vpop.eup %9260  ;;  %v4909_v38 = vmul.bf16 %v12850_v10, %v4881_v2  ;;  %v4910_v21 = vmul.bf16 %v12861_v11, %v4881_v2  ;;  %v14622_v52 = vld [vmem:[#allocation8_spill] sm:$0xff] }
 0x932   : > { %v9263_v30 = vpop.eup %9262  ;;  %v14623_v42 = vsub.s32 2, %v14622_v52 }
 0x933   : > { %v4779_v17 = vpop.xlane.xlu1 %4778  ;;  %5764 = vmatprep.mubr.bf16.mxu0 %v4910_v21  ;;  %v4834_v19 = vpack.c.bf16 %v9263_v30, %v9261_v9 }
 0x934   : > { %9272 = vrcp.f32 %v4779_v17  ;;  %v4782_v12 = vpop.xlane.xlu0 %4781  ;;  %5765 = vmatmul.mubr.bf16.gmra.mrb[0].mxu0 %v4909_v38  ;;  %v13110_v22 = vrot.slane %v13105_v47, %v14623_v42  ;;  %v14624_v38 = vld [vmem:[#allocation46_spill] sm:$0xff]  ;;  %v14625_v17 = vld [vmem:[#allocation47_spill] sm:$0xff] }
 0x935   : > { %9274 = vrcp.f32 %v4782_v12  ;;  %v9265_v6 = vpop.eup %9264  ;;  %v4864_v51 = vmul.bf16 %v12893_v26, %v4834_v19  ;;  %v4863_v62 = vmul.bf16 %v12887_v61, %v4834_v19 }
 0x936   : > { %v9267_v60 = vpop.eup %9266 }
 0x937   : > { %v4593_v53 = vpop.xlane.xlu1 %4592  ;;  %5611 = vmatprep.mubr.bf16.mxu1 %v4864_v51  ;;  %v4882_v1 = vpack.c.bf16 %v9267_v60, %v9265_v6 }
 0x938   : > { %9276 = vrcp.f32 %v4593_v53  ;;  %v4596_v10 = vpop.xlane.xlu0 %4595  ;;  %5612 = vmatmul.mubr.bf16.gmra.mrb[196].mxu1 %v4863_v62 }
 0x939   : > { %9278 = vrcp.f32 %v4596_v10  ;;  %v8089_v23 = vpop.f32.mrb[216].mxu0  ;;  %v4911_v54 = vmul.bf16 %v12882_v59, %v4882_v1  ;;  %v4912_v25 = vmul.bf16 %v12896_v49, %v4882_v1 }
 0x93a   : > { %v9269_v11 = vpop.eup %9268  ;;  %v8090_v31 = vpop.f32.mrb[217].mxu0 }
 0x93b   : > { %v9271_v8 = vpop.eup %9270  ;;  %v4785_v3 = vpop.xlane.xlu1 %4784  ;;  %5772 = vmatprep.mubr.bf16.mxu0 %v4912_v25  ;;  %v13070_v26 = vadd.f32 %v8090_v31, %v8089_v23  ;;  %v14627_v25 = vld [vmem:[#allocation49_spill] sm:$0xff] }
 0x93c   : > { %9280 = vrcp.f32 %v4785_v3  ;;  %v4788_v61 = vpop.xlane.xlu0 %4787  ;;  %v8092_v18 = vpop.f32.mrb[218].mxu0  ;;  %v4835_v28 = vpack.c.bf16 %v9271_v8, %v9269_v11  ;;  %5773 = vmatmul.mubr.bf16.gmra.mrb[4].mxu0 %v4911_v54  ;;  %v14626_v11 = vld [vmem:[#allocation48_spill] sm:$0xff] }
 0x93d   : > { %9282 = vrcp.f32 %v4788_v61  ;;  %v8093_v0 = vpop.f32.mrb[219].mxu0 }
 0x93e   : > { %v9273_v13 = vpop.eup %9272  ;;  %v13072_v32 = vadd.f32 %v8093_v0, %v8092_v18  ;;  %v4866_v59 = vmul.bf16 %v12909_v45, %v4835_v28  ;;  %v4865_v49 = vmul.bf16 %v12905_v56, %v4835_v28 }
 0x93f   : > { %v9275_v14 = vpop.eup %9274 }
 0x940   : > { %5619 = vmatprep.mubr.bf16.mxu1 %v4866_v59  ;;  %v4883_v50 = vpack.c.bf16 %v9275_v14, %v9273_v13  ;;  %v14628_v13 = vld [vmem:[#allocation50_spill] sm:$0xff] }
 0x941   : > { %5620 = vmatmul.mubr.bf16.gmra.mrb[200].mxu1 %v4865_v49 }
 0x942   : > { %v9277_v43 = vpop.eup %9276  ;;  %v4913_v7 = vmul.bf16 %v12920_v35, %v4883_v50  ;;  %v4914_v4 = vmul.bf16 %v12925_v24, %v4883_v50  ;;  %v14629_v50 = vld [vmem:[#allocation51_spill] sm:$0xff] }
 0x943   : > { %v9279_v58 = vpop.eup %9278 }
 0x944   : > { %5780 = vmatprep.mubr.bf16.mxu0 %v4914_v4  ;;  %v4836_v46 = vpack.c.bf16 %v9279_v58, %v9277_v43 }
 0x945   : > { %5781 = vmatmul.mubr.bf16.gmra.mrb[8].mxu0 %v4913_v7 }
 0x946   : > { %v9281_v37 = vpop.eup %9280  ;;  %v4868_v27 = vmul.bf16 %v12931_v5, %v4836_v46  ;;  %v4867_v45 = vmul.bf16 %v12928_v29, %v4836_v46  ;;  %v14618_v5 = vld [vmem:[#allocation42_spill] sm:$0xff]  ;;  %v14619_v29 = vld [vmem:[#allocation43_spill] sm:$0xff] }
 0x947   : > { %v9283_v63 = vpop.eup %9282 }
 0x948   : > { %5627 = vmatprep.mubr.bf16.mxu1 %v4868_v27  ;;  %v4884_v56 = vpack.c.bf16 %v9283_v63, %v9281_v37 }
 0x949   : > { %5628 = vmatmul.mubr.bf16.gmra.mrb[204].mxu1 %v4867_v45 }
 0x94a   : > { %8407 = vmatprep.mubr.msk.bf16.mxu1 %vm2624_vm0, %v14617_v33  ;;  %v4915_v35 = vmul.bf16 %v12941_v34, %v4884_v56  ;;  %v4916_v24 = vmul.bf16 %v12943_v20, %v4884_v56  ;;  %v8768_v34 = vld [vmem:[%s13930_s9 + $0x10] sm:$0xff]   ;;  %v8769_v20 = vld [vmem:[%s13930_s9 + $0x18] sm:$0xff]  }
 0x94c   : > { %5788 = vmatprep.mubr.bf16.mxu0 %v4916_v24  ;;  %v14630_v24 = vld [vmem:[#allocation52_spill] sm:$0xff] }
 0x94d   : > { %5789 = vmatmul.mubr.bf16.gmra.mrb[12].mxu0 %v4915_v35 }
 0x951   : > { %8408 = vmatmul.mubr.msk.bf16.vlgmr.msra.gmra.mrb[208].mxu1 %vm2624_vm0, %v14618_v5  ;;  %v14631_v5 = vld [vmem:[#allocation53_spill] sm:$0xff] }
 0x952   : > { %8411 = vmatprep.mubr.msk.bf16.mxu1 %vm2624_vm0, %v14619_v29  ;;  %8440 = vmatpush3.bf16.msra.mxu1 %v13029_v40 }
 0x953   : > { %8441 = vmatprep.subr.bf16.mxu1 %v8767_v39 }
 0x956   : > { %8442 = vmatpush3.bf16.msra.mxu1 %v8767_v39 }
 0x957   : > { %8443 = vmatprep.subr.bf16.mxu1 %v8768_v34 }
 0x959   : > { %8412 = vmatmul.mubr.msk.bf16.gmra.mrb[212].mxu1 %vm2624_vm0, %v14620_v57  ;;  %v14632_v57 = vld [vmem:[#allocation54_spill] sm:$0xff] }
 0x95a   : > { %8415 = vmatprep.mubr.msk.bf16.mxu1 %vm2624_vm0, %v14621_v41  ;;  %8444 = vmatpush3.bf16.msra.mxu1 %v8768_v34  ;;  %v7965_v40 = vpop.f32.mrb[144].mxu1  ;;  %v14633_v41 = vld [vmem:[#allocation55_spill] sm:$0xff] }
 0x95b   : > { %8445 = vmatprep.subr.bf16.mxu1 %v8769_v20  ;;  %v7966_v16 = vpop.f32.mrb[145].mxu1 }
 0x95c   : > { %v7967_v36 = vadd.f32 %v7966_v16, %v7965_v40  ;;  %v7968_v2 = vpop.f32.mrb[146].mxu1  ;;  %v14634_v40 = vld [vmem:[#allocation56_spill] sm:$0xff] }
 0x95d   : > { %v7969_v9 = vpop.f32.mrb[147].mxu1 }
 0x95e   : > { %8446 = vmatpush3.bf16.msra.mxu1 %v8769_v20  ;;  %v5510_v21 = vadd.f32 %v7967_v36, %v13110_v22  ;;  %v7970_v30 = vadd.f32 %v7969_v9, %v7968_v2 }
 0x960   : > { %v5671_v12 = vadd.f32 %v13046_v48, %v5510_v21  ;;  %v5513_v19 = vadd.f32 %v7970_v30, %v13110_v22 }
 0x961   : > { %8416 = vmatmul.mubr.msk.bf16.gmra.mrb[216].mxu1 %vm2624_vm0, %v14624_v38 }
 0x962   : > { %8419 = vmatprep.mubr.msk.bf16.mxu1 %vm2624_vm0, %v14625_v17  ;;  %v5674_v6 = vadd.f32 %v13050_v55, %v5513_v19  ;;  %v7971_v51 = vpop.f32.mrb[148].mxu1 }
 0x963   : > { %v7972_v62 = vpop.f32.mrb[149].mxu1 }
 0x964   : > { %v5797_v60 = vpack.c.bf16 %v5674_v6, %v5671_v12  ;;  %v7973_v53 = vadd.f32 %v7972_v62, %v7971_v51  ;;  %v7974_v10 = vpop.f32.mrb[150].mxu1 }
 0x965   : > { %v7975_v1 = vpop.f32.mrb[151].mxu1 }
 0x966   : > { %v5518_v23 = vadd.f32 %v7973_v53, %v13110_v22  ;;  %v7976_v54 = vadd.f32 %v7975_v1, %v7974_v10 }
 0x968   : > { %v5679_v48 = vadd.f32 %v13058_v15, %v5518_v23  ;;  %v5521_v8 = vadd.f32 %v7976_v54, %v13110_v22 }
 0x969   : > { %8420 = vmatmul.mubr.msk.bf16.gmra.mrb[220].mxu1 %vm2624_vm0, %v14626_v11 }
 0x96a   : > { %8423 = vmatprep.mubr.msk.bf16.mxu1 %vm2624_vm0, %v14627_v25  ;;  %v5682_v55 = vadd.f32 %v13062_v44, %v5521_v8  ;;  %v7977_v3 = vpop.f32.mrb[152].mxu1 }
 0x96b   : > { %v7978_v31 = vpop.f32.mrb[153].mxu1 }
 0x96c   : > { %v5798_v61 = vpack.c.bf16 %v5682_v55, %v5679_v48  ;;  %v7979_v18 = vadd.f32 %v7978_v31, %v7977_v3  ;;  %v7980_v28 = vpop.f32.mrb[154].mxu1 }
 0x96d   : > { %v7981_v0 = vpop.f32.mrb[155].mxu1 }
 0x96e   : > { %v5526_v59 = vadd.f32 %v7979_v18, %v13110_v22  ;;  %v7982_v49 = vadd.f32 %v7981_v0, %v7980_v28 }
 0x96f   : > { %v8095_v14 = vpop.f32.mrb[220].mxu0 }
 0x970   : > { %v8096_v15 = vpop.f32.mrb[221].mxu0  ;;  %v5687_v43 = vadd.f32 %v13070_v26, %v5526_v59  ;;  %v5529_v44 = vadd.f32 %v7982_v49, %v13110_v22 }
 0x971   : > { %8424 = vmatmul.mubr.msk.bf16.gmra.mrb[224].mxu1 %vm2624_vm0, %v14628_v13  ;;  %v8097_v7 = vadd.f32 %v8096_v15, %v8095_v14  ;;  %v8098_v4 = vpop.f32.mrb[222].mxu0 }
 0x972   : > { %8427 = vmatprep.mubr.msk.bf16.mxu1 %vm2624_vm0, %v14629_v50  ;;  %v8099_v58 = vpop.f32.mrb[223].mxu0  ;;  %v5690_v46 = vadd.f32 %v13072_v32, %v5529_v44 }
 0x973   : > { %v8100_v37 = vadd.f32 %v8099_v58, %v8098_v4  ;;  %v7983_v27 = vpop.f32.mrb[156].mxu1 }
 0x974   : > { %v7984_v45 = vpop.f32.mrb[157].mxu1  ;;  %v5799_v63 = vpack.c.bf16 %v5690_v46, %v5687_v43 }
 0x975   : > { %v7985_v56 = vadd.f32 %v7984_v45, %v7983_v27  ;;  %v7986_v33 = vpop.f32.mrb[158].mxu1 }
 0x976   : > { %v7987_v35 = vpop.f32.mrb[159].mxu1 }
 0x977   : > { %v5534_v39 = vadd.f32 %v7985_v56, %v13110_v22  ;;  %v7988_v26 = vadd.f32 %v7987_v35, %v7986_v33 }
 0x979   : > { %8428 = vmatmul.mubr.msk.bf16.gmra.mrb[228].mxu1 %vm2624_vm0, %v14630_v24  ;;  %v5695_v29 = vadd.f32 %v8097_v7, %v5534_v39  ;;  %v5537_v34 = vadd.f32 %v7988_v26, %v13110_v22 }
 0x97a   : > { %8431 = vmatprep.mubr.msk.bf16.mxu1 %vm2624_vm0, %v14631_v5 }
 0x97b   : > { %v5698_v32 = vadd.f32 %v8100_v37, %v5537_v34 }
 0x97d   : > { %v5800_v20 = vpack.c.bf16 %v5698_v32, %v5695_v29 }
 0x981   : > { %8432 = vmatmul.mubr.msk.bf16.gmra.mrb[232].mxu1 %vm2624_vm0, %v14632_v57 }
 0x982   : > { %8435 = vmatprep.mubr.msk.bf16.mxu1 %vm2624_vm0, %v14633_v41 }
 0x989   : > { %8436 = vmatmul.mubr.msk.bf16.gmra.mrb[236].mxu1 %vm2624_vm0, %v14634_v40 }
 0x98a   : > { %8447 = vmatprep.mubr.msk.bf16.mxu1 %vm6010_vm1, %v5797_v60 }
 0x991   : > { %8448 = vmatmul.mubr.msk.bf16.vlgmr.msra.gmra.mrb[208].mxu1 %vm6010_vm1, %v5798_v61 }
 0x992   : > { %8451 = vmatprep.mubr.msk.bf16.mxu1 %vm6010_vm1, %v5799_v63 }
 0x999   : > { %8452 = vmatmul.mubr.msk.bf16.gmra.mrb[212].mxu1 %vm6010_vm1, %v5800_v20 }
 0x9c1   : > { %v7989_v42 = vpop.f32.mrb[160].mxu1 }
 0x9c2   : > { %v7990_v16 = vpop.f32.mrb[161].mxu1 }
 0x9c3   : > { %v7991_v36 = vadd.f32 %v7990_v16, %v7989_v42  ;;  %v7992_v2 = vpop.f32.mrb[162].mxu1 }
 0x9c4   : > { %v7993_v9 = vpop.f32.mrb[163].mxu1 }
 0x9c5   : > { %v7994_v38 = vadd.f32 %v7993_v9, %v7992_v2  ;;  %v8101_v21 = vpop.f32.mrb[224].mxu0  ;;  %v5542_v17 = vadd.f32 %v7991_v36, %v13110_v22 }
 0x9c6   : > { %v8102_v30 = vpop.f32.mrb[225].mxu0 }
 0x9c7   : > { %v8103_v12 = vadd.f32 %v8102_v30, %v8101_v21  ;;  %v8104_v19 = vpop.f32.mrb[226].mxu0  ;;  %v5545_v51 = vadd.f32 %v7994_v38, %v13110_v22 }
 0x9c8   : > { %v8105_v6 = vpop.f32.mrb[227].mxu0 }
 0x9c9   : > { %v5703_v62 = vadd.f32 %v8103_v12, %v5542_v17  ;;  %v8106_v60 = vadd.f32 %v8105_v6, %v8104_v19  ;;  %v7995_v53 = vpop.f32.mrb[164].mxu1 }
 0x9ca   : > { %v7996_v1 = vpop.f32.mrb[165].mxu1 }
 0x9cb   : > { %v5706_v10 = vadd.f32 %v8106_v60, %v5545_v51  ;;  %v7997_v11 = vadd.f32 %v7996_v1, %v7995_v53  ;;  %v7998_v23 = vpop.f32.mrb[166].mxu1 }
 0x9cc   : > { %v7999_v25 = vpop.f32.mrb[167].mxu1 }
 0x9cd   : > { %v5801_v54 = vpack.c.bf16 %v5706_v10, %v5703_v62  ;;  %v8000_v48 = vadd.f32 %v7999_v25, %v7998_v23  ;;  %v8107_v8 = vpop.f32.mrb[228].mxu0  ;;  %v5550_v3 = vadd.f32 %v7997_v11, %v13110_v22 }
 0x9ce   : > { %v8108_v55 = vpop.f32.mrb[229].mxu0 }
 0x9cf   : > { %8455 = vmatprep.mubr.msk.bf16.mxu1 %vm6010_vm1, %v5801_v54  ;;  %v8109_v31 = vadd.f32 %v8108_v55, %v8107_v8  ;;  %v8110_v61 = vpop.f32.mrb[230].mxu0  ;;  %v5553_v28 = vadd.f32 %v8000_v48, %v13110_v22 }
 0x9d0   : > { %v8111_v18 = vpop.f32.mrb[231].mxu0 }
 0x9d1   : > { %v5711_v0 = vadd.f32 %v8109_v31, %v5550_v3  ;;  %v8112_v13 = vadd.f32 %v8111_v18, %v8110_v61  ;;  %v8001_v59 = vpop.f32.mrb[168].mxu1 }
 0x9d2   : > { %v8002_v49 = vpop.f32.mrb[169].mxu1 }
 0x9d3   : > { %v5714_v14 = vadd.f32 %v8112_v13, %v5553_v28  ;;  %v8003_v50 = vadd.f32 %v8002_v49, %v8001_v59  ;;  %v8004_v15 = vpop.f32.mrb[170].mxu1 }
 0x9d4   : > { %v8005_v43 = vpop.f32.mrb[171].mxu1 }
 0x9d5   : > { %v5802_v44 = vpack.c.bf16 %v5714_v14, %v5711_v0  ;;  %v8006_v7 = vadd.f32 %v8005_v43, %v8004_v15  ;;  %v8113_v4 = vpop.f32.mrb[232].mxu0  ;;  %v5558_v46 = vadd.f32 %v8003_v50, %v13110_v22 }
 0x9d6   : > { %v8114_v58 = vpop.f32.mrb[233].mxu0 }
 0x9d7   : > { %v8115_v37 = vadd.f32 %v8114_v58, %v8113_v4  ;;  %v8116_v27 = vpop.f32.mrb[234].mxu0  ;;  %8456 = vmatmul.mubr.msk.bf16.gmra.mrb[216].mxu1 %vm6010_vm1, %v5802_v44  ;;  %v5561_v63 = vadd.f32 %v8006_v7, %v13110_v22 }
 0x9d8   : > { %v8117_v45 = vpop.f32.mrb[235].mxu0 }
 0x9d9   : > { %v5719_v56 = vadd.f32 %v8115_v37, %v5558_v46  ;;  %v8118_v33 = vadd.f32 %v8117_v45, %v8116_v27 }
 0x9db   : > { %v8007_v35 = vpop.f32.mrb[172].mxu1  ;;  %v5722_v24 = vadd.f32 %v8118_v33, %v5561_v63 }
 0x9dc   : > { %v8008_v39 = vpop.f32.mrb[173].mxu1 }
 0x9dd   : > { %v8009_v26 = vadd.f32 %v8008_v39, %v8007_v35  ;;  %v8010_v5 = vpop.f32.mrb[174].mxu1  ;;  %v5803_v29 = vpack.c.bf16 %v5722_v24, %v5719_v56 }
 0x9de   : > { %v8011_v34 = vpop.f32.mrb[175].mxu1 }
 0x9df   : > { %v8012_v32 = vadd.f32 %v8011_v34, %v8010_v5  ;;  %v8119_v20 = vpop.f32.mrb[236].mxu0  ;;  %8459 = vmatprep.mubr.msk.bf16.mxu1 %vm6010_vm1, %v5803_v29  ;;  %v5566_v41 = vadd.f32 %v8009_v26, %v13110_v22 }
 0x9e0   : > { %v8120_v57 = vpop.f32.mrb[237].mxu0 }
 0x9e1   : > { %v8121_v40 = vadd.f32 %v8120_v57, %v8119_v20  ;;  %v8122_v42 = vpop.f32.mrb[238].mxu0  ;;  %v5569_v36 = vadd.f32 %v8012_v32, %v13110_v22 }
 0x9e2   : > { %v8123_v16 = vpop.f32.mrb[239].mxu0 }
 0x9e3   : > { %v5727_v2 = vadd.f32 %v8121_v40, %v5566_v41  ;;  %v8124_v9 = vadd.f32 %v8123_v16, %v8122_v42  ;;  %v8013_v38 = vpop.f32.mrb[176].mxu1 }
 0x9e4   : > { %v8014_v21 = vpop.f32.mrb[177].mxu1 }
 0x9e5   : > { %v5730_v30 = vadd.f32 %v8124_v9, %v5569_v36  ;;  %v8015_v17 = vadd.f32 %v8014_v21, %v8013_v38  ;;  %v8016_v12 = vpop.f32.mrb[178].mxu1 }
 0x9e6   : > { %v8017_v19 = vpop.f32.mrb[179].mxu1 }
 0x9e7   : > { %v5804_v6 = vpack.c.bf16 %v5730_v30, %v5727_v2  ;;  %v8018_v51 = vadd.f32 %v8017_v19, %v8016_v12  ;;  %v8125_v62 = vpop.f32.mrb[240].mxu0  ;;  %v5574_v53 = vadd.f32 %v8015_v17, %v13110_v22 }
 0x9e8   : > { %v8126_v60 = vpop.f32.mrb[241].mxu0 }
 0x9e9   : > { %v8127_v10 = vadd.f32 %v8126_v60, %v8125_v62  ;;  %v8128_v1 = vpop.f32.mrb[242].mxu0  ;;  %8460 = vmatmul.mubr.msk.bf16.gmra.mrb[220].mxu1 %vm6010_vm1, %v5804_v6  ;;  %v5577_v23 = vadd.f32 %v8018_v51, %v13110_v22 }
 0x9ea   : > { %v8129_v11 = vpop.f32.mrb[243].mxu0 }
 0x9eb   : > { %v5735_v54 = vadd.f32 %v8127_v10, %v5574_v53  ;;  %v8130_v25 = vadd.f32 %v8129_v11, %v8128_v1  ;;  %v8019_v48 = vpop.f32.mrb[180].mxu1 }
 0x9ec   : > { %v8020_v8 = vpop.f32.mrb[181].mxu1 }
 0x9ed   : > { %v5738_v55 = vadd.f32 %v8130_v25, %v5577_v23  ;;  %v8021_v3 = vadd.f32 %v8020_v8, %v8019_v48  ;;  %v8022_v31 = vpop.f32.mrb[182].mxu1 }
 0x9ee   : > { %v8023_v61 = vpop.f32.mrb[183].mxu1 }
 0x9ef   : > { %v5805_v18 = vpack.c.bf16 %v5738_v55, %v5735_v54  ;;  %v8024_v28 = vadd.f32 %v8023_v61, %v8022_v31  ;;  %v8131_v0 = vpop.f32.mrb[244].mxu0  ;;  %v5582_v59 = vadd.f32 %v8021_v3, %v13110_v22 }
 0x9f0   : > { %v8132_v13 = vpop.f32.mrb[245].mxu0 }
 0x9f1   : > { %v8133_v49 = vadd.f32 %v8132_v13, %v8131_v0  ;;  %v8134_v14 = vpop.f32.mrb[246].mxu0  ;;  %8463 = vmatprep.mubr.msk.bf16.mxu1 %vm6010_vm1, %v5805_v18  ;;  %v5585_v15 = vadd.f32 %v8024_v28, %v13110_v22 }
 0x9f2   : > { %v8135_v50 = vpop.f32.mrb[247].mxu0 }
 0x9f3   : > { %v5743_v43 = vadd.f32 %v8133_v49, %v5582_v59  ;;  %v8136_v44 = vadd.f32 %v8135_v50, %v8134_v14  ;;  %v8025_v7 = vpop.f32.mrb[184].mxu1 }
 0x9f4   : > { %v8026_v4 = vpop.f32.mrb[185].mxu1 }
 0x9f5   : > { %v5746_v58 = vadd.f32 %v8136_v44, %v5585_v15  ;;  %v8027_v46 = vadd.f32 %v8026_v4, %v8025_v7  ;;  %v8028_v37 = vpop.f32.mrb[186].mxu1 }
 0x9f6   : > { %v8029_v27 = vpop.f32.mrb[187].mxu1 }
 0x9f7   : > { %v5806_v45 = vpack.c.bf16 %v5746_v58, %v5743_v43  ;;  %v8030_v63 = vadd.f32 %v8029_v27, %v8028_v37  ;;  %v8137_v56 = vpop.f32.mrb[248].mxu0  ;;  %v5590_v35 = vadd.f32 %v8027_v46, %v13110_v22 }
 0x9f8   : > { %v8138_v33 = vpop.f32.mrb[249].mxu0 }
 0x9f9   : > { %v8139_v24 = vadd.f32 %v8138_v33, %v8137_v56  ;;  %v8140_v39 = vpop.f32.mrb[250].mxu0  ;;  %8464 = vmatmul.mubr.msk.bf16.gmra.mrb[224].mxu1 %vm6010_vm1, %v5806_v45  ;;  %v5593_v5 = vadd.f32 %v8030_v63, %v13110_v22 }
 0x9fa   : > { %v8141_v26 = vpop.f32.mrb[251].mxu0 }
 0x9fb   : > { %v5751_v29 = vadd.f32 %v8139_v24, %v5590_v35  ;;  %v8142_v34 = vadd.f32 %v8141_v26, %v8140_v39  ;;  %v8031_v32 = vpop.f32.mrb[188].mxu1 }
 0x9fc   : > { %v8032_v20 = vpop.f32.mrb[189].mxu1 }
 0x9fd   : > { %v5754_v57 = vadd.f32 %v8142_v34, %v5593_v5  ;;  %v8033_v41 = vadd.f32 %v8032_v20, %v8031_v32  ;;  %v8034_v40 = vpop.f32.mrb[190].mxu1 }
 0x9fe   : > { %v8035_v42 = vpop.f32.mrb[191].mxu1 }
 0x9ff   : > { %v5807_v16 = vpack.c.bf16 %v5754_v57, %v5751_v29  ;;  %v8036_v36 = vadd.f32 %v8035_v42, %v8034_v40  ;;  %v8143_v2 = vpop.f32.mrb[252].mxu0  ;;  %v5598_v38 = vadd.f32 %v8033_v41, %v13110_v22 }
 0xa00   : > { %v8144_v9 = vpop.f32.mrb[253].mxu0 }
 0xa01   : > { %v8145_v21 = vadd.f32 %v8144_v9, %v8143_v2  ;;  %v8146_v30 = vpop.f32.mrb[254].mxu0  ;;  %8467 = vmatprep.mubr.msk.bf16.mxu1 %vm6010_vm1, %v5807_v16  ;;  %v5601_v12 = vadd.f32 %v8036_v36, %v13110_v22 }
 0xa02   : > { %v8147_v17 = vpop.f32.mrb[255].mxu0 }
 0xa03   : > { %v5759_v19 = vadd.f32 %v8145_v21, %v5598_v38  ;;  %v8148_v6 = vadd.f32 %v8147_v17, %v8146_v30  ;;  %v8037_v51 = vpop.f32.mrb[192].mxu1 }
 0xa04   : > { %v8038_v62 = vpop.f32.mrb[193].mxu1 }
 0xa05   : > { %v5762_v60 = vadd.f32 %v8148_v6, %v5601_v12  ;;  %v8039_v53 = vadd.f32 %v8038_v62, %v8037_v51  ;;  %v8040_v10 = vpop.f32.mrb[194].mxu1 }
 0xa06   : > { %v8041_v1 = vpop.f32.mrb[195].mxu1 }
 0xa07   : > { %v5808_v11 = vpack.c.bf16 %v5762_v60, %v5759_v19  ;;  %v8042_v23 = vadd.f32 %v8041_v1, %v8040_v10  ;;  %v8149_v54 = vpop.f32.mrb[0].mxu0  ;;  %v5606_v48 = vadd.f32 %v8039_v53, %v13110_v22 }
 0xa08   : > { %v8150_v25 = vpop.f32.mrb[1].mxu0 }
 0xa09   : > { %v8151_v8 = vadd.f32 %v8150_v25, %v8149_v54  ;;  %v8152_v55 = vpop.f32.mrb[2].mxu0  ;;  %8468 = vmatmul.mubr.msk.bf16.gmra.mrb[228].mxu1 %vm6010_vm1, %v5808_v11  ;;  %v5609_v31 = vadd.f32 %v8042_v23, %v13110_v22  ;;  %v6222_v25 = vsub.s32 3, %v14622_v52 }
 0xa0a   : > { %v8153_v3 = vpop.f32.mrb[3].mxu0 }
 0xa0b   : > { %v5767_v61 = vadd.f32 %v8151_v8, %v5606_v48  ;;  %v8154_v18 = vadd.f32 %v8153_v3, %v8152_v55  ;;  %v8043_v28 = vpop.f32.mrb[196].mxu1  ;;  %v13190_v48 = vrot.slane %v13105_v47, %v6222_v25 }
 0xa0c   : > { %v8044_v0 = vpop.f32.mrb[197].mxu1 }
 0xa0d   : > { %v5770_v13 = vadd.f32 %v8154_v18, %v5609_v31  ;;  %v8045_v59 = vadd.f32 %v8044_v0, %v8043_v28  ;;  %v8046_v49 = vpop.f32.mrb[198].mxu1 }
 0xa0e   : > { %v8047_v14 = vpop.f32.mrb[199].mxu1 }
 0xa0f   : > { %v5809_v50 = vpack.c.bf16 %v5770_v13, %v5767_v61  ;;  %v8048_v15 = vadd.f32 %v8047_v14, %v8046_v49  ;;  %v8155_v43 = vpop.f32.mrb[4].mxu0  ;;  %v5614_v7 = vadd.f32 %v8045_v59, %v13110_v22 }
 0xa10   : > { %v8156_v44 = vpop.f32.mrb[5].mxu0 }
 0xa11   : > { %v8157_v4 = vadd.f32 %v8156_v44, %v8155_v43  ;;  %v8158_v58 = vpop.f32.mrb[6].mxu0  ;;  %8471 = vmatprep.mubr.msk.bf16.mxu1 %vm6010_vm1, %v5809_v50  ;;  %v5617_v37 = vadd.f32 %v8048_v15, %v13110_v22 }
 0xa12   : > { %v8159_v46 = vpop.f32.mrb[7].mxu0 }
 0xa13   : > { %v5775_v27 = vadd.f32 %v8157_v4, %v5614_v7  ;;  %v8160_v45 = vadd.f32 %v8159_v46, %v8158_v58 }
 0xa14   : > { %v8049_v63 = vpop.f32.mrb[200].mxu1 }
 0xa15   : > { %v8050_v56 = vpop.f32.mrb[201].mxu1  ;;  %v5778_v33 = vadd.f32 %v8160_v45, %v5617_v37 }
 0xa16   : > { %v8051_v35 = vadd.f32 %v8050_v56, %v8049_v63  ;;  %v8052_v24 = vpop.f32.mrb[202].mxu1  ;;  %v13235_v56 = vpop.permute.xlu1 %6544 }
 0xa17   : > { %v8053_v39 = vpop.f32.mrb[203].mxu1  ;;  %v5810_v26 = vpack.c.bf16 %v5778_v33, %v5775_v27 }
 0xa18   : > { %v8054_v5 = vadd.f32 %v8053_v39, %v8052_v24  ;;  %v8161_v29 = vpop.f32.mrb[8].mxu0  ;;  %v5622_v32 = vadd.f32 %v8051_v35, %v13110_v22 }
 0xa19   : > { %v8162_v34 = vpop.f32.mrb[9].mxu0  ;;  %8472 = vmatmul.mubr.msk.bf16.gmra.mrb[232].mxu1 %vm6010_vm1, %v5810_v26  ;;  %v13244_v26 = vpop.permute.xlu0 %6546 }
 0xa1a   : > { %v8163_v20 = vadd.f32 %v8162_v34, %v8161_v29  ;;  %v8164_v57 = vpop.f32.mrb[10].mxu0  ;;  %v5625_v40 = vadd.f32 %v8054_v5, %v13110_v22  ;;  %v13247_v5 = vpop.permute.xlu1 %6548 }
 0xa1b   : > { %v8165_v41 = vpop.f32.mrb[11].mxu0 }
 0xa1c   : > { %v5783_v42 = vadd.f32 %v8163_v20, %v5622_v32  ;;  %v8166_v16 = vadd.f32 %v8165_v41, %v8164_v57  ;;  %v8055_v36 = vpop.f32.mrb[204].mxu1 }
 0xa1d   : > { %v8056_v2 = vpop.f32.mrb[205].mxu1  ;;  %v13254_v32 = vpop.permute.xlu0 %6552 }
 0xa1e   : > { %v5786_v9 = vadd.f32 %v8166_v16, %v5625_v40  ;;  %v8057_v38 = vadd.f32 %v8056_v2, %v8055_v36  ;;  %v8058_v21 = vpop.f32.mrb[206].mxu1  ;;  %v13256_v20 = vpop.permute.xlu1 %6550 }
 0xa1f   : > { %v8059_v30 = vpop.f32.mrb[207].mxu1 }
 0xa20   : > { %v5811_v17 = vpack.c.bf16 %v5786_v9, %v5783_v42  ;;  %v8060_v12 = vadd.f32 %v8059_v30, %v8058_v21  ;;  %v8167_v19 = vpop.f32.mrb[12].mxu0  ;;  %v5630_v51 = vadd.f32 %v8057_v38, %v13110_v22 }
 0xa21   : > { %v8168_v6 = vpop.f32.mrb[13].mxu0  ;;  %v13263_v36 = vpop.permute.xlu0 %6556 }
 0xa22   : > { %v8169_v62 = vadd.f32 %v8168_v6, %v8167_v19  ;;  %v8170_v60 = vpop.f32.mrb[14].mxu0  ;;  %8475 = vmatprep.mubr.msk.bf16.mxu1 %vm6010_vm1, %v5811_v17  ;;  %v5633_v10 = vadd.f32 %v8060_v12, %v13110_v22  ;;  %v13266_v9 = vpop.permute.xlu1 %6554 }
 0xa23   : > { %v8171_v53 = vpop.f32.mrb[15].mxu0 }
 0xa24   : > { %v5791_v1 = vadd.f32 %v8169_v62, %v5630_v51  ;;  %v8172_v11 = vadd.f32 %v8171_v53, %v8170_v60 }
 0xa25   : > { %v13272_v17 = vpop.permute.xlu0 %6560 }
 0xa26   : > { %v5794_v23 = vadd.f32 %v8172_v11, %v5633_v10  ;;  %v13279_v19 = vpop.permute.xlu1 %6558 }
 0xa28   : > { %v5812_v54 = vpack.c.bf16 %v5794_v23, %v5791_v1 }
 0xa29   : > { %v13285_v51 = vpop.permute.xlu0 %6564 }
 0xa2a   : > { %8476 = vmatmul.mubr.msk.bf16.gmra.mrb[236].mxu1 %vm6010_vm1, %v5812_v54  ;;  %v13287_v62 = vpop.permute.xlu1 %6562 }
 0xa2d   : > { %v13291_v11 = vpop.permute.xlu0 %6568 }
 0xa2e   : > { %v13293_v54 = vpop.permute.xlu1 %6566 }
 0xa64   : > { %v8449_v8 = vpop.f32.mrb[208].mxu1 }
 0xa65   : > { %v13193_v55 = vadd.f32 %v8449_v8, %v13190_v48  ;;  %v6093_v3 = vpop.f32.mrb[209].mxu1 }
 0xa66   : > { %v8450_v31 = vpop.f32.mrb[210].mxu1  ;;  %v13197_v22 = vadd.f32 %v13190_v48, %v6093_v3 }
 0xa67   : > { %9284 = vtanh.f32 %v13193_v55  ;;  %v6096_v61 = vpop.f32.mrb[211].mxu1  ;;  %v13200_v18 = vadd.f32 %v8450_v31, %v13190_v48 }
 0xa68   : > { %9286 = vtanh.f32 %v13197_v22  ;;  %v13205_v47 = vadd.f32 %v13190_v48, %v6096_v61 }
 0xa69   : > { %9288 = vtanh.f32 %v13200_v18 }
 0xa6c   : > { %v8453_v52 = vpop.f32.mrb[212].mxu1 }
 0xa6d   : > { %v13208_v28 = vadd.f32 %v8453_v52, %v13190_v48  ;;  %v6109_v0 = vpop.f32.mrb[213].mxu1  ;;  %v13304_v52 = vpop.permute.xlu0 %6572 }
 0xa6e   : > { %v8454_v13 = vpop.f32.mrb[214].mxu1  ;;  %v13212_v59 = vadd.f32 %v13190_v48, %v6109_v0 }
 0xa6f   : > { %9290 = vtanh.f32 %v13208_v28  ;;  %v6112_v49 = vpop.f32.mrb[215].mxu1  ;;  %v13216_v14 = vadd.f32 %v8454_v13, %v13190_v48  ;;  %v13309_v13 = vpop.permute.xlu1 %6570 }
 0xa70   : > { %9292 = vtanh.f32 %v13205_v47  ;;  %v13222_v43 = vadd.f32 %v13190_v48, %v6112_v49 }
 0xa71   : > { %v9285_v50 = vpop.eup %9284  ;;  %9294 = vtanh.f32 %v13212_v59 }
 0xa72   : > { %6708 = vrot.lane.b32.xlu0 %v9285_v50, %s9575_s15  ;;  %9296 = vtanh.f32 %v13216_v14  ;;  %v9287_v15 = vpop.eup %9286  ;;  %v13317_v50 = vpop.permute.xlu0 %6576 }
 0xa73   : > { %v9289_v44 = vpop.eup %9288  ;;  %9298 = vtanh.f32 %v13222_v43 }
 0xa74   : > { %6710 = vrot.lane.b32.xlu1 %v9289_v44, %s9575_s15 }
 0xa76   : > { %6704 = vrot.lane.b32.xlu0 %v9287_v15, %s9575_s15  ;;  %v13319_v15 = vpop.permute.xlu1 %6574 }
 0xa79   : > { %v9291_v7 = vpop.eup %9290 }
 0xa7a   : > { %v9293_v4 = vpop.eup %9292  ;;  %6716 = vrot.lane.b32.xlu0 %v9291_v7, %s9575_s15 }
 0xa7b   : > { %6706 = vrot.lane.b32.xlu1 %v9293_v4, %s9575_s15  ;;  %v9295_v58 = vpop.eup %9294 }
 0xa7c   : > { %v9297_v46 = vpop.eup %9296 }
 0xa7d   : > { %v9299_v37 = vpop.eup %9298 }
 0xa7e   : > { %6712 = vrot.lane.b32.xlu0 %v9295_v58, %s9575_s15 }
 0xa7f   : > { %6718 = vrot.lane.b32.xlu1 %v9297_v46, %s9575_s15 }
 0xa83   : > { %6714 = vrot.lane.b32.xlu1 %v9299_v37, %s9575_s15 }
 0xaaa   : > { %v8457_v27 = vpop.f32.mrb[216].mxu1 }
 0xaab   : > { %v13233_v45 = vadd.f32 %v8457_v27, %v13190_v48  ;;  %v6125_v63 = vpop.f32.mrb[217].mxu1 }
 0xaac   : > { %v8458_v33 = vpop.f32.mrb[218].mxu1  ;;  %v13239_v35 = vadd.f32 %v13190_v48, %v6125_v63  ;;  %v13330_v63 = vpop.permute.xlu0 %6580 }
 0xaad   : > { %9300 = vtanh.f32 %v13233_v45  ;;  %v6128_v24 = vpop.f32.mrb[219].mxu1  ;;  %v13242_v39 = vadd.f32 %v8458_v33, %v13190_v48 }
 0xaae   : > { %9302 = vtanh.f32 %v13239_v35  ;;  %v13251_v29 = vadd.f32 %v13190_v48, %v6128_v24  ;;  %v13332_v24 = vpop.permute.xlu1 %6578 }
 0xaaf   : > { %9304 = vtanh.f32 %v13242_v39 }
 0xab0   : > { %9306 = vtanh.f32 %v13251_v29 }
 0xab7   : > { %v9301_v34 = vpop.eup %9300 }
 0xab8   : > { %6724 = vrot.lane.b32.xlu0 %v9301_v34, %s9575_s15  ;;  %v9303_v57 = vpop.eup %9302 }
 0xab9   : > { %v9305_v40 = vpop.eup %9304 }
 0xaba   : > { %6726 = vrot.lane.b32.xlu1 %v9305_v40, %s9575_s15  ;;  %v9307_v30 = vpop.eup %9306  ;;  %v13340_v40 = vpop.permute.xlu0 %6584 }
 0xabc   : > { %v8461_v41 = vpop.f32.mrb[220].mxu1  ;;  %6720 = vrot.lane.b32.xlu0 %v9303_v57, %s9575_s15 }
 0xabd   : > { %v13260_v42 = vadd.f32 %v8461_v41, %v13190_v48  ;;  %v6141_v16 = vpop.f32.mrb[221].mxu1 }
 0xabe   : > { %v8462_v2 = vpop.f32.mrb[222].mxu1  ;;  %v13270_v21 = vadd.f32 %v13190_v48, %v6141_v16  ;;  %6722 = vrot.lane.b32.xlu1 %v9307_v30, %s9575_s15  ;;  %v13342_v16 = vpop.permute.xlu1 %6582  ;;  %v7607_v30 = vmul.f32 -1.442695, %v13193_v55  ;;  %v7608_v55 = vmul.f32 -1.442695, %v13200_v18 }
 0xabf   : > { %v6144_v38 = vpop.f32.mrb[223].mxu1  ;;  %9308 = vtanh.f32 %v13260_v42  ;;  %v13275_v12 = vadd.f32 %v8462_v2, %v13190_v48 }
 0xac0   : > { %9310 = vtanh.f32 %v13270_v21  ;;  %v13283_v6 = vadd.f32 %v13190_v48, %v6144_v38 }
 0xac1   : > { %9312 = vtanh.f32 %v13275_v12 }
 0xac2   : > { %9314 = vtanh.f32 %v13283_v6 }
 0xac9   : > { %v9309_v60 = vpop.eup %9308 }
 0xaca   : > { %6732 = vrot.lane.b32.xlu0 %v9309_v60, %s9575_s15  ;;  %v9311_v1 = vpop.eup %9310  ;;  %v13352_v60 = vpop.permute.xlu0 %6588 }
 0xacb   : > { %v9313_v3 = vpop.eup %9312 }
 0xacc   : > { %v8465_v53 = vpop.f32.mrb[224].mxu1  ;;  %6734 = vrot.lane.b32.xlu1 %v9313_v3, %s9575_s15  ;;  %v9315_v61 = vpop.eup %9314 }
 0xacd   : > { %v6157_v10 = vpop.f32.mrb[225].mxu1  ;;  %v13296_v25 = vadd.f32 %v8465_v53, %v13190_v48 }
 0xace   : > { %v8466_v23 = vpop.f32.mrb[226].mxu1  ;;  %6728 = vrot.lane.b32.xlu0 %v9311_v1, %s9575_s15  ;;  %v13302_v31 = vadd.f32 %v13190_v48, %v6157_v10  ;;  %v13354_v1 = vpop.permute.xlu1 %6586 }
 0xacf   : > { %v6160_v8 = vpop.f32.mrb[227].mxu1  ;;  %9316 = vtanh.f32 %v13296_v25  ;;  %v13307_v0 = vadd.f32 %v8466_v23, %v13190_v48  ;;  %14635 = vst [vmem:[#allocation167_spill] sm:$0xff] %v13354_v1 }
 0xad0   : > { %6730 = vrot.lane.b32.xlu1 %v9315_v61, %s9575_s15  ;;  %9318 = vtanh.f32 %v13302_v31  ;;  %v13315_v49 = vadd.f32 %v13190_v48, %v6160_v8 }
 0xad1   : > { %9320 = vtanh.f32 %v13307_v0 }
 0xad2   : > { %9322 = vtanh.f32 %v13315_v49 }
 0xad9   : > { %v9317_v7 = vpop.eup %9316 }
 0xada   : > { %6740 = vrot.lane.b32.xlu0 %v9317_v7, %s9575_s15  ;;  %v9319_v33 = vpop.eup %9318 }
 0xadb   : > { %v9321_v34 = vpop.eup %9320 }
 0xadc   : > { %v8469_v44 = vpop.f32.mrb[228].mxu1  ;;  %6742 = vrot.lane.b32.xlu1 %v9321_v34, %s9575_s15  ;;  %v9323_v41 = vpop.eup %9322 }
 0xadd   : > { %v13323_v4 = vadd.f32 %v8469_v44, %v13190_v48  ;;  %v6173_v58 = vpop.f32.mrb[229].mxu1 }
 0xade   : > { %v8470_v46 = vpop.f32.mrb[230].mxu1  ;;  %v13328_v37 = vadd.f32 %v13190_v48, %v6173_v58  ;;  %6736 = vrot.lane.b32.xlu0 %v9319_v33, %s9575_s15  ;;  %v7605_v58 = vmul.f32 -1.442695, %v13197_v22 }
 0xadf   : > { %9324 = vtanh.f32 %v13323_v4  ;;  %v6176_v27 = vpop.f32.mrb[231].mxu1  ;;  %v13338_v57 = vadd.f32 %v8470_v46, %v13190_v48  ;;  %v13366_v46 = vpop.permute.xlu0 %6592 }
 0xae0   : > { %9326 = vtanh.f32 %v13328_v37  ;;  %v13346_v2 = vadd.f32 %v13190_v48, %v6176_v27  ;;  %6738 = vrot.lane.b32.xlu1 %v9323_v41, %s9575_s15  ;;  %14636 = vst [vmem:[#allocation165_spill] sm:$0xff] %v13366_v46  ;;  %v13369_v27 = vpop.permute.xlu1 %6590  ;;  %v7606_v41 = vmul.f32 -1.442695, %v13205_v47 }
 0xae1   : > { %9328 = vtanh.f32 %v13338_v57 }
 0xae2   : > { %9330 = vtanh.f32 %v13346_v2 }
 0xae3   : > { %9332 = vpow2.f32 %v7607_v30 }
 0xae9   : > { %v9325_v38 = vpop.eup %9324 }
 0xaea   : > { %6748 = vrot.lane.b32.xlu0 %v9325_v38, %s9575_s15  ;;  %v9327_v10 = vpop.eup %9326  ;;  %v13381_v38 = vpop.permute.xlu0 %6596 }
 0xaeb   : > { %v9329_v7 = vpop.eup %9328  ;;  %14637 = vst [vmem:[#allocation85_spill] sm:$0xff] %v13381_v38 }
 0xaec   : > { %v8473_v53 = vpop.f32.mrb[232].mxu1  ;;  %6750 = vrot.lane.b32.xlu1 %v9329_v7, %s9575_s15  ;;  %v9331_v18 = vpop.eup %9330 }
 0xaed   : > { %v13357_v23 = vadd.f32 %v8473_v53, %v13190_v48  ;;  %v6189_v8 = vpop.f32.mrb[233].mxu1  ;;  %v9333_v34 = vpop.eup %9332  ;;  %v7611_v53 = vmul.f32 -1.442695, %v13208_v28 }
 0xaee   : > { %6744 = vrot.lane.b32.xlu0 %v9327_v10, %s9575_s15  ;;  %v8474_v3 = vpop.f32.mrb[234].mxu1  ;;  %v13363_v44 = vadd.f32 %v13190_v48, %v6189_v8  ;;  %v13384_v10 = vpop.permute.xlu1 %6594  ;;  %v6354_v8 = vadd.f32 1.0, %v9333_v34 }
 0xaef   : > { %9334 = vtanh.f32 %v13357_v23  ;;  %v6192_v61 = vpop.f32.mrb[235].mxu1  ;;  %v13372_v33 = vadd.f32 %v8474_v3, %v13190_v48  ;;  %14638 = vst [vmem:[#allocation86_spill] sm:$0xff] %v13384_v10  ;;  %v13392_v28 = vpop.permute.xlu0 %6600 }
 0xaf0   : > { %9336 = vpow2.f32 %v7608_v55  ;;  %6746 = vrot.lane.b32.xlu1 %v9331_v18, %s9575_s15  ;;  %v13378_v22 = vadd.f32 %v13190_v48, %v6192_v61  ;;  %14639 = vst [vmem:[#allocation87_spill] sm:$0xff] %v13392_v28 }
 0xaf1   : > { %9338 = vtanh.f32 %v13363_v44 }
 0xaf2   : > { %9340 = vpow2.f32 %v7605_v58  ;;  %v7609_v58 = vmul.f32 -1.442695, %v13212_v59  ;;  %v13395_v10 = vpop.permute.xlu1 %6598 }
 0xaf3   : > { %9342 = vtanh.f32 %v13372_v33  ;;  %14640 = vst [vmem:[#allocation88_spill] sm:$0xff] %v13395_v10 }
 0xaf4   : > { %9344 = vtanh.f32 %v13378_v22 }
 0xaf5   : > { %9346 = vpow2.f32 %v7606_v41 }
 0xaf6   : > { %9348 = vpow2.f32 %v7611_v53 }
 0xaf7   : > { %9350 = vrcp.f32 %v6354_v8 }
 0xaf9   : > { %v9335_v30 = vpop.eup %9334 }
 0xafa   : > { %6756 = vrot.lane.b32.xlu0 %v9335_v30, %s9575_s15  ;;  %v9337_v55 = vpop.eup %9336  ;;  %v7612_v30 = vmul.f32 -1.442695, %v13216_v14  ;;  %v13406_v14 = vpop.permute.xlu0 %6604 }
 0xafb   : > { %v9339_v7 = vpop.eup %9338  ;;  %v6355_v8 = vadd.f32 1.0, %v9337_v55  ;;  %14641 = vst [vmem:[#allocation139_spill] sm:$0xff] %v13406_v14  ;;  %v7615_v55 = vmul.f32 -1.442695, %v13233_v45 }
 0xafc   : > { %v9341_v34 = vpop.eup %9340 }
 0xafd   : > { %v8477_v3 = vpop.f32.mrb[236].mxu1  ;;  %v6352_v46 = vadd.f32 1.0, %v9341_v34 }
 0xafe   : > { %v13389_v61 = vadd.f32 %v8477_v3, %v13190_v48  ;;  %v6205_v47 = vpop.f32.mrb[237].mxu1  ;;  %6752 = vrot.lane.b32.xlu0 %v9339_v7, %s9575_s15  ;;  %v9343_v3 = vpop.eup %9342 }
 0xaff   : > { %v8478_v18 = vpop.f32.mrb[238].mxu1  ;;  %v13400_v53 = vadd.f32 %v13190_v48, %v6205_v47  ;;  %6758 = vrot.lane.b32.xlu1 %v9343_v3, %s9575_s15  ;;  %v9345_v28 = vpop.eup %9344 }
 0xb00   : > { %9352 = vtanh.f32 %v13389_v61  ;;  %v6208_v41 = vpop.f32.mrb[239].mxu1  ;;  %v13404_v59 = vadd.f32 %v8478_v18, %v13190_v48  ;;  %v13409_v7 = vpop.permute.xlu1 %6602 }
 0xb01   : > { %9354 = vpow2.f32 %v7609_v58  ;;  %14642 = vst [vmem:[#allocation140_spill] sm:$0xff] %v13409_v7  ;;  %v9347_v47 = vpop.eup %9346  ;;  %v13415_v18 = vadd.f32 %v13190_v48, %v6208_v41  ;;  %v6709_v7 = vpop.permute.xlu0 %6708 }
 0xb02   : > { %9356 = vpow2.f32 %v7612_v30  ;;  %v9349_v58 = vpop.eup %9348  ;;  %v7610_v30 = vmul.f32 -1.442695, %v13222_v43 }
 0xb03   : > { %9358 = vtanh.f32 %v13400_v53  ;;  %6754 = vrot.lane.b32.xlu1 %v9345_v28, %s9575_s15  ;;  %v13417_v34 = vpop.eup %9350  ;;  %v6358_v14 = vadd.f32 1.0, %v9349_v58 }
 0xb04   : > { %9360 = vrcp.f32 %v6355_v8  ;;  %v6353_v8 = vadd.f32 1.0, %v9347_v47  ;;  %v6482_v45 = vsub.f32 1.0, %v13417_v34  ;;  %v6802_v41 = vmul.f32 %v13417_v34, %v6709_v7 }
 0xb05   : > { %9362 = vrcp.f32 %v6352_v46  ;;  %v13422_v46 = vpop.permute.xlu1 %6606  ;;  %v7616_v47 = vmul.f32 -1.442695, %v13242_v39 }
 0xb06   : > { %9364 = vtanh.f32 %v13404_v59  ;;  %14643 = vst [vmem:[#allocation137_spill] sm:$0xff] %v13422_v46  ;;  %v6642_v58 = vmul.f32 %v13247_v5, %v6482_v45 }
 0xb07   : > { %9366 = vpow2.f32 %v7615_v55 }
 0xb08   : > { %9368 = vtanh.f32 %v13415_v18  ;;  %v6834_v38 = vadd.f32 %v6802_v41, %v6642_v58 }
 0xb09   : > { %9370 = vpow2.f32 %v7610_v30  ;;  %v7613_v30 = vmul.f32 -1.442695, %v13239_v35 }
 0xb0a   : > { %v9353_v3 = vpop.eup %9352  ;;  %9372 = vrcp.f32 %v6353_v8  ;;  %v6711_v8 = vpop.permute.xlu1 %6710 }
 0xb0b   : > { %6764 = vrot.lane.b32.xlu0 %v9353_v3, %s9575_s15  ;;  %v9355_v28 = vpop.eup %9354  ;;  %9374 = vrcp.f32 %v6358_v14  ;;  %v6705_v14 = vpop.permute.xlu0 %6704 }
 0xb0c   : > { %v9357_v48 = vpop.eup %9356  ;;  %v6356_v1 = vadd.f32 1.0, %v9355_v28  ;;  %9376 = vpow2.f32 %v7616_v47 }
 0xb0d   : > { %v9359_v43 = vpop.eup %9358  ;;  %v6359_v46 = vadd.f32 1.0, %v9357_v48 }
 0xb0e   : > { %v13427_v55 = vpop.eup %9360 }
 0xb0f   : > { %6760 = vrot.lane.b32.xlu0 %v9359_v43, %s9575_s15  ;;  %v13431_v3 = vpop.eup %9362  ;;  %v6483_v7 = vsub.f32 1.0, %v13427_v55  ;;  %9378 = vrcp.f32 %v6359_v46  ;;  %v6803_v45 = vmul.f32 %v13427_v55, %v6711_v8  ;;  %v7614_v43 = vmul.f32 -1.442695, %v13251_v29  ;;  %v6717_v29 = vpop.permute.xlu0 %6716 }
 0xb10   : > { %14644 = vst [vmem:[#allocation138_spill] sm:$0xff] %v13431_v3  ;;  %v9365_v10 = vpop.eup %9364  ;;  %v6480_v39 = vsub.f32 1.0, %v13431_v3  ;;  %9380 = vpow2.f32 %v7613_v30  ;;  %v6800_v35 = vmul.f32 %v13431_v3, %v6705_v14  ;;  %v7619_v30 = vmul.f32 -1.442695, %v13260_v42  ;;  %v6707_v3 = vpop.permute.xlu1 %6706 }
 0xb11   : > { %6766 = vrot.lane.b32.xlu1 %v9365_v10, %s9575_s15  ;;  %v9367_v5 = vpop.eup %9366  ;;  %9382 = vrcp.f32 %v6356_v1  ;;  %v6643_v28 = vmul.f32 %v13256_v20, %v6483_v7 }
 0xb12   : > { %v9369_v48 = vpop.eup %9368  ;;  %v6640_v47 = vmul.f32 %v13235_v56, %v6480_v39  ;;  %v6362_v58 = vadd.f32 1.0, %v9367_v5  ;;  %9384 = vpow2.f32 %v7614_v43  ;;  %v7617_v43 = vmul.f32 -1.442695, %v13270_v21 }
 0xb13   : > { %6900 = vrot.lane.b32.xlu0 %v6834_v38, %s9575_s15  ;;  %v9371_v41 = vpop.eup %9370  ;;  %v6835_v8 = vadd.f32 %v6803_v45, %v6643_v28  ;;  %v7620_v45 = vmul.f32 -1.442695, %v13275_v12  ;;  %v6713_v12 = vpop.permute.xlu0 %6712 }
 0xb14   : > { %v13443_v10 = vpop.eup %9372  ;;  %v6357_v14 = vadd.f32 1.0, %v9371_v41  ;;  %v6832_v1 = vadd.f32 %v6800_v35, %v6640_v47  ;;  %9386 = vrcp.f32 %v6362_v58  ;;  %v6719_v58 = vpop.permute.xlu1 %6718 }
 0xb15   : > { %6762 = vrot.lane.b32.xlu1 %v9369_v48, %s9575_s15  ;;  %v13447_v46 = vpop.eup %9374  ;;  %v6481_v20 = vsub.f32 1.0, %v13443_v10  ;;  %9388 = vpow2.f32 %v7619_v30 }
 0xb16   : > { %v6486_v7 = vsub.f32 1.0, %v13447_v46  ;;  %v9377_v56 = vpop.eup %9376  ;;  %9390 = vrcp.f32 %v6357_v14  ;;  %v6806_v42 = vmul.f32 %v13447_v46, %v6717_v29 }
 0xb17   : > { %7028 = vrot.lane.b32.xlu0 %v6834_v38, %s9573_s30  ;;  %v6801_v38 = vmul.f32 %v13443_v10, %v6707_v3  ;;  %v6641_v5 = vmul.f32 %v13244_v26, %v6481_v20  ;;  %v6363_v41 = vadd.f32 1.0, %v9377_v56  ;;  %9392 = vpow2.f32 %v7620_v45 }
 0xb18   : > { %v6646_v35 = vmul.f32 %v13263_v36, %v6486_v7 }
 0xb19   : > { %6902 = vrot.lane.b32.xlu1 %v6835_v8, %s9575_s15  ;;  %v13456_v39 = vpop.eup %9378  ;;  %v6833_v3 = vadd.f32 %v6801_v38, %v6641_v5  ;;  %9394 = vrcp.f32 %v6363_v41  ;;  %v7618_v38 = vmul.f32 -1.442695, %v13283_v6  ;;  %v6715_v41 = vpop.permute.xlu1 %6714 }
 0xb1a   : > { %v9381_v48 = vpop.eup %9380  ;;  %v6838_v47 = vadd.f32 %v6806_v42, %v6646_v35  ;;  %v6487_v30 = vsub.f32 1.0, %v13456_v39  ;;  %v6807_v14 = vmul.f32 %v13456_v39, %v6719_v58  ;;  %9396 = vpow2.f32 %v7617_v43 }
 0xb1b   : > { %6896 = vrot.lane.b32.xlu0 %v6832_v1, %s9575_s15  ;;  %v13463_v28 = vpop.eup %9382  ;;  %v6360_v26 = vadd.f32 1.0, %v9381_v48 }
 0xb1c   : > { %v9385_v36 = vpop.eup %9384  ;;  %v6804_v21 = vmul.f32 %v13463_v28, %v6713_v12  ;;  %v6647_v29 = vmul.f32 %v13279_v19, %v6487_v30 }
 0xb1d   : > { %7030 = vrot.lane.b32.xlu1 %v6835_v8, %s9573_s30  ;;  %v6484_v8 = vsub.f32 1.0, %v13463_v28  ;;  %9398 = vrcp.f32 %v6360_v26  ;;  %v6361_v42 = vadd.f32 1.0, %v9385_v36 }
 0xb1e   : > { %v6839_v5 = vadd.f32 %v6807_v14, %v6647_v29  ;;  %9400 = vpow2.f32 %v7618_v38 }
 0xb1f   : > { %7024 = vrot.lane.b32.xlu0 %v6832_v1, %s9573_s30  ;;  %v13471_v1 = vpop.eup %9386  ;;  %v6644_v56 = vmul.f32 %v13254_v32, %v6484_v8  ;;  %9402 = vrcp.f32 %v6361_v42  ;;  %v7621_v42 = vmul.f32 -1.442695, %v13302_v31  ;;  %v7622_v31 = vmul.f32 -1.442695, %v13315_v49 }
 0xb20   : > { %v9389_v20 = vpop.eup %9388  ;;  %v6490_v45 = vsub.f32 1.0, %v13471_v1 }
 0xb21   : > { %6898 = vrot.lane.b32.xlu1 %v6833_v3, %s9575_s15  ;;  %v13476_v7 = vpop.eup %9390  ;;  %v6366_v48 = vadd.f32 1.0, %v9389_v20  ;;  %v6836_v35 = vadd.f32 %v6804_v21, %v6644_v56  ;;  %v7624_v21 = vmul.f32 -1.442695, %v13307_v0 }
 0xb22   : > { %v6485_v19 = vsub.f32 1.0, %v13476_v7  ;;  %v9393_v6 = vpop.eup %9392  ;;  %v6805_v43 = vmul.f32 %v13476_v7, %v6715_v41  ;;  %v6650_v30 = vmul.f32 %v13285_v51, %v6490_v45 }
 0xb23   : > { %6908 = vrot.lane.b32.xlu0 %v6838_v47, %s9575_s15  ;;  %v13488_v58 = vpop.eup %9394  ;;  %9404 = vrcp.f32 %v6366_v48 }
 0xb24   : > { %v6645_v26 = vmul.f32 %v13266_v9, %v6485_v19  ;;  %v9397_v12 = vpop.eup %9396  ;;  %v6491_v14 = vsub.f32 1.0, %v13488_v58 }
 0xb25   : > { %7026 = vrot.lane.b32.xlu1 %v6833_v3, %s9573_s30  ;;  %v7623_v3 = vmul.f32 -1.442695, %v13296_v25  ;;  %v6367_v25 = vadd.f32 1.0, %v9393_v6  ;;  %v6364_v51 = vadd.f32 1.0, %v9397_v12 }
 0xb26   : > { %v6837_v20 = vadd.f32 %v6805_v43, %v6645_v26 }
 0xb27   : > { %7036 = vrot.lane.b32.xlu0 %v6838_v47, %s9573_s30  ;;  %9406 = vpow2.f32 %v7623_v3  ;;  %v13494_v36 = vpop.eup %9398 }
 0xb28   : > { %v6488_v38 = vsub.f32 1.0, %v13494_v36  ;;  %9408 = vrcp.f32 %v6367_v25  ;;  %v9401_v45 = vpop.eup %9400 }
 0xb29   : > { %6910 = vrot.lane.b32.xlu1 %v6839_v5, %s9575_s15  ;;  %9410 = vpow2.f32 %v7624_v21  ;;  %v13505_v48 = vpop.eup %9402  ;;  %v7628_v21 = vmul.f32 -1.442695, %v13338_v57 }
 0xb2a   : > { %v6725_v32 = vpop.permute.xlu0 %6724  ;;  %9412 = vrcp.f32 %v6364_v51  ;;  %v6648_v19 = vmul.f32 %v13272_v17, %v6488_v38 }
 0xb2b   : > { %6904 = vrot.lane.b32.xlu0 %v6836_v35, %s9575_s15  ;;  %v6810_v47 = vmul.f32 %v13471_v1, %v6725_v32  ;;  %9414 = vpow2.f32 %v7621_v42  ;;  %v7627_v32 = vmul.f32 -1.442695, %v13323_v4 }
 0xb2c   : > { %v6727_v29 = vpop.permute.xlu1 %6726  ;;  %9416 = vpow2.f32 %v7622_v31 }
 0xb2d   : > { %7038 = vrot.lane.b32.xlu1 %v6839_v5, %s9573_s30  ;;  %v6842_v8 = vadd.f32 %v6810_v47, %v6650_v30  ;;  %v6811_v9 = vmul.f32 %v13488_v58, %v6727_v29  ;;  %v6651_v5 = vmul.f32 %v13293_v54, %v6491_v14  ;;  %v13508_v41 = vpop.eup %9404  ;;  %v6365_v54 = vadd.f32 1.0, %v9401_v45 }
 0xb2e   : > { %v6721_v56 = vpop.permute.xlu0 %6720  ;;  %v6489_v47 = vsub.f32 1.0, %v13505_v48  ;;  %v6494_v30 = vsub.f32 1.0, %v13508_v41 }
 0xb2f   : > { %7032 = vrot.lane.b32.xlu0 %v6836_v35, %s9573_s30  ;;  %v6808_v0 = vmul.f32 %v13494_v36, %v6721_v56  ;;  %v6843_v35 = vadd.f32 %v6811_v9, %v6651_v5  ;;  %9418 = vrcp.f32 %v6365_v54  ;;  %v7626_v54 = vmul.f32 -1.442695, %v13346_v2 }
 0xb30   : > { %v6723_v43 = vpop.permute.xlu1 %6722  ;;  %9420 = vpow2.f32 %v7627_v32  ;;  %v6649_v25 = vmul.f32 %v13287_v62, %v6489_v47 }
 0xb31   : > { %6906 = vrot.lane.b32.xlu1 %v6837_v20, %s9575_s15  ;;  %v9407_v3 = vpop.eup %9406  ;;  %v6840_v6 = vadd.f32 %v6808_v0, %v6648_v19  ;;  %v6809_v49 = vmul.f32 %v13505_v48, %v6723_v43 }
 0xb32   : > { %v6370_v17 = vadd.f32 1.0, %v9407_v3  ;;  %v13519_v26 = vpop.eup %9408 }
 0xb33   : > { %6916 = vrot.lane.b32.xlu0 %v6842_v8, %s9575_s15  ;;  %v9411_v4 = vpop.eup %9410  ;;  %v6495_v29 = vsub.f32 1.0, %v13519_v26  ;;  %v6841_v51 = vadd.f32 %v6809_v49, %v6649_v25  ;;  %v7632_v25 = vmul.f32 -1.442695, %v13372_v33 }
 0xb34   : > { %9422 = vrcp.f32 %v6370_v17  ;;  %v6371_v38 = vadd.f32 1.0, %v9411_v4 }
 0xb35   : > { %7034 = vrot.lane.b32.xlu1 %v6837_v20, %s9573_s30  ;;  %v13527_v20 = vpop.eup %9412  ;;  %9424 = vpow2.f32 %v7628_v21  ;;  %v6655_v5 = vmul.f32 %v13319_v15, %v6495_v29 }
 0xb36   : > { %v9415_v56 = vpop.eup %9414  ;;  %v6492_v57 = vsub.f32 1.0, %v13527_v20  ;;  %9426 = vrcp.f32 %v6371_v38  ;;  %v7629_v38 = vmul.f32 -1.442695, %v13363_v44 }
 0xb37   : > { %7044 = vrot.lane.b32.xlu0 %v6842_v8, %s9573_s30  ;;  %v6654_v8 = vmul.f32 %v13304_v52, %v6494_v30  ;;  %v7625_v52 = vmul.f32 -1.442695, %v13328_v37  ;;  %v6368_v45 = vadd.f32 1.0, %v9415_v56 }
 0xb38   : > { %v6652_v32 = vmul.f32 %v13291_v11, %v6492_v57 }
 0xb39   : > { %6918 = vrot.lane.b32.xlu1 %v6843_v35, %s9575_s15  ;;  %9428 = vpow2.f32 %v7625_v52 }
 0xb3a   : > { %9430 = vrcp.f32 %v6368_v45 }
 0xb3b   : > { %6912 = vrot.lane.b32.xlu0 %v6840_v6, %s9575_s15  ;;  %9432 = vpow2.f32 %v7626_v54 }
 0xb3c   : > { %v6733_v12 = vpop.permute.xlu0 %6732 }
 0xb3d   : > { %7046 = vrot.lane.b32.xlu1 %v6843_v35, %s9573_s30  ;;  %v6814_v14 = vmul.f32 %v13508_v41, %v6733_v12  ;;  %v9417_v35 = vpop.eup %9416 }
 0xb3e   : > { %v6735_v42 = vpop.permute.xlu1 %6734  ;;  %v13537_v31 = vpop.eup %9418  ;;  %v6369_v15 = vadd.f32 1.0, %v9417_v35 }
 0xb3f   : > { %7040 = vrot.lane.b32.xlu0 %v6840_v6, %s9573_s30  ;;  %v6846_v9 = vadd.f32 %v6814_v14, %v6654_v8  ;;  %v6815_v0 = vmul.f32 %v13519_v26, %v6735_v42  ;;  %v9421_v3 = vpop.eup %9420  ;;  %v7631_v6 = vmul.f32 -1.442695, %v13357_v23  ;;  %v6493_v2 = vsub.f32 1.0, %v13537_v31 }
 0xb40   : > { %v6729_v62 = vpop.permute.xlu0 %6728  ;;  %v13544_v30 = vpop.eup %9422  ;;  %v6374_v17 = vadd.f32 1.0, %v9421_v3  ;;  %9434 = vrcp.f32 %v6369_v15 }
 0xb41   : > { %6914 = vrot.lane.b32.xlu1 %v6841_v51, %s9575_s15  ;;  %v6812_v19 = vmul.f32 %v13527_v20, %v6729_v62  ;;  %v6847_v37 = vadd.f32 %v6815_v0, %v6655_v5  ;;  %v9425_v49 = vpop.eup %9424  ;;  %9436 = vpow2.f32 %v7631_v6  ;;  %v6498_v12 = vsub.f32 1.0, %v13544_v30 }
 0xb42   : > { %v6731_v47 = vpop.permute.xlu1 %6730  ;;  %9438 = vrcp.f32 %v6374_v17  ;;  %v6653_v23 = vmul.f32 %v13309_v13, %v6493_v2  ;;  %v13553_v4 = vpop.eup %9426  ;;  %v6375_v8 = vadd.f32 1.0, %v9425_v49 }
 0xb43   : > { %6924 = vrot.lane.b32.xlu0 %v6846_v9, %s9575_s15  ;;  %v6844_v43 = vadd.f32 %v6812_v19, %v6652_v32  ;;  %v6813_v11 = vmul.f32 %v13537_v31, %v6731_v47  ;;  %v9429_v29 = vpop.eup %9428  ;;  %v6499_v13 = vsub.f32 1.0, %v13553_v4  ;;  %9440 = vpow2.f32 %v7632_v25 }
 0xb44   : > { %v13559_v56 = vpop.eup %9430  ;;  %v6372_v52 = vadd.f32 1.0, %v9429_v29  ;;  %9442 = vrcp.f32 %v6375_v8  ;;  %v7635_v32 = vmul.f32 -1.442695, %v13389_v61 }
 0xb45   : > { %7042 = vrot.lane.b32.xlu1 %v6841_v51, %s9573_s30  ;;  %v6845_v14 = vadd.f32 %v6813_v11, %v6653_v23  ;;  %v6658_v51 = vmul.f32 %v13330_v63, %v6498_v12  ;;  %v9433_v62 = vpop.eup %9432  ;;  %v6496_v5 = vsub.f32 1.0, %v13559_v56  ;;  %v6659_v45 = vmul.f32 %v13342_v16, %v6499_v13 }
 0xb46   : > { %v6373_v35 = vadd.f32 1.0, %v9433_v62  ;;  %9444 = vpow2.f32 %v7629_v38  ;;  %v7636_v23 = vmul.f32 -1.442695, %v13404_v59 }
 0xb47   : > { %7052 = vrot.lane.b32.xlu0 %v6846_v9, %s9573_s30  ;;  %9446 = vrcp.f32 %v6372_v52  ;;  %v6656_v15 = vmul.f32 %v13317_v50, %v6496_v5  ;;  %v7633_v50 = vmul.f32 -1.442695, %v13400_v53 }
 0xb48   : > { %9448 = vrcp.f32 %v6373_v35 }
 0xb49   : > { %6926 = vrot.lane.b32.xlu1 %v6847_v37, %s9575_s15 }
 0xb4a   : > { %v13566_v63 = vpop.eup %9434 }
 0xb4b   : > { %6920 = vrot.lane.b32.xlu0 %v6844_v43, %s9575_s15  ;;  %v9437_v44 = vpop.eup %9436 }
 0xb4c   : > { %v6741_v21 = vpop.permute.xlu0 %6740  ;;  %v13572_v54 = vpop.eup %9438  ;;  %v6378_v6 = vadd.f32 1.0, %v9437_v44 }
 0xb4d   : > { %7054 = vrot.lane.b32.xlu1 %v6847_v37, %s9573_s30  ;;  %v6818_v9 = vmul.f32 %v13544_v30, %v6741_v21  ;;  %v7630_v37 = vmul.f32 -1.442695, %v13378_v22  ;;  %v6502_v17 = vsub.f32 1.0, %v13572_v54  ;;  %v9441_v11 = vpop.eup %9440 }
 0xb4e   : > { %v6743_v57 = vpop.permute.xlu1 %6742  ;;  %v13585_v49 = vpop.eup %9442  ;;  %v6379_v8 = vadd.f32 1.0, %v9441_v11 }
 0xb4f   : > { %7048 = vrot.lane.b32.xlu0 %v6844_v43, %s9573_s30  ;;  %v6850_v33 = vadd.f32 %v6818_v9, %v6658_v51  ;;  %v6819_v0 = vmul.f32 %v13553_v4, %v6743_v57  ;;  %v6497_v43 = vsub.f32 1.0, %v13566_v63  ;;  %9450 = vpow2.f32 %v7630_v37 }
 0xb50   : > { %v6737_v42 = vpop.permute.xlu0 %6736  ;;  %9452 = vpow2.f32 %v7635_v32  ;;  %v6662_v25 = vmul.f32 %v13352_v60, %v6502_v17  ;;  %v9445_v21 = vpop.eup %9444  ;;  %v6503_v29 = vsub.f32 1.0, %v13585_v49 }
 0xb51   : > { %6922 = vrot.lane.b32.xlu1 %v6845_v14, %s9575_s15  ;;  %v6816_v19 = vmul.f32 %v13559_v56, %v6737_v42  ;;  %v6851_v3 = vadd.f32 %v6819_v0, %v6659_v45  ;;  %9454 = vrcp.f32 %v6378_v6  ;;  %v6657_v12 = vmul.f32 %v13332_v24, %v6497_v43  ;;  %v13593_v51 = vpop.eup %9446 }
 0xb52   : > { %v6739_v16 = vpop.permute.xlu1 %6738  ;;  %9456 = vpow2.f32 %v7633_v50  ;;  %v7634_v24 = vmul.f32 -1.442695, %v13415_v18  ;;  %v6376_v9 = vadd.f32 1.0, %v9445_v21  ;;  %v13597_v13 = vpop.eup %9448  ;;  %v6663_v38 = vmul.f32 %v13369_v27, %v6503_v29 }
 0xb53   : > { %6932 = vrot.lane.b32.xlu0 %v6850_v33, %s9575_s15  ;;  %v6848_v47 = vadd.f32 %v6816_v19, %v6656_v15  ;;  %v6817_v22 = vmul.f32 %v13566_v63, %v6739_v16  ;;  %9458 = vpow2.f32 %v7636_v23  ;;  %v6500_v62 = vsub.f32 1.0, %v13593_v51 }
 0xb54   : > { %9460 = vrcp.f32 %v6379_v8  ;;  %v6501_v35 = vsub.f32 1.0, %v13597_v13 }
 0xb55   : > { %7050 = vrot.lane.b32.xlu1 %v6845_v14, %s9573_s30  ;;  %v6849_v14 = vadd.f32 %v6817_v22, %v6657_v12  ;;  %9462 = vpow2.f32 %v7634_v24  ;;  %v6660_v27 = vmul.f32 %v13340_v40, %v6500_v62  ;;  %v14646_v22 = vld [vmem:[#allocation85_spill] sm:$0xff] }
 0xb56   : > { %9464 = vrcp.f32 %v6376_v9  ;;  %v14648_v62 = vld [vmem:[#allocation165_spill] sm:$0xff] }
 0xb57   : > { %7060 = vrot.lane.b32.xlu0 %v6850_v33, %s9573_s30 }
 0xb59   : > { %6934 = vrot.lane.b32.xlu1 %v6851_v3, %s9575_s15  ;;  %v9451_v52 = vpop.eup %9450 }
 0xb5a   : > { %v9453_v42 = vpop.eup %9452  ;;  %v6377_v45 = vadd.f32 1.0, %v9451_v52 }
 0xb5b   : > { %6928 = vrot.lane.b32.xlu0 %v6848_v47, %s9575_s15  ;;  %v13605_v5 = vpop.eup %9454  ;;  %v6382_v44 = vadd.f32 1.0, %v9453_v42 }
 0xb5c   : > { %v6749_v2 = vpop.permute.xlu0 %6748  ;;  %v9457_v19 = vpop.eup %9456  ;;  %9466 = vrcp.f32 %v6377_v45 }
 0xb5d   : > { %v6822_v61 = vmul.f32 %v13572_v54, %v6749_v2  ;;  %7062 = vrot.lane.b32.xlu1 %v6851_v3, %s9573_s30  ;;  %v6506_v3 = vsub.f32 1.0, %v13605_v5  ;;  %v9459_v16 = vpop.eup %9458  ;;  %9468 = vrcp.f32 %v6382_v44  ;;  %v6380_v43 = vadd.f32 1.0, %v9457_v19 }
 0xb5e   : > { %v6751_v59 = vpop.permute.xlu1 %6750  ;;  %v13615_v6 = vpop.eup %9460  ;;  %v6383_v11 = vadd.f32 1.0, %v9459_v16 }
 0xb5f   : > { %v6854_v53 = vadd.f32 %v6822_v61, %v6662_v25  ;;  %7056 = vrot.lane.b32.xlu0 %v6848_v47, %s9573_s30  ;;  %v6823_v33 = vmul.f32 %v13585_v49, %v6751_v59  ;;  %v14645_v47 = vld [vmem:[#allocation167_spill] sm:$0xff]  ;;  %v6666_v2 = vmul.f32 %v14646_v22, %v6506_v3  ;;  %v9463_v61 = vpop.eup %9462  ;;  %v6507_v23 = vsub.f32 1.0, %v13615_v6 }
 0xb60   : > { %v6745_v60 = vpop.permute.xlu0 %6744  ;;  %v6661_v17 = vmul.f32 %v14645_v47, %v6501_v35  ;;  %v13622_v25 = vpop.eup %9464  ;;  %9470 = vrcp.f32 %v6380_v43  ;;  %v6381_v8 = vadd.f32 1.0, %v9463_v61 }
 0xb61   : > { %6930 = vrot.lane.b32.xlu1 %v6849_v14, %s9575_s15  ;;  %v6855_v18 = vadd.f32 %v6823_v33, %v6663_v38  ;;  %v6820_v57 = vmul.f32 %v13593_v51, %v6745_v60  ;;  %9472 = vrcp.f32 %v6383_v11  ;;  %v6504_v9 = vsub.f32 1.0, %v13622_v25  ;;  %v14651_v11 = vld [vmem:[#allocation87_spill] sm:$0xff] }
 0xb62   : > { %v6747_v0 = vpop.permute.xlu1 %6746  ;;  %9474 = vrcp.f32 %v6381_v8 }
 0xb63   : > { %6940 = vrot.lane.b32.xlu0 %v6854_v53, %s9575_s15  ;;  %v6852_v37 = vadd.f32 %v6820_v57, %v6660_v27  ;;  %v6821_v32 = vmul.f32 %v13597_v13, %v6747_v0  ;;  %v6664_v52 = vmul.f32 %v14648_v62, %v6504_v9  ;;  %v14654_v62 = vld [vmem:[#allocation140_spill] sm:$0xff] }
 0xb65   : > { %7058 = vrot.lane.b32.xlu1 %v6849_v14, %s9573_s30  ;;  %v6853_v50 = vadd.f32 %v6821_v32, %v6661_v17  ;;  %v14650_v32 = vld [vmem:[#allocation139_spill] sm:$0xff] }
 0xb66   : > { %v13630_v59 = vpop.eup %9466 }
 0xb67   : > { %7068 = vrot.lane.b32.xlu0 %v6854_v53, %s9573_s30  ;;  %v14647_v53 = vld [vmem:[#allocation88_spill] sm:$0xff]  ;;  %v13633_v33 = vpop.eup %9468 }
 0xb68   : > { %v6667_v29 = vmul.f32 %v14647_v53, %v6507_v23  ;;  %v6510_v45 = vsub.f32 1.0, %v13633_v33 }
 0xb69   : > { %6942 = vrot.lane.b32.xlu1 %v6855_v18, %s9575_s15 }
 0xb6a   : > { %v13640_v27 = vpop.eup %9470 }
 0xb6b   : > { %6936 = vrot.lane.b32.xlu0 %v6852_v37, %s9575_s15  ;;  %v13645_v19 = vpop.eup %9472  ;;  %v6508_v16 = vsub.f32 1.0, %v13640_v27 }
 0xb6c   : > { %v6757_v15 = vpop.permute.xlu0 %6756  ;;  %v6511_v47 = vsub.f32 1.0, %v13645_v19  ;;  %v13653_v22 = vpop.eup %9474 }
 0xb6d   : > { %v6826_v40 = vmul.f32 %v13605_v5, %v6757_v15  ;;  %7070 = vrot.lane.b32.xlu1 %v6855_v18, %s9573_s30  ;;  %v6505_v18 = vsub.f32 1.0, %v13630_v59  ;;  %v6670_v15 = vmul.f32 %v14650_v32, %v6510_v45  ;;  %v14656_v32 = vld [vmem:[#allocation18_spill] sm:$0xff] }
 0xb6f   : > { %v6858_v12 = vadd.f32 %v6826_v40, %v6666_v2  ;;  %7064 = vrot.lane.b32.xlu0 %v6852_v37, %s9573_s30  ;;  %v14649_v37 = vld [vmem:[#allocation86_spill] sm:$0xff] }
 0xb70   : > { %v6753_v21 = vpop.permute.xlu0 %6752  ;;  %v6665_v3 = vmul.f32 %v14649_v37, %v6505_v18  ;;  %v14655_v37 = vld [vmem:[#allocation138_spill] sm:$0xff] }
 0xb71   : > { %6938 = vrot.lane.b32.xlu1 %v6853_v50, %s9575_s15  ;;  %v6759_v14 = vpop.permute.xlu1 %6758  ;;  %v6824_v38 = vmul.f32 %v13622_v25, %v6753_v21  ;;  %v6509_v21 = vsub.f32 1.0, %v13653_v22 }
 0xb72   : > { %v6827_v24 = vmul.f32 %v13615_v6, %v6759_v14 }
 0xb73   : > { %6948 = vrot.lane.b32.xlu0 %v6858_v12, %s9575_s15  ;;  %v6856_v57 = vadd.f32 %v6824_v38, %v6664_v52  ;;  %v6669_v52 = vmul.f32 %v14654_v62, %v6509_v21 }
 0xb74   : > { %v6859_v60 = vadd.f32 %v6827_v24, %v6667_v29 }
 0xb75   : > { %7066 = vrot.lane.b32.xlu1 %v6853_v50, %s9573_s30  ;;  %v6755_v42 = vpop.permute.xlu1 %6754  ;;  %v6668_v50 = vmul.f32 %v14651_v11, %v6508_v16 }
 0xb76   : > { %v6825_v0 = vmul.f32 %v13630_v59, %v6755_v42 }
 0xb77   : > { %7076 = vrot.lane.b32.xlu0 %v6858_v12, %s9573_s30  ;;  %v14652_v12 = vld [vmem:[#allocation137_spill] sm:$0xff] }
 0xb78   : > { %v6857_v40 = vadd.f32 %v6825_v0, %v6665_v3  ;;  %v6671_v23 = vmul.f32 %v14652_v12, %v6511_v47 }
 0xb79   : > { %6950 = vrot.lane.b32.xlu1 %v6859_v60, %s9575_s15 }
 0xb7b   : > { %6944 = vrot.lane.b32.xlu0 %v6856_v57, %s9575_s15 }
 0xb7d   : > { %v6765_v44 = vpop.permute.xlu0 %6764  ;;  %7078 = vrot.lane.b32.xlu1 %v6859_v60, %s9573_s30  ;;  %v14653_v60 = vld [vmem:[#allocation17_spill] sm:$0xff] }
 0xb7e   : > { %v6830_v35 = vmul.f32 %v13633_v33, %v6765_v44 }
 0xb7f   : > { %7072 = vrot.lane.b32.xlu0 %v6856_v57, %s9573_s30 }
 0xb80   : > { %v6862_v43 = vadd.f32 %v6830_v35, %v6670_v15 }
 0xb81   : > { %v6761_v17 = vpop.permute.xlu0 %6760  ;;  %6946 = vrot.lane.b32.xlu1 %v6857_v40, %s9575_s15 }
 0xb82   : > { %v6828_v2 = vmul.f32 %v13640_v27, %v6761_v17 }
 0xb83   : > { %v6767_v61 = vpop.permute.xlu1 %6766  ;;  %6956 = vrot.lane.b32.xlu0 %v6862_v43, %s9575_s15 }
 0xb84   : > { %v6831_v8 = vmul.f32 %v13645_v19, %v6767_v61  ;;  %v6860_v14 = vadd.f32 %v6828_v2, %v6668_v50 }
 0xb85   : > { %v6901_v53 = vpop.permute.xlu0 %6900  ;;  %7074 = vrot.lane.b32.xlu1 %v6857_v40, %s9573_s30  ;;  %v14657_v40 = vld [vmem:[#allocation15_spill] sm:$0xff] }
 0xb86   : > { %v6994_v29 = vmul.f32 %v13417_v34, %v6901_v53  ;;  %v6863_v24 = vadd.f32 %v6831_v8, %v6671_v23  ;;  %v14658_v8 = vld [vmem:[#allocation16_spill] sm:$0xff]  ;;  %v14659_v53 = vld [vmem:[#allocation21_spill] sm:$0xff] }
 0xb87   : > { %v6763_v9 = vpop.permute.xlu1 %6762  ;;  %6952 = vrot.lane.b32.xlu0 %v6860_v14, %s9575_s15 }
 0xb88   : > { %v7122_v38 = vsel %vm2624_vm0, %v6994_v29, %v14653_v60  ;;  %v6829_v42 = vmul.f32 %v13653_v22, %v6763_v9 }
 0xb89   : > { %v7029_v18 = vpop.permute.xlu0 %7028  ;;  %6958 = vrot.lane.b32.xlu1 %v6863_v24, %s9575_s15 }
 0xb8a   : > { %v7154_v57 = vsel %vm6010_vm1, %v7122_v38, %v7029_v18  ;;  %v6861_v34 = vadd.f32 %v6829_v42, %v6669_v52  ;;  %v14660_v18 = vld [vmem:[#allocation22_spill] sm:$0xff] }
 0xb8b   : > { %v7187_v45 = vsel %vm7184_vm2, %v7154_v57, 0.0  ;;  %v6903_v0 = vpop.permute.xlu1 %6902  ;;  %7080 = vrot.lane.b32.xlu0 %v6860_v14, %s9573_s30 }
 0xb8c   : > { %7219 = vst [vmem:[%s13675_s18 + $0x10] sm:$0xff] %v7187_v45  ;;  %v6995_v44 = vmul.f32 %v13427_v55, %v6903_v0  ;;  %v14661_v45 = vld [vmem:[#allocation19_spill] sm:$0xff] }
 0xb8d   : > { %v6897_v35 = vpop.permute.xlu0 %6896  ;;  %6954 = vrot.lane.b32.xlu1 %v6861_v34, %s9575_s15  ;;  %s7263_s15 = sshll.u32 %s13675_s18, 4  ;;  %s13873_s15 = int_to_ptr.vmem [resolvable:$true] %s7263_s15 }
 0xb8e   : > { %v6992_v3 = vmul.f32 %v14655_v37, %v6897_v35  ;;  %v7123_v15 = vsel %vm2624_vm0, %v6995_v44, %v14656_v32  ;;  %s9509_s26 = scalar_lea.vmem %s13873_s15, 4096  ;;  %p9516_p0 = scmp.lt.s32.totalorder %s13873_s15, %s9514_s17 }
 0xb8f   : > { %v7031_v16 = vpop.permute.xlu1 %7030  ;;  %7084 = vrot.lane.b32.xlu0 %v6862_v43, %s9573_s30  ;;  %p9510_p11 = scmp.ne.s32.totalorder %s13873_s15, %s9509_s26  ;;  %p9517_p1 = scmp.lt.s32.totalorder %s9515_s19, %s9509_s26 }
 0xb90   : > { %v7120_v47 = vsel %vm2624_vm0, %v6992_v3, %v14657_v40  ;;  %v7155_v17 = vsel %vm6010_vm1, %v7123_v15, %v7031_v16  ;;  %v14662_v40 = vld [vmem:[#allocation20_spill] sm:$0xff] }
 0xb91   : > { %v7025_v55 = vpop.permute.xlu0 %7024  ;;  %v7188_v2 = vsel %vm7184_vm2, %v7155_v17, 0.0  ;;  %7082 = vrot.lane.b32.xlu1 %v6861_v34, %s9573_s30  ;;  %p9511_p12 = pnand %p9510_p11, %p9682_p5  ;;  %p9518_p2 = por %p9517_p1, %p9516_p0 }
 0xb92   : > { %v7152_v11 = vsel %vm6010_vm1, %v7120_v47, %v7025_v55  ;;  %7220 = vst [vmem:[%s13675_s18 + $0x18] sm:$0xff] %v7188_v2  ;;  %v14663_v55 = vld [vmem:[#allocation25_spill] sm:$0xff] }
 0xb93   : > { %v7185_v50 = vsel %vm7184_vm2, %v7152_v11, 0.0  ;;  %v6899_v61 = vpop.permute.xlu1 %6898  ;;  %p9512_p13 = pneg %p9511_p12 }
 0xb94   : > { %7217 = vst [vmem:[%s13675_s18] sm:$0xff] %v7185_v50  ;;  %v6993_v12 = vmul.f32 %v13443_v10, %v6899_v61 }
 0xb95   : > { %v6909_v23 = vpop.permute.xlu0 %6908  ;;  %7086 = vrot.lane.b32.xlu1 %v6863_v24, %s9573_s30  ;;  %s7644_s30 = sshll.u32 %s9665_s25, 12  ;;  %s13880_s25 = scalar_lea.sflag [#allocation3], %s434_s20 }
 0xb96   : > { %v6998_v43 = vmul.f32 %v13447_v46, %v6909_v23  ;;  %v7121_v14 = vsel %vm2624_vm0, %v6993_v12, %v14658_v8  ;;  %s13871_s27 = scalar_lea.hbm %s13933_s12, %s7644_s30  ;;  %p9519_p3 = pnand %p9518_p2, %p9512_p13 }
 0xb97   : > { %v7027_v21 = vpop.permute.xlu1 %7026 }
 0xb98   : > { %v7126_v29 = vsel %vm2624_vm0, %v6998_v43, %v14659_v53  ;;  %v7153_v9 = vsel %vm6010_vm1, %v7121_v14, %v7027_v21  ;;  %v14664_v14 = vld [vmem:[#allocation26_spill] sm:$0xff] }
 0xb99   : > { %v7037_v60 = vpop.permute.xlu0 %7036  ;;  %v7186_v38 = vsel %vm7184_vm2, %v7153_v9, 0.0 }
 0xb9a   : > { %v7158_v10 = vsel %vm6010_vm1, %v7126_v29, %v7037_v60  ;;  %7218 = vst [vmem:[%s13675_s18 + $0x8] sm:$0xff] %v7186_v38  ;;  %v14665_v29 = vld [vmem:[#allocation23_spill] sm:$0xff] }
 0xb9b   : > { %v7191_v24 = vsel %vm7184_vm2, %v7158_v10, 0.0  ;;  %v6911_v46 = vpop.permute.xlu1 %6910 }
 0xb9c   : > { %7223 = vst [vmem:[%s13675_s18 + $0x30] sm:$0xff] %v7191_v24  ;;  %v6999_v62 = vmul.f32 %v13456_v39, %v6911_v46 }
 0xb9d   : > { %v6905_v52 = vpop.permute.xlu0 %6904 }
 0xb9e   : > { %v6996_v42 = vmul.f32 %v13463_v28, %v6905_v52  ;;  %v7127_v57 = vsel %vm2624_vm0, %v6999_v62, %v14660_v18 }
 0xb9f   : > { %v7039_v34 = vpop.permute.xlu1 %7038 }
 0xba0   : > { %v7124_v0 = vsel %vm2624_vm0, %v6996_v42, %v14661_v45  ;;  %v7159_v44 = vsel %vm6010_vm1, %v7127_v57, %v7039_v34  ;;  %v14666_v42 = vld [vmem:[#allocation24_spill] sm:$0xff]  ;;  %v14667_v34 = vld [vmem:[#allocation29_spill] sm:$0xff] }
 0xba1   : > { %v7033_v35 = vpop.permute.xlu0 %7032  ;;  %v7192_v37 = vsel %vm7184_vm2, %v7159_v44, 0.0 }
 0xba2   : > { %v7156_v3 = vsel %vm6010_vm1, %v7124_v0, %v7033_v35  ;;  %7224 = vst [vmem:[%s13675_s18 + $0x38] sm:$0xff] %v7192_v37 }
 0xba3   : > { %v7189_v39 = vsel %vm7184_vm2, %v7156_v3, 0.0  ;;  %v6907_v28 = vpop.permute.xlu1 %6906 }
 0xba4   : > { %7221 = vst [vmem:[%s13675_s18 + $0x20] sm:$0xff] %v7189_v39  ;;  %v6997_v32 = vmul.f32 %v13476_v7, %v6907_v28 }
 0xba5   : > { %v6917_v15 = vpop.permute.xlu0 %6916 }
 0xba6   : > { %v7002_v16 = vmul.f32 %v13471_v1, %v6917_v15  ;;  %v7125_v47 = vsel %vm2624_vm0, %v6997_v32, %v14662_v40  ;;  %v14668_v32 = vld [vmem:[#allocation30_spill] sm:$0xff]  ;;  %v14669_v40 = vld [vmem:[#allocation27_spill] sm:$0xff] }
 0xba7   : > { %v7035_v17 = vpop.permute.xlu1 %7034 }
 0xba8   : > { %v7130_v2 = vsel %vm2624_vm0, %v7002_v16, %v14663_v55  ;;  %v7157_v11 = vsel %vm6010_vm1, %v7125_v47, %v7035_v17 }
 0xba9   : > { %v7045_v50 = vpop.permute.xlu0 %7044  ;;  %v7190_v61 = vsel %vm7184_vm2, %v7157_v11, 0.0 }
 0xbaa   : > { %v7162_v12 = vsel %vm6010_vm1, %v7130_v2, %v7045_v50  ;;  %7222 = vst [vmem:[%s13675_s18 + $0x28] sm:$0xff] %v7190_v61  ;;  %v14670_v61 = vld [vmem:[#allocation28_spill] sm:$0xff] }
 0xbab   : > { %v7195_v7 = vsel %vm7184_vm2, %v7162_v12, 0.0  ;;  %v6919_v1 = vpop.permute.xlu1 %6918 }
 0xbac   : > { %7227 = vst [vmem:[%s13675_s18 + $0x50] sm:$0xff] %v7195_v7  ;;  %v7003_v23 = vmul.f32 %v13488_v58, %v6919_v1 }
 0xbad   : > { %v6913_v43 = vpop.permute.xlu0 %6912 }
 0xbae   : > { %v7000_v8 = vmul.f32 %v13494_v36, %v6913_v43  ;;  %v7131_v21 = vsel %vm2624_vm0, %v7003_v23, %v14664_v14  ;;  %v14671_v14 = vld [vmem:[#allocation33_spill] sm:$0xff] }
 0xbaf   : > { %v7047_v53 = vpop.permute.xlu1 %7046 }
 0xbb0   : > { %v7128_v9 = vsel %vm2624_vm0, %v7000_v8, %v14665_v29  ;;  %v7163_v60 = vsel %vm6010_vm1, %v7131_v21, %v7047_v53 }
 0xbb1   : > { %v7041_v38 = vpop.permute.xlu0 %7040  ;;  %v7196_v10 = vsel %vm7184_vm2, %v7163_v60, 0.0 }
 0xbb2   : > { %v7160_v24 = vsel %vm6010_vm1, %v7128_v9, %v7041_v38  ;;  %7228 = vst [vmem:[%s13675_s18 + $0x58] sm:$0xff] %v7196_v10 }
 0xbb3   : > { %v7193_v58 = vsel %vm7184_vm2, %v7160_v24, 0.0  ;;  %v6915_v36 = vpop.permute.xlu1 %6914 }
 0xbb4   : > { %7225 = vst [vmem:[%s13675_s18 + $0x40] sm:$0xff] %v7193_v58  ;;  %v7001_v46 = vmul.f32 %v13505_v48, %v6915_v36 }
 0xbb5   : > { %v6925_v62 = vpop.permute.xlu0 %6924 }
 0xbb6   : > { %v7006_v52 = vmul.f32 %v13508_v41, %v6925_v62  ;;  %v7129_v18 = vsel %vm2624_vm0, %v7001_v46, %v14666_v42  ;;  %v14673_v62 = vld [vmem:[#allocation31_spill] sm:$0xff] }
 0xbb7   : > { %v7043_v57 = vpop.permute.xlu1 %7042 }
 0xbb8   : > { %v7134_v45 = vsel %vm2624_vm0, %v7006_v52, %v14667_v34  ;;  %v7161_v0 = vsel %vm6010_vm1, %v7129_v18, %v7043_v57 }
 0xbb9   : > { %v7053_v44 = vpop.permute.xlu0 %7052  ;;  %v7194_v35 = vsel %vm7184_vm2, %v7161_v0, 0.0 }
 0xbba   : > { %v7166_v37 = vsel %vm6010_vm1, %v7134_v45, %v7053_v44  ;;  %7226 = vst [vmem:[%s13675_s18 + $0x48] sm:$0xff] %v7194_v35 }
 0xbbb   : > { %v7199_v48 = vsel %vm7184_vm2, %v7166_v37, 0.0  ;;  %v6927_v41 = vpop.permute.xlu1 %6926 }
 0xbbc   : > { %7231 = vst [vmem:[%s13675_s18 + $0x70] sm:$0xff] %v7199_v48  ;;  %v7007_v3 = vmul.f32 %v13519_v26, %v6927_v41  ;;  %v14675_v41 = vld [vmem:[#allocation37_spill] sm:$0xff] }
 0xbbd   : > { %v6921_v39 = vpop.permute.xlu0 %6920 }
 0xbbe   : > { %v7004_v28 = vmul.f32 %v13527_v20, %v6921_v39  ;;  %v7135_v15 = vsel %vm2624_vm0, %v7007_v3, %v14668_v32 }
 0xbbf   : > { %v7055_v16 = vpop.permute.xlu1 %7054 }
 0xbc0   : > { %v7132_v47 = vsel %vm2624_vm0, %v7004_v28, %v14669_v40  ;;  %v7167_v17 = vsel %vm6010_vm1, %v7135_v15, %v7055_v16 }
 0xbc1   : > { %v7049_v55 = vpop.permute.xlu0 %7048  ;;  %v7200_v2 = vsel %vm7184_vm2, %v7167_v17, 0.0 }
 0xbc2   : > { %v7164_v11 = vsel %vm6010_vm1, %v7132_v47, %v7049_v55  ;;  %7232 = vst [vmem:[%s13675_s18 + $0x78] sm:$0xff] %v7200_v2 }
 0xbc3   : > { %v7197_v26 = vsel %vm7184_vm2, %v7164_v11, 0.0  ;;  %v6923_v50 = vpop.permute.xlu1 %6922  ;;  %v14677_v11 = vld [vmem:[#allocation35_spill] sm:$0xff] }
 0xbc4   : > { %7229 = vst [vmem:[%s13675_s18 + $0x60] sm:$0xff] %v7197_v26  ;;  %v7005_v20 = vmul.f32 %v13537_v31, %v6923_v50 }
 0xbc5   : > { %v6933_v7 = vpop.permute.xlu0 %6932 }
 0xbc6   : > { %v7133_v12 = vsel %vm2624_vm0, %v7005_v20, %v14670_v61  ;;  %v7010_v23 = vmul.f32 %v13544_v30, %v6933_v7  ;;  %v14672_v30 = vld [vmem:[#allocation34_spill] sm:$0xff] }
 0xbc7   : > { %v7051_v1 = vpop.permute.xlu1 %7050 }
 0xbc8   : > { %v7165_v43 = vsel %vm6010_vm1, %v7133_v12, %v7051_v1  ;;  %v7138_v21 = vsel %vm2624_vm0, %v7010_v23, %v14671_v14 }
 0xbc9   : > { %v7198_v8 = vsel %vm7184_vm2, %v7165_v43, 0.0  ;;  %v7061_v53 = vpop.permute.xlu0 %7060 }
 0xbca   : > { %7230 = vst [vmem:[%s13675_s18 + $0x68] sm:$0xff] %v7198_v8  ;;  %v7170_v31 = vsel %vm6010_vm1, %v7138_v21, %v7061_v53  ;;  %v14679_v21 = vld [vmem:[#allocation12_spill] sm:$0xff] }
 0xbcb   : > { %v6935_v29 = vpop.permute.xlu1 %6934  ;;  %v7203_v60 = vsel %vm7184_vm2, %v7170_v31, 0.0 }
 0xbcc   : > { %v7011_v9 = vmul.f32 %v13553_v4, %v6935_v29  ;;  %7235 = vst [vmem:[%s13675_s18 + $0x90] sm:$0xff] %v7203_v60 }
 0xbcd   : > { %v6929_v10 = vpop.permute.xlu0 %6928 }
 0xbce   : > { %v7139_v38 = vsel %vm2624_vm0, %v7011_v9, %v14672_v30  ;;  %v7008_v58 = vmul.f32 %v13559_v56, %v6929_v10  ;;  %v14674_v56 = vld [vmem:[#allocation32_spill] sm:$0xff] }
 0xbcf   : > { %v7063_v24 = vpop.permute.xlu1 %7062 }
 0xbd0   : > { %v7171_v36 = vsel %vm6010_vm1, %v7139_v38, %v7063_v24  ;;  %v7136_v52 = vsel %vm2624_vm0, %v7008_v58, %v14673_v62 }
 0xbd1   : > { %v7204_v46 = vsel %vm7184_vm2, %v7171_v36, 0.0  ;;  %v7057_v4 = vpop.permute.xlu0 %7056 }
 0xbd2   : > { %7236 = vst [vmem:[%s13675_s18 + $0x98] sm:$0xff] %v7204_v46  ;;  %v7168_v18 = vsel %vm6010_vm1, %v7136_v52, %v7057_v4  ;;  %v14681_v46 = vld [vmem:[#allocation10_spill] sm:$0xff] }
 0xbd3   : > { %v6931_v42 = vpop.permute.xlu1 %6930  ;;  %v7201_v34 = vsel %vm7184_vm2, %v7168_v18, 0.0 }
 0xbd4   : > { %v7009_v57 = vmul.f32 %v13566_v63, %v6931_v42  ;;  %7233 = vst [vmem:[%s13675_s18 + $0x80] sm:$0xff] %v7201_v34 }
 0xbd5   : > { %v6941_v0 = vpop.permute.xlu0 %6940 }
 0xbd6   : > { %v7137_v45 = vsel %vm2624_vm0, %v7009_v57, %v14674_v56  ;;  %v7014_v35 = vmul.f32 %v13572_v54, %v6941_v0  ;;  %v14676_v54 = vld [vmem:[#allocation9_spill] sm:$0xff]  ;;  %v14682_v57 = vld [vmem:[#allocation11_spill] sm:$0xff] }
 0xbd7   : > { %v7059_v44 = vpop.permute.xlu1 %7058 }
 0xbd8   : > { %v7169_v37 = vsel %vm6010_vm1, %v7137_v45, %v7059_v44  ;;  %v7142_v3 = vsel %vm2624_vm0, %v7014_v35, %v14675_v41 }
 0xbd9   : > { %v7202_v48 = vsel %vm7184_vm2, %v7169_v37, 0.0  ;;  %v7069_v63 = vpop.permute.xlu0 %7068 }
 0xbda   : > { %7234 = vst [vmem:[%s13675_s18 + $0x88] sm:$0xff] %v7202_v48  ;;  %v7174_v28 = vsel %vm6010_vm1, %v7142_v3, %v7069_v63  ;;  %v14683_v48 = vld [vmem:[#allocation38_spill] sm:$0xff] }
 0xbdb   : > { %v6943_v39 = vpop.permute.xlu1 %6942  ;;  %v7207_v15 = vsel %vm7184_vm2, %v7174_v28, 0.0 }
 0xbdc   : > { %v7015_v32 = vmul.f32 %v13585_v49, %v6943_v39  ;;  %7239 = vst [vmem:[%s13675_s18 + $0xb0] sm:$0xff] %v7207_v15  ;;  %v14684_v15 = vld [vmem:[#allocation39_spill] sm:$0xff] }
 0xbdd   : > { %v6937_v40 = vpop.permute.xlu0 %6936 }
 0xbde   : > { %v7143_v16 = vsel %vm2624_vm0, %v7015_v32, %v14676_v54  ;;  %v7012_v17 = vmul.f32 %v13593_v51, %v6937_v40  ;;  %v14678_v51 = vld [vmem:[#allocation36_spill] sm:$0xff] }
 0xbdf   : > { %v7071_v47 = vpop.permute.xlu1 %7070  ;;  %v14685_v54 = vld [vmem:[#allocation40_spill] sm:$0xff] }
 0xbe0   : > { %v7175_v55 = vsel %vm6010_vm1, %v7143_v16, %v7071_v47  ;;  %v7140_v26 = vsel %vm2624_vm0, %v7012_v17, %v14677_v11  ;;  %v14686_v11 = vld [vmem:[#allocation14_spill] sm:$0xff] }
 0xbe1   : > { %v7208_v2 = vsel %vm7184_vm2, %v7175_v55, 0.0  ;;  %v7065_v49 = vpop.permute.xlu0 %7064 }
 0xbe2   : > { %7240 = vst [vmem:[%s13675_s18 + $0xb8] sm:$0xff] %v7208_v2  ;;  %v7172_v20 = vsel %vm6010_vm1, %v7140_v26, %v7065_v49 }
 0xbe3   : > { %v6939_v50 = vpop.permute.xlu1 %6938  ;;  %v7205_v12 = vsel %vm7184_vm2, %v7172_v20, 0.0 }
 0xbe4   : > { %v7013_v61 = vmul.f32 %v13597_v13, %v6939_v50  ;;  %7237 = vst [vmem:[%s13675_s18 + $0xa0] sm:$0xff] %v7205_v12 }
 0xbe5   : > { %v6949_v1 = vpop.permute.xlu0 %6948 }
 0xbe6   : > { %v7141_v7 = vsel %vm2624_vm0, %v7013_v61, %v14678_v51  ;;  %v7018_v43 = vmul.f32 %v13605_v5, %v6949_v1  ;;  %v14680_v5 = vld [vmem:[#allocation13_spill] sm:$0xff] }
 0xbe7   : > { %v7067_v23 = vpop.permute.xlu1 %7066 }
 0xbe8   : > { %v7173_v8 = vsel %vm6010_vm1, %v7141_v7, %v7067_v23  ;;  %v7146_v53 = vsel %vm2624_vm0, %v7018_v43, %v14679_v21 }
 0xbe9   : > { %v7206_v14 = vsel %vm7184_vm2, %v7173_v8, 0.0  ;;  %v7077_v13 = vpop.permute.xlu0 %7076 }
 0xbea   : > { %7238 = vst [vmem:[%s13675_s18 + $0xa8] sm:$0xff] %v7206_v14  ;;  %v7178_v31 = vsel %vm6010_vm1, %v7146_v53, %v7077_v13 }
 0xbeb   : > { %v6951_v29 = vpop.permute.xlu1 %6950  ;;  %v7211_v60 = vsel %vm7184_vm2, %v7178_v31, 0.0 }
 0xbec   : > { %v7019_v9 = vmul.f32 %v13615_v6, %v6951_v29  ;;  %7243 = vst [vmem:[%s13675_s18 + $0xd0] sm:$0xff] %v7211_v60 }
 0xbed   : > { %v6945_v38 = vpop.permute.xlu0 %6944 }
 0xbee   : > { %v7147_v30 = vsel %vm2624_vm0, %v7019_v9, %v14680_v5  ;;  %v7016_v24 = vmul.f32 %v13622_v25, %v6945_v38 }
 0xbef   : > { %v7079_v10 = vpop.permute.xlu1 %7078 }
 0xbf0   : > { %v7179_v58 = vsel %vm6010_vm1, %v7147_v30, %v7079_v10  ;;  %v7144_v62 = vsel %vm2624_vm0, %v7016_v24, %v14681_v46 }
 0xbf1   : > { %v7212_v36 = vsel %vm7184_vm2, %v7179_v58, 0.0  ;;  %v7073_v6 = vpop.permute.xlu0 %7072 }
 0xbf2   : > { %7244 = vst [vmem:[%s13675_s18 + $0xd8] sm:$0xff] %v7212_v36  ;;  %v7176_v4 = vsel %vm6010_vm1, %v7144_v62, %v7073_v6 }
 0xbf3   : > { %v6947_v52 = vpop.permute.xlu1 %6946  ;;  %v7209_v18 = vsel %vm7184_vm2, %v7176_v4, 0.0 }
 0xbf4   : > { %v7017_v42 = vmul.f32 %v13630_v59, %v6947_v52  ;;  %7241 = vst [vmem:[%s13675_s18 + $0xc0] sm:$0xff] %v7209_v18 }
 0xbf5   : > { %v6957_v34 = vpop.permute.xlu0 %6956 }
 0xbf6   : > { %v7145_v25 = vsel %vm2624_vm0, %v7017_v42, %v14682_v57  ;;  %v7022_v41 = vmul.f32 %v13633_v33, %v6957_v34 }
 0xbf7   : > { %v7075_v56 = vpop.permute.xlu1 %7074 }
 0xbf8   : > { %v7177_v45 = vsel %vm6010_vm1, %v7145_v25, %v7075_v56  ;;  %v7150_v16 = vsel %vm2624_vm0, %v7022_v41, %v14685_v54 }
 0xbf9   : > { %v7210_v0 = vsel %vm7184_vm2, %v7177_v45, 0.0  ;;  %v6953_v44 = vpop.permute.xlu0 %6952 }
 0xbfa   : > { %7242 = vst [vmem:[%s13675_s18 + $0xc8] sm:$0xff] %v7210_v0  ;;  %v7020_v37 = vmul.f32 %v13640_v27, %v6953_v44 }
 0xbfb   : > { %v6959_v35 = vpop.permute.xlu1 %6958 }
 0xbfc   : > { %v7148_v59 = vsel %vm2624_vm0, %v7020_v37, %v14683_v48  ;;  %v7023_v33 = vmul.f32 %v13645_v19, %v6959_v35 }
 0xbfd   : > { %v7081_v3 = vpop.permute.xlu0 %7080 }
 0xbfe   : > { %v7180_v39 = vsel %vm6010_vm1, %v7148_v59, %v7081_v3  ;;  %v7151_v26 = vsel %vm2624_vm0, %v7023_v33, %v14686_v11 }
 0xbff   : > { %v6955_v63 = vpop.permute.xlu1 %6954  ;;  %v7213_v32 = vsel %vm7184_vm2, %v7180_v39, 0.0 }
 0xc00   : > { %v7021_v28 = vmul.f32 %v13653_v22, %v6955_v63  ;;  %7245 = vst [vmem:[%s13675_s18 + $0xe0] sm:$0xff] %v7213_v32 }
 0xc01   : > { %v7085_v40 = vpop.permute.xlu0 %7084 }
 0xc02   : > { %v7149_v27 = vsel %vm2624_vm0, %v7021_v28, %v14684_v15  ;;  %v7182_v17 = vsel %vm6010_vm1, %v7150_v16, %v7085_v40 }
 0xc03   : > { %v7083_v47 = vpop.permute.xlu1 %7082  ;;  %v7215_v22 = vsel %vm7184_vm2, %v7182_v17, 0.0 }
 0xc04   : > { %v7181_v55 = vsel %vm6010_vm1, %v7149_v27, %v7083_v47  ;;  %7247 = vst [vmem:[%s13675_s18 + $0xf0] sm:$0xff] %v7215_v22 }
 0xc05   : > { %v7214_v2 = vsel %vm7184_vm2, %v7181_v55, 0.0 }
 0xc06   : > { %7246 = vst [vmem:[%s13675_s18 + $0xe8] sm:$0xff] %v7214_v2 }
 0xc07   : > { %v7087_v19 = vpop.permute.xlu1 %7086 }
 0xc08   : > { %v7183_v49 = vsel %vm6010_vm1, %v7151_v26, %v7087_v19 }
 0xc09   : > { %v7216_v50 = vsel %vm7184_vm2, %v7183_v49, 0.0 }
 0xc0a   : > { %7248 = vst [vmem:[%s13675_s18 + $0xf8] sm:$0xff] %v7216_v50 }
 0xc0b   : > { %9522 = shalt.err (!%p9519_p3)
}
 0xc0c   : > { %s9523_s20 = scalar_lea.hbm %s13871_s27, 4096  ;;  %s9527_s30 = scalar_lea.hbm %s13933_s12, 8192 }
 0xc0d   : > { %p9524_p4 = scmp.ne.s32.totalorder %s13871_s27, %s9523_s20  ;;  %p9528_p9 = scmp.lt.u32.totalorder %s13871_s27, %s13933_s12 }
 0xc0e   : > { %p9529_p10 = scmp.lt.u32.totalorder %s9527_s30, %s9523_s20  ;;  %p9531_p12 = scmp.lt.u32.totalorder %s9523_s20, %s13871_s27 }
 0xc0f   : > { %p9525_p7 = pnand %p9524_p4, %p9682_p5 }
 0xc10   : > { %p9530_p11 = por %p9529_p10, %p9528_p9 }
 0xc11   : > { %p9526_p8 = pneg %p9525_p7 }
 0xc12   : > { %p9532_p13 = por %p9531_p12, %p9530_p11 }
 0xc14   : > { %p9533_p0 = pnand %p9532_p13, %p9526_p8 }
 0xc16   : > { %9536 = shalt.err (!%p9533_p0)
}
 0xc17   : > { %s9577_s26 = smov 128   ;;  %s9578_s16 = smov 8  }
 0xc18   : > { %8544 = dma.vmem_to_hbm [thread:$0]  (%p9682_p5), %s13873_s15, 4096, %s13871_s27, %s13880_s25, %s9577_s26, %s9577_s26, %s9578_s16  }
 0xc19 PF: > { %p8550_p1 = scmp.ge.s32.totalorder %s9571_s24, 2  ;;  %s7278_s17 = sand.u32 1, %s9559_s21  }
 0xc1a   : > { %s7279_s19 = scalar_lea.sflag [#allocation3], %s7278_s17 }
 0xc1b   : > { %p8547_p2 = pnand %p8550_p1, %p9686_p6 }
 0xc1d   : > { %9554 = dma.done.wait (!%p8547_p2), %s7279_s19, 4096  }
 0xc1e   : > { %9556 = vsyncadd (!%p8547_p2), %s7279_s19, 4294963200  ;;  %s14687_s24 = sld [smem:[#allocation6_spill]]  ;;  %s14688_s20 = sld [smem:[#allocation5_spill]] }
 0xc1f   : > { %s14689_s23 = sld [smem:[#allocation7_spill]]  ;;  %s14690_s21 = smov %s9563_s22 }
 0xc24   : > { %p22_p3 = scmp.ge.s32.totalorder %s14687_s24, 4   ;;  %s14691_s22 = smov %s14688_s20 }
 0xc26   :  { %24 = sbr.rel (!%p22_p3) target bundleno = 3 (0x3), region = 109 }
 0xc2d   :  { %7284 = vsyncpa [#allocation3], 1 }
 0xc2e   :  { %7286 = vsyncpa [#allocation3 + $0x1], 1 }

</bundles_post_ra>
